<compile_context>
chip_gen: v7x
topology: tpu7x:2x2x1
jax: 0.10.0
libtpu: 0.0.40
codegen_flags: <defaults>
</compile_context>

<pallas_src>
import jax
import jax.numpy as jnp
import numpy as np
from jax.experimental import pallas as pl
from jax.experimental.pallas import tpu as pltpu

NUM_CLASSES = 6
HEADS = 8
HEAD_DIM = 16
CHS = HEADS * HEAD_DIM      # 128 = GATConv(., 16, heads=8, concat=True) width
FC1 = 100
NEG = -1e30


def gatnet_kernel(x_ref, adj_ref, nmask_ref,
                  w1_ref, b1_ref, att1_ref, bn1_ref,
                  w2_ref, b2_ref, att2_ref, bn2_ref,
                  fc1w_ref, fc1b_ref, fc2w_ref, fc2b_ref, hmask_ref,
                  out_ref):
    Bt, N, _ = x_ref.shape
    H, C = HEADS, CHS

    adj_pos = adj_ref[...] > 0.0            # (Bt, N, N) edges incl. self loops
    nmask = nmask_ref[...]                  # (Bt, N, 1) valid-node mask
    ones_col = jnp.ones((Bt, N, 1), jnp.float32)

    def gat_layer(xin3, w_ref, b_ref, att_ref):
        # Projection + attention scores for all heads as two lane-dense matmuls
        # with the graph tile folded into the sublane (row) axis.
        cin = xin3.shape[-1]
        xin2 = xin3.reshape(Bt * N, cin)
        xh2 = jnp.dot(xin2, w_ref[...], preferred_element_type=jnp.float32)   # (Bt*N, C)
        s2 = jnp.dot(xh2, att_ref[...], preferred_element_type=jnp.float32)   # (Bt*N, 2H) [src|dst]
        xh = xh2.reshape(Bt, N, C)
        s = s2.reshape(Bt, N, 2 * H)

        acc = None
        for h in range(H):
            ss = s[:, :, h:h + 1]                 # (Bt, N, 1) source score per node j
            sd = s[:, :, H + h:H + h + 1]         # (Bt, N, 1) target score per node i
            # Broadcast the source scores onto the lane (j) axis with a rank-1
            # batched matmul (proven 'bqd,bkd->bqk' pattern, no transposes).
            ss_row = jnp.einsum('bic,bjc->bij', ones_col, ss,
                                preferred_element_type=jnp.float32)           # (Bt, N, N)
            e = sd + ss_row
            e = jnp.where(e > 0.0, e, 0.2 * e)            # LeakyReLU(0.2)
            e = jnp.where(adj_pos, e, NEG)                # mask non-edges
            e = e - jnp.max(e, axis=-1, keepdims=True)
            p = jnp.where(adj_pos, jnp.exp(e), 0.0)
            alpha = p / jnp.sum(p, axis=-1, keepdims=True)  # safe: self loops present
            # Head-h message on head-h's 16 lanes; summing over heads rebuilds
            # the concatenated (N, 128) output without lane-splitting relayouts.
            msg = jnp.einsum('bij,bjc->bic', alpha, xh * hmask_ref[h],
                             preferred_element_type=jnp.float32)              # (Bt, N, C)
            acc = msg if acc is None else acc + msg
        return acc + b_ref[...]

    def elu(v):
        return jnp.where(v > 0.0, v, jnp.exp(jnp.minimum(v, 0.0)) - 1.0)

    # Layer 1: GATConv -> ELU -> BatchNorm (inference affine)
    bn1 = bn1_ref[...]
    z = gat_layer(x_ref[...], w1_ref, b1_ref, att1_ref)
    z = elu(z) * bn1[0:1, :] + bn1[1:2, :]

    # Layer 2
    bn2 = bn2_ref[...]
    z = gat_layer(z, w2_ref, b2_ref, att2_ref)
    z = elu(z) * bn2[0:1, :] + bn2[1:2, :]

    # Masked global mean / max pooling over the node (sublane) axis.
    cnt = jnp.maximum(jnp.sum(nmask, axis=1), 1.0)            # (Bt, 1)
    mean_p = jnp.sum(z * nmask, axis=1) / cnt                 # (Bt, C)
    max_p = jnp.max(jnp.where(nmask > 0.0, z, NEG), axis=1)   # (Bt, C)

    # Head: split-weight fc1 (no [mean|max] concat), ReLU, fc2, log_softmax.
    # All head matmuls have Bt rows, batched over the graph tile.
    h1 = (jnp.dot(mean_p, fc1w_ref[0], preferred_element_type=jnp.float32)
          + jnp.dot(max_p, fc1w_ref[1], preferred_element_type=jnp.float32)
          + fc1b_ref[...])
    h1 = jnp.maximum(h1, 0.0)
    logits = (jnp.dot(h1, fc2w_ref[...], preferred_element_type=jnp.float32)
              + fc2b_ref[...])                                # (Bt, NUM_CLASSES)
    mmax = jnp.max(logits, axis=-1, keepdims=True)
    lse = jnp.log(jnp.sum(jnp.exp(logits - mmax), axis=-1, keepdims=True)) + mmax
    out_ref[...] = (logits - lse).reshape(1, Bt, NUM_CLASSES)


WEIGHT_ORDER = ("w1", "b1", "att1", "bn1", "w2", "b2", "att2", "bn2",
                "fc1w", "fc1b", "fc2w", "fc2b", "hmask")


def gatnet_forward(x, adj, node_mask, params, *, block_b=None):
    B, N, Fin = x.shape
    Bt = B if block_b is None else int(block_b)
    assert B % Bt == 0, "batch must be a multiple of the per-step graph tile"
    nmask3 = node_mask.astype(jnp.float32).reshape(B, N, 1)
    weights = [params[k] for k in WEIGHT_ORDER]

    def const_spec(a):
        r = a.ndim
        return pl.BlockSpec(a.shape, lambda b, _r=r: (0,) * _r)  # resident weights

    in_specs = [
        pl.BlockSpec((Bt, N, Fin), lambda b: (b, 0, 0)),
        pl.BlockSpec((Bt, N, N), lambda b: (b, 0, 0)),
        pl.BlockSpec((Bt, N, 1), lambda b: (b, 0, 0)),
    ] + [const_spec(w) for w in weights]

    out = pl.pallas_call(
        gatnet_kernel,
        out_shape=jax.ShapeDtypeStruct((B // Bt, Bt, NUM_CLASSES), jnp.float32),
        grid_spec=pltpu.PrefetchScalarGridSpec(
            num_scalar_prefetch=0,
            grid=(B // Bt,),
            in_specs=in_specs,
            out_specs=pl.BlockSpec((1, Bt, NUM_CLASSES), lambda b: (b, 0, 0)),
        ),
        compiler_params=pltpu.CompilerParams(
            dimension_semantics=("parallel",)),   # graph tiles are independent
    )(x, adj, nmask3, *weights)
    return out.reshape(B, NUM_CLASSES)


def gatnet_reference(x, adj, node_mask, params):
    """Pure-JAX mirror of the dense GAT forward (for verification)."""
    H, D, C = HEADS, HEAD_DIM, CHS
    adj_pos = adj > 0.0
    nm = node_mask[:, :, None]

    def elu(v):
        return jnp.where(v > 0.0, v, jnp.exp(jnp.minimum(v, 0.0)) - 1.0)

    def gat(xin, w, b, att):
        xh = jnp.einsum('bnf,fc->bnc', xin, w)
        s = jnp.einsum('bnc,ch->bnh', xh, att)           # (B, N, 2H)
        ssrc, sdst = s[..., :H], s[..., H:]
        e = sdst[:, :, None, :] + ssrc[:, None, :, :]    # (B, Ni, Nj, H)
        e = jnp.where(e > 0.0, e, 0.2 * e)
        mask = adj_pos[:, :, :, None]
        e = jnp.where(mask, e, NEG)
        e = e - jnp.max(e, axis=2, keepdims=True)
        p = jnp.where(mask, jnp.exp(e), 0.0)
        alpha = p / jnp.sum(p, axis=2, keepdims=True)
        xh4 = xh.reshape(xh.shape[0], xh.shape[1], H, D)
        out = jnp.einsum('bijh,bjhd->bihd', alpha, xh4)
        return out.reshape(xh.shape[0], xh.shape[1], C) + b

    z = gat(x, params["w1"], params["b1"], params["att1"])
    z = elu(z) * params["bn1"][0:1] + params["bn1"][1:2]
    z = gat(z, params["w2"], params["b2"], params["att2"])
    z = elu(z) * params["bn2"][0:1] + params["bn2"][1:2]

    cnt = jnp.maximum(jnp.sum(node_mask, axis=1, keepdims=True), 1.0)
    mean_p = jnp.sum(z * nm, axis=1) / cnt
    max_p = jnp.max(jnp.where(nm > 0.0, z, NEG), axis=1)
    h = mean_p @ params["fc1w"][0] + max_p @ params["fc1w"][1] + params["fc1b"]
    h = jnp.maximum(h, 0.0)
    logits = h @ params["fc2w"] + params["fc2b"]
    return jax.nn.log_softmax(logits, axis=-1)


def init_params(key, fin):
    """Deterministic synthetic parameters in the kernel's packed layout."""
    ks = iter(jax.random.split(key, 24))

    def rnd(shape, scale=1.0):
        return (jax.random.normal(next(ks), shape, jnp.float32) * scale).astype(jnp.float32)

    def att_map(a_src, a_dst):
        # Per-head attention vectors packed into one (C, 2H) projection so that
        # xh @ att yields [alpha_src | alpha_dst] for all heads in one matmul.
        eye_h = jnp.eye(HEADS, dtype=jnp.float32)
        src = jnp.einsum('hd,hk->hdk', a_src, eye_h).reshape(CHS, HEADS)
        dst = jnp.einsum('hd,hk->hdk', a_dst, eye_h).reshape(CHS, HEADS)
        return jnp.concatenate([src, dst], axis=1)

    def bn_pack(gamma, beta, mean, var):
        scale = gamma / jnp.sqrt(var + 1e-5)      # inference-mode BatchNorm
        return jnp.stack([scale, beta - mean * scale], axis=0)   # (2, C)

    p = {}
    p["w1"] = rnd((fin, CHS), 1.0 / np.sqrt(fin))
    p["b1"] = rnd((1, CHS), 0.1)
    p["att1"] = att_map(rnd((HEADS, HEAD_DIM), 0.3), rnd((HEADS, HEAD_DIM), 0.3))
    p["bn1"] = bn_pack(1.0 + 0.1 * rnd((CHS,)), 0.1 * rnd((CHS,)),
                       0.1 * rnd((CHS,)), jnp.abs(rnd((CHS,))) + 0.5)
    p["w2"] = rnd((CHS, CHS), 1.0 / np.sqrt(CHS))
    p["b2"] = rnd((1, CHS), 0.1)
    p["att2"] = att_map(rnd((HEADS, HEAD_DIM), 0.3), rnd((HEADS, HEAD_DIM), 0.3))
    p["bn2"] = bn_pack(1.0 + 0.1 * rnd((CHS,)), 0.1 * rnd((CHS,)),
                       0.1 * rnd((CHS,)), jnp.abs(rnd((CHS,))) + 0.5)
    p["fc1w"] = jnp.stack([rnd((CHS, FC1), 1.0 / np.sqrt(2 * CHS)),
                           rnd((CHS, FC1), 1.0 / np.sqrt(2 * CHS))], axis=0)
    p["fc1b"] = rnd((1, FC1), 0.1)
    p["fc2w"] = rnd((FC1, NUM_CLASSES), 1.0 / np.sqrt(FC1))
    p["fc2b"] = rnd((1, NUM_CLASSES), 0.1)
    # Static head-selection masks: hmask[h] is 1.0 on head h's 16 output lanes.
    p["hmask"] = jnp.repeat(jnp.eye(HEADS, dtype=jnp.float32),
                            HEAD_DIM, axis=1).reshape(HEADS, 1, CHS)
    return p


if __name__ == "__main__":
    B, N, FIN = 8, 16, 32      # 8 padded graphs, <=16 nodes, 32 input node features
    BT = 4                     # graphs processed per grid step

    key = jax.random.PRNGKey(0)
    kx, ka, kn, kp = jax.random.split(key, 4)

    n_nodes = jax.random.randint(kn, (B,), 10, N + 1)
    node_mask = (jnp.arange(N)[None, :] < n_nodes[:, None]).astype(jnp.float32)  # (B, N)

    x = jax.random.normal(kx, (B, N, FIN), jnp.float32) * node_mask[:, :, None]

    eye = jnp.eye(N, dtype=jnp.float32)[None]
    adj = (jax.random.uniform(ka, (B, N, N)) < 0.3).astype(jnp.float32)
    adj = jnp.maximum(adj, jnp.transpose(adj, (0, 2, 1)))             # undirected
    valid = node_mask[:, :, None] * node_mask[:, None, :]
    adj = adj * valid * (1.0 - eye) + eye                              # + self loops

    params = init_params(kp, FIN)

    out = gatnet_forward(x, adj, node_mask, params, block_b=BT)
    out = jax.block_until_ready(out)

    ref = jax.block_until_ready(gatnet_reference(x, adj, node_mask, params))
    assert out.shape == (B, NUM_CLASSES)
    np.testing.assert_allclose(np.asarray(out), np.asarray(ref), rtol=1e-3, atol=1e-3)

    print("KERNEL_OK")
</pallas_src>

<mosaic_0001>
module attributes {stable_mosaic.version = 11 : i64} {
  func.func @gatnet_kernel(%arg0: i32, %arg1: memref<4x16x32xf32, #tpu.memory_space<vmem>>, %arg2: memref<4x16x16xf32, #tpu.memory_space<vmem>>, %arg3: memref<4x16x1xf32, #tpu.memory_space<vmem>>, %arg4: memref<32x128xf32, #tpu.memory_space<vmem>>, %arg5: memref<1x128xf32, #tpu.memory_space<vmem>>, %arg6: memref<128x16xf32, #tpu.memory_space<vmem>>, %arg7: memref<2x128xf32, #tpu.memory_space<vmem>>, %arg8: memref<128x128xf32, #tpu.memory_space<vmem>>, %arg9: memref<1x128xf32, #tpu.memory_space<vmem>>, %arg10: memref<128x16xf32, #tpu.memory_space<vmem>>, %arg11: memref<2x128xf32, #tpu.memory_space<vmem>>, %arg12: memref<2x128x100xf32, #tpu.memory_space<vmem>>, %arg13: memref<1x100xf32, #tpu.memory_space<vmem>>, %arg14: memref<100x6xf32, #tpu.memory_space<vmem>>, %arg15: memref<1x6xf32, #tpu.memory_space<vmem>>, %arg16: memref<8x1x128xf32, #tpu.memory_space<vmem>>, %arg17: memref<1x4x6xf32, #tpu.memory_space<vmem>>) attributes {dimension_semantics = [#tpu.dimension_semantics<parallel>], iteration_bounds = array<i64: 2>, scalar_prefetch = 0 : i64, scratch_operands = 0 : i64, tpu.core_type = #tpu.core_type<tc>, window_params = [{transform_indices = @transform_0, window_bounds = array<i64: 4, 16, 32>}, {transform_indices = @transform_1, window_bounds = array<i64: 4, 16, 16>}, {transform_indices = @transform_2, window_bounds = array<i64: 4, 16, 1>}, {pipeline_mode = #tpu.pipeline_mode<synchronous>, transform_indices = @transform_3, window_bounds = array<i64: 32, 128>}, {pipeline_mode = #tpu.pipeline_mode<synchronous>, transform_indices = @transform_4, window_bounds = array<i64: 1, 128>}, {pipeline_mode = #tpu.pipeline_mode<synchronous>, transform_indices = @transform_5, window_bounds = array<i64: 128, 16>}, {pipeline_mode = #tpu.pipeline_mode<synchronous>, transform_indices = @transform_6, window_bounds = array<i64: 2, 128>}, {pipeline_mode = #tpu.pipeline_mode<synchronous>, transform_indices = @transform_7, window_bounds = array<i64: 128, 128>}, {pipeline_mode = #tpu.pipeline_mode<synchronous>, transform_indices = @transform_8, window_bounds = array<i64: 1, 128>}, {pipeline_mode = #tpu.pipeline_mode<synchronous>, transform_indices = @transform_9, window_bounds = array<i64: 128, 16>}, {pipeline_mode = #tpu.pipeline_mode<synchronous>, transform_indices = @transform_10, window_bounds = array<i64: 2, 128>}, {pipeline_mode = #tpu.pipeline_mode<synchronous>, transform_indices = @transform_11, window_bounds = array<i64: 2, 128, 100>}, {pipeline_mode = #tpu.pipeline_mode<synchronous>, transform_indices = @transform_12, window_bounds = array<i64: 1, 100>}, {pipeline_mode = #tpu.pipeline_mode<synchronous>, transform_indices = @transform_13, window_bounds = array<i64: 100, 6>}, {pipeline_mode = #tpu.pipeline_mode<synchronous>, transform_indices = @transform_14, window_bounds = array<i64: 1, 6>}, {pipeline_mode = #tpu.pipeline_mode<synchronous>, transform_indices = @transform_15, window_bounds = array<i64: 8, 1, 128>}, {transform_indices = @transform_16, window_bounds = array<i64: 1, 4, 6>}]} {
    %c0 = arith.constant 0 : index
    %c0_0 = arith.constant 0 : index
    %c0_1 = arith.constant 0 : index
    %0 = vector.load %arg2[%c0, %c0_0, %c0_1] : memref<4x16x16xf32, #tpu.memory_space<vmem>>, vector<4x16x16xf32>
    %cst = arith.constant 0.000000e+00 : f32
    %1 = vector.broadcast %cst : f32 to vector<4x16x16xf32>
    %2 = arith.cmpf ogt, %0, %1 : vector<4x16x16xf32>
    %c0_2 = arith.constant 0 : index
    %c0_3 = arith.constant 0 : index
    %c0_4 = arith.constant 0 : index
    %3 = vector.load %arg3[%c0_2, %c0_3, %c0_4] : memref<4x16x1xf32, #tpu.memory_space<vmem>>, vector<4x16x1xf32>
    %cst_5 = arith.constant 1.000000e+00 : f32
    %4 = vector.broadcast %cst_5 : f32 to vector<4x16x1xf32>
    %c0_6 = arith.constant 0 : index
    %c0_7 = arith.constant 0 : index
    %5 = vector.load %arg7[%c0_6, %c0_7] : memref<2x128xf32, #tpu.memory_space<vmem>>, vector<2x128xf32>
    %c0_8 = arith.constant 0 : index
    %c0_9 = arith.constant 0 : index
    %c0_10 = arith.constant 0 : index
    %6 = vector.load %arg1[%c0_8, %c0_9, %c0_10] : memref<4x16x32xf32, #tpu.memory_space<vmem>>, vector<4x16x32xf32>
    %7 = vector.shape_cast %6 : vector<4x16x32xf32> to vector<64x32xf32>
    %c0_11 = arith.constant 0 : index
    %c0_12 = arith.constant 0 : index
    %8 = vector.load %arg4[%c0_11, %c0_12] : memref<32x128xf32, #tpu.memory_space<vmem>>, vector<32x128xf32>
    %cst_13 = arith.constant dense<0.000000e+00> : vector<64x128xf32>
    %9 = tpu.matmul %7, %8, %cst_13 {dimension_numbers = #tpu.dot_dimension_numbers<[1], [0], [0], [1], [0, 0, 1, 1], [], []>} : vector<64x32xf32>, vector<32x128xf32>, vector<64x128xf32> -> vector<64x128xf32>
    %c0_14 = arith.constant 0 : index
    %c0_15 = arith.constant 0 : index
    %10 = vector.load %arg6[%c0_14, %c0_15] : memref<128x16xf32, #tpu.memory_space<vmem>>, vector<128x16xf32>
    %cst_16 = arith.constant dense<0.000000e+00> : vector<64x16xf32>
    %11 = tpu.matmul %9, %10, %cst_16 {dimension_numbers = #tpu.dot_dimension_numbers<[1], [0], [0], [1], [0, 0, 1, 1], [], []>} : vector<64x128xf32>, vector<128x16xf32>, vector<64x16xf32> -> vector<64x16xf32>
    %12 = vector.shape_cast %9 : vector<64x128xf32> to vector<4x16x128xf32>
    %13 = vector.shape_cast %11 : vector<64x16xf32> to vector<4x16x16xf32>
    %14 = vector.extract_strided_slice %13 {offsets = [0, 0, 0], sizes = [4, 16, 1], strides = [1, 1, 1]} : vector<4x16x16xf32> to vector<4x16x1xf32>
    %15 = vector.extract_strided_slice %13 {offsets = [0, 0, 8], sizes = [4, 16, 1], strides = [1, 1, 1]} : vector<4x16x16xf32> to vector<4x16x1xf32>
    "tpu.trace_start"() <{level = 10 : i32, message = "bic,bjc->bij"}> : () -> ()
    %cst_17 = arith.constant dense<0.000000e+00> : vector<4x16x16xf32>
    %16 = tpu.matmul %4, %14, %cst_17 {dimension_numbers = #tpu.dot_dimension_numbers<[2], [2], [1], [1], [0, 0, 0, 1, 1, 1], [0], [0]>} : vector<4x16x1xf32>, vector<4x16x1xf32>, vector<4x16x16xf32> -> vector<4x16x16xf32>
    "tpu.trace_stop"() : () -> ()
    %17 = vector.broadcast %15 : vector<4x16x1xf32> to vector<4x16x16xf32>
    %18 = arith.addf %17, %16 : vector<4x16x16xf32>
    %cst_18 = arith.constant 0.000000e+00 : f32
    %19 = vector.broadcast %cst_18 : f32 to vector<4x16x16xf32>
    %20 = arith.cmpf ogt, %18, %19 : vector<4x16x16xf32>
    %cst_19 = arith.constant 2.000000e-01 : f32
    %21 = vector.broadcast %cst_19 : f32 to vector<4x16x16xf32>
    %22 = arith.mulf %21, %18 : vector<4x16x16xf32>
    %23 = arith.select %20, %18, %22 : vector<4x16x16xi1>, vector<4x16x16xf32>
    %cst_20 = arith.constant -1.000000e+30 : f32
    %24 = vector.broadcast %cst_20 : f32 to vector<4x16x16xf32>
    %25 = arith.select %2, %23, %24 : vector<4x16x16xi1>, vector<4x16x16xf32>
    %cst_21 = arith.constant dense<0xFF800000> : vector<4x16xf32>
    %26 = vector.multi_reduction <maximumf>, %25, %cst_21 [2] : vector<4x16x16xf32> to vector<4x16xf32>
    %27 = vector.shape_cast %26 : vector<4x16xf32> to vector<4x16x1xf32>
    %28 = vector.broadcast %27 : vector<4x16x1xf32> to vector<4x16x16xf32>
    %29 = arith.subf %25, %28 : vector<4x16x16xf32>
    %30 = math.exp %29 : vector<4x16x16xf32>
    %cst_22 = arith.constant 0.000000e+00 : f32
    %31 = vector.broadcast %cst_22 : f32 to vector<4x16x16xf32>
    %32 = arith.select %2, %30, %31 : vector<4x16x16xi1>, vector<4x16x16xf32>
    %cst_23 = arith.constant dense<0.000000e+00> : vector<4x16xf32>
    %33 = vector.multi_reduction <add>, %32, %cst_23 [2] : vector<4x16x16xf32> to vector<4x16xf32>
    %34 = vector.shape_cast %33 : vector<4x16xf32> to vector<4x16x1xf32>
    %35 = vector.broadcast %34 : vector<4x16x1xf32> to vector<4x16x16xf32>
    %36 = arith.divf %32, %35 : vector<4x16x16xf32>
    %c0_24 = arith.constant 0 : index
    %c0_25 = arith.constant 0 : index
    %c0_26 = arith.constant 0 : index
    %37 = vector.load %arg16[%c0_24, %c0_25, %c0_26] : memref<8x1x128xf32, #tpu.memory_space<vmem>>, vector<1x1x128xf32>
    %38 = vector.shape_cast %37 : vector<1x1x128xf32> to vector<1x128xf32>
    %39 = vector.shape_cast %38 : vector<1x128xf32> to vector<1x1x128xf32>
    %40 = vector.broadcast %39 : vector<1x1x128xf32> to vector<4x16x128xf32>
    %41 = arith.mulf %12, %40 : vector<4x16x128xf32>
    "tpu.trace_start"() <{level = 10 : i32, message = "bij,bjc->bic"}> : () -> ()
    %cst_27 = arith.constant dense<0.000000e+00> : vector<4x16x128xf32>
    %42 = tpu.matmul %36, %41, %cst_27 {dimension_numbers = #tpu.dot_dimension_numbers<[2], [1], [1], [2], [0, 0, 0, 1, 1, 2], [0], [0]>} : vector<4x16x16xf32>, vector<4x16x128xf32>, vector<4x16x128xf32> -> vector<4x16x128xf32>
    "tpu.trace_stop"() : () -> ()
    %43 = vector.extract_strided_slice %13 {offsets = [0, 0, 1], sizes = [4, 16, 1], strides = [1, 1, 1]} : vector<4x16x16xf32> to vector<4x16x1xf32>
    %44 = vector.extract_strided_slice %13 {offsets = [0, 0, 9], sizes = [4, 16, 1], strides = [1, 1, 1]} : vector<4x16x16xf32> to vector<4x16x1xf32>
    "tpu.trace_start"() <{level = 10 : i32, message = "bic,bjc->bij"}> : () -> ()
    %cst_28 = arith.constant dense<0.000000e+00> : vector<4x16x16xf32>
    %45 = tpu.matmul %4, %43, %cst_28 {dimension_numbers = #tpu.dot_dimension_numbers<[2], [2], [1], [1], [0, 0, 0, 1, 1, 1], [0], [0]>} : vector<4x16x1xf32>, vector<4x16x1xf32>, vector<4x16x16xf32> -> vector<4x16x16xf32>
    "tpu.trace_stop"() : () -> ()
    %46 = vector.broadcast %44 : vector<4x16x1xf32> to vector<4x16x16xf32>
    %47 = arith.addf %46, %45 : vector<4x16x16xf32>
    %cst_29 = arith.constant 0.000000e+00 : f32
    %48 = vector.broadcast %cst_29 : f32 to vector<4x16x16xf32>
    %49 = arith.cmpf ogt, %47, %48 : vector<4x16x16xf32>
    %cst_30 = arith.constant 2.000000e-01 : f32
    %50 = vector.broadcast %cst_30 : f32 to vector<4x16x16xf32>
    %51 = arith.mulf %50, %47 : vector<4x16x16xf32>
    %52 = arith.select %49, %47, %51 : vector<4x16x16xi1>, vector<4x16x16xf32>
    %cst_31 = arith.constant -1.000000e+30 : f32
    %53 = vector.broadcast %cst_31 : f32 to vector<4x16x16xf32>
    %54 = arith.select %2, %52, %53 : vector<4x16x16xi1>, vector<4x16x16xf32>
    %cst_32 = arith.constant dense<0xFF800000> : vector<4x16xf32>
    %55 = vector.multi_reduction <maximumf>, %54, %cst_32 [2] : vector<4x16x16xf32> to vector<4x16xf32>
    %56 = vector.shape_cast %55 : vector<4x16xf32> to vector<4x16x1xf32>
    %57 = vector.broadcast %56 : vector<4x16x1xf32> to vector<4x16x16xf32>
    %58 = arith.subf %54, %57 : vector<4x16x16xf32>
    %59 = math.exp %58 : vector<4x16x16xf32>
    %cst_33 = arith.constant 0.000000e+00 : f32
    %60 = vector.broadcast %cst_33 : f32 to vector<4x16x16xf32>
    %61 = arith.select %2, %59, %60 : vector<4x16x16xi1>, vector<4x16x16xf32>
    %cst_34 = arith.constant dense<0.000000e+00> : vector<4x16xf32>
    %62 = vector.multi_reduction <add>, %61, %cst_34 [2] : vector<4x16x16xf32> to vector<4x16xf32>
    %63 = vector.shape_cast %62 : vector<4x16xf32> to vector<4x16x1xf32>
    %64 = vector.broadcast %63 : vector<4x16x1xf32> to vector<4x16x16xf32>
    %65 = arith.divf %61, %64 : vector<4x16x16xf32>
    %c1 = arith.constant 1 : index
    %c0_35 = arith.constant 0 : index
    %c0_36 = arith.constant 0 : index
    %66 = vector.load %arg16[%c1, %c0_35, %c0_36] : memref<8x1x128xf32, #tpu.memory_space<vmem>>, vector<1x1x128xf32>
    %67 = vector.shape_cast %66 : vector<1x1x128xf32> to vector<1x128xf32>
    %68 = vector.shape_cast %67 : vector<1x128xf32> to vector<1x1x128xf32>
    %69 = vector.broadcast %68 : vector<1x1x128xf32> to vector<4x16x128xf32>
    %70 = arith.mulf %12, %69 : vector<4x16x128xf32>
    "tpu.trace_start"() <{level = 10 : i32, message = "bij,bjc->bic"}> : () -> ()
    %cst_37 = arith.constant dense<0.000000e+00> : vector<4x16x128xf32>
    %71 = tpu.matmul %65, %70, %cst_37 {dimension_numbers = #tpu.dot_dimension_numbers<[2], [1], [1], [2], [0, 0, 0, 1, 1, 2], [0], [0]>} : vector<4x16x16xf32>, vector<4x16x128xf32>, vector<4x16x128xf32> -> vector<4x16x128xf32>
    "tpu.trace_stop"() : () -> ()
    %72 = arith.addf %42, %71 : vector<4x16x128xf32>
    %73 = vector.extract_strided_slice %13 {offsets = [0, 0, 2], sizes = [4, 16, 1], strides = [1, 1, 1]} : vector<4x16x16xf32> to vector<4x16x1xf32>
    %74 = vector.extract_strided_slice %13 {offsets = [0, 0, 10], sizes = [4, 16, 1], strides = [1, 1, 1]} : vector<4x16x16xf32> to vector<4x16x1xf32>
    "tpu.trace_start"() <{level = 10 : i32, message = "bic,bjc->bij"}> : () -> ()
    %cst_38 = arith.constant dense<0.000000e+00> : vector<4x16x16xf32>
    %75 = tpu.matmul %4, %73, %cst_38 {dimension_numbers = #tpu.dot_dimension_numbers<[2], [2], [1], [1], [0, 0, 0, 1, 1, 1], [0], [0]>} : vector<4x16x1xf32>, vector<4x16x1xf32>, vector<4x16x16xf32> -> vector<4x16x16xf32>
    "tpu.trace_stop"() : () -> ()
    %76 = vector.broadcast %74 : vector<4x16x1xf32> to vector<4x16x16xf32>
    %77 = arith.addf %76, %75 : vector<4x16x16xf32>
    %cst_39 = arith.constant 0.000000e+00 : f32
    %78 = vector.broadcast %cst_39 : f32 to vector<4x16x16xf32>
    %79 = arith.cmpf ogt, %77, %78 : vector<4x16x16xf32>
    %cst_40 = arith.constant 2.000000e-01 : f32
    %80 = vector.broadcast %cst_40 : f32 to vector<4x16x16xf32>
    %81 = arith.mulf %80, %77 : vector<4x16x16xf32>
    %82 = arith.select %79, %77, %81 : vector<4x16x16xi1>, vector<4x16x16xf32>
    %cst_41 = arith.constant -1.000000e+30 : f32
    %83 = vector.broadcast %cst_41 : f32 to vector<4x16x16xf32>
    %84 = arith.select %2, %82, %83 : vector<4x16x16xi1>, vector<4x16x16xf32>
    %cst_42 = arith.constant dense<0xFF800000> : vector<4x16xf32>
    %85 = vector.multi_reduction <maximumf>, %84, %cst_42 [2] : vector<4x16x16xf32> to vector<4x16xf32>
    %86 = vector.shape_cast %85 : vector<4x16xf32> to vector<4x16x1xf32>
    %87 = vector.broadcast %86 : vector<4x16x1xf32> to vector<4x16x16xf32>
    %88 = arith.subf %84, %87 : vector<4x16x16xf32>
    %89 = math.exp %88 : vector<4x16x16xf32>
    %cst_43 = arith.constant 0.000000e+00 : f32
    %90 = vector.broadcast %cst_43 : f32 to vector<4x16x16xf32>
    %91 = arith.select %2, %89, %90 : vector<4x16x16xi1>, vector<4x16x16xf32>
    %cst_44 = arith.constant dense<0.000000e+00> : vector<4x16xf32>
    %92 = vector.multi_reduction <add>, %91, %cst_44 [2] : vector<4x16x16xf32> to vector<4x16xf32>
    %93 = vector.shape_cast %92 : vector<4x16xf32> to vector<4x16x1xf32>
    %94 = vector.broadcast %93 : vector<4x16x1xf32> to vector<4x16x16xf32>
    %95 = arith.divf %91, %94 : vector<4x16x16xf32>
    %c2 = arith.constant 2 : index
    %c0_45 = arith.constant 0 : index
    %c0_46 = arith.constant 0 : index
    %96 = vector.load %arg16[%c2, %c0_45, %c0_46] : memref<8x1x128xf32, #tpu.memory_space<vmem>>, vector<1x1x128xf32>
    %97 = vector.shape_cast %96 : vector<1x1x128xf32> to vector<1x128xf32>
    %98 = vector.shape_cast %97 : vector<1x128xf32> to vector<1x1x128xf32>
    %99 = vector.broadcast %98 : vector<1x1x128xf32> to vector<4x16x128xf32>
    %100 = arith.mulf %12, %99 : vector<4x16x128xf32>
    "tpu.trace_start"() <{level = 10 : i32, message = "bij,bjc->bic"}> : () -> ()
    %cst_47 = arith.constant dense<0.000000e+00> : vector<4x16x128xf32>
    %101 = tpu.matmul %95, %100, %cst_47 {dimension_numbers = #tpu.dot_dimension_numbers<[2], [1], [1], [2], [0, 0, 0, 1, 1, 2], [0], [0]>} : vector<4x16x16xf32>, vector<4x16x128xf32>, vector<4x16x128xf32> -> vector<4x16x128xf32>
    "tpu.trace_stop"() : () -> ()
    %102 = arith.addf %72, %101 : vector<4x16x128xf32>
    %103 = vector.extract_strided_slice %13 {offsets = [0, 0, 3], sizes = [4, 16, 1], strides = [1, 1, 1]} : vector<4x16x16xf32> to vector<4x16x1xf32>
    %104 = vector.extract_strided_slice %13 {offsets = [0, 0, 11], sizes = [4, 16, 1], strides = [1, 1, 1]} : vector<4x16x16xf32> to vector<4x16x1xf32>
    "tpu.trace_start"() <{level = 10 : i32, message = "bic,bjc->bij"}> : () -> ()
    %cst_48 = arith.constant dense<0.000000e+00> : vector<4x16x16xf32>
    %105 = tpu.matmul %4, %103, %cst_48 {dimension_numbers = #tpu.dot_dimension_numbers<[2], [2], [1], [1], [0, 0, 0, 1, 1, 1], [0], [0]>} : vector<4x16x1xf32>, vector<4x16x1xf32>, vector<4x16x16xf32> -> vector<4x16x16xf32>
    "tpu.trace_stop"() : () -> ()
    %106 = vector.broadcast %104 : vector<4x16x1xf32> to vector<4x16x16xf32>
    %107 = arith.addf %106, %105 : vector<4x16x16xf32>
    %cst_49 = arith.constant 0.000000e+00 : f32
    %108 = vector.broadcast %cst_49 : f32 to vector<4x16x16xf32>
    %109 = arith.cmpf ogt, %107, %108 : vector<4x16x16xf32>
    %cst_50 = arith.constant 2.000000e-01 : f32
    %110 = vector.broadcast %cst_50 : f32 to vector<4x16x16xf32>
    %111 = arith.mulf %110, %107 : vector<4x16x16xf32>
    %112 = arith.select %109, %107, %111 : vector<4x16x16xi1>, vector<4x16x16xf32>
    %cst_51 = arith.constant -1.000000e+30 : f32
    %113 = vector.broadcast %cst_51 : f32 to vector<4x16x16xf32>
    %114 = arith.select %2, %112, %113 : vector<4x16x16xi1>, vector<4x16x16xf32>
    %cst_52 = arith.constant dense<0xFF800000> : vector<4x16xf32>
    %115 = vector.multi_reduction <maximumf>, %114, %cst_52 [2] : vector<4x16x16xf32> to vector<4x16xf32>
    %116 = vector.shape_cast %115 : vector<4x16xf32> to vector<4x16x1xf32>
    %117 = vector.broadcast %116 : vector<4x16x1xf32> to vector<4x16x16xf32>
    %118 = arith.subf %114, %117 : vector<4x16x16xf32>
    %119 = math.exp %118 : vector<4x16x16xf32>
    %cst_53 = arith.constant 0.000000e+00 : f32
    %120 = vector.broadcast %cst_53 : f32 to vector<4x16x16xf32>
    %121 = arith.select %2, %119, %120 : vector<4x16x16xi1>, vector<4x16x16xf32>
    %cst_54 = arith.constant dense<0.000000e+00> : vector<4x16xf32>
    %122 = vector.multi_reduction <add>, %121, %cst_54 [2] : vector<4x16x16xf32> to vector<4x16xf32>
    %123 = vector.shape_cast %122 : vector<4x16xf32> to vector<4x16x1xf32>
    %124 = vector.broadcast %123 : vector<4x16x1xf32> to vector<4x16x16xf32>
    %125 = arith.divf %121, %124 : vector<4x16x16xf32>
    %c3 = arith.constant 3 : index
    %c0_55 = arith.constant 0 : index
    %c0_56 = arith.constant 0 : index
    %126 = vector.load %arg16[%c3, %c0_55, %c0_56] : memref<8x1x128xf32, #tpu.memory_space<vmem>>, vector<1x1x128xf32>
    %127 = vector.shape_cast %126 : vector<1x1x128xf32> to vector<1x128xf32>
    %128 = vector.shape_cast %127 : vector<1x128xf32> to vector<1x1x128xf32>
    %129 = vector.broadcast %128 : vector<1x1x128xf32> to vector<4x16x128xf32>
    %130 = arith.mulf %12, %129 : vector<4x16x128xf32>
    "tpu.trace_start"() <{level = 10 : i32, message = "bij,bjc->bic"}> : () -> ()
    %cst_57 = arith.constant dense<0.000000e+00> : vector<4x16x128xf32>
    %131 = tpu.matmul %125, %130, %cst_57 {dimension_numbers = #tpu.dot_dimension_numbers<[2], [1], [1], [2], [0, 0, 0, 1, 1, 2], [0], [0]>} : vector<4x16x16xf32>, vector<4x16x128xf32>, vector<4x16x128xf32> -> vector<4x16x128xf32>
    "tpu.trace_stop"() : () -> ()
    %132 = arith.addf %102, %131 : vector<4x16x128xf32>
    %133 = vector.extract_strided_slice %13 {offsets = [0, 0, 4], sizes = [4, 16, 1], strides = [1, 1, 1]} : vector<4x16x16xf32> to vector<4x16x1xf32>
    %134 = vector.extract_strided_slice %13 {offsets = [0, 0, 12], sizes = [4, 16, 1], strides = [1, 1, 1]} : vector<4x16x16xf32> to vector<4x16x1xf32>
    "tpu.trace_start"() <{level = 10 : i32, message = "bic,bjc->bij"}> : () -> ()
    %cst_58 = arith.constant dense<0.000000e+00> : vector<4x16x16xf32>
    %135 = tpu.matmul %4, %133, %cst_58 {dimension_numbers = #tpu.dot_dimension_numbers<[2], [2], [1], [1], [0, 0, 0, 1, 1, 1], [0], [0]>} : vector<4x16x1xf32>, vector<4x16x1xf32>, vector<4x16x16xf32> -> vector<4x16x16xf32>
    "tpu.trace_stop"() : () -> ()
    %136 = vector.broadcast %134 : vector<4x16x1xf32> to vector<4x16x16xf32>
    %137 = arith.addf %136, %135 : vector<4x16x16xf32>
    %cst_59 = arith.constant 0.000000e+00 : f32
    %138 = vector.broadcast %cst_59 : f32 to vector<4x16x16xf32>
    %139 = arith.cmpf ogt, %137, %138 : vector<4x16x16xf32>
    %cst_60 = arith.constant 2.000000e-01 : f32
    %140 = vector.broadcast %cst_60 : f32 to vector<4x16x16xf32>
    %141 = arith.mulf %140, %137 : vector<4x16x16xf32>
    %142 = arith.select %139, %137, %141 : vector<4x16x16xi1>, vector<4x16x16xf32>
    %cst_61 = arith.constant -1.000000e+30 : f32
    %143 = vector.broadcast %cst_61 : f32 to vector<4x16x16xf32>
    %144 = arith.select %2, %142, %143 : vector<4x16x16xi1>, vector<4x16x16xf32>
    %cst_62 = arith.constant dense<0xFF800000> : vector<4x16xf32>
    %145 = vector.multi_reduction <maximumf>, %144, %cst_62 [2] : vector<4x16x16xf32> to vector<4x16xf32>
    %146 = vector.shape_cast %145 : vector<4x16xf32> to vector<4x16x1xf32>
    %147 = vector.broadcast %146 : vector<4x16x1xf32> to vector<4x16x16xf32>
    %148 = arith.subf %144, %147 : vector<4x16x16xf32>
    %149 = math.exp %148 : vector<4x16x16xf32>
    %cst_63 = arith.constant 0.000000e+00 : f32
    %150 = vector.broadcast %cst_63 : f32 to vector<4x16x16xf32>
    %151 = arith.select %2, %149, %150 : vector<4x16x16xi1>, vector<4x16x16xf32>
    %cst_64 = arith.constant dense<0.000000e+00> : vector<4x16xf32>
    %152 = vector.multi_reduction <add>, %151, %cst_64 [2] : vector<4x16x16xf32> to vector<4x16xf32>
    %153 = vector.shape_cast %152 : vector<4x16xf32> to vector<4x16x1xf32>
    %154 = vector.broadcast %153 : vector<4x16x1xf32> to vector<4x16x16xf32>
    %155 = arith.divf %151, %154 : vector<4x16x16xf32>
    %c4 = arith.constant 4 : index
    %c0_65 = arith.constant 0 : index
    %c0_66 = arith.constant 0 : index
    %156 = vector.load %arg16[%c4, %c0_65, %c0_66] : memref<8x1x128xf32, #tpu.memory_space<vmem>>, vector<1x1x128xf32>
    %157 = vector.shape_cast %156 : vector<1x1x128xf32> to vector<1x128xf32>
    %158 = vector.shape_cast %157 : vector<1x128xf32> to vector<1x1x128xf32>
    %159 = vector.broadcast %158 : vector<1x1x128xf32> to vector<4x16x128xf32>
    %160 = arith.mulf %12, %159 : vector<4x16x128xf32>
    "tpu.trace_start"() <{level = 10 : i32, message = "bij,bjc->bic"}> : () -> ()
    %cst_67 = arith.constant dense<0.000000e+00> : vector<4x16x128xf32>
    %161 = tpu.matmul %155, %160, %cst_67 {dimension_numbers = #tpu.dot_dimension_numbers<[2], [1], [1], [2], [0, 0, 0, 1, 1, 2], [0], [0]>} : vector<4x16x16xf32>, vector<4x16x128xf32>, vector<4x16x128xf32> -> vector<4x16x128xf32>
    "tpu.trace_stop"() : () -> ()
    %162 = arith.addf %132, %161 : vector<4x16x128xf32>
    %163 = vector.extract_strided_slice %13 {offsets = [0, 0, 5], sizes = [4, 16, 1], strides = [1, 1, 1]} : vector<4x16x16xf32> to vector<4x16x1xf32>
    %164 = vector.extract_strided_slice %13 {offsets = [0, 0, 13], sizes = [4, 16, 1], strides = [1, 1, 1]} : vector<4x16x16xf32> to vector<4x16x1xf32>
    "tpu.trace_start"() <{level = 10 : i32, message = "bic,bjc->bij"}> : () -> ()
    %cst_68 = arith.constant dense<0.000000e+00> : vector<4x16x16xf32>
    %165 = tpu.matmul %4, %163, %cst_68 {dimension_numbers = #tpu.dot_dimension_numbers<[2], [2], [1], [1], [0, 0, 0, 1, 1, 1], [0], [0]>} : vector<4x16x1xf32>, vector<4x16x1xf32>, vector<4x16x16xf32> -> vector<4x16x16xf32>
    "tpu.trace_stop"() : () -> ()
    %166 = vector.broadcast %164 : vector<4x16x1xf32> to vector<4x16x16xf32>
    %167 = arith.addf %166, %165 : vector<4x16x16xf32>
    %cst_69 = arith.constant 0.000000e+00 : f32
    %168 = vector.broadcast %cst_69 : f32 to vector<4x16x16xf32>
    %169 = arith.cmpf ogt, %167, %168 : vector<4x16x16xf32>
    %cst_70 = arith.constant 2.000000e-01 : f32
    %170 = vector.broadcast %cst_70 : f32 to vector<4x16x16xf32>
    %171 = arith.mulf %170, %167 : vector<4x16x16xf32>
    %172 = arith.select %169, %167, %171 : vector<4x16x16xi1>, vector<4x16x16xf32>
    %cst_71 = arith.constant -1.000000e+30 : f32
    %173 = vector.broadcast %cst_71 : f32 to vector<4x16x16xf32>
    %174 = arith.select %2, %172, %173 : vector<4x16x16xi1>, vector<4x16x16xf32>
    %cst_72 = arith.constant dense<0xFF800000> : vector<4x16xf32>
    %175 = vector.multi_reduction <maximumf>, %174, %cst_72 [2] : vector<4x16x16xf32> to vector<4x16xf32>
    %176 = vector.shape_cast %175 : vector<4x16xf32> to vector<4x16x1xf32>
    %177 = vector.broadcast %176 : vector<4x16x1xf32> to vector<4x16x16xf32>
    %178 = arith.subf %174, %177 : vector<4x16x16xf32>
    %179 = math.exp %178 : vector<4x16x16xf32>
    %cst_73 = arith.constant 0.000000e+00 : f32
    %180 = vector.broadcast %cst_73 : f32 to vector<4x16x16xf32>
    %181 = arith.select %2, %179, %180 : vector<4x16x16xi1>, vector<4x16x16xf32>
    %cst_74 = arith.constant dense<0.000000e+00> : vector<4x16xf32>
    %182 = vector.multi_reduction <add>, %181, %cst_74 [2] : vector<4x16x16xf32> to vector<4x16xf32>
    %183 = vector.shape_cast %182 : vector<4x16xf32> to vector<4x16x1xf32>
    %184 = vector.broadcast %183 : vector<4x16x1xf32> to vector<4x16x16xf32>
    %185 = arith.divf %181, %184 : vector<4x16x16xf32>
    %c5 = arith.constant 5 : index
    %c0_75 = arith.constant 0 : index
    %c0_76 = arith.constant 0 : index
    %186 = vector.load %arg16[%c5, %c0_75, %c0_76] : memref<8x1x128xf32, #tpu.memory_space<vmem>>, vector<1x1x128xf32>
    %187 = vector.shape_cast %186 : vector<1x1x128xf32> to vector<1x128xf32>
    %188 = vector.shape_cast %187 : vector<1x128xf32> to vector<1x1x128xf32>
    %189 = vector.broadcast %188 : vector<1x1x128xf32> to vector<4x16x128xf32>
    %190 = arith.mulf %12, %189 : vector<4x16x128xf32>
    "tpu.trace_start"() <{level = 10 : i32, message = "bij,bjc->bic"}> : () -> ()
    %cst_77 = arith.constant dense<0.000000e+00> : vector<4x16x128xf32>
    %191 = tpu.matmul %185, %190, %cst_77 {dimension_numbers = #tpu.dot_dimension_numbers<[2], [1], [1], [2], [0, 0, 0, 1, 1, 2], [0], [0]>} : vector<4x16x16xf32>, vector<4x16x128xf32>, vector<4x16x128xf32> -> vector<4x16x128xf32>
    "tpu.trace_stop"() : () -> ()
    %192 = arith.addf %162, %191 : vector<4x16x128xf32>
    %193 = vector.extract_strided_slice %13 {offsets = [0, 0, 6], sizes = [4, 16, 1], strides = [1, 1, 1]} : vector<4x16x16xf32> to vector<4x16x1xf32>
    %194 = vector.extract_strided_slice %13 {offsets = [0, 0, 14], sizes = [4, 16, 1], strides = [1, 1, 1]} : vector<4x16x16xf32> to vector<4x16x1xf32>
    "tpu.trace_start"() <{level = 10 : i32, message = "bic,bjc->bij"}> : () -> ()
    %cst_78 = arith.constant dense<0.000000e+00> : vector<4x16x16xf32>
    %195 = tpu.matmul %4, %193, %cst_78 {dimension_numbers = #tpu.dot_dimension_numbers<[2], [2], [1], [1], [0, 0, 0, 1, 1, 1], [0], [0]>} : vector<4x16x1xf32>, vector<4x16x1xf32>, vector<4x16x16xf32> -> vector<4x16x16xf32>
    "tpu.trace_stop"() : () -> ()
    %196 = vector.broadcast %194 : vector<4x16x1xf32> to vector<4x16x16xf32>
    %197 = arith.addf %196, %195 : vector<4x16x16xf32>
    %cst_79 = arith.constant 0.000000e+00 : f32
    %198 = vector.broadcast %cst_79 : f32 to vector<4x16x16xf32>
    %199 = arith.cmpf ogt, %197, %198 : vector<4x16x16xf32>
    %cst_80 = arith.constant 2.000000e-01 : f32
    %200 = vector.broadcast %cst_80 : f32 to vector<4x16x16xf32>
    %201 = arith.mulf %200, %197 : vector<4x16x16xf32>
    %202 = arith.select %199, %197, %201 : vector<4x16x16xi1>, vector<4x16x16xf32>
    %cst_81 = arith.constant -1.000000e+30 : f32
    %203 = vector.broadcast %cst_81 : f32 to vector<4x16x16xf32>
    %204 = arith.select %2, %202, %203 : vector<4x16x16xi1>, vector<4x16x16xf32>
    %cst_82 = arith.constant dense<0xFF800000> : vector<4x16xf32>
    %205 = vector.multi_reduction <maximumf>, %204, %cst_82 [2] : vector<4x16x16xf32> to vector<4x16xf32>
    %206 = vector.shape_cast %205 : vector<4x16xf32> to vector<4x16x1xf32>
    %207 = vector.broadcast %206 : vector<4x16x1xf32> to vector<4x16x16xf32>
    %208 = arith.subf %204, %207 : vector<4x16x16xf32>
    %209 = math.exp %208 : vector<4x16x16xf32>
    %cst_83 = arith.constant 0.000000e+00 : f32
    %210 = vector.broadcast %cst_83 : f32 to vector<4x16x16xf32>
    %211 = arith.select %2, %209, %210 : vector<4x16x16xi1>, vector<4x16x16xf32>
    %cst_84 = arith.constant dense<0.000000e+00> : vector<4x16xf32>
    %212 = vector.multi_reduction <add>, %211, %cst_84 [2] : vector<4x16x16xf32> to vector<4x16xf32>
    %213 = vector.shape_cast %212 : vector<4x16xf32> to vector<4x16x1xf32>
    %214 = vector.broadcast %213 : vector<4x16x1xf32> to vector<4x16x16xf32>
    %215 = arith.divf %211, %214 : vector<4x16x16xf32>
    %c6 = arith.constant 6 : index
    %c0_85 = arith.constant 0 : index
    %c0_86 = arith.constant 0 : index
    %216 = vector.load %arg16[%c6, %c0_85, %c0_86] : memref<8x1x128xf32, #tpu.memory_space<vmem>>, vector<1x1x128xf32>
    %217 = vector.shape_cast %216 : vector<1x1x128xf32> to vector<1x128xf32>
    %218 = vector.shape_cast %217 : vector<1x128xf32> to vector<1x1x128xf32>
    %219 = vector.broadcast %218 : vector<1x1x128xf32> to vector<4x16x128xf32>
    %220 = arith.mulf %12, %219 : vector<4x16x128xf32>
    "tpu.trace_start"() <{level = 10 : i32, message = "bij,bjc->bic"}> : () -> ()
    %cst_87 = arith.constant dense<0.000000e+00> : vector<4x16x128xf32>
    %221 = tpu.matmul %215, %220, %cst_87 {dimension_numbers = #tpu.dot_dimension_numbers<[2], [1], [1], [2], [0, 0, 0, 1, 1, 2], [0], [0]>} : vector<4x16x16xf32>, vector<4x16x128xf32>, vector<4x16x128xf32> -> vector<4x16x128xf32>
    "tpu.trace_stop"() : () -> ()
    %222 = arith.addf %192, %221 : vector<4x16x128xf32>
    %223 = vector.extract_strided_slice %13 {offsets = [0, 0, 7], sizes = [4, 16, 1], strides = [1, 1, 1]} : vector<4x16x16xf32> to vector<4x16x1xf32>
    %224 = vector.extract_strided_slice %13 {offsets = [0, 0, 15], sizes = [4, 16, 1], strides = [1, 1, 1]} : vector<4x16x16xf32> to vector<4x16x1xf32>
    "tpu.trace_start"() <{level = 10 : i32, message = "bic,bjc->bij"}> : () -> ()
    %cst_88 = arith.constant dense<0.000000e+00> : vector<4x16x16xf32>
    %225 = tpu.matmul %4, %223, %cst_88 {dimension_numbers = #tpu.dot_dimension_numbers<[2], [2], [1], [1], [0, 0, 0, 1, 1, 1], [0], [0]>} : vector<4x16x1xf32>, vector<4x16x1xf32>, vector<4x16x16xf32> -> vector<4x16x16xf32>
    "tpu.trace_stop"() : () -> ()
    %226 = vector.broadcast %224 : vector<4x16x1xf32> to vector<4x16x16xf32>
    %227 = arith.addf %226, %225 : vector<4x16x16xf32>
    %cst_89 = arith.constant 0.000000e+00 : f32
    %228 = vector.broadcast %cst_89 : f32 to vector<4x16x16xf32>
    %229 = arith.cmpf ogt, %227, %228 : vector<4x16x16xf32>
    %cst_90 = arith.constant 2.000000e-01 : f32
    %230 = vector.broadcast %cst_90 : f32 to vector<4x16x16xf32>
    %231 = arith.mulf %230, %227 : vector<4x16x16xf32>
    %232 = arith.select %229, %227, %231 : vector<4x16x16xi1>, vector<4x16x16xf32>
    %cst_91 = arith.constant -1.000000e+30 : f32
    %233 = vector.broadcast %cst_91 : f32 to vector<4x16x16xf32>
    %234 = arith.select %2, %232, %233 : vector<4x16x16xi1>, vector<4x16x16xf32>
    %cst_92 = arith.constant dense<0xFF800000> : vector<4x16xf32>
    %235 = vector.multi_reduction <maximumf>, %234, %cst_92 [2] : vector<4x16x16xf32> to vector<4x16xf32>
    %236 = vector.shape_cast %235 : vector<4x16xf32> to vector<4x16x1xf32>
    %237 = vector.broadcast %236 : vector<4x16x1xf32> to vector<4x16x16xf32>
    %238 = arith.subf %234, %237 : vector<4x16x16xf32>
    %239 = math.exp %238 : vector<4x16x16xf32>
    %cst_93 = arith.constant 0.000000e+00 : f32
    %240 = vector.broadcast %cst_93 : f32 to vector<4x16x16xf32>
    %241 = arith.select %2, %239, %240 : vector<4x16x16xi1>, vector<4x16x16xf32>
    %cst_94 = arith.constant dense<0.000000e+00> : vector<4x16xf32>
    %242 = vector.multi_reduction <add>, %241, %cst_94 [2] : vector<4x16x16xf32> to vector<4x16xf32>
    %243 = vector.shape_cast %242 : vector<4x16xf32> to vector<4x16x1xf32>
    %244 = vector.broadcast %243 : vector<4x16x1xf32> to vector<4x16x16xf32>
    %245 = arith.divf %241, %244 : vector<4x16x16xf32>
    %c7 = arith.constant 7 : index
    %c0_95 = arith.constant 0 : index
    %c0_96 = arith.constant 0 : index
    %246 = vector.load %arg16[%c7, %c0_95, %c0_96] : memref<8x1x128xf32, #tpu.memory_space<vmem>>, vector<1x1x128xf32>
    %247 = vector.shape_cast %246 : vector<1x1x128xf32> to vector<1x128xf32>
    %248 = vector.shape_cast %247 : vector<1x128xf32> to vector<1x1x128xf32>
    %249 = vector.broadcast %248 : vector<1x1x128xf32> to vector<4x16x128xf32>
    %250 = arith.mulf %12, %249 : vector<4x16x128xf32>
    "tpu.trace_start"() <{level = 10 : i32, message = "bij,bjc->bic"}> : () -> ()
    %cst_97 = arith.constant dense<0.000000e+00> : vector<4x16x128xf32>
    %251 = tpu.matmul %245, %250, %cst_97 {dimension_numbers = #tpu.dot_dimension_numbers<[2], [1], [1], [2], [0, 0, 0, 1, 1, 2], [0], [0]>} : vector<4x16x16xf32>, vector<4x16x128xf32>, vector<4x16x128xf32> -> vector<4x16x128xf32>
    "tpu.trace_stop"() : () -> ()
    %252 = arith.addf %222, %251 : vector<4x16x128xf32>
    %c0_98 = arith.constant 0 : index
    %c0_99 = arith.constant 0 : index
    %253 = vector.load %arg5[%c0_98, %c0_99] : memref<1x128xf32, #tpu.memory_space<vmem>>, vector<1x128xf32>
    %254 = vector.shape_cast %253 : vector<1x128xf32> to vector<1x1x128xf32>
    %255 = vector.broadcast %254 : vector<1x1x128xf32> to vector<4x16x128xf32>
    %256 = arith.addf %252, %255 : vector<4x16x128xf32>
    %cst_100 = arith.constant 0.000000e+00 : f32
    %257 = vector.broadcast %cst_100 : f32 to vector<4x16x128xf32>
    %258 = arith.cmpf ogt, %256, %257 : vector<4x16x128xf32>
    %cst_101 = arith.constant 0.000000e+00 : f32
    %259 = vector.broadcast %cst_101 : f32 to vector<4x16x128xf32>
    %260 = arith.minimumf %256, %259 : vector<4x16x128xf32>
    %261 = math.exp %260 : vector<4x16x128xf32>
    %cst_102 = arith.constant 1.000000e+00 : f32
    %262 = vector.broadcast %cst_102 : f32 to vector<4x16x128xf32>
    %263 = arith.subf %261, %262 : vector<4x16x128xf32>
    %264 = arith.select %258, %256, %263 : vector<4x16x128xi1>, vector<4x16x128xf32>
    %265 = vector.extract_strided_slice %5 {offsets = [0, 0], sizes = [1, 128], strides = [1, 1]} : vector<2x128xf32> to vector<1x128xf32>
    %266 = vector.shape_cast %265 : vector<1x128xf32> to vector<1x1x128xf32>
    %267 = vector.broadcast %266 : vector<1x1x128xf32> to vector<4x16x128xf32>
    %268 = arith.mulf %264, %267 : vector<4x16x128xf32>
    %269 = vector.extract_strided_slice %5 {offsets = [1, 0], sizes = [1, 128], strides = [1, 1]} : vector<2x128xf32> to vector<1x128xf32>
    %270 = vector.shape_cast %269 : vector<1x128xf32> to vector<1x1x128xf32>
    %271 = vector.broadcast %270 : vector<1x1x128xf32> to vector<4x16x128xf32>
    %272 = arith.addf %268, %271 : vector<4x16x128xf32>
    %c0_103 = arith.constant 0 : index
    %c0_104 = arith.constant 0 : index
    %273 = vector.load %arg11[%c0_103, %c0_104] : memref<2x128xf32, #tpu.memory_space<vmem>>, vector<2x128xf32>
    %274 = vector.shape_cast %272 : vector<4x16x128xf32> to vector<64x128xf32>
    %c0_105 = arith.constant 0 : index
    %c0_106 = arith.constant 0 : index
    %275 = vector.load %arg8[%c0_105, %c0_106] : memref<128x128xf32, #tpu.memory_space<vmem>>, vector<128x128xf32>
    %cst_107 = arith.constant dense<0.000000e+00> : vector<64x128xf32>
    %276 = tpu.matmul %274, %275, %cst_107 {dimension_numbers = #tpu.dot_dimension_numbers<[1], [0], [0], [1], [0, 0, 1, 1], [], []>} : vector<64x128xf32>, vector<128x128xf32>, vector<64x128xf32> -> vector<64x128xf32>
    %c0_108 = arith.constant 0 : index
    %c0_109 = arith.constant 0 : index
    %277 = vector.load %arg10[%c0_108, %c0_109] : memref<128x16xf32, #tpu.memory_space<vmem>>, vector<128x16xf32>
    %cst_110 = arith.constant dense<0.000000e+00> : vector<64x16xf32>
    %278 = tpu.matmul %276, %277, %cst_110 {dimension_numbers = #tpu.dot_dimension_numbers<[1], [0], [0], [1], [0, 0, 1, 1], [], []>} : vector<64x128xf32>, vector<128x16xf32>, vector<64x16xf32> -> vector<64x16xf32>
    %279 = vector.shape_cast %276 : vector<64x128xf32> to vector<4x16x128xf32>
    %280 = vector.shape_cast %278 : vector<64x16xf32> to vector<4x16x16xf32>
    %281 = vector.extract_strided_slice %280 {offsets = [0, 0, 0], sizes = [4, 16, 1], strides = [1, 1, 1]} : vector<4x16x16xf32> to vector<4x16x1xf32>
    %282 = vector.extract_strided_slice %280 {offsets = [0, 0, 8], sizes = [4, 16, 1], strides = [1, 1, 1]} : vector<4x16x16xf32> to vector<4x16x1xf32>
    "tpu.trace_start"() <{level = 10 : i32, message = "bic,bjc->bij"}> : () -> ()
    %cst_111 = arith.constant dense<0.000000e+00> : vector<4x16x16xf32>
    %283 = tpu.matmul %4, %281, %cst_111 {dimension_numbers = #tpu.dot_dimension_numbers<[2], [2], [1], [1], [0, 0, 0, 1, 1, 1], [0], [0]>} : vector<4x16x1xf32>, vector<4x16x1xf32>, vector<4x16x16xf32> -> vector<4x16x16xf32>
    "tpu.trace_stop"() : () -> ()
    %284 = vector.broadcast %282 : vector<4x16x1xf32> to vector<4x16x16xf32>
    %285 = arith.addf %284, %283 : vector<4x16x16xf32>
    %cst_112 = arith.constant 0.000000e+00 : f32
    %286 = vector.broadcast %cst_112 : f32 to vector<4x16x16xf32>
    %287 = arith.cmpf ogt, %285, %286 : vector<4x16x16xf32>
    %cst_113 = arith.constant 2.000000e-01 : f32
    %288 = vector.broadcast %cst_113 : f32 to vector<4x16x16xf32>
    %289 = arith.mulf %288, %285 : vector<4x16x16xf32>
    %290 = arith.select %287, %285, %289 : vector<4x16x16xi1>, vector<4x16x16xf32>
    %cst_114 = arith.constant -1.000000e+30 : f32
    %291 = vector.broadcast %cst_114 : f32 to vector<4x16x16xf32>
    %292 = arith.select %2, %290, %291 : vector<4x16x16xi1>, vector<4x16x16xf32>
    %cst_115 = arith.constant dense<0xFF800000> : vector<4x16xf32>
    %293 = vector.multi_reduction <maximumf>, %292, %cst_115 [2] : vector<4x16x16xf32> to vector<4x16xf32>
    %294 = vector.shape_cast %293 : vector<4x16xf32> to vector<4x16x1xf32>
    %295 = vector.broadcast %294 : vector<4x16x1xf32> to vector<4x16x16xf32>
    %296 = arith.subf %292, %295 : vector<4x16x16xf32>
    %297 = math.exp %296 : vector<4x16x16xf32>
    %cst_116 = arith.constant 0.000000e+00 : f32
    %298 = vector.broadcast %cst_116 : f32 to vector<4x16x16xf32>
    %299 = arith.select %2, %297, %298 : vector<4x16x16xi1>, vector<4x16x16xf32>
    %cst_117 = arith.constant dense<0.000000e+00> : vector<4x16xf32>
    %300 = vector.multi_reduction <add>, %299, %cst_117 [2] : vector<4x16x16xf32> to vector<4x16xf32>
    %301 = vector.shape_cast %300 : vector<4x16xf32> to vector<4x16x1xf32>
    %302 = vector.broadcast %301 : vector<4x16x1xf32> to vector<4x16x16xf32>
    %303 = arith.divf %299, %302 : vector<4x16x16xf32>
    %c0_118 = arith.constant 0 : index
    %c0_119 = arith.constant 0 : index
    %c0_120 = arith.constant 0 : index
    %304 = vector.load %arg16[%c0_118, %c0_119, %c0_120] : memref<8x1x128xf32, #tpu.memory_space<vmem>>, vector<1x1x128xf32>
    %305 = vector.shape_cast %304 : vector<1x1x128xf32> to vector<1x128xf32>
    %306 = vector.shape_cast %305 : vector<1x128xf32> to vector<1x1x128xf32>
    %307 = vector.broadcast %306 : vector<1x1x128xf32> to vector<4x16x128xf32>
    %308 = arith.mulf %279, %307 : vector<4x16x128xf32>
    "tpu.trace_start"() <{level = 10 : i32, message = "bij,bjc->bic"}> : () -> ()
    %cst_121 = arith.constant dense<0.000000e+00> : vector<4x16x128xf32>
    %309 = tpu.matmul %303, %308, %cst_121 {dimension_numbers = #tpu.dot_dimension_numbers<[2], [1], [1], [2], [0, 0, 0, 1, 1, 2], [0], [0]>} : vector<4x16x16xf32>, vector<4x16x128xf32>, vector<4x16x128xf32> -> vector<4x16x128xf32>
    "tpu.trace_stop"() : () -> ()
    %310 = vector.extract_strided_slice %280 {offsets = [0, 0, 1], sizes = [4, 16, 1], strides = [1, 1, 1]} : vector<4x16x16xf32> to vector<4x16x1xf32>
    %311 = vector.extract_strided_slice %280 {offsets = [0, 0, 9], sizes = [4, 16, 1], strides = [1, 1, 1]} : vector<4x16x16xf32> to vector<4x16x1xf32>
    "tpu.trace_start"() <{level = 10 : i32, message = "bic,bjc->bij"}> : () -> ()
    %cst_122 = arith.constant dense<0.000000e+00> : vector<4x16x16xf32>
    %312 = tpu.matmul %4, %310, %cst_122 {dimension_numbers = #tpu.dot_dimension_numbers<[2], [2], [1], [1], [0, 0, 0, 1, 1, 1], [0], [0]>} : vector<4x16x1xf32>, vector<4x16x1xf32>, vector<4x16x16xf32> -> vector<4x16x16xf32>
    "tpu.trace_stop"() : () -> ()
    %313 = vector.broadcast %311 : vector<4x16x1xf32> to vector<4x16x16xf32>
    %314 = arith.addf %313, %312 : vector<4x16x16xf32>
    %cst_123 = arith.constant 0.000000e+00 : f32
    %315 = vector.broadcast %cst_123 : f32 to vector<4x16x16xf32>
    %316 = arith.cmpf ogt, %314, %315 : vector<4x16x16xf32>
    %cst_124 = arith.constant 2.000000e-01 : f32
    %317 = vector.broadcast %cst_124 : f32 to vector<4x16x16xf32>
    %318 = arith.mulf %317, %314 : vector<4x16x16xf32>
    %319 = arith.select %316, %314, %318 : vector<4x16x16xi1>, vector<4x16x16xf32>
    %cst_125 = arith.constant -1.000000e+30 : f32
    %320 = vector.broadcast %cst_125 : f32 to vector<4x16x16xf32>
    %321 = arith.select %2, %319, %320 : vector<4x16x16xi1>, vector<4x16x16xf32>
    %cst_126 = arith.constant dense<0xFF800000> : vector<4x16xf32>
    %322 = vector.multi_reduction <maximumf>, %321, %cst_126 [2] : vector<4x16x16xf32> to vector<4x16xf32>
    %323 = vector.shape_cast %322 : vector<4x16xf32> to vector<4x16x1xf32>
    %324 = vector.broadcast %323 : vector<4x16x1xf32> to vector<4x16x16xf32>
    %325 = arith.subf %321, %324 : vector<4x16x16xf32>
    %326 = math.exp %325 : vector<4x16x16xf32>
    %cst_127 = arith.constant 0.000000e+00 : f32
    %327 = vector.broadcast %cst_127 : f32 to vector<4x16x16xf32>
    %328 = arith.select %2, %326, %327 : vector<4x16x16xi1>, vector<4x16x16xf32>
    %cst_128 = arith.constant dense<0.000000e+00> : vector<4x16xf32>
    %329 = vector.multi_reduction <add>, %328, %cst_128 [2] : vector<4x16x16xf32> to vector<4x16xf32>
    %330 = vector.shape_cast %329 : vector<4x16xf32> to vector<4x16x1xf32>
    %331 = vector.broadcast %330 : vector<4x16x1xf32> to vector<4x16x16xf32>
    %332 = arith.divf %328, %331 : vector<4x16x16xf32>
    %c1_129 = arith.constant 1 : index
    %c0_130 = arith.constant 0 : index
    %c0_131 = arith.constant 0 : index
    %333 = vector.load %arg16[%c1_129, %c0_130, %c0_131] : memref<8x1x128xf32, #tpu.memory_space<vmem>>, vector<1x1x128xf32>
    %334 = vector.shape_cast %333 : vector<1x1x128xf32> to vector<1x128xf32>
    %335 = vector.shape_cast %334 : vector<1x128xf32> to vector<1x1x128xf32>
    %336 = vector.broadcast %335 : vector<1x1x128xf32> to vector<4x16x128xf32>
    %337 = arith.mulf %279, %336 : vector<4x16x128xf32>
    "tpu.trace_start"() <{level = 10 : i32, message = "bij,bjc->bic"}> : () -> ()
    %cst_132 = arith.constant dense<0.000000e+00> : vector<4x16x128xf32>
    %338 = tpu.matmul %332, %337, %cst_132 {dimension_numbers = #tpu.dot_dimension_numbers<[2], [1], [1], [2], [0, 0, 0, 1, 1, 2], [0], [0]>} : vector<4x16x16xf32>, vector<4x16x128xf32>, vector<4x16x128xf32> -> vector<4x16x128xf32>
    "tpu.trace_stop"() : () -> ()
    %339 = arith.addf %309, %338 : vector<4x16x128xf32>
    %340 = vector.extract_strided_slice %280 {offsets = [0, 0, 2], sizes = [4, 16, 1], strides = [1, 1, 1]} : vector<4x16x16xf32> to vector<4x16x1xf32>
    %341 = vector.extract_strided_slice %280 {offsets = [0, 0, 10], sizes = [4, 16, 1], strides = [1, 1, 1]} : vector<4x16x16xf32> to vector<4x16x1xf32>
    "tpu.trace_start"() <{level = 10 : i32, message = "bic,bjc->bij"}> : () -> ()
    %cst_133 = arith.constant dense<0.000000e+00> : vector<4x16x16xf32>
    %342 = tpu.matmul %4, %340, %cst_133 {dimension_numbers = #tpu.dot_dimension_numbers<[2], [2], [1], [1], [0, 0, 0, 1, 1, 1], [0], [0]>} : vector<4x16x1xf32>, vector<4x16x1xf32>, vector<4x16x16xf32> -> vector<4x16x16xf32>
    "tpu.trace_stop"() : () -> ()
    %343 = vector.broadcast %341 : vector<4x16x1xf32> to vector<4x16x16xf32>
    %344 = arith.addf %343, %342 : vector<4x16x16xf32>
    %cst_134 = arith.constant 0.000000e+00 : f32
    %345 = vector.broadcast %cst_134 : f32 to vector<4x16x16xf32>
    %346 = arith.cmpf ogt, %344, %345 : vector<4x16x16xf32>
    %cst_135 = arith.constant 2.000000e-01 : f32
    %347 = vector.broadcast %cst_135 : f32 to vector<4x16x16xf32>
    %348 = arith.mulf %347, %344 : vector<4x16x16xf32>
    %349 = arith.select %346, %344, %348 : vector<4x16x16xi1>, vector<4x16x16xf32>
    %cst_136 = arith.constant -1.000000e+30 : f32
    %350 = vector.broadcast %cst_136 : f32 to vector<4x16x16xf32>
    %351 = arith.select %2, %349, %350 : vector<4x16x16xi1>, vector<4x16x16xf32>
    %cst_137 = arith.constant dense<0xFF800000> : vector<4x16xf32>
    %352 = vector.multi_reduction <maximumf>, %351, %cst_137 [2] : vector<4x16x16xf32> to vector<4x16xf32>
    %353 = vector.shape_cast %352 : vector<4x16xf32> to vector<4x16x1xf32>
    %354 = vector.broadcast %353 : vector<4x16x1xf32> to vector<4x16x16xf32>
    %355 = arith.subf %351, %354 : vector<4x16x16xf32>
    %356 = math.exp %355 : vector<4x16x16xf32>
    %cst_138 = arith.constant 0.000000e+00 : f32
    %357 = vector.broadcast %cst_138 : f32 to vector<4x16x16xf32>
    %358 = arith.select %2, %356, %357 : vector<4x16x16xi1>, vector<4x16x16xf32>
    %cst_139 = arith.constant dense<0.000000e+00> : vector<4x16xf32>
    %359 = vector.multi_reduction <add>, %358, %cst_139 [2] : vector<4x16x16xf32> to vector<4x16xf32>
    %360 = vector.shape_cast %359 : vector<4x16xf32> to vector<4x16x1xf32>
    %361 = vector.broadcast %360 : vector<4x16x1xf32> to vector<4x16x16xf32>
    %362 = arith.divf %358, %361 : vector<4x16x16xf32>
    %c2_140 = arith.constant 2 : index
    %c0_141 = arith.constant 0 : index
    %c0_142 = arith.constant 0 : index
    %363 = vector.load %arg16[%c2_140, %c0_141, %c0_142] : memref<8x1x128xf32, #tpu.memory_space<vmem>>, vector<1x1x128xf32>
    %364 = vector.shape_cast %363 : vector<1x1x128xf32> to vector<1x128xf32>
    %365 = vector.shape_cast %364 : vector<1x128xf32> to vector<1x1x128xf32>
    %366 = vector.broadcast %365 : vector<1x1x128xf32> to vector<4x16x128xf32>
    %367 = arith.mulf %279, %366 : vector<4x16x128xf32>
    "tpu.trace_start"() <{level = 10 : i32, message = "bij,bjc->bic"}> : () -> ()
    %cst_143 = arith.constant dense<0.000000e+00> : vector<4x16x128xf32>
    %368 = tpu.matmul %362, %367, %cst_143 {dimension_numbers = #tpu.dot_dimension_numbers<[2], [1], [1], [2], [0, 0, 0, 1, 1, 2], [0], [0]>} : vector<4x16x16xf32>, vector<4x16x128xf32>, vector<4x16x128xf32> -> vector<4x16x128xf32>
    "tpu.trace_stop"() : () -> ()
    %369 = arith.addf %339, %368 : vector<4x16x128xf32>
    %370 = vector.extract_strided_slice %280 {offsets = [0, 0, 3], sizes = [4, 16, 1], strides = [1, 1, 1]} : vector<4x16x16xf32> to vector<4x16x1xf32>
    %371 = vector.extract_strided_slice %280 {offsets = [0, 0, 11], sizes = [4, 16, 1], strides = [1, 1, 1]} : vector<4x16x16xf32> to vector<4x16x1xf32>
    "tpu.trace_start"() <{level = 10 : i32, message = "bic,bjc->bij"}> : () -> ()
    %cst_144 = arith.constant dense<0.000000e+00> : vector<4x16x16xf32>
    %372 = tpu.matmul %4, %370, %cst_144 {dimension_numbers = #tpu.dot_dimension_numbers<[2], [2], [1], [1], [0, 0, 0, 1, 1, 1], [0], [0]>} : vector<4x16x1xf32>, vector<4x16x1xf32>, vector<4x16x16xf32> -> vector<4x16x16xf32>
    "tpu.trace_stop"() : () -> ()
    %373 = vector.broadcast %371 : vector<4x16x1xf32> to vector<4x16x16xf32>
    %374 = arith.addf %373, %372 : vector<4x16x16xf32>
    %cst_145 = arith.constant 0.000000e+00 : f32
    %375 = vector.broadcast %cst_145 : f32 to vector<4x16x16xf32>
    %376 = arith.cmpf ogt, %374, %375 : vector<4x16x16xf32>
    %cst_146 = arith.constant 2.000000e-01 : f32
    %377 = vector.broadcast %cst_146 : f32 to vector<4x16x16xf32>
    %378 = arith.mulf %377, %374 : vector<4x16x16xf32>
    %379 = arith.select %376, %374, %378 : vector<4x16x16xi1>, vector<4x16x16xf32>
    %cst_147 = arith.constant -1.000000e+30 : f32
    %380 = vector.broadcast %cst_147 : f32 to vector<4x16x16xf32>
    %381 = arith.select %2, %379, %380 : vector<4x16x16xi1>, vector<4x16x16xf32>
    %cst_148 = arith.constant dense<0xFF800000> : vector<4x16xf32>
    %382 = vector.multi_reduction <maximumf>, %381, %cst_148 [2] : vector<4x16x16xf32> to vector<4x16xf32>
    %383 = vector.shape_cast %382 : vector<4x16xf32> to vector<4x16x1xf32>
    %384 = vector.broadcast %383 : vector<4x16x1xf32> to vector<4x16x16xf32>
    %385 = arith.subf %381, %384 : vector<4x16x16xf32>
    %386 = math.exp %385 : vector<4x16x16xf32>
    %cst_149 = arith.constant 0.000000e+00 : f32
    %387 = vector.broadcast %cst_149 : f32 to vector<4x16x16xf32>
    %388 = arith.select %2, %386, %387 : vector<4x16x16xi1>, vector<4x16x16xf32>
    %cst_150 = arith.constant dense<0.000000e+00> : vector<4x16xf32>
    %389 = vector.multi_reduction <add>, %388, %cst_150 [2] : vector<4x16x16xf32> to vector<4x16xf32>
    %390 = vector.shape_cast %389 : vector<4x16xf32> to vector<4x16x1xf32>
    %391 = vector.broadcast %390 : vector<4x16x1xf32> to vector<4x16x16xf32>
    %392 = arith.divf %388, %391 : vector<4x16x16xf32>
    %c3_151 = arith.constant 3 : index
    %c0_152 = arith.constant 0 : index
    %c0_153 = arith.constant 0 : index
    %393 = vector.load %arg16[%c3_151, %c0_152, %c0_153] : memref<8x1x128xf32, #tpu.memory_space<vmem>>, vector<1x1x128xf32>
    %394 = vector.shape_cast %393 : vector<1x1x128xf32> to vector<1x128xf32>
    %395 = vector.shape_cast %394 : vector<1x128xf32> to vector<1x1x128xf32>
    %396 = vector.broadcast %395 : vector<1x1x128xf32> to vector<4x16x128xf32>
    %397 = arith.mulf %279, %396 : vector<4x16x128xf32>
    "tpu.trace_start"() <{level = 10 : i32, message = "bij,bjc->bic"}> : () -> ()
    %cst_154 = arith.constant dense<0.000000e+00> : vector<4x16x128xf32>
    %398 = tpu.matmul %392, %397, %cst_154 {dimension_numbers = #tpu.dot_dimension_numbers<[2], [1], [1], [2], [0, 0, 0, 1, 1, 2], [0], [0]>} : vector<4x16x16xf32>, vector<4x16x128xf32>, vector<4x16x128xf32> -> vector<4x16x128xf32>
    "tpu.trace_stop"() : () -> ()
    %399 = arith.addf %369, %398 : vector<4x16x128xf32>
    %400 = vector.extract_strided_slice %280 {offsets = [0, 0, 4], sizes = [4, 16, 1], strides = [1, 1, 1]} : vector<4x16x16xf32> to vector<4x16x1xf32>
    %401 = vector.extract_strided_slice %280 {offsets = [0, 0, 12], sizes = [4, 16, 1], strides = [1, 1, 1]} : vector<4x16x16xf32> to vector<4x16x1xf32>
    "tpu.trace_start"() <{level = 10 : i32, message = "bic,bjc->bij"}> : () -> ()
    %cst_155 = arith.constant dense<0.000000e+00> : vector<4x16x16xf32>
    %402 = tpu.matmul %4, %400, %cst_155 {dimension_numbers = #tpu.dot_dimension_numbers<[2], [2], [1], [1], [0, 0, 0, 1, 1, 1], [0], [0]>} : vector<4x16x1xf32>, vector<4x16x1xf32>, vector<4x16x16xf32> -> vector<4x16x16xf32>
    "tpu.trace_stop"() : () -> ()
    %403 = vector.broadcast %401 : vector<4x16x1xf32> to vector<4x16x16xf32>
    %404 = arith.addf %403, %402 : vector<4x16x16xf32>
    %cst_156 = arith.constant 0.000000e+00 : f32
    %405 = vector.broadcast %cst_156 : f32 to vector<4x16x16xf32>
    %406 = arith.cmpf ogt, %404, %405 : vector<4x16x16xf32>
    %cst_157 = arith.constant 2.000000e-01 : f32
    %407 = vector.broadcast %cst_157 : f32 to vector<4x16x16xf32>
    %408 = arith.mulf %407, %404 : vector<4x16x16xf32>
    %409 = arith.select %406, %404, %408 : vector<4x16x16xi1>, vector<4x16x16xf32>
    %cst_158 = arith.constant -1.000000e+30 : f32
    %410 = vector.broadcast %cst_158 : f32 to vector<4x16x16xf32>
    %411 = arith.select %2, %409, %410 : vector<4x16x16xi1>, vector<4x16x16xf32>
    %cst_159 = arith.constant dense<0xFF800000> : vector<4x16xf32>
    %412 = vector.multi_reduction <maximumf>, %411, %cst_159 [2] : vector<4x16x16xf32> to vector<4x16xf32>
    %413 = vector.shape_cast %412 : vector<4x16xf32> to vector<4x16x1xf32>
    %414 = vector.broadcast %413 : vector<4x16x1xf32> to vector<4x16x16xf32>
    %415 = arith.subf %411, %414 : vector<4x16x16xf32>
    %416 = math.exp %415 : vector<4x16x16xf32>
    %cst_160 = arith.constant 0.000000e+00 : f32
    %417 = vector.broadcast %cst_160 : f32 to vector<4x16x16xf32>
    %418 = arith.select %2, %416, %417 : vector<4x16x16xi1>, vector<4x16x16xf32>
    %cst_161 = arith.constant dense<0.000000e+00> : vector<4x16xf32>
    %419 = vector.multi_reduction <add>, %418, %cst_161 [2] : vector<4x16x16xf32> to vector<4x16xf32>
    %420 = vector.shape_cast %419 : vector<4x16xf32> to vector<4x16x1xf32>
    %421 = vector.broadcast %420 : vector<4x16x1xf32> to vector<4x16x16xf32>
    %422 = arith.divf %418, %421 : vector<4x16x16xf32>
    %c4_162 = arith.constant 4 : index
    %c0_163 = arith.constant 0 : index
    %c0_164 = arith.constant 0 : index
    %423 = vector.load %arg16[%c4_162, %c0_163, %c0_164] : memref<8x1x128xf32, #tpu.memory_space<vmem>>, vector<1x1x128xf32>
    %424 = vector.shape_cast %423 : vector<1x1x128xf32> to vector<1x128xf32>
    %425 = vector.shape_cast %424 : vector<1x128xf32> to vector<1x1x128xf32>
    %426 = vector.broadcast %425 : vector<1x1x128xf32> to vector<4x16x128xf32>
    %427 = arith.mulf %279, %426 : vector<4x16x128xf32>
    "tpu.trace_start"() <{level = 10 : i32, message = "bij,bjc->bic"}> : () -> ()
    %cst_165 = arith.constant dense<0.000000e+00> : vector<4x16x128xf32>
    %428 = tpu.matmul %422, %427, %cst_165 {dimension_numbers = #tpu.dot_dimension_numbers<[2], [1], [1], [2], [0, 0, 0, 1, 1, 2], [0], [0]>} : vector<4x16x16xf32>, vector<4x16x128xf32>, vector<4x16x128xf32> -> vector<4x16x128xf32>
    "tpu.trace_stop"() : () -> ()
    %429 = arith.addf %399, %428 : vector<4x16x128xf32>
    %430 = vector.extract_strided_slice %280 {offsets = [0, 0, 5], sizes = [4, 16, 1], strides = [1, 1, 1]} : vector<4x16x16xf32> to vector<4x16x1xf32>
    %431 = vector.extract_strided_slice %280 {offsets = [0, 0, 13], sizes = [4, 16, 1], strides = [1, 1, 1]} : vector<4x16x16xf32> to vector<4x16x1xf32>
    "tpu.trace_start"() <{level = 10 : i32, message = "bic,bjc->bij"}> : () -> ()
    %cst_166 = arith.constant dense<0.000000e+00> : vector<4x16x16xf32>
    %432 = tpu.matmul %4, %430, %cst_166 {dimension_numbers = #tpu.dot_dimension_numbers<[2], [2], [1], [1], [0, 0, 0, 1, 1, 1], [0], [0]>} : vector<4x16x1xf32>, vector<4x16x1xf32>, vector<4x16x16xf32> -> vector<4x16x16xf32>
    "tpu.trace_stop"() : () -> ()
    %433 = vector.broadcast %431 : vector<4x16x1xf32> to vector<4x16x16xf32>
    %434 = arith.addf %433, %432 : vector<4x16x16xf32>
    %cst_167 = arith.constant 0.000000e+00 : f32
    %435 = vector.broadcast %cst_167 : f32 to vector<4x16x16xf32>
    %436 = arith.cmpf ogt, %434, %435 : vector<4x16x16xf32>
    %cst_168 = arith.constant 2.000000e-01 : f32
    %437 = vector.broadcast %cst_168 : f32 to vector<4x16x16xf32>
    %438 = arith.mulf %437, %434 : vector<4x16x16xf32>
    %439 = arith.select %436, %434, %438 : vector<4x16x16xi1>, vector<4x16x16xf32>
    %cst_169 = arith.constant -1.000000e+30 : f32
    %440 = vector.broadcast %cst_169 : f32 to vector<4x16x16xf32>
    %441 = arith.select %2, %439, %440 : vector<4x16x16xi1>, vector<4x16x16xf32>
    %cst_170 = arith.constant dense<0xFF800000> : vector<4x16xf32>
    %442 = vector.multi_reduction <maximumf>, %441, %cst_170 [2] : vector<4x16x16xf32> to vector<4x16xf32>
    %443 = vector.shape_cast %442 : vector<4x16xf32> to vector<4x16x1xf32>
    %444 = vector.broadcast %443 : vector<4x16x1xf32> to vector<4x16x16xf32>
    %445 = arith.subf %441, %444 : vector<4x16x16xf32>
    %446 = math.exp %445 : vector<4x16x16xf32>
    %cst_171 = arith.constant 0.000000e+00 : f32
    %447 = vector.broadcast %cst_171 : f32 to vector<4x16x16xf32>
    %448 = arith.select %2, %446, %447 : vector<4x16x16xi1>, vector<4x16x16xf32>
    %cst_172 = arith.constant dense<0.000000e+00> : vector<4x16xf32>
    %449 = vector.multi_reduction <add>, %448, %cst_172 [2] : vector<4x16x16xf32> to vector<4x16xf32>
    %450 = vector.shape_cast %449 : vector<4x16xf32> to vector<4x16x1xf32>
    %451 = vector.broadcast %450 : vector<4x16x1xf32> to vector<4x16x16xf32>
    %452 = arith.divf %448, %451 : vector<4x16x16xf32>
    %c5_173 = arith.constant 5 : index
    %c0_174 = arith.constant 0 : index
    %c0_175 = arith.constant 0 : index
    %453 = vector.load %arg16[%c5_173, %c0_174, %c0_175] : memref<8x1x128xf32, #tpu.memory_space<vmem>>, vector<1x1x128xf32>
    %454 = vector.shape_cast %453 : vector<1x1x128xf32> to vector<1x128xf32>
    %455 = vector.shape_cast %454 : vector<1x128xf32> to vector<1x1x128xf32>
    %456 = vector.broadcast %455 : vector<1x1x128xf32> to vector<4x16x128xf32>
    %457 = arith.mulf %279, %456 : vector<4x16x128xf32>
    "tpu.trace_start"() <{level = 10 : i32, message = "bij,bjc->bic"}> : () -> ()
    %cst_176 = arith.constant dense<0.000000e+00> : vector<4x16x128xf32>
    %458 = tpu.matmul %452, %457, %cst_176 {dimension_numbers = #tpu.dot_dimension_numbers<[2], [1], [1], [2], [0, 0, 0, 1, 1, 2], [0], [0]>} : vector<4x16x16xf32>, vector<4x16x128xf32>, vector<4x16x128xf32> -> vector<4x16x128xf32>
    "tpu.trace_stop"() : () -> ()
    %459 = arith.addf %429, %458 : vector<4x16x128xf32>
    %460 = vector.extract_strided_slice %280 {offsets = [0, 0, 6], sizes = [4, 16, 1], strides = [1, 1, 1]} : vector<4x16x16xf32> to vector<4x16x1xf32>
    %461 = vector.extract_strided_slice %280 {offsets = [0, 0, 14], sizes = [4, 16, 1], strides = [1, 1, 1]} : vector<4x16x16xf32> to vector<4x16x1xf32>
    "tpu.trace_start"() <{level = 10 : i32, message = "bic,bjc->bij"}> : () -> ()
    %cst_177 = arith.constant dense<0.000000e+00> : vector<4x16x16xf32>
    %462 = tpu.matmul %4, %460, %cst_177 {dimension_numbers = #tpu.dot_dimension_numbers<[2], [2], [1], [1], [0, 0, 0, 1, 1, 1], [0], [0]>} : vector<4x16x1xf32>, vector<4x16x1xf32>, vector<4x16x16xf32> -> vector<4x16x16xf32>
    "tpu.trace_stop"() : () -> ()
    %463 = vector.broadcast %461 : vector<4x16x1xf32> to vector<4x16x16xf32>
    %464 = arith.addf %463, %462 : vector<4x16x16xf32>
    %cst_178 = arith.constant 0.000000e+00 : f32
    %465 = vector.broadcast %cst_178 : f32 to vector<4x16x16xf32>
    %466 = arith.cmpf ogt, %464, %465 : vector<4x16x16xf32>
    %cst_179 = arith.constant 2.000000e-01 : f32
    %467 = vector.broadcast %cst_179 : f32 to vector<4x16x16xf32>
    %468 = arith.mulf %467, %464 : vector<4x16x16xf32>
    %469 = arith.select %466, %464, %468 : vector<4x16x16xi1>, vector<4x16x16xf32>
    %cst_180 = arith.constant -1.000000e+30 : f32
    %470 = vector.broadcast %cst_180 : f32 to vector<4x16x16xf32>
    %471 = arith.select %2, %469, %470 : vector<4x16x16xi1>, vector<4x16x16xf32>
    %cst_181 = arith.constant dense<0xFF800000> : vector<4x16xf32>
    %472 = vector.multi_reduction <maximumf>, %471, %cst_181 [2] : vector<4x16x16xf32> to vector<4x16xf32>
    %473 = vector.shape_cast %472 : vector<4x16xf32> to vector<4x16x1xf32>
    %474 = vector.broadcast %473 : vector<4x16x1xf32> to vector<4x16x16xf32>
    %475 = arith.subf %471, %474 : vector<4x16x16xf32>
    %476 = math.exp %475 : vector<4x16x16xf32>
    %cst_182 = arith.constant 0.000000e+00 : f32
    %477 = vector.broadcast %cst_182 : f32 to vector<4x16x16xf32>
    %478 = arith.select %2, %476, %477 : vector<4x16x16xi1>, vector<4x16x16xf32>
    %cst_183 = arith.constant dense<0.000000e+00> : vector<4x16xf32>
    %479 = vector.multi_reduction <add>, %478, %cst_183 [2] : vector<4x16x16xf32> to vector<4x16xf32>
    %480 = vector.shape_cast %479 : vector<4x16xf32> to vector<4x16x1xf32>
    %481 = vector.broadcast %480 : vector<4x16x1xf32> to vector<4x16x16xf32>
    %482 = arith.divf %478, %481 : vector<4x16x16xf32>
    %c6_184 = arith.constant 6 : index
    %c0_185 = arith.constant 0 : index
    %c0_186 = arith.constant 0 : index
    %483 = vector.load %arg16[%c6_184, %c0_185, %c0_186] : memref<8x1x128xf32, #tpu.memory_space<vmem>>, vector<1x1x128xf32>
    %484 = vector.shape_cast %483 : vector<1x1x128xf32> to vector<1x128xf32>
    %485 = vector.shape_cast %484 : vector<1x128xf32> to vector<1x1x128xf32>
    %486 = vector.broadcast %485 : vector<1x1x128xf32> to vector<4x16x128xf32>
    %487 = arith.mulf %279, %486 : vector<4x16x128xf32>
    "tpu.trace_start"() <{level = 10 : i32, message = "bij,bjc->bic"}> : () -> ()
    %cst_187 = arith.constant dense<0.000000e+00> : vector<4x16x128xf32>
    %488 = tpu.matmul %482, %487, %cst_187 {dimension_numbers = #tpu.dot_dimension_numbers<[2], [1], [1], [2], [0, 0, 0, 1, 1, 2], [0], [0]>} : vector<4x16x16xf32>, vector<4x16x128xf32>, vector<4x16x128xf32> -> vector<4x16x128xf32>
    "tpu.trace_stop"() : () -> ()
    %489 = arith.addf %459, %488 : vector<4x16x128xf32>
    %490 = vector.extract_strided_slice %280 {offsets = [0, 0, 7], sizes = [4, 16, 1], strides = [1, 1, 1]} : vector<4x16x16xf32> to vector<4x16x1xf32>
    %491 = vector.extract_strided_slice %280 {offsets = [0, 0, 15], sizes = [4, 16, 1], strides = [1, 1, 1]} : vector<4x16x16xf32> to vector<4x16x1xf32>
    "tpu.trace_start"() <{level = 10 : i32, message = "bic,bjc->bij"}> : () -> ()
    %cst_188 = arith.constant dense<0.000000e+00> : vector<4x16x16xf32>
    %492 = tpu.matmul %4, %490, %cst_188 {dimension_numbers = #tpu.dot_dimension_numbers<[2], [2], [1], [1], [0, 0, 0, 1, 1, 1], [0], [0]>} : vector<4x16x1xf32>, vector<4x16x1xf32>, vector<4x16x16xf32> -> vector<4x16x16xf32>
    "tpu.trace_stop"() : () -> ()
    %493 = vector.broadcast %491 : vector<4x16x1xf32> to vector<4x16x16xf32>
    %494 = arith.addf %493, %492 : vector<4x16x16xf32>
    %cst_189 = arith.constant 0.000000e+00 : f32
    %495 = vector.broadcast %cst_189 : f32 to vector<4x16x16xf32>
    %496 = arith.cmpf ogt, %494, %495 : vector<4x16x16xf32>
    %cst_190 = arith.constant 2.000000e-01 : f32
    %497 = vector.broadcast %cst_190 : f32 to vector<4x16x16xf32>
    %498 = arith.mulf %497, %494 : vector<4x16x16xf32>
    %499 = arith.select %496, %494, %498 : vector<4x16x16xi1>, vector<4x16x16xf32>
    %cst_191 = arith.constant -1.000000e+30 : f32
    %500 = vector.broadcast %cst_191 : f32 to vector<4x16x16xf32>
    %501 = arith.select %2, %499, %500 : vector<4x16x16xi1>, vector<4x16x16xf32>
    %cst_192 = arith.constant dense<0xFF800000> : vector<4x16xf32>
    %502 = vector.multi_reduction <maximumf>, %501, %cst_192 [2] : vector<4x16x16xf32> to vector<4x16xf32>
    %503 = vector.shape_cast %502 : vector<4x16xf32> to vector<4x16x1xf32>
    %504 = vector.broadcast %503 : vector<4x16x1xf32> to vector<4x16x16xf32>
    %505 = arith.subf %501, %504 : vector<4x16x16xf32>
    %506 = math.exp %505 : vector<4x16x16xf32>
    %cst_193 = arith.constant 0.000000e+00 : f32
    %507 = vector.broadcast %cst_193 : f32 to vector<4x16x16xf32>
    %508 = arith.select %2, %506, %507 : vector<4x16x16xi1>, vector<4x16x16xf32>
    %cst_194 = arith.constant dense<0.000000e+00> : vector<4x16xf32>
    %509 = vector.multi_reduction <add>, %508, %cst_194 [2] : vector<4x16x16xf32> to vector<4x16xf32>
    %510 = vector.shape_cast %509 : vector<4x16xf32> to vector<4x16x1xf32>
    %511 = vector.broadcast %510 : vector<4x16x1xf32> to vector<4x16x16xf32>
    %512 = arith.divf %508, %511 : vector<4x16x16xf32>
    %c7_195 = arith.constant 7 : index
    %c0_196 = arith.constant 0 : index
    %c0_197 = arith.constant 0 : index
    %513 = vector.load %arg16[%c7_195, %c0_196, %c0_197] : memref<8x1x128xf32, #tpu.memory_space<vmem>>, vector<1x1x128xf32>
    %514 = vector.shape_cast %513 : vector<1x1x128xf32> to vector<1x128xf32>
    %515 = vector.shape_cast %514 : vector<1x128xf32> to vector<1x1x128xf32>
    %516 = vector.broadcast %515 : vector<1x1x128xf32> to vector<4x16x128xf32>
    %517 = arith.mulf %279, %516 : vector<4x16x128xf32>
    "tpu.trace_start"() <{level = 10 : i32, message = "bij,bjc->bic"}> : () -> ()
    %cst_198 = arith.constant dense<0.000000e+00> : vector<4x16x128xf32>
    %518 = tpu.matmul %512, %517, %cst_198 {dimension_numbers = #tpu.dot_dimension_numbers<[2], [1], [1], [2], [0, 0, 0, 1, 1, 2], [0], [0]>} : vector<4x16x16xf32>, vector<4x16x128xf32>, vector<4x16x128xf32> -> vector<4x16x128xf32>
    "tpu.trace_stop"() : () -> ()
    %519 = arith.addf %489, %518 : vector<4x16x128xf32>
    %c0_199 = arith.constant 0 : index
    %c0_200 = arith.constant 0 : index
    %520 = vector.load %arg9[%c0_199, %c0_200] : memref<1x128xf32, #tpu.memory_space<vmem>>, vector<1x128xf32>
    %521 = vector.shape_cast %520 : vector<1x128xf32> to vector<1x1x128xf32>
    %522 = vector.broadcast %521 : vector<1x1x128xf32> to vector<4x16x128xf32>
    %523 = arith.addf %519, %522 : vector<4x16x128xf32>
    %cst_201 = arith.constant 0.000000e+00 : f32
    %524 = vector.broadcast %cst_201 : f32 to vector<4x16x128xf32>
    %525 = arith.cmpf ogt, %523, %524 : vector<4x16x128xf32>
    %cst_202 = arith.constant 0.000000e+00 : f32
    %526 = vector.broadcast %cst_202 : f32 to vector<4x16x128xf32>
    %527 = arith.minimumf %523, %526 : vector<4x16x128xf32>
    %528 = math.exp %527 : vector<4x16x128xf32>
    %cst_203 = arith.constant 1.000000e+00 : f32
    %529 = vector.broadcast %cst_203 : f32 to vector<4x16x128xf32>
    %530 = arith.subf %528, %529 : vector<4x16x128xf32>
    %531 = arith.select %525, %523, %530 : vector<4x16x128xi1>, vector<4x16x128xf32>
    %532 = vector.extract_strided_slice %273 {offsets = [0, 0], sizes = [1, 128], strides = [1, 1]} : vector<2x128xf32> to vector<1x128xf32>
    %533 = vector.shape_cast %532 : vector<1x128xf32> to vector<1x1x128xf32>
    %534 = vector.broadcast %533 : vector<1x1x128xf32> to vector<4x16x128xf32>
    %535 = arith.mulf %531, %534 : vector<4x16x128xf32>
    %536 = vector.extract_strided_slice %273 {offsets = [1, 0], sizes = [1, 128], strides = [1, 1]} : vector<2x128xf32> to vector<1x128xf32>
    %537 = vector.shape_cast %536 : vector<1x128xf32> to vector<1x1x128xf32>
    %538 = vector.broadcast %537 : vector<1x1x128xf32> to vector<4x16x128xf32>
    %539 = arith.addf %535, %538 : vector<4x16x128xf32>
    %cst_204 = arith.constant dense<0.000000e+00> : vector<4x1xf32>
    %540 = vector.multi_reduction <add>, %3, %cst_204 [1] : vector<4x16x1xf32> to vector<4x1xf32>
    %cst_205 = arith.constant 1.000000e+00 : f32
    %541 = vector.broadcast %cst_205 : f32 to vector<4x1xf32>
    %542 = arith.maximumf %540, %541 : vector<4x1xf32>
    %543 = vector.broadcast %3 : vector<4x16x1xf32> to vector<4x16x128xf32>
    %544 = arith.mulf %539, %543 : vector<4x16x128xf32>
    %cst_206 = arith.constant dense<0.000000e+00> : vector<4x128xf32>
    %545 = vector.multi_reduction <add>, %544, %cst_206 [1] : vector<4x16x128xf32> to vector<4x128xf32>
    %546 = vector.broadcast %542 : vector<4x1xf32> to vector<4x128xf32>
    %547 = arith.divf %545, %546 : vector<4x128xf32>
    %cst_207 = arith.constant 0.000000e+00 : f32
    %548 = vector.broadcast %cst_207 : f32 to vector<4x16x1xf32>
    %549 = arith.cmpf ogt, %3, %548 : vector<4x16x1xf32>
    %cst_208 = arith.constant -1.000000e+30 : f32
    %550 = vector.shape_cast %549 : vector<4x16x1xi1> to vector<4x16x1xi1>
    %551 = vector.broadcast %550 : vector<4x16x1xi1> to vector<4x16x128xi1>
    %552 = vector.broadcast %cst_208 : f32 to vector<4x16x128xf32>
    %553 = arith.select %551, %539, %552 : vector<4x16x128xi1>, vector<4x16x128xf32>
    %cst_209 = arith.constant dense<0xFF800000> : vector<4x128xf32>
    %554 = vector.multi_reduction <maximumf>, %553, %cst_209 [1] : vector<4x16x128xf32> to vector<4x128xf32>
    %c0_210 = arith.constant 0 : index
    %c0_211 = arith.constant 0 : index
    %c0_212 = arith.constant 0 : index
    %555 = vector.load %arg12[%c0_210, %c0_211, %c0_212] : memref<2x128x100xf32, #tpu.memory_space<vmem>>, vector<1x128x100xf32>
    %556 = vector.shape_cast %555 : vector<1x128x100xf32> to vector<128x100xf32>
    %cst_213 = arith.constant dense<0.000000e+00> : vector<4x100xf32>
    %557 = tpu.matmul %547, %556, %cst_213 {dimension_numbers = #tpu.dot_dimension_numbers<[1], [0], [0], [1], [0, 0, 1, 1], [], []>} : vector<4x128xf32>, vector<128x100xf32>, vector<4x100xf32> -> vector<4x100xf32>
    %c1_214 = arith.constant 1 : index
    %c0_215 = arith.constant 0 : index
    %c0_216 = arith.constant 0 : index
    %558 = vector.load %arg12[%c1_214, %c0_215, %c0_216] : memref<2x128x100xf32, #tpu.memory_space<vmem>>, vector<1x128x100xf32>
    %559 = vector.shape_cast %558 : vector<1x128x100xf32> to vector<128x100xf32>
    %cst_217 = arith.constant dense<0.000000e+00> : vector<4x100xf32>
    %560 = tpu.matmul %554, %559, %cst_217 {dimension_numbers = #tpu.dot_dimension_numbers<[1], [0], [0], [1], [0, 0, 1, 1], [], []>} : vector<4x128xf32>, vector<128x100xf32>, vector<4x100xf32> -> vector<4x100xf32>
    %561 = arith.addf %557, %560 : vector<4x100xf32>
    %c0_218 = arith.constant 0 : index
    %c0_219 = arith.constant 0 : index
    %562 = vector.load %arg13[%c0_218, %c0_219] : memref<1x100xf32, #tpu.memory_space<vmem>>, vector<1x100xf32>
    %563 = vector.broadcast %562 : vector<1x100xf32> to vector<4x100xf32>
    %564 = arith.addf %561, %563 : vector<4x100xf32>
    %cst_220 = arith.constant 0.000000e+00 : f32
    %565 = vector.broadcast %cst_220 : f32 to vector<4x100xf32>
    %566 = arith.maximumf %564, %565 : vector<4x100xf32>
    %c0_221 = arith.constant 0 : index
    %c0_222 = arith.constant 0 : index
    %567 = vector.load %arg14[%c0_221, %c0_222] : memref<100x6xf32, #tpu.memory_space<vmem>>, vector<100x6xf32>
    %cst_223 = arith.constant dense<0.000000e+00> : vector<4x6xf32>
    %568 = tpu.matmul %566, %567, %cst_223 {dimension_numbers = #tpu.dot_dimension_numbers<[1], [0], [0], [1], [0, 0, 1, 1], [], []>} : vector<4x100xf32>, vector<100x6xf32>, vector<4x6xf32> -> vector<4x6xf32>
    %c0_224 = arith.constant 0 : index
    %c0_225 = arith.constant 0 : index
    %569 = vector.load %arg15[%c0_224, %c0_225] : memref<1x6xf32, #tpu.memory_space<vmem>>, vector<1x6xf32>
    %570 = vector.broadcast %569 : vector<1x6xf32> to vector<4x6xf32>
    %571 = arith.addf %568, %570 : vector<4x6xf32>
    %cst_226 = arith.constant dense<0xFF800000> : vector<4xf32>
    %572 = vector.multi_reduction <maximumf>, %571, %cst_226 [1] : vector<4x6xf32> to vector<4xf32>
    %573 = vector.shape_cast %572 : vector<4xf32> to vector<4x1xf32>
    %574 = vector.broadcast %573 : vector<4x1xf32> to vector<4x6xf32>
    %575 = arith.subf %571, %574 : vector<4x6xf32>
    %576 = math.exp %575 : vector<4x6xf32>
    %cst_227 = arith.constant dense<0.000000e+00> : vector<4xf32>
    %577 = vector.multi_reduction <add>, %576, %cst_227 [1] : vector<4x6xf32> to vector<4xf32>
    %578 = vector.shape_cast %577 : vector<4xf32> to vector<4x1xf32>
    %579 = math.log %578 : vector<4x1xf32>
    %580 = arith.addf %579, %573 : vector<4x1xf32>
    %581 = vector.broadcast %580 : vector<4x1xf32> to vector<4x6xf32>
    %582 = arith.subf %571, %581 : vector<4x6xf32>
    %583 = vector.shape_cast %582 : vector<4x6xf32> to vector<1x4x6xf32>
    %c0_228 = arith.constant 0 : index
    %c0_229 = arith.constant 0 : index
    %c0_230 = arith.constant 0 : index
    %584 = vector.load %arg17[%c0_228, %c0_229, %c0_230] : memref<1x4x6xf32, #tpu.memory_space<vmem>>, vector<1x4x6xf32>
    tpu.vector_store %arg17[%c0_228, %c0_229, %c0_230], %583 {strides = array<i32>} : memref<1x4x6xf32, #tpu.memory_space<vmem>>, vector<1x4x6xf32>,
    return
  }
  func.func @transform_0(%arg0: i32) -> (i32, i32, i32) {
    %c0_i32 = arith.constant 0 : i32
    %c0_i32_0 = arith.constant 0 : i32
    %c0_i32_1 = arith.constant 0 : i32
    return %arg0, %c0_i32, %c0_i32_0 : i32, i32, i32
  }
  func.func @transform_1(%arg0: i32) -> (i32, i32, i32) {
    %c0_i32 = arith.constant 0 : i32
    %c0_i32_0 = arith.constant 0 : i32
    %c0_i32_1 = arith.constant 0 : i32
    return %arg0, %c0_i32, %c0_i32_0 : i32, i32, i32
  }
  func.func @transform_2(%arg0: i32) -> (i32, i32, i32) {
    %c0_i32 = arith.constant 0 : i32
    %c0_i32_0 = arith.constant 0 : i32
    %c0_i32_1 = arith.constant 0 : i32
    return %arg0, %c0_i32, %c0_i32_0 : i32, i32, i32
  }
  func.func @transform_3(%arg0: i32) -> (i32, i32) {
    %c0_i32 = arith.constant 0 : i32
    %c0_i32_0 = arith.constant 0 : i32
    %c0_i32_1 = arith.constant 0 : i32
    return %c0_i32, %c0_i32_0 : i32, i32
  }
  func.func @transform_4(%arg0: i32) -> (i32, i32) {
    %c0_i32 = arith.constant 0 : i32
    %c0_i32_0 = arith.constant 0 : i32
    %c0_i32_1 = arith.constant 0 : i32
    return %c0_i32, %c0_i32_0 : i32, i32
  }
  func.func @transform_5(%arg0: i32) -> (i32, i32) {
    %c0_i32 = arith.constant 0 : i32
    %c0_i32_0 = arith.constant 0 : i32
    %c0_i32_1 = arith.constant 0 : i32
    return %c0_i32, %c0_i32_0 : i32, i32
  }
  func.func @transform_6(%arg0: i32) -> (i32, i32) {
    %c0_i32 = arith.constant 0 : i32
    %c0_i32_0 = arith.constant 0 : i32
    %c0_i32_1 = arith.constant 0 : i32
    return %c0_i32, %c0_i32_0 : i32, i32
  }
  func.func @transform_7(%arg0: i32) -> (i32, i32) {
    %c0_i32 = arith.constant 0 : i32
    %c0_i32_0 = arith.constant 0 : i32
    %c0_i32_1 = arith.constant 0 : i32
    return %c0_i32, %c0_i32_0 : i32, i32
  }
  func.func @transform_8(%arg0: i32) -> (i32, i32) {
    %c0_i32 = arith.constant 0 : i32
    %c0_i32_0 = arith.constant 0 : i32
    %c0_i32_1 = arith.constant 0 : i32
    return %c0_i32, %c0_i32_0 : i32, i32
  }
  func.func @transform_9(%arg0: i32) -> (i32, i32) {
    %c0_i32 = arith.constant 0 : i32
    %c0_i32_0 = arith.constant 0 : i32
    %c0_i32_1 = arith.constant 0 : i32
    return %c0_i32, %c0_i32_0 : i32, i32
  }
  func.func @transform_10(%arg0: i32) -> (i32, i32) {
    %c0_i32 = arith.constant 0 : i32
    %c0_i32_0 = arith.constant 0 : i32
    %c0_i32_1 = arith.constant 0 : i32
    return %c0_i32, %c0_i32_0 : i32, i32
  }
  func.func @transform_11(%arg0: i32) -> (i32, i32, i32) {
    %c0_i32 = arith.constant 0 : i32
    %c0_i32_0 = arith.constant 0 : i32
    %c0_i32_1 = arith.constant 0 : i32
    %c0_i32_2 = arith.constant 0 : i32
    return %c0_i32, %c0_i32_0, %c0_i32_1 : i32, i32, i32
  }
  func.func @transform_12(%arg0: i32) -> (i32, i32) {
    %c0_i32 = arith.constant 0 : i32
    %c0_i32_0 = arith.constant 0 : i32
    %c0_i32_1 = arith.constant 0 : i32
    return %c0_i32, %c0_i32_0 : i32, i32
  }
  func.func @transform_13(%arg0: i32) -> (i32, i32) {
    %c0_i32 = arith.constant 0 : i32
    %c0_i32_0 = arith.constant 0 : i32
    %c0_i32_1 = arith.constant 0 : i32
    return %c0_i32, %c0_i32_0 : i32, i32
  }
  func.func @transform_14(%arg0: i32) -> (i32, i32) {
    %c0_i32 = arith.constant 0 : i32
    %c0_i32_0 = arith.constant 0 : i32
    %c0_i32_1 = arith.constant 0 : i32
    return %c0_i32, %c0_i32_0 : i32, i32
  }
  func.func @transform_15(%arg0: i32) -> (i32, i32, i32) {
    %c0_i32 = arith.constant 0 : i32
    %c0_i32_0 = arith.constant 0 : i32
    %c0_i32_1 = arith.constant 0 : i32
    %c0_i32_2 = arith.constant 0 : i32
    return %c0_i32, %c0_i32_0, %c0_i32_1 : i32, i32, i32
  }
  func.func @transform_16(%arg0: i32) -> (i32, i32, i32) {
    %c0_i32 = arith.constant 0 : i32
    %c0_i32_0 = arith.constant 0 : i32
    %c0_i32_1 = arith.constant 0 : i32
    return %arg0, %c0_i32, %c0_i32_0 : i32, i32, i32
  }
}

</mosaic_0001>

<bundles_post_ra>
// kernel: tpu_custom_call.1
= control target key start
LH: loop header
LB: loop body
LE: loop exit
PB: predicated region body
PF: predicated region fallthrough
CT: control target
= control target key end

     0   :  { %s23350_s0 = inlined_call_operand.vmem [shape: f32[8,16,32], index: 0, kind: input, shape index: {}]   ;;  %s23351_s1 = inlined_call_operand.vmem [shape: f32[8,16,16], index: 1, kind: input, shape index: {}]   ;;  %s23352_s2 = inlined_call_operand.vmem [shape: f32[8,16,1], index: 2, kind: input, shape index: {}]   ;;  %s23353_s3 = inlined_call_operand.vmem [shape: f32[32,128], index: 3, kind: input, shape index: {}]   ;;  %s23354_s4 = inlined_call_operand.vmem [shape: f32[1,128], index: 4, kind: input, shape index: {}]   ;;  %s23355_s5 = inlined_call_operand.vmem [shape: f32[128,16], index: 5, kind: input, shape index: {}]   ;;  %s23356_s6 = inlined_call_operand.vmem [shape: f32[2,128], index: 6, kind: input, shape index: {}]   ;;  %s23357_s7 = inlined_call_operand.vmem [shape: f32[128,128], index: 7, kind: input, shape index: {}]   ;;  %s23358_s8 = inlined_call_operand.vmem [shape: f32[1,128], index: 8, kind: input, shape index: {}]   ;;  %s23359_s9 = inlined_call_operand.vmem [shape: f32[128,16], index: 9, kind: input, shape index: {}]   ;;  %s23360_s10 = inlined_call_operand.vmem [shape: f32[2,128], index: 10, kind: input, shape index: {}]   ;;  %s23361_s11 = inlined_call_operand.vmem [shape: f32[2,128,100], index: 11, kind: input, shape index: {}]   ;;  %s23362_s12 = inlined_call_operand.vmem [shape: f32[1,100], index: 12, kind: input, shape index: {}]   ;;  %s23363_s13 = inlined_call_operand.vmem [shape: f32[100,6], index: 13, kind: input, shape index: {}]   ;;  %s23364_s14 = inlined_call_operand.vmem [shape: f32[1,6], index: 14, kind: input, shape index: {}]   ;;  %s23365_s15 = inlined_call_operand.vmem [shape: f32[8,1,128], index: 15, kind: input, shape index: {}]   ;;  %s23366_s16 = inlined_call_operand.hbm [shape: f32[2,4,6], index: 16, kind: output, shape index: {}]  }
   0x1   :  { %23461 = sst [smem:[#allocation37_spill]] %s23350_s0 }
   0x2   :  { %21 = vsyncpa [#allocation3], 0 }
   0x3   :  { %23 = vsyncpa [#allocation3 + $0x1], 0  ;;  %s19732_s21 = smov 0   ;;  %s19734_s22 = smov 0  }
   0x4   :  { %s19736_s23 = smov 0   ;;  %s19738_s24 = smov 0  }
   0x5 LB: > { %23462 = sst [smem:[#allocation5_spill]] %s19612_s21  ;;  %s19753_s25 = sadd.s32 4294967295, %s19624_s24   ;;  %s19624_s24 = sphi %s19738_s24, %s23628_s24   ;;  %s19620_s23 = sphi %s19736_s23, %s23630_s23   ;;  %s19616_s22 = sphi %s19734_s22, %s23632_s22   ;;  %s19612_s21 = sphi %s19732_s21, %s23631_s21  }
   0x6   : > { %23463 = sst [smem:[#allocation6_spill]] %s19620_s23  ;;  %s15435_s26 = sadd.s32 4294967294, %s19624_s24  }
   0x7   : > { %s19757_s27 = sadd.s32 1, %s19624_s24   ;;  %s387_s28 = sadd.s32 1, %s19620_s23 }
   0x8   : > { %23464 = sst [smem:[#allocation7_spill]] %s19757_s27  ;;  %s384_s29 = ssub.s32 %s19624_s24, %s19757_s27 }
   0x9   : > { %p397_p0 = scmp.ne.s32.totalorder %s19620_s23, %s19616_s22  ;;  %p385_p1 = scmp.eq.s32.totalorder %s384_s29, 0 }
   0xa   : > { %p398_p2 = scmp.eq.s32.totalorder %s19753_s25, 1  ;;  %p403_p3 = scmp.ne.s32.totalorder %s19616_s22, %s19612_s21 }
   0xb   : > { %p404_p4 = scmp.eq.s32.totalorder %s15435_s26, 1  ;;  %p15438_p7 = scmp.ge.s32.totalorder %s19624_s24, 1 }
   0xc   : > { %s19768_s30 = scalar_select %p385_p1, %s19620_s23, %s387_s28  }
   0xd   : > { %p19770_p5 = por %p398_p2, %p397_p0  ;;  %p19774_p6 = por %p404_p4, %p403_p3 }
   0xe   : > { %23465 = sst [smem:[#allocation8_spill]] %s19768_s30  ;;  %p491_p8 = scmp.lt.s32.totalorder %s19624_s24, 3 }
   0xf   : > { %s23467_s17 = scalar_select %p19774_p6, 1, 0 }
  0x10   : > { %p492_p9 = pnand %p15438_p7, %p491_p8 }
  0x11   : > { %23468 = sst [smem:[#allocation9_spill]] %s23467_s17 }
  0x12   : > { %495 = sbr.rel (%p492_p9) target bundleno = 10368 (0x2880), region = 84 }
  0x19   : > { %v608_v0 = vld [vmem:[%s23353_s3] sm:$0xff]  ;;  %v609_v1 = vld [vmem:[%s23353_s3 + $0x8] sm:$0xff]  ;;  %v610_v2 = vld [vmem:[%s23353_s3 + $0x10] sm:$0xff]  ;;  %s15440_s30 = sshll.u32 %s19753_s25, 2  ;;  %s23469_s26 = sld [smem:[#allocation37_spill]]  ;;  %vm612_vm0 = vcmask 261120  }
  0x1a   : > { %v17707_v3 = vpack.c.bf16 %v609_v1, %v608_v0  ;;  %v611_v4 = vld [vmem:[%s23353_s3 + $0x18] sm:$0xff]  ;;  %p555_p10 = scmp.lt.s32.totalorder %s15440_s30, 7  ;;  %v742_v6 = vld [vmem:[%s23355_s5] sm:$0xff]  ;;  %v743_v7 = vld [vmem:[%s23355_s5 + $0x8] sm:$0xff]  ;;  %vm23460_vm1 = vcmask 7168   ;;  %s23417_s19 = smov 127  }
  0x1b   : > { %v17711_v5 = vpack.c.bf16 %v611_v4, %v610_v2  ;;  %v17715_v8 = vpack.c.bf16 %v743_v7, %v742_v6  ;;  %v744_v9 = vld [vmem:[%s23355_s5 + $0x10] sm:$0xff]  ;;  %v745_v10 = vld [vmem:[%s23355_s5 + $0x18] sm:$0xff]  ;;  %v746_v13 = vld [vmem:[%s23355_s5 + $0x20] sm:$0xff]  ;;  %vm1263_vm6 = vcmask 130048   ;;  %s23415_s29 = smov 126   ;;  %s23413_s17 = smov 125  }
  0x1c   : > { %17708 = vmatprep.subr.bf16.mxu1 %v17707_v3  ;;  %s23634_s30 = smov (!%p555_p10, %s15440_s30), 7  ;;  %v17719_v12 = vpack.c.bf16 %v745_v10, %v744_v9  ;;  %v747_v16 = vld [vmem:[%s23355_s5 + $0x28] sm:$0xff]  ;;  %v748_v20 = vld [vmem:[%s23355_s5 + $0x30] sm:$0xff]  ;;  %v749_v21 = vld [vmem:[%s23355_s5 + $0x38] sm:$0xff]  ;;  %s23411_s21 = smov 124  }
  0x1d   : > { %17710 = vmatpush3.bf16.msra.mxu1 %v17707_v3  ;;  %s19799_s20 = sshll.u32 %s23634_s30, 4  ;;  %v17723_v19 = vpack.c.bf16 %v747_v16, %v746_v13  ;;  %v17727_v24 = vpack.c.bf16 %v749_v21, %v748_v20  ;;  %v750_v25 = vld [vmem:[%s23355_s5 + $0x40] sm:$0xff]  ;;  %v751_v26 = vld [vmem:[%s23355_s5 + $0x48] sm:$0xff]  ;;  %v752_v29 = vld [vmem:[%s23355_s5 + $0x50] sm:$0xff]  ;;  %s23409_s18 = smov 123  }
  0x1e   : > { %17712 = vmatprep.subr.bf16.mxu1 %v17711_v5  ;;  %v17731_v28 = vpack.c.bf16 %v751_v26, %v750_v25  ;;  %v753_v30 = vld [vmem:[%s23355_s5 + $0x58] sm:$0xff]  ;;  %v754_v32 = vld [vmem:[%s23355_s5 + $0x60] sm:$0xff]  ;;  %v755_v33 = vld [vmem:[%s23355_s5 + $0x68] sm:$0xff]  ;;  %s23405_s30 = smov 121   ;;  %s23588_s23 = smov 122  }
  0x1f   : > { %s19805_s28 = scalar_lea.vmem %s23469_s26, %s19799_s20  ;;  %v17735_v31 = vpack.c.bf16 %v753_v30, %v752_v29  ;;  %v17739_v34 = vpack.c.bf16 %v755_v33, %v754_v32  ;;  %v756_v35 = vld [vmem:[%s23355_s5 + $0x70] sm:$0xff]  ;;  %v757_v36 = vld [vmem:[%s23355_s5 + $0x78] sm:$0xff]  ;;  %v19868_v38 = vld [vmem:[%s23365_s15 + $0x1] ss:$0 sm:$0xff]  ;;  %s20224_s26 = scalar_lea.vmem %s23351_s1, %s19799_s20 }
  0x20   : > { %v600_v11 = vld [vmem:[%s19805_s28] sm:$0xff]  ;;  %v601_v14 = vld [vmem:[%s19805_s28 + $0x8] sm:$0xff]  ;;  %v602_v15 = vld [vmem:[%s19805_s28 + $0x10] sm:$0xff]  ;;  %v17743_v37 = vpack.c.bf16 %v757_v36, %v756_v35  ;;  %s23601_s27 = smov 121  }
  0x21   : > { %17714 = vmatpush3.bf16.msra.mxu1 %v17711_v5  ;;  %16568 = vmatprep.mubr.msk.f32.mxu1 %vm612_vm0, %v600_v11  ;;  %v603_v17 = vld [vmem:[%s19805_s28 + $0x18] sm:$0xff]  ;;  %v604_v18 = vld [vmem:[%s19805_s28 + $0x20] sm:$0xff]  ;;  %v605_v22 = vld [vmem:[%s19805_s28 + $0x28] sm:$0xff] }
  0x22   : > { %17716 = vmatprep.subr.bf16.mxu1 %v17715_v8  ;;  %v606_v23 = vld [vmem:[%s19805_s28 + $0x30] sm:$0xff]  ;;  %v607_v27 = vld [vmem:[%s19805_s28 + $0x38] sm:$0xff]  ;;  %v19873_v39 = vld [vmem:[%s23365_s15] ss:$0 sm:$0xff]  ;;  %s23407_s28 = smov 122  }
  0x23   : > { %v19878_v40 = vld [vmem:[%s23365_s15 + $0x2] ss:$0 sm:$0xff]  ;;  %v19883_v41 = vld [vmem:[%s23365_s15 + $0x3] ss:$0 sm:$0xff]  ;;  %v19890_v43 = vld [vmem:[%s23365_s15 + $0x4] ss:$0 sm:$0xff] }
  0x24   : > { %16569 = vmatmul.mubr.msk.f32.vlgmr.msra.gmra.mrb[0].mxu1 %vm612_vm0, %v601_v14  ;;  %v19895_v44 = vld [vmem:[%s23365_s15 + $0x5] ss:$0 sm:$0xff]  ;;  %vm20080_vm2 = vmpackc.low %vm23460_vm1, %vm23460_vm1 }
  0x25   : > { %16571 = vmatprep.mubr.msk.f32.mxu1 %vm612_vm0, %v602_v15  ;;  %17718 = vmatpush3.bf16.msra.mxu1 %v17715_v8 }
  0x26   : > { %17720 = vmatprep.subr.bf16.mxu1 %v17719_v12 }
  0x28   : > { %16572 = vmatmul.mubr.msk.f32.gmra.mrb[2].mxu1 %vm612_vm0, %v603_v17 }
  0x29   : > { %16574 = vmatprep.mubr.msk.f32.mxu1 %vm612_vm0, %v604_v18  ;;  %17722 = vmatpush3.bf16.msra.mxu1 %v17719_v12 }
  0x2a   : > { %17724 = vmatprep.subr.bf16.mxu1 %v17723_v19 }
  0x2c   : > { %16575 = vmatmul.mubr.msk.f32.gmra.mrb[4].mxu1 %vm612_vm0, %v605_v22 }
  0x2d   : > { %16577 = vmatprep.mubr.msk.f32.mxu1 %vm612_vm0, %v606_v23  ;;  %17726 = vmatpush3.bf16.msra.mxu1 %v17723_v19 }
  0x2e   : > { %17728 = vmatprep.subr.bf16.mxu1 %v17727_v24 }
  0x30   : > { %16578 = vmatmul.mubr.msk.f32.gmra.mrb[6].mxu1 %vm612_vm0, %v607_v27 }
  0x31   : > { %17730 = vmatpush3.bf16.msra.mxu1 %v17727_v24 }
  0x32   : > { %17732 = vmatprep.subr.bf16.mxu1 %v17731_v28 }
  0x35   : > { %17734 = vmatpush3.bf16.msra.mxu1 %v17731_v28 }
  0x36   : > { %17736 = vmatprep.subr.bf16.mxu1 %v17735_v31 }
  0x39   : > { %17738 = vmatpush3.bf16.msra.mxu1 %v17735_v31 }
  0x3a   : > { %17740 = vmatprep.subr.bf16.mxu1 %v17739_v34 }
  0x3d   : > { %17742 = vmatpush3.bf16.msra.mxu1 %v17739_v34 }
  0x3e   : > { %17744 = vmatprep.subr.bf16.mxu1 %v17743_v37 }
  0x41   : > { %17746 = vmatpush3.bf16.msra.mxu1 %v17743_v37 }
  0xf7   : > { %v19885_v42 = vpop.f32.mrb[0].mxu1 }
  0xf8   : > { %v19897_v45 = vpop.f32.mrb[1].mxu1  ;;  %v1884_v46 = vmul.f32 %v19885_v42, %v19868_v38  ;;  %v1368_v47 = vmul.f32 %v19885_v42, %v19873_v39  ;;  %v3048_v48 = vmul.f32 %v19885_v42, %v19878_v40  ;;  %v3896_v49 = vmul.f32 %v19885_v42, %v19883_v41 }
  0xf9   : > { %16612 = vmatprep.mubr.f32.mxu1 %v19897_v45  ;;  %v1883_v50 = vmul.f32 %v19868_v38, %v19897_v45  ;;  %v1367_v51 = vmul.f32 %v19873_v39, %v19897_v45  ;;  %v3047_v52 = vmul.f32 %v19878_v40, %v19897_v45  ;;  %v3895_v53 = vmul.f32 %v19883_v41, %v19897_v45 }
  0xfa   : > { %16613 = vmatmul.mubr.f32.vlgmr.msra.gmra.mrb[8].mxu1 %v19885_v42  ;;  %v4743_v54 = vmul.f32 %v19890_v43, %v19897_v45  ;;  %v4744_v55 = vmul.f32 %v19885_v42, %v19890_v43  ;;  %v5591_v56 = vmul.f32 %v19895_v44, %v19897_v45  ;;  %v5592_v57 = vmul.f32 %v19885_v42, %v19895_v44 }
  0xfb   : > { %v19925_v58 = vpop.f32.mrb[2].mxu1  ;;  %v19927_v59 = vpack.c.bf16 %v1884_v46, %v1883_v50  ;;  %v19929_v60 = vpack.c.bf16 %v1368_v47, %v1367_v51  ;;  %v19931_v61 = vpack.c.bf16 %v3048_v48, %v3047_v52  ;;  %v19933_v62 = vpack.c.bf16 %v3896_v49, %v3895_v53 }
  0xfc   : > { %v19935_v63 = vpop.f32.mrb[3].mxu1  ;;  %v1886_v0 = vmul.f32 %v19925_v58, %v19868_v38  ;;  %v1370_v1 = vmul.f32 %v19925_v58, %v19873_v39  ;;  %v3050_v2 = vmul.f32 %v19925_v58, %v19878_v40  ;;  %v3898_v3 = vmul.f32 %v19925_v58, %v19883_v41 }
  0xfd   : > { %23470 = vst [vmem:[#allocation10_spill] sm:$0xff] %v19931_v61  ;;  %23471 = vst [vmem:[#allocation11_spill] sm:$0xff] %v19933_v62  ;;  %16615 = vmatprep.mubr.f32.mxu1 %v19935_v63  ;;  %v1885_v4 = vmul.f32 %v19868_v38, %v19935_v63  ;;  %v1369_v5 = vmul.f32 %v19873_v39, %v19935_v63  ;;  %v3049_v6 = vmul.f32 %v19878_v40, %v19935_v63 }
  0xfe   : > { %v3897_v7 = vmul.f32 %v19883_v41, %v19935_v63  ;;  %16616 = vmatmul.mubr.f32.gmra.mrb[10].mxu1 %v19925_v58  ;;  %v19955_v8 = vpack.c.bf16 %v4744_v55, %v4743_v54  ;;  %v4745_v9 = vmul.f32 %v19890_v43, %v19935_v63  ;;  %v4746_v10 = vmul.f32 %v19925_v58, %v19890_v43 }
  0xff   : > { %v19961_v11 = vpack.c.bf16 %v5592_v57, %v5591_v56  ;;  %v19963_v12 = vpop.f32.mrb[4].mxu1  ;;  %v19965_v13 = vpack.c.bf16 %v1886_v0, %v1885_v4  ;;  %v19967_v14 = vpack.c.bf16 %v1370_v1, %v1369_v5  ;;  %v19969_v15 = vpack.c.bf16 %v3050_v2, %v3049_v6 }
 0x100   : > { %23472 = vst [vmem:[#allocation12_spill] sm:$0xff] %v19955_v8  ;;  %v19971_v16 = vpack.c.bf16 %v3898_v3, %v3897_v7  ;;  %v723_v17 = vpop.f32.mrb[5].mxu1  ;;  %v1888_v18 = vmul.f32 %v19963_v12, %v19868_v38  ;;  %v1372_v19 = vmul.f32 %v19963_v12, %v19873_v39  ;;  %v3052_v20 = vmul.f32 %v19963_v12, %v19878_v40 }
 0x101   : > { %23473 = vst [vmem:[#allocation13_spill] sm:$0xff] %v19961_v11  ;;  %23474 = vst [vmem:[#allocation14_spill] sm:$0xff] %v19969_v15  ;;  %v3900_v21 = vmul.f32 %v19963_v12, %v19883_v41  ;;  %16618 = vmatprep.mubr.f32.mxu1 %v723_v17  ;;  %v1887_v22 = vmul.f32 %v19868_v38, %v723_v17  ;;  %v1371_v23 = vmul.f32 %v19873_v39, %v723_v17 }
 0x102   : > { %23475 = vst [vmem:[#allocation15_spill] sm:$0xff] %v19971_v16  ;;  %v3051_v24 = vmul.f32 %v19878_v40, %v723_v17  ;;  %v3899_v25 = vmul.f32 %v19883_v41, %v723_v17  ;;  %16619 = vmatmul.mubr.f32.gmra.mrb[12].mxu1 %v19963_v12  ;;  %v4747_v26 = vmul.f32 %v19890_v43, %v723_v17 }
 0x103   : > { %v4748_v27 = vmul.f32 %v19963_v12, %v19890_v43  ;;  %v19989_v28 = vpack.c.bf16 %v4746_v10, %v4745_v9  ;;  %v5595_v29 = vmul.f32 %v19895_v44, %v723_v17  ;;  %v16579_v30 = vpop.f32.mrb[6].mxu1  ;;  %v19992_v31 = vpack.c.bf16 %v1888_v18, %v1887_v22  ;;  %v15655_v18 = vld [vmem:[%s23365_s15 + $0x7] ss:$0 sm:$0xff] }
 0x104   : > { %v19994_v32 = vpack.c.bf16 %v1372_v19, %v1371_v23  ;;  %v19996_v33 = vpack.c.bf16 %v3052_v20, %v3051_v24  ;;  %v19998_v34 = vpack.c.bf16 %v3900_v21, %v3899_v25  ;;  %v733_v35 = vpop.f32.mrb[7].mxu1  ;;  %v1890_v36 = vmul.f32 %v16579_v30, %v19868_v38 }
 0x105   : > { %23476 = vst [vmem:[#allocation16_spill] sm:$0xff] %v19989_v28  ;;  %v1374_v37 = vmul.f32 %v16579_v30, %v19873_v39  ;;  %v3054_v46 = vmul.f32 %v16579_v30, %v19878_v40  ;;  %v3902_v47 = vmul.f32 %v16579_v30, %v19883_v41  ;;  %16621 = vmatprep.mubr.f32.mxu1 %v733_v35 }
 0x106   : > { %23477 = vst [vmem:[#allocation17_spill] sm:$0xff] %v19996_v33  ;;  %23478 = vst [vmem:[#allocation18_spill] sm:$0xff] %v19998_v34  ;;  %v1889_v48 = vmul.f32 %v19868_v38, %v733_v35  ;;  %v1373_v49 = vmul.f32 %v19873_v39, %v733_v35  ;;  %v3053_v50 = vmul.f32 %v19878_v40, %v733_v35  ;;  %16622 = vmatmul.mubr.f32.gmra.mrb[14].mxu1 %v16579_v30  ;;  %v15629_v40 = vld [vmem:[%s23365_s15 + $0x6] ss:$0 sm:$0xff] }
 0x107   : > { %v3901_v51 = vmul.f32 %v19883_v41, %v733_v35  ;;  %v20008_v52 = vpack.c.bf16 %v4748_v27, %v4747_v26  ;;  %v4749_v53 = vmul.f32 %v19890_v43, %v733_v35  ;;  %v4750_v54 = vmul.f32 %v16579_v30, %v19890_v43 }
 0x108   : > { %v5596_v55 = vmul.f32 %v19963_v12, %v19895_v44  ;;  %v20014_v56 = vpack.c.bf16 %v1890_v36, %v1889_v48  ;;  %v20016_v57 = vpack.c.bf16 %v1374_v37, %v1373_v49  ;;  %v20018_v38 = vpack.c.bf16 %v3054_v46, %v3053_v50 }
 0x109   : > { %23479 = vst [vmem:[#allocation19_spill] sm:$0xff] %v20008_v52  ;;  %v20020_v39 = vpack.c.bf16 %v3902_v47, %v3901_v51  ;;  %v20025_v41 = vpack.c.bf16 %v4750_v54, %v4749_v53  ;;  %v5593_v43 = vmul.f32 %v19895_v44, %v19935_v63  ;;  %v5594_v1 = vmul.f32 %v19925_v58, %v19895_v44 }
 0x10a   : > { %23480 = vst [vmem:[#allocation20_spill] sm:$0xff] %v20016_v57  ;;  %23481 = vst [vmem:[#allocation21_spill] sm:$0xff] %v20018_v38  ;;  %v20027_v0 = vpack.c.bf16 %v5596_v55, %v5595_v29  ;;  %v5597_v2 = vmul.f32 %v19895_v44, %v733_v35  ;;  %v5598_v3 = vmul.f32 %v16579_v30, %v19895_v44 }
 0x10b   : > { %23482 = vst [vmem:[#allocation22_spill] sm:$0xff] %v20020_v39  ;;  %23483 = vst [vmem:[#allocation23_spill] sm:$0xff] %v20025_v41  ;;  %v6443_v4 = vmul.f32 %v15629_v40, %v723_v17  ;;  %v6444_v5 = vmul.f32 %v19963_v12, %v15629_v40  ;;  %v20036_v6 = vpack.c.bf16 %v5594_v1, %v5593_v43 }
 0x10c   : > { %23484 = vst [vmem:[#allocation24_spill] sm:$0xff] %v20027_v0  ;;  %v6439_v7 = vmul.f32 %v15629_v40, %v19897_v45  ;;  %v6440_v9 = vmul.f32 %v19885_v42, %v15629_v40  ;;  %v6441_v10 = vmul.f32 %v15629_v40, %v19935_v63  ;;  %v20044_v19 = vpack.c.bf16 %v5598_v3, %v5597_v2 }
 0x10d   : > { %23485 = vst [vmem:[#allocation25_spill] sm:$0xff] %v20036_v6  ;;  %v20046_v20 = vpack.c.bf16 %v6444_v5, %v6443_v4  ;;  %v6442_v44 = vmul.f32 %v19925_v58, %v15629_v40  ;;  %v6445_v21 = vmul.f32 %v15629_v40, %v733_v35  ;;  %v6446_v23 = vmul.f32 %v16579_v30, %v15629_v40  ;;  %v20256_v6 = vld [vmem:[%s20224_s26 + $0x18] sm:$0xff] }
 0x10e   : > { %23486 = vst [vmem:[#allocation26_spill] sm:$0xff] %v20044_v19  ;;  %v20049_v22 = vpack.c.bf16 %v6440_v9, %v6439_v7  ;;  %v7291_v24 = vmul.f32 %v15655_v18, %v723_v17  ;;  %v7292_v25 = vmul.f32 %v19963_v12, %v15655_v18  ;;  %v7287_v27 = vmul.f32 %v15655_v18, %v19897_v45  ;;  %v20253_v19 = vld [vmem:[%s20224_s26 + $0x10] sm:$0xff] }
 0x10f   : > { %23487 = vst [vmem:[#allocation27_spill] sm:$0xff] %v20046_v20  ;;  %v20052_v26 = vpack.c.bf16 %v6442_v44, %v6441_v10  ;;  %v7288_v29 = vmul.f32 %v19885_v42, %v15655_v18  ;;  %v7289_v36 = vmul.f32 %v15655_v18, %v19935_v63  ;;  %v20057_v37 = vpack.c.bf16 %v6446_v23, %v6445_v21 }
 0x110   : > { %23488 = vst [vmem:[#allocation28_spill] sm:$0xff] %v20049_v22  ;;  %v20059_v46 = vpack.c.bf16 %v7292_v25, %v7291_v24  ;;  %v7290_v47 = vmul.f32 %v19925_v58, %v15655_v18  ;;  %v7293_v48 = vmul.f32 %v15655_v18, %v733_v35  ;;  %v7294_v17 = vmul.f32 %v16579_v30, %v15655_v18 }
 0x111   : > { %23489 = vst [vmem:[#allocation29_spill] sm:$0xff] %v20052_v26  ;;  %23490 = vst [vmem:[#allocation30_spill] sm:$0xff] %v20057_v37  ;;  %v20062_v49 = vpack.c.bf16 %v7288_v29, %v7287_v27  ;;  %v23374_v45 = vmov 9   ;;  %v23376_v42 = vmov 1.0   ;;  %v23372_v10 = vmov 8  }
 0x112   : > { %23491 = vst [vmem:[#allocation31_spill] sm:$0xff] %v20059_v46  ;;  %v20064_v50 = vpack.c.bf16 %v7290_v47, %v7289_v36  ;;  %v20066_v12 = vpack.c.bf16 %v7294_v17, %v7293_v48  ;;  %18708 = vset.pattern.permute.xlu0 %v23374_v45  ;;  %16628 = vmatprep.mubr.msk.f32.mxu0 %vm23460_vm1, %v23376_v42  ;;  %vm586_vm12 = vcmp.gt.f32.partialorder %v20256_v6, 0.0  ;;  %vm585_vm13 = vcmp.gt.f32.partialorder %v20253_v19, 0.0 }
 0x113   : > { %23492 = vst [vmem:[#allocation32_spill] sm:$0xff] %v20062_v49  ;;  %18709 = vset.pattern.permute.xlu1 %v23374_v45  ;;  %16656 = vmatprep.mubr.msk.f32.mxu1 %vm23460_vm1, %v23376_v42 }
 0x114   : > { %23493 = vst [vmem:[#allocation33_spill] sm:$0xff] %v20064_v50  ;;  %23494 = vst [vmem:[#allocation34_spill] sm:$0xff] %v20066_v12 }
 0x1cd   : > { %v20074_v58 = vpop.f32.mrb[8].mxu1 }
 0x1ce   : > { %v20076_v63 = vpop.f32.mrb[9].mxu1 }
 0x1cf   : > { %v20086_v35 = vpack.i.bf16 %v20074_v58, %v20076_v63  ;;  %v17747_v51 = vpack.c.bf16 %v20074_v58, %v20076_v63 }
 0x1d1   : > { %18689 = vrot.lane.b32.xlu0 %v20086_v35, %s23417_s19  ;;  %v20092_v53 = vpop.f32.mrb[10].mxu1  ;;  %17749 = vmatprep.subr.msk.bf16.mxu0 %vm20080_vm2, %v17747_v51 }
 0x1d2   : > { %v20096_v54 = vpop.f32.mrb[11].mxu1  ;;  %17752 = vmatpush3.bf16.xpose.msk.msra.mxu0 %vm20080_vm2, %v17747_v51 }
 0x1d3   : > { %v20102_v55 = vpack.i.bf16 %v20092_v53, %v20096_v54  ;;  %v17753_v40 = vpack.c.bf16 %v20092_v53, %v20096_v54 }
 0x1d5   : > { %18694 = vrot.lane.b32.xlu0 %v20102_v55, %s23417_s19  ;;  %v20108_v43 = vpop.f32.mrb[12].mxu1  ;;  %17755 = vmatprep.subr.msk.bf16.mxu0 %vm20080_vm2, %v17753_v40 }
 0x1d6   : > { %v20112_v1 = vpop.f32.mrb[13].mxu1 }
 0x1d7   : > { %v20116_v2 = vpack.i.bf16 %v20108_v43, %v20112_v1  ;;  %v17759_v3 = vpack.c.bf16 %v20108_v43, %v20112_v1 }
 0x1d9   : > { %16629 = vmatmul.mubr.msk.f32.vlgmr.msra.gmra.mrb[0].mxu0 %vm23460_vm1, %v23376_v42  ;;  %1708 = vperm.xlu0 %18708, %v20076_v63   ;;  %v20123_v4 = vpop.f32.mrb[14].mxu1 }
 0x1da   : > { %18699 = vrot.lane.b32.xlu1 %v20116_v2, %s23417_s19  ;;  %v20127_v5 = vpop.f32.mrb[15].mxu1  ;;  %17758 = vmatpush3.bf16.xpose.msk.msra.mxu0 %vm20080_vm2, %v17753_v40 }
 0x1db   : > { %v20133_v7 = vpack.i.bf16 %v20123_v4, %v20127_v5  ;;  %17761 = vmatprep.subr.msk.bf16.mxu0 %vm20080_vm2, %v17759_v3  ;;  %16635 = vmatprep.mubr.msk.f32.mxu0 %vm23460_vm1, %v23376_v42  ;;  %v17765_v9 = vpack.c.bf16 %v20123_v4, %v20127_v5 }
 0x1dd   : > { %1720 = vperm.xlu0 %18708, %v20092_v53  }
 0x1de   : > { %18704 = vrot.lane.b32.xlu1 %v20133_v7, %s23417_s19  ;;  %s23551_s19 = smov 127  }
 0x1e1   : > { %16636 = vmatmul.mubr.msk.f32.vlgmr.msra.gmra.mrb[2].mxu0 %vm23460_vm1, %v23376_v42  ;;  %1728 = vperm.xlu0 %18708, %v20108_v43  }
 0x1e2   : > { %1712 = vperm.xlu1 %18709, %v20074_v58   ;;  %17764 = vmatpush3.bf16.xpose.msk.msra.mxu0 %vm20080_vm2, %v17759_v3 }
 0x1e3   : > { %17767 = vmatprep.subr.msk.bf16.mxu0 %vm20080_vm2, %v17765_v9  ;;  %16642 = vmatprep.mubr.msk.f32.mxu0 %vm23460_vm1, %v23376_v42 }
 0x1e5   : > { %1736 = vperm.xlu0 %18708, %v20123_v4  }
 0x1e6   : > { %1716 = vperm.xlu1 %18709, %v20096_v54  }
 0x1e9   : > { %16643 = vmatmul.mubr.msk.f32.vlgmr.msra.gmra.mrb[4].mxu0 %vm23460_vm1, %v23376_v42  ;;  %18711 = vset.pattern.permute.xlu0 %v23372_v10 }
 0x1ea   : > { %1724 = vperm.xlu1 %18709, %v20112_v1   ;;  %1196 = vperm.xlu0 %18711, %v20074_v58  }
 0x1eb   : > { %17770 = vmatpush3.bf16.xpose.msk.msra.mxu0 %vm20080_vm2, %v17765_v9  ;;  %16649 = vmatprep.mubr.msk.f32.mxu0 %vm23460_vm1, %v23376_v42 }
 0x1ee   : > { %18710 = vset.pattern.permute.xlu1 %v23372_v10  ;;  %1200 = vperm.xlu0 %18711, %v20096_v54  }
 0x1ef   : > { %1192 = vperm.xlu1 %18710, %v20076_v63  }
 0x1f2   : > { %16650 = vmatmul.mubr.msk.f32.vlgmr.msra.gmra.mrb[6].mxu0 %vm23460_vm1, %v23376_v42  ;;  %1216 = vperm.xlu0 %18711, %v20127_v5  }
 0x1f3   : > { %18712 = vset.pattern.permute.xlu1 %v23374_v45  ;;  %16663 = vmatprep.mubr.msk.f32.mxu0 %vm23460_vm1, %v23376_v42 }
 0x1f4   : > { %1732 = vperm.xlu1 %18712, %v20127_v5  }
 0x1f8   : > { %18713 = vset.pattern.permute.xlu1 %v23372_v10 }
 0x1f9   : > { %1208 = vperm.xlu1 %18713, %v20112_v1  }
 0x1fd   : > { %1212 = vperm.xlu1 %18713, %v20108_v43  }
 0x201   : > { %1204 = vperm.xlu1 %18713, %v20092_v53  }
 0x205   : > { %1220 = vperm.xlu1 %18713, %v20123_v4  }
 0x243   : > { %v18690_v18 = vpop.permute.xlu0 %18689 }
 0x244   : > { %v18692_v44 = vunpack.i.h.bf16 %v18690_v18  ;;  %v18691_v21 = vunpack.i.l.bf16 %v18690_v18 }
 0x246   : > { %v17771_v23 = vpack.c.bf16 %v18692_v44, %v18691_v21 }
 0x247   : > { %v18695_v24 = vpop.permute.xlu0 %18694 }
 0x248   : > { %v18697_v25 = vunpack.i.h.bf16 %v18695_v24  ;;  %v18696_v27 = vunpack.i.l.bf16 %v18695_v24  ;;  %17773 = vmatprep.subr.msk.bf16.mxu1 %vm20080_vm2, %v17771_v23 }
 0x249   : > { %17776 = vmatpush3.bf16.xpose.msk.msra.mxu1 %vm20080_vm2, %v17771_v23 }
 0x24a   : > { %v17777_v29 = vpack.c.bf16 %v18697_v25, %v18696_v27 }
 0x24c   : > { %v18700_v36 = vpop.permute.xlu1 %18699  ;;  %17779 = vmatprep.subr.msk.bf16.mxu0 %vm20080_vm2, %v17777_v29 }
 0x24d   : > { %v18702_v47 = vunpack.i.h.bf16 %v18700_v36  ;;  %v18701_v48 = vunpack.i.l.bf16 %v18700_v36  ;;  %17782 = vmatpush3.bf16.xpose.msk.msra.mxu0 %vm20080_vm2, %v17777_v29  ;;  %v20230_v36 = vld [vmem:[%s20224_s26] sm:$0xff] }
 0x24e   : > { %vm583_vm5 = vcmp.gt.f32.partialorder %v20230_v36, 0.0 }
 0x24f   : > { %v17783_v17 = vpack.c.bf16 %v18702_v47, %v18701_v48 }
 0x250   : > { %v18705_v51 = vpop.permute.xlu1 %18704  ;;  %16657 = vmatmul.mubr.msk.f32.vlgmr.msra.gmra.mrb[16].mxu1 %vm23460_vm1, %v23376_v42 }
 0x251   : > { %v18707_v40 = vunpack.i.h.bf16 %v18705_v51  ;;  %v18706_v3 = vunpack.i.l.bf16 %v18705_v51  ;;  %17785 = vmatprep.subr.msk.bf16.mxu1 %vm20080_vm2, %v17783_v17  ;;  %16670 = vmatprep.mubr.msk.f32.mxu1 %vm23460_vm1, %v23376_v42 }
 0x252   : > { %17788 = vmatpush3.bf16.xpose.msk.msra.mxu1 %vm20080_vm2, %v17783_v17 }
 0x253   : > { %v17789_v9 = vpack.c.bf16 %v18707_v40, %v18706_v3  ;;  %17800 = vmatprep.subr.bf16.mxu1 %v19965_v13 }
 0x254   : > { %16664 = vmatmul.mubr.msk.f32.vlgmr.msra.gmra.mrb[8].mxu0 %vm23460_vm1, %v23376_v42 }
 0x255   : > { %17791 = vmatprep.subr.msk.bf16.mxu0 %vm20080_vm2, %v17789_v9  ;;  %16677 = vmatprep.mubr.msk.f32.mxu0 %vm23460_vm1, %v23376_v42 }
 0x256   : > { %17794 = vmatpush3.bf16.xpose.msk.msra.mxu0 %vm20080_vm2, %v17789_v9 }
 0x257   : > { %17796 = vmatprep.subr.bf16.mxu0 %v19927_v59 }
 0x258   : > { %v1709_v18 = vpop.permute.xlu0 %1708 }
 0x259   : > { %16671 = vmatmul.mubr.msk.f32.vlgmr.msra.gmra.mrb[18].mxu1 %vm23460_vm1, %v23376_v42 }
 0x25a   : > { %17802 = vmatpush3.bf16.msra.mxu1 %v19965_v13 }
 0x25b   : > { %17808 = vmatprep.subr.bf16.mxu1 %v20014_v56 }
 0x25c   : > { %v1721_v44 = vpop.permute.xlu0 %1720 }
 0x25d   : > { %16678 = vmatmul.mubr.msk.f32.vlgmr.msra.gmra.mrb[10].mxu0 %vm23460_vm1, %v23376_v42 }
 0x25e   : > { %17798 = vmatpush3.bf16.msra.mxu0 %v19927_v59  ;;  %v20227_v59 = vld [vmem:[%s20224_s26 + $0x8] sm:$0xff] }
 0x25f   : > { %17804 = vmatprep.subr.bf16.mxu0 %v19992_v31  ;;  %vm584_vm3 = vcmp.gt.f32.partialorder %v20227_v59, 0.0 }
 0x260   : > { %v20214_v23 = vpop.permute.xlu0 %1728 }
 0x261   : > { %v1713_v21 = vpop.permute.xlu1 %1712 }
 0x264   : > { %v20216_v25 = vpop.permute.xlu0 %1736 }
 0x265   : > { %v1717_v24 = vpop.permute.xlu1 %1716 }
 0x269   : > { %v20218_v27 = vpop.permute.xlu1 %1724  ;;  %v1197_v13 = vpop.permute.xlu0 %1196 }
 0x26e   : > { %v1193_v47 = vpop.permute.xlu1 %1192 }
 0x2ac   : > { %v16630_v29 = vpop.f32.mrb[0].mxu0 }
 0x2ad   : > { %v1224_v48 = vadd.f32 %v16630_v29, %v1197_v13  ;;  %v939_v17 = vpop.f32.mrb[1].mxu0 }
 0x2ae   : > { %v1223_v51 = vadd.f32 %v1193_v47, %v939_v17 }
 0x2af   : > { %v1240_v40 = vmul.f32 0.2, %v1224_v48  ;;  %vm1232_vm4 = vcmp.gt.f32.partialorder %v1224_v48, 0.0 }
 0x2b0   : > { %v1239_v3 = vmul.f32 0.2, %v1223_v51  ;;  %vm1231_vm7 = vcmp.gt.f32.partialorder %v1223_v51, 0.0 }
 0x2b1   : > { %v1248_v9 = vsel %vm1232_vm4, %v1224_v48, %v1240_v40 }
 0x2b2   : > { %v20236_v10 = vsel %vm584_vm3, %v1248_v9, -1e+30  ;;  %v1247_v45 = vsel %vm1231_vm7, %v1223_v51, %v1239_v3  ;;  %v1733_v3 = vpop.permute.xlu1 %1732 }
 0x2b3   : > { %v1267_v13 = vsel %vm1263_vm6, %v20236_v10, -inf  ;;  %v20242_v29 = vsel %vm583_vm5, %v1247_v45, -1e+30 }
 0x2b4   : > { %v20244_v47 = vpop.f32.mrb[2].mxu0  ;;  %1268 = vmax.xlane.f32.xlu0 %v1267_v13  ;;  %v1264_v17 = vsel %vm1263_vm6, %v20242_v29, -inf }
 0x2b5   : > { %v1020_v42 = vpop.f32.mrb[3].mxu0  ;;  %1265 = vmax.xlane.f32.xlu1 %v1264_v17 }
 0x2b6   : > { %v1209_v46 = vpop.permute.xlu1 %1208 }
 0x2bc   : > { %v16644_v48 = vpop.f32.mrb[4].mxu0 }
 0x2bd   : > { %v1101_v40 = vpop.f32.mrb[5].mxu0 }
 0x2be   : > { %v1227_v28 = vadd.f32 %v1209_v46, %v1101_v40 }
 0x2c0   : > { %v1243_v39 = vmul.f32 0.2, %v1227_v28 }
 0x2c5   : > { %v20248_v9 = vpop.f32.mrb[6].mxu0 }
 0x2c6   : > { %v20250_v51 = vpop.f32.mrb[7].mxu0 }
 0x323   : > { %v16658_v12 = vpop.f32.mrb[16].mxu1 }
 0x324   : > { %v1740_v45 = vadd.f32 %v16658_v12, %v1713_v21  ;;  %v1449_v50 = vpop.f32.mrb[17].mxu1 }
 0x325   : > { %v1739_v49 = vadd.f32 %v1709_v18, %v1449_v50 }
 0x326   : > { %v1756_v13 = vmul.f32 0.2, %v1740_v45  ;;  %vm1748_vm8 = vcmp.gt.f32.partialorder %v1740_v45, 0.0 }
 0x327   : > { %v1755_v37 = vmul.f32 0.2, %v1739_v49  ;;  %v16665_v26 = vpop.f32.mrb[8].mxu0  ;;  %vm1747_vm9 = vcmp.gt.f32.partialorder %v1739_v49, 0.0 }
 0x328   : > { %v1742_v17 = vadd.f32 %v16665_v26, %v1721_v44  ;;  %v1532_v22 = vpop.f32.mrb[9].mxu0  ;;  %v1764_v20 = vsel %vm1748_vm8, %v1740_v45, %v1756_v13  ;;  %v20269_v44 = vld [vmem:[%s20224_s26 + $0x20] sm:$0xff]  ;;  %vm1235_vm8 = vcmp.gt.f32.partialorder %v1227_v28, 0.0 }
 0x329   : > { %v1741_v11 = vadd.f32 %v1717_v24, %v1532_v22  ;;  %v20260_v50 = vsel %vm584_vm3, %v1764_v20, -1e+30  ;;  %v1763_v12 = vsel %vm1747_vm9, %v1739_v49, %v1755_v37  ;;  %v20274_v20 = vld [vmem:[%s20224_s26 + $0x28] sm:$0xff]  ;;  %v20277_v37 = vld [vmem:[%s20224_s26 + $0x30] sm:$0xff]  ;;  %v1213_v49 = vpop.permute.xlu1 %1212  ;;  %vm587_vm14 = vcmp.gt.f32.partialorder %v20269_v44, 0.0 }
 0x32a   : > { %v1758_v18 = vmul.f32 0.2, %v1742_v17  ;;  %v1782_v21 = vsel %vm1263_vm6, %v20260_v50, -inf  ;;  %v20266_v26 = vsel %vm583_vm5, %v1763_v12, -1e+30  ;;  %vm1750_vm10 = vcmp.gt.f32.partialorder %v1742_v17, 0.0 }
 0x32b   : > { %v1757_v45 = vmul.f32 0.2, %v1741_v11  ;;  %1783 = vmax.xlane.f32.xlu1 %v1782_v21  ;;  %v1779_v22 = vsel %vm1263_vm6, %v20266_v26, -inf  ;;  %vm1749_vm11 = vcmp.gt.f32.partialorder %v1741_v11, 0.0  ;;  %vm588_vm15 = vcmp.gt.f32.partialorder %v20274_v20, 0.0 }
 0x32c   : > { %v16672_v24 = vpop.f32.mrb[18].mxu1  ;;  %1780 = vmax.xlane.f32.xlu0 %v1779_v22  ;;  %v1766_v13 = vsel %vm1750_vm10, %v1742_v17, %v1758_v18  ;;  %vm589_vm0 = vcmp.gt.f32.partialorder %v20277_v37, 0.0  ;;  %v1228_v46 = vadd.f32 %v16644_v48, %v1213_v49  ;;  %v19642_v37 = vmov 0  }
 0x32d   : > { %v1744_v12 = vadd.f32 %v16672_v24, %v20214_v23  ;;  %v1615_v0 = vpop.f32.mrb[19].mxu1  ;;  %v20284_v21 = vsel %vm586_vm12, %v1766_v13, -1e+30  ;;  %v1765_v41 = vsel %vm1749_vm11, %v1741_v11, %v1757_v45  ;;  %v1201_v23 = vpop.permute.xlu0 %1200  ;;  %v20298_v24 = vld [vmem:[%s20224_s26 + $0x38] sm:$0xff] }
 0x32e   : > { %v1743_v8 = vadd.f32 %v20218_v27, %v1615_v0  ;;  %v1788_v52 = vsel %vm1263_vm6, %v20284_v21, -inf  ;;  %v20294_v11 = vsel %vm585_vm13, %v1765_v41, -1e+30  ;;  %v1225_v0 = vadd.f32 %v1201_v23, %v1020_v42  ;;  %v1205_v13 = vpop.permute.xlu1 %1204 }
 0x32f   : > { %v1760_v17 = vmul.f32 0.2, %v1744_v12  ;;  %vm1752_vm4 = vcmp.gt.f32.partialorder %v1744_v12, 0.0  ;;  %v1785_v41 = vsel %vm1263_vm6, %v20294_v11, -inf  ;;  %vm1236_vm11 = vcmp.gt.f32.partialorder %v1228_v46, 0.0 }
 0x330   : > { %v1759_v18 = vmul.f32 0.2, %v1743_v8  ;;  %v16679_v22 = vpop.f32.mrb[10].mxu0  ;;  %1789 = vmax.xlane.f32.xlu0 %v1788_v52  ;;  %vm1751_vm7 = vcmp.gt.f32.partialorder %v1743_v8, 0.0  ;;  %v1241_v49 = vmul.f32 0.2, %v1225_v0 }
 0x331   : > { %v1746_v27 = vadd.f32 %v16679_v22, %v20216_v25  ;;  %v1698_v40 = vpop.f32.mrb[11].mxu0  ;;  %v1768_v45 = vsel %vm1752_vm4, %v1744_v12, %v1760_v17  ;;  %vm590_vm4 = vcmp.gt.f32.partialorder %v20298_v24, 0.0 }
 0x332   : > { %v1745_v16 = vadd.f32 %v1733_v3, %v1698_v40  ;;  %v1767_v62 = vsel %vm1751_vm7, %v1743_v8, %v1759_v18  ;;  %v20310_v48 = vsel %vm588_vm15, %v1768_v45, -1e+30  ;;  %v1217_v8 = vpop.permute.xlu0 %1216  ;;  %v1226_v3 = vadd.f32 %v20244_v47, %v1205_v13  ;;  %v1221_v47 = vpop.permute.xlu1 %1220 }
 0x333   : > { %v1762_v34 = vmul.f32 0.2, %v1746_v27  ;;  %v20302_v52 = vsel %vm587_vm14, %v1767_v62, -1e+30  ;;  %vm1754_vm9 = vcmp.gt.f32.partialorder %v1746_v27, 0.0  ;;  %v1229_v23 = vadd.f32 %v1217_v8, %v20250_v51 }
 0x334   : > { %v1761_v42 = vmul.f32 0.2, %v1745_v16  ;;  %v1791_v25 = vsel %vm1263_vm6, %v20302_v52, -inf  ;;  %1786 = vmax.xlane.f32.xlu0 %v1785_v41  ;;  %vm1753_vm10 = vcmp.gt.f32.partialorder %v1745_v16, 0.0  ;;  %v1244_v62 = vmul.f32 0.2, %v1228_v46 }
 0x335   : > { %1792 = vmax.xlane.f32.xlu1 %v1791_v25  ;;  %v1770_v12 = vsel %vm1754_vm9, %v1746_v27, %v1762_v34  ;;  %v1251_v18 = vsel %vm1235_vm8, %v1227_v28, %v1243_v39  ;;  %v1794_v22 = vsel %vm1263_vm6, %v20310_v48, -inf  ;;  %vm1233_vm7 = vcmp.gt.f32.partialorder %v1225_v0, 0.0 }
 0x336   : > { %v1769_v17 = vsel %vm1753_vm10, %v1745_v16, %v1761_v42  ;;  %v20326_v16 = vsel %vm590_vm4, %v1770_v12, -1e+30  ;;  %v1242_v28 = vmul.f32 0.2, %v1226_v3  ;;  %v1230_v39 = vadd.f32 %v20248_v9, %v1221_v47 }
 0x337   : > { %v20320_v40 = vsel %vm589_vm0, %v1769_v17, -1e+30  ;;  %v1259_v51 = vsel %vm587_vm14, %v1251_v18, -1e+30  ;;  %v1252_v27 = vsel %vm1236_vm11, %v1228_v46, %v1244_v62  ;;  %v1245_v45 = vmul.f32 0.2, %v1229_v23 }
 0x338   : > { %1795 = vmax.xlane.f32.xlu0 %v1794_v22  ;;  %v1797_v34 = vsel %vm1263_vm6, %v20320_v40, -inf  ;;  %v1249_v13 = vsel %vm1233_vm7, %v1225_v0, %v1241_v49  ;;  %vm1234_vm8 = vcmp.gt.f32.partialorder %v1226_v3, 0.0  ;;  %v1800_v41 = vsel %vm1263_vm6, %v20326_v16, -inf }
 0x339   : > { %1798 = vmax.xlane.f32.xlu1 %v1797_v34  ;;  %vm1237_vm9 = vcmp.gt.f32.partialorder %v1229_v23, 0.0  ;;  %v1276_v42 = vsel %vm1263_vm6, %v1259_v51, -inf  ;;  %v1260_v25 = vsel %vm588_vm15, %v1252_v27, -1e+30  ;;  %v1246_v8 = vmul.f32 0.2, %v1230_v39 }
 0x33a   : > { %v1257_v9 = vsel %vm585_vm13, %v1249_v13, -1e+30  ;;  %v1250_v12 = vsel %vm1234_vm8, %v1226_v3, %v1242_v28  ;;  %v1253_v46 = vsel %vm1237_vm9, %v1229_v23, %v1245_v45  ;;  %vm1238_vm10 = vcmp.gt.f32.partialorder %v1230_v39, 0.0 }
 0x33b   : > { %v1279_v0 = vsel %vm1263_vm6, %v1260_v25, -inf  ;;  %v1270_v49 = vsel %vm1263_vm6, %v1257_v9, -inf  ;;  %v20342_v62 = vsel %vm586_vm12, %v1250_v12, -1e+30  ;;  %v20346_v18 = vsel %vm589_vm0, %v1253_v46, -1e+30 }
 0x33c   : > { %1801 = vmax.xlane.f32.xlu0 %v1800_v41  ;;  %v1254_v22 = vsel %vm1238_vm10, %v1230_v39, %v1246_v8  ;;  %v1273_v34 = vsel %vm1263_vm6, %v20342_v62, -inf  ;;  %v1282_v27 = vsel %vm1263_vm6, %v20346_v18, -inf  ;;  %v23399_v46 = vmov 10  }
 0x33d   : > { %1277 = vmax.xlane.f32.xlu1 %v1276_v42  ;;  %v20356_v45 = vsel %vm590_vm4, %v1254_v22, -1e+30  ;;  %18734 = vset.pattern.permute.xlu0 %v23399_v46 }
 0x33e   : > { %18735 = vset.pattern.permute.xlu1 %v23399_v46 }
 0x340   : > { %1280 = vmax.xlane.f32.xlu0 %v1279_v0 }
 0x341   : > { %1271 = vmax.xlane.f32.xlu1 %v1270_v49  ;;  %v1269_v17 = vpop.xlane.xlu0 %1268 }
 0x342   : > { %v1289_v3 = vsub.f32 %v20236_v10, %v1269_v17  ;;  %v1266_v23 = vpop.xlane.xlu1 %1265  ;;  %v1285_v10 = vsel %vm1263_vm6, %v20356_v45, -inf }
 0x343   : > { %v1288_v47 = vsub.f32 %v20242_v29, %v1266_v23 }
 0x344   : > { %v1298_v28 = vmul.f32 1.442695, %v1289_v3  ;;  %1274 = vmax.xlane.f32.xlu0 %v1273_v34 }
 0x345   : > { %v1296_v13 = vmul.f32 1.442695, %v1288_v47  ;;  %1283 = vmax.xlane.f32.xlu1 %v1282_v27 }
 0x346   : > { %19006 = vpow2.f32 %v1298_v28 }
 0x347   : > { %19008 = vpow2.f32 %v1296_v13 }
 0x348   : > { %1286 = vmax.xlane.f32.xlu0 %v1285_v10 }
 0x350   : > { %v19007_v29 = vpop.eup %19006 }
 0x351   : > { %v19009_v39 = vpop.eup %19008  ;;  %v20362_v41 = vsel %vm584_vm3, %v19007_v29, 0.0 }
 0x352   : > { %v1323_v42 = vsel %vm1263_vm6, %v20362_v41, 0.0  ;;  %v20368_v8 = vsel %vm583_vm5, %v19009_v39, 0.0 }
 0x353   : > { %1324 = vadd.xlane.f32.xlu0 %v1323_v42  ;;  %v1320_v12 = vsel %vm1263_vm6, %v20368_v8, 0.0 }
 0x354   : > { %1321 = vadd.xlane.f32.xlu1 %v1320_v12 }
 0x3b8   : > { %v1784_v17 = vpop.xlane.xlu1 %1783 }
 0x3b9   : > { %v1781_v0 = vpop.xlane.xlu0 %1780  ;;  %v1804_v34 = vsub.f32 %v20260_v50, %v1784_v17 }
 0x3ba   : > { %v1803_v46 = vsub.f32 %v20266_v26, %v1781_v0 }
 0x3bb   : > { %v1813_v10 = vmul.f32 1.442695, %v1804_v34 }
 0x3bc   : > { %v1811_v17 = vmul.f32 1.442695, %v1803_v46 }
 0x3bd   : > { %v1790_v49 = vpop.xlane.xlu0 %1789  ;;  %19010 = vpow2.f32 %v1813_v10 }
 0x3be   : > { %v1806_v42 = vsub.f32 %v20284_v21, %v1790_v49 }
 0x3c0   : > { %v1817_v57 = vmul.f32 1.442695, %v1806_v42 }
 0x3c1   : > { %v1787_v22 = vpop.xlane.xlu0 %1786 }
 0x3c2   : > { %v1793_v3 = vpop.xlane.xlu1 %1792 }
 0x3c3   : > { %v1807_v34 = vsub.f32 %v20302_v52, %v1793_v3 }
 0x3c5   : > { %v1796_v23 = vpop.xlane.xlu0 %1795 }
 0x3c6   : > { %v1799_v47 = vpop.xlane.xlu1 %1798  ;;  %v1808_v50 = vsub.f32 %v20310_v48, %v1796_v23 }
 0x3c7   : > { %v19011_v49 = vpop.eup %19010 }
 0x3c8   : > { %v1821_v26 = vmul.f32 1.442695, %v1808_v50 }
 0x3c9   : > { %v1802_v28 = vpop.xlane.xlu0 %1801 }
 0x3ca   : > { %v1278_v27 = vpop.xlane.xlu1 %1277  ;;  %v1810_v21 = vsub.f32 %v20326_v16, %v1802_v28 }
 0x3cb   : > { %v1292_v13 = vsub.f32 %v1259_v51, %v1278_v27  ;;  %v1805_v51 = vsub.f32 %v20294_v11, %v1787_v22  ;;  %v20399_v27 = vsel %vm584_vm3, %v19011_v49, 0.0 }
 0x3cd   : > { %v1304_v29 = vmul.f32 1.442695, %v1292_v13  ;;  %v1281_v39 = vpop.xlane.xlu0 %1280 }
 0x3ce   : > { %v1293_v12 = vsub.f32 %v1260_v25, %v1281_v39  ;;  %v1272_v38 = vpop.xlane.xlu1 %1271 }
 0x3cf   : > { %v1290_v15 = vsub.f32 %v1257_v9, %v1272_v38  ;;  %19012 = vpow2.f32 %v1304_v29  ;;  %v1815_v38 = vmul.f32 1.442695, %v1805_v51  ;;  %v1819_v9 = vmul.f32 1.442695, %v1807_v34 }
 0x3d0   : > { %v1306_v33 = vmul.f32 1.442695, %v1293_v12 }
 0x3d1   : > { %v1300_v61 = vmul.f32 1.442695, %v1290_v15  ;;  %v1275_v25 = vpop.xlane.xlu0 %1274  ;;  %v1825_v15 = vmul.f32 1.442695, %v1810_v21 }
 0x3d2   : > { %19014 = vpow2.f32 %v1306_v33  ;;  %v1284_v0 = vpop.xlane.xlu1 %1283  ;;  %v1291_v33 = vsub.f32 %v20342_v62, %v1275_v25 }
 0x3d3   : > { %19016 = vpow2.f32 %v1300_v61  ;;  %v1294_v61 = vsub.f32 %v20346_v18, %v1284_v0  ;;  %v1809_v18 = vsub.f32 %v20320_v40, %v1799_v47  ;;  %v1838_v40 = vsel %vm1263_vm6, %v20399_v27, 0.0 }
 0x3d4   : > { %19018 = vpow2.f32 %v1817_v57  ;;  %v1302_v46 = vmul.f32 1.442695, %v1291_v33 }
 0x3d5   : > { %19020 = vpow2.f32 %v1811_v17  ;;  %v1287_v11 = vpop.xlane.xlu0 %1286  ;;  %v1308_v23 = vmul.f32 1.442695, %v1294_v61  ;;  %v1823_v47 = vmul.f32 1.442695, %v1809_v18 }
 0x3d6   : > { %19022 = vpow2.f32 %v1821_v26  ;;  %v1295_v22 = vsub.f32 %v20356_v45, %v1287_v11 }
 0x3d7   : > { %19024 = vpow2.f32 %v1815_v38 }
 0x3d8   : > { %19026 = vpow2.f32 %v1819_v9  ;;  %v1310_v29 = vmul.f32 1.442695, %v1295_v22 }
 0x3d9   : > { %v19013_v48 = vpop.eup %19012  ;;  %19028 = vpow2.f32 %v1825_v15 }
 0x3da   : > { %v20403_v45 = vsel %vm587_vm14, %v19013_v48, 0.0  ;;  %19030 = vpow2.f32 %v1302_v46 }
 0x3db   : > { %19032 = vpow2.f32 %v1308_v23  ;;  %v1332_v39 = vsel %vm1263_vm6, %v20403_v45, 0.0 }
 0x3dc   : > { %v19015_v52 = vpop.eup %19014  ;;  %19034 = vpow2.f32 %v1310_v29 }
 0x3dd   : > { %v19017_v16 = vpop.eup %19016  ;;  %v20385_v57 = vsel %vm588_vm15, %v19015_v52, 0.0  ;;  %19036 = vpow2.f32 %v1823_v47 }
 0x3de   : > { %v1335_v3 = vsel %vm1263_vm6, %v20385_v57, 0.0  ;;  %v20392_v62 = vsel %vm585_vm13, %v19017_v16, 0.0  ;;  %v19019_v13 = vpop.eup %19018 }
 0x3df   : > { %1336 = vadd.xlane.f32.xlu0 %v1335_v3  ;;  %v1326_v28 = vsel %vm1263_vm6, %v20392_v62, 0.0  ;;  %v19021_v10 = vpop.eup %19020  ;;  %v20411_v42 = vsel %vm586_vm12, %v19019_v13, 0.0 }
 0x3e0   : > { %1327 = vadd.xlane.f32.xlu1 %v1326_v28  ;;  %v19023_v12 = vpop.eup %19022  ;;  %v20415_v50 = vsel %vm583_vm5, %v19021_v10, 0.0  ;;  %v1844_v34 = vsel %vm1263_vm6, %v20411_v42, 0.0  ;;  %v1325_v29 = vpop.xlane.xlu0 %1324 }
 0x3e1   : > { %v19025_v17 = vpop.eup %19024  ;;  %v1835_v25 = vsel %vm1263_vm6, %v20415_v50, 0.0  ;;  %v20423_v26 = vsel %vm588_vm15, %v19023_v12, 0.0 }
 0x3e2   : > { %v19027_v51 = vpop.eup %19026  ;;  %v20427_v38 = vsel %vm585_vm13, %v19025_v17, 0.0  ;;  %v1850_v9 = vsel %vm1263_vm6, %v20423_v26, 0.0 }
 0x3e3   : > { %1839 = vadd.xlane.f32.xlu0 %v1838_v40  ;;  %v19029_v21 = vpop.eup %19028  ;;  %v1841_v0 = vsel %vm1263_vm6, %v20427_v38, 0.0  ;;  %v20439_v33 = vsel %vm587_vm14, %v19027_v51, 0.0  ;;  %v1322_v40 = vpop.xlane.xlu1 %1321 }
 0x3e4   : > { %1333 = vadd.xlane.f32.xlu1 %v1332_v39  ;;  %v20435_v15 = vsel %vm590_vm4, %v19029_v21, 0.0  ;;  %v19031_v49 = vpop.eup %19030  ;;  %v1847_v11 = vsel %vm1263_vm6, %v20439_v33, 0.0 }
 0x3e5   : > { %v19033_v48 = vpop.eup %19032  ;;  %v1856_v61 = vsel %vm1263_vm6, %v20435_v15, 0.0  ;;  %v20447_v52 = vsel %vm586_vm12, %v19031_v49, 0.0 }
 0x3e6   : > { %v19035_v16 = vpop.eup %19034  ;;  %v20451_v46 = vsel %vm589_vm0, %v19033_v48, 0.0  ;;  %v1329_v3 = vsel %vm1263_vm6, %v20447_v52, 0.0 }
 0x3e7   : > { %1845 = vadd.xlane.f32.xlu0 %v1844_v34  ;;  %v19037_v22 = vpop.eup %19036  ;;  %v1338_v18 = vsel %vm1263_vm6, %v20451_v46, 0.0  ;;  %v20459_v23 = vsel %vm590_vm4, %v19035_v16, 0.0 }
 0x3e8   : > { %1836 = vadd.xlane.f32.xlu1 %v1835_v25  ;;  %v20463_v28 = vsel %vm589_vm0, %v19037_v22, 0.0  ;;  %v1341_v13 = vsel %vm1263_vm6, %v20459_v23, 0.0 }
 0x3e9   : > { %v1853_v10 = vsel %vm1263_vm6, %v20463_v28, 0.0 }
 0x3eb   : > { %1851 = vadd.xlane.f32.xlu0 %v1850_v9 }
 0x3ec   : > { %1842 = vadd.xlane.f32.xlu1 %v1841_v0 }
 0x3ef   : > { %1857 = vadd.xlane.f32.xlu0 %v1856_v61 }
 0x3f0   : > { %1848 = vadd.xlane.f32.xlu1 %v1847_v11 }
 0x3f3   : > { %1330 = vadd.xlane.f32.xlu0 %v1329_v3 }
 0x3f4   : > { %1339 = vadd.xlane.f32.xlu1 %v1338_v18 }
 0x3f7   : > { %1342 = vadd.xlane.f32.xlu0 %v1341_v13 }
 0x3f8   : > { %1854 = vadd.xlane.f32.xlu1 %v1853_v10 }
 0x409   : > { %18715 = vrot.lane.b32.xlu1 %v20086_v35, %s23415_s29 }
 0x40d   : > { %18725 = vrot.lane.b32.xlu1 %v20116_v2, %s23415_s29  ;;  %18720 = vrot.lane.b32.xlu0 %v20102_v55, %s23415_s29 }
 0x411   : > { %18730 = vrot.lane.b32.xlu1 %v20133_v7, %s23415_s29  ;;  %2872 = vperm.xlu0 %18734, %v20076_v63   ;;  %s23554_s29 = smov 126  }
 0x415   : > { %2876 = vperm.xlu1 %18735, %v20074_v58   ;;  %2884 = vperm.xlu0 %18734, %v20092_v53  }
 0x419   : > { %2880 = vperm.xlu1 %18735, %v20096_v54   ;;  %2892 = vperm.xlu0 %18734, %v20108_v43  }
 0x41d   : > { %2888 = vperm.xlu1 %18735, %v20112_v1   ;;  %2900 = vperm.xlu0 %18734, %v20123_v4  }
 0x421   : > { %2896 = vperm.xlu1 %18735, %v20127_v5  }
 0x46c   : > { %v1337_v47 = vpop.xlane.xlu0 %1336 }
 0x46d   : > { %v1328_v39 = vpop.xlane.xlu1 %1327 }
 0x470   : > { %v1840_v12 = vpop.xlane.xlu0 %1839 }
 0x471   : > { %v1334_v17 = vpop.xlane.xlu1 %1333  ;;  %19038 = vrcp.f32 %v1840_v12 }
 0x474   : > { %v1846_v51 = vpop.xlane.xlu0 %1845 }
 0x475   : > { %v1837_v34 = vpop.xlane.xlu1 %1836 }
 0x476   : > { %19040 = vrcp.f32 %v1837_v34 }
 0x477   : > { %19042 = vrcp.f32 %v1846_v51 }
 0x478   : > { %v1852_v21 = vpop.xlane.xlu0 %1851 }
 0x479   : > { %v1843_v25 = vpop.xlane.xlu1 %1842 }
 0x47a   : > { %19044 = vrcp.f32 %v1843_v25 }
 0x47b   : > { %19046 = vrcp.f32 %v1334_v17  ;;  %v19039_v49 = vpop.eup %19038 }
 0x47c   : > { %v1858_v9 = vpop.xlane.xlu0 %1857  ;;  %19048 = vrcp.f32 %v1852_v21  ;;  %v1862_v22 = vmul.f32 %v19039_v49, %v20399_v27 }
 0x47d   : > { %v1849_v0 = vpop.xlane.xlu1 %1848 }
 0x47e   : > { %19050 = vrcp.f32 %v1849_v0 }
 0x47f   : > { %19052 = vrcp.f32 %v1322_v40 }
 0x480   : > { %v19041_v48 = vpop.eup %19040  ;;  %v1331_v16 = vpop.xlane.xlu0 %1330  ;;  %19054 = vrcp.f32 %v1337_v47 }
 0x481   : > { %v1340_v61 = vpop.xlane.xlu1 %1339  ;;  %v1860_v11 = vmul.f32 %v19041_v48, %v20415_v50  ;;  %v19043_v3 = vpop.eup %19042  ;;  %19056 = vrcp.f32 %v1858_v9 }
 0x482   : > { %v1866_v27 = vmul.f32 %v19043_v3, %v20411_v42 }
 0x483   : > { %16684 = vmatprep.mubr.msk.f32.mxu0 %vm1263_vm6, %v1860_v11 }
 0x484   : > { %v19045_v18 = vpop.eup %19044  ;;  %16685 = vmatmul.mubr.msk.f32.vlgmr.msra.gmra.mrb[12].mxu0 %vm1263_vm6, %v1862_v22  ;;  %v1343_v17 = vpop.xlane.xlu0 %1342  ;;  %v23497_v22 = vmov 1.0  }
 0x485   : > { %17806 = vmatpush3.bf16.msra.mxu0 %v19992_v31  ;;  %v1855_v13 = vpop.xlane.xlu1 %1854  ;;  %v1864_v10 = vmul.f32 %v19045_v18, %v20427_v38  ;;  %v19047_v12 = vpop.eup %19046 }
 0x486   : > { %17820 = vmatprep.subr.bf16.mxu0 %v19994_v32  ;;  %19058 = vrcp.f32 %v1855_v13  ;;  %v19049_v50 = vpop.eup %19048  ;;  %v1353_v34 = vmul.f32 %v19047_v12, %v20403_v45 }
 0x487   : > { %16691 = vmatprep.mubr.msk.f32.mxu1 %vm1263_vm6, %v1864_v10  ;;  %19060 = vrcp.f32 %v1325_v29  ;;  %v1870_v42 = vmul.f32 %v19049_v50, %v20423_v26 }
 0x488   : > { %v19051_v40 = vpop.eup %19050  ;;  %16692 = vmatmul.mubr.msk.f32.vlgmr.msra.gmra.mrb[20].mxu1 %vm1263_vm6, %v1866_v27  ;;  %19062 = vrcp.f32 %v1328_v39 }
 0x489   : > { %17810 = vmatpush3.bf16.msra.mxu1 %v20014_v56  ;;  %v18716_v31 = vpop.permute.xlu1 %18715  ;;  %v1868_v47 = vmul.f32 %v19051_v40, %v20439_v33  ;;  %v19053_v29 = vpop.eup %19052  ;;  %19064 = vrcp.f32 %v1331_v16 }
 0x48a   : > { %17812 = vmatprep.subr.bf16.mxu1 %v19929_v60  ;;  %v18718_v38 = vunpack.i.h.bf16 %v18716_v31  ;;  %v18717_v51 = vunpack.i.l.bf16 %v18716_v31  ;;  %v19055_v56 = vpop.eup %19054  ;;  %v18721_v33 = vpop.permute.xlu0 %18720  ;;  %19066 = vrcp.f32 %v1340_v61  ;;  %v1345_v11 = vmul.f32 %v19053_v29, %v20368_v8 }
 0x48b   : > { %16698 = vmatprep.mubr.msk.f32.mxu0 %vm1263_vm6, %v1868_v47  ;;  %v19057_v39 = vpop.eup %19056  ;;  %19068 = vrcp.f32 %v1343_v17  ;;  %v18723_v45 = vunpack.i.h.bf16 %v18721_v33  ;;  %v18722_v9 = vunpack.i.l.bf16 %v18721_v33 }
 0x48c   : > { %v17827_v21 = vpack.c.bf16 %v18718_v38, %v18717_v51  ;;  %16699 = vmatmul.mubr.msk.f32.vlgmr.msra.gmra.mrb[14].mxu0 %vm1263_vm6, %v1870_v42  ;;  %v1874_v49 = vmul.f32 %v19057_v39, %v20435_v15 }
 0x48d   : > { %17822 = vmatpush3.bf16.msra.mxu0 %v19994_v32  ;;  %16726 = vmatprep.mubr.msk.f32.mxu0 %vm1263_vm6, %v1353_v34  ;;  %v18726_v25 = vpop.permute.xlu1 %18725  ;;  %v1355_v32 = vmul.f32 %v19055_v56, %v20385_v57  ;;  %v17833_v61 = vpack.c.bf16 %v18723_v45, %v18722_v9 }
 0x48e   : > { %17829 = vmatprep.subr.msk.bf16.mxu0 %vm20080_vm2, %v17827_v21  ;;  %v18728_v3 = vunpack.i.h.bf16 %v18726_v25  ;;  %v18727_v18 = vunpack.i.l.bf16 %v18726_v25 }
 0x490   : > { %v19059_v26 = vpop.eup %19058  ;;  %v17839_v50 = vpack.c.bf16 %v18728_v3, %v18727_v18  ;;  %v2873_v47 = vpop.permute.xlu0 %2872 }
 0x491   : > { %v1872_v0 = vmul.f32 %v19059_v26, %v20463_v28  ;;  %v19061_v48 = vpop.eup %19060  ;;  %v18731_v28 = vpop.permute.xlu1 %18730 }
 0x492   : > { %v19063_v16 = vpop.eup %19062  ;;  %v1347_v57 = vmul.f32 %v19061_v48, %v20362_v41  ;;  %v18733_v13 = vunpack.i.h.bf16 %v18731_v28  ;;  %v18732_v10 = vunpack.i.l.bf16 %v18731_v28  ;;  %v23498_v41 = vld [vmem:[#allocation20_spill] sm:$0xff] }
 0x493   : > { %16705 = vmatprep.mubr.msk.f32.mxu1 %vm1263_vm6, %v1872_v0  ;;  %v19065_v15 = vpop.eup %19064  ;;  %v1349_v8 = vmul.f32 %v19063_v16, %v20392_v62 }
 0x494   : > { %16706 = vmatmul.mubr.msk.f32.vlgmr.msra.gmra.mrb[22].mxu1 %vm1263_vm6, %v1874_v49  ;;  %16727 = vmatmul.mubr.msk.f32.vlgmr.msra.gmra.mrb[14].mxu0 %vm1263_vm6, %v1355_v32  ;;  %v1351_v12 = vmul.f32 %v19065_v15, %v20447_v52  ;;  %v17845_v40 = vpack.c.bf16 %v18733_v13, %v18732_v10  ;;  %v23499_v52 = vld [vmem:[#allocation10_spill] sm:$0xff] }
 0x495   : > { %17814 = vmatpush3.bf16.msra.mxu1 %v19929_v60  ;;  %16712 = vmatprep.mubr.msk.f32.mxu1 %vm1263_vm6, %v1345_v11  ;;  %v19067_v60 = vpop.eup %19066  ;;  %v2877_v38 = vpop.permute.xlu1 %2876 }
 0x496   : > { %17816 = vmatprep.subr.bf16.mxu1 %v19967_v14  ;;  %17832 = vmatpush3.bf16.xpose.msk.msra.mxu0 %vm20080_vm2, %v17827_v21  ;;  %v19069_v27 = vpop.eup %19068  ;;  %v1357_v62 = vmul.f32 %v19067_v60, %v20451_v46  ;;  %v23500_v46 = vld [vmem:[#allocation17_spill] sm:$0xff]  ;;  %v2885_v21 = vpop.permute.xlu0 %2884 }
 0x497   : > { %17835 = vmatprep.subr.msk.bf16.mxu0 %vm20080_vm2, %v17833_v61  ;;  %16740 = vmatprep.mubr.msk.f32.mxu0 %vm23460_vm1, %v23497_v22 }
 0x498   : > { %16713 = vmatmul.mubr.msk.f32.vlgmr.msra.gmra.mrb[24].mxu1 %vm1263_vm6, %v1347_v57 }
 0x499   : > { %17818 = vmatpush3.bf16.msra.mxu1 %v19967_v14  ;;  %16719 = vmatprep.mubr.msk.f32.mxu1 %vm1263_vm6, %v1349_v8  ;;  %v1359_v14 = vmul.f32 %v19069_v27, %v20459_v23  ;;  %v23501_v23 = vld [vmem:[#allocation14_spill] sm:$0xff]  ;;  %v2881_v56 = vpop.permute.xlu1 %2880 }
 0x49a   : > { %17824 = vmatprep.subr.bf16.mxu1 %v23498_v41  ;;  %v2893_v49 = vpop.permute.xlu0 %2892 }
 0x49c   : > { %16720 = vmatmul.mubr.msk.f32.vlgmr.msra.gmra.mrb[20].mxu1 %vm1263_vm6, %v1351_v12 }
 0x49d   : > { %17826 = vmatpush3.bf16.msra.mxu1 %v23498_v41  ;;  %16741 = vmatmul.mubr.msk.f32.vlgmr.msra.gmra.mrb[16].mxu0 %vm23460_vm1, %v23497_v22  ;;  %v2889_v11 = vpop.permute.xlu1 %2888 }
 0x49e   : > { %16733 = vmatprep.mubr.msk.f32.mxu1 %vm1263_vm6, %v1357_v62  ;;  %17838 = vmatpush3.bf16.xpose.msk.msra.mxu0 %vm20080_vm2, %v17833_v61  ;;  %v2901_v18 = vpop.permute.xlu0 %2900 }
 0x49f   : > { %17841 = vmatprep.subr.msk.bf16.mxu1 %vm20080_vm2, %v17839_v50  ;;  %17847 = vmatprep.subr.msk.bf16.mxu0 %vm20080_vm2, %v17845_v40 }
 0x4a0   : > { %16734 = vmatmul.mubr.msk.f32.vlgmr.msra.gmra.mrb[22].mxu1 %vm1263_vm6, %v1359_v14  ;;  %16747 = vmatprep.mubr.msk.f32.mxu0 %vm23460_vm1, %v23497_v22 }
 0x4a1   : > { %16754 = vmatprep.mubr.msk.f32.mxu1 %vm23460_vm1, %v23497_v22  ;;  %v2897_v13 = vpop.permute.xlu1 %2896 }
 0x4a5   : > { %16748 = vmatmul.mubr.msk.f32.vlgmr.msra.gmra.mrb[18].mxu0 %vm23460_vm1, %v23497_v22 }
 0x4a6   : > { %17844 = vmatpush3.bf16.xpose.msk.msra.mxu1 %vm20080_vm2, %v17839_v50  ;;  %17850 = vmatpush3.bf16.xpose.msk.msra.mxu0 %vm20080_vm2, %v17845_v40 }
 0x4a7   : > { %17852 = vmatprep.subr.bf16.mxu1 %v23499_v52  ;;  %17860 = vmatprep.subr.bf16.mxu0 %v23500_v46 }
 0x4a8   : > { %16761 = vmatprep.mubr.msk.f32.mxu0 %vm23460_vm1, %v23497_v22 }
 0x4ad   : > { %16755 = vmatmul.mubr.msk.f32.vlgmr.msra.gmra.mrb[26].mxu1 %vm23460_vm1, %v23497_v22  ;;  %16762 = vmatmul.mubr.msk.f32.vlgmr.msra.gmra.mrb[20].mxu0 %vm23460_vm1, %v23497_v22 }
 0x4ae   : > { %17854 = vmatpush3.bf16.msra.mxu1 %v23499_v52  ;;  %17862 = vmatpush3.bf16.msra.mxu0 %v23500_v46 }
 0x4af   : > { %17856 = vmatprep.subr.bf16.mxu1 %v23501_v23 }
 0x557   : > { %v20564_v17 = vpop.f32.mrb[12].mxu0 }
 0x558   : > { %v20566_v31 = vpop.f32.mrb[13].mxu0 }
 0x570   : > { %v16742_v51 = vpop.f32.mrb[16].mxu0 }
 0x571   : > { %v2904_v42 = vadd.f32 %v16742_v51, %v2877_v38  ;;  %v2613_v34 = vpop.f32.mrb[17].mxu0 }
 0x572   : > { %v2903_v29 = vadd.f32 %v2873_v47, %v2613_v34 }
 0x573   : > { %v2920_v33 = vmul.f32 0.2, %v2904_v42  ;;  %vm2912_vm11 = vcmp.gt.f32.partialorder %v2904_v42, 0.0 }
 0x574   : > { %v2919_v39 = vmul.f32 0.2, %v2903_v29  ;;  %vm2911_vm7 = vcmp.gt.f32.partialorder %v2903_v29, 0.0 }
 0x575   : > { %v2928_v26 = vsel %vm2912_vm11, %v2904_v42, %v2920_v33 }
 0x576   : > { %v20570_v25 = vsel %vm584_vm3, %v2928_v26, -1e+30  ;;  %v2927_v45 = vsel %vm2911_vm7, %v2903_v29, %v2919_v39 }
 0x577   : > { %v2946_v9 = vsel %vm1263_vm6, %v20570_v25, -inf  ;;  %v20576_v0 = vsel %vm583_vm5, %v2927_v45, -1e+30 }
 0x578   : > { %2947 = vmax.xlane.f32.xlu0 %v2946_v9  ;;  %v16749_v32 = vpop.f32.mrb[18].mxu0  ;;  %v2943_v48 = vsel %vm1263_vm6, %v20576_v0, -inf }
 0x579   : > { %v2906_v16 = vadd.f32 %v16749_v32, %v2885_v21  ;;  %2944 = vmax.xlane.f32.xlu1 %v2943_v48  ;;  %v2696_v61 = vpop.f32.mrb[19].mxu0 }
 0x57a   : > { %v2905_v28 = vadd.f32 %v2881_v56, %v2696_v61 }
 0x57b   : > { %v2922_v57 = vmul.f32 0.2, %v2906_v16  ;;  %vm2914_vm8 = vcmp.gt.f32.partialorder %v2906_v16, 0.0 }
 0x57c   : > { %v2921_v15 = vmul.f32 0.2, %v2905_v28  ;;  %vm2913_vm9 = vcmp.gt.f32.partialorder %v2905_v28, 0.0 }
 0x57d   : > { %v2930_v8 = vsel %vm2914_vm8, %v2906_v16, %v2922_v57  ;;  %v23429_v16 = vmov 11  }
 0x57e   : > { %v2938_v60 = vsel %vm586_vm12, %v2930_v8, -1e+30  ;;  %v2929_v3 = vsel %vm2913_vm9, %v2905_v28, %v2921_v15  ;;  %18756 = vset.pattern.permute.xlu1 %v23429_v16  ;;  %18757 = vset.pattern.permute.xlu0 %v23429_v16 }
 0x57f   : > { %v2952_v10 = vsel %vm1263_vm6, %v2938_v60, -inf  ;;  %v2937_v41 = vsel %vm585_vm13, %v2929_v3, -1e+30 }
 0x580   : > { %v16756_v12 = vpop.f32.mrb[26].mxu1  ;;  %2953 = vmax.xlane.f32.xlu1 %v2952_v10  ;;  %v16763_v27 = vpop.f32.mrb[20].mxu0  ;;  %v2949_v62 = vsel %vm1263_vm6, %v2937_v41, -inf }
 0x581   : > { %v2908_v50 = vadd.f32 %v16756_v12, %v2893_v49  ;;  %v2910_v40 = vadd.f32 %v16763_v27, %v2901_v18  ;;  %v2779_v14 = vpop.f32.mrb[27].mxu1  ;;  %2950 = vmax.xlane.f32.xlu0 %v2949_v62  ;;  %v2862_v52 = vpop.f32.mrb[21].mxu0 }
 0x582   : > { %v2907_v46 = vadd.f32 %v2889_v11, %v2779_v14  ;;  %v2909_v47 = vadd.f32 %v2897_v13, %v2862_v52 }
 0x583   : > { %v2924_v38 = vmul.f32 0.2, %v2908_v50  ;;  %v2926_v51 = vmul.f32 0.2, %v2910_v40  ;;  %vm2916_vm10 = vcmp.gt.f32.partialorder %v2908_v50, 0.0  ;;  %vm2918_vm11 = vcmp.gt.f32.partialorder %v2910_v40, 0.0 }
 0x584   : > { %v2923_v42 = vmul.f32 0.2, %v2907_v46  ;;  %v2925_v34 = vmul.f32 0.2, %v2909_v47  ;;  %vm2915_vm7 = vcmp.gt.f32.partialorder %v2907_v46, 0.0  ;;  %vm2917_vm8 = vcmp.gt.f32.partialorder %v2909_v47, 0.0 }
 0x585   : > { %v2932_v21 = vsel %vm2916_vm10, %v2908_v50, %v2924_v38  ;;  %v2934_v29 = vsel %vm2918_vm11, %v2910_v40, %v2926_v51 }
 0x586   : > { %v2940_v56 = vsel %vm588_vm15, %v2932_v21, -1e+30  ;;  %v2931_v33 = vsel %vm2915_vm7, %v2907_v46, %v2923_v42  ;;  %v2933_v39 = vsel %vm2917_vm8, %v2909_v47, %v2925_v34  ;;  %v2942_v49 = vsel %vm590_vm4, %v2934_v29, -1e+30 }
 0x587   : > { %v2958_v26 = vsel %vm1263_vm6, %v2940_v56, -inf  ;;  %v2939_v45 = vsel %vm587_vm14, %v2931_v33, -1e+30  ;;  %v2941_v32 = vsel %vm589_vm0, %v2933_v39, -1e+30  ;;  %v2964_v48 = vsel %vm1263_vm6, %v2942_v49, -inf }
 0x588   : > { %2959 = vmax.xlane.f32.xlu1 %v2958_v26  ;;  %v2955_v9 = vsel %vm1263_vm6, %v2939_v45, -inf  ;;  %v2961_v11 = vsel %vm1263_vm6, %v2941_v32, -inf }
 0x589   : > { %2956 = vmax.xlane.f32.xlu0 %v2955_v9 }
 0x58c   : > { %2965 = vmax.xlane.f32.xlu1 %v2964_v48 }
 0x58d   : > { %2962 = vmax.xlane.f32.xlu0 %v2961_v11 }
 0x605   : > { %v2948_v61 = vpop.xlane.xlu0 %2947 }
 0x606   : > { %v2968_v28 = vsub.f32 %v20570_v25, %v2948_v61  ;;  %v2945_v57 = vpop.xlane.xlu1 %2944 }
 0x607   : > { %v2967_v15 = vsub.f32 %v20576_v0, %v2945_v57 }
 0x608   : > { %v2977_v8 = vmul.f32 1.442695, %v2968_v28 }
 0x609   : > { %v2975_v3 = vmul.f32 1.442695, %v2967_v15 }
 0x60a   : > { %19070 = vpow2.f32 %v2977_v8 }
 0x60b   : > { %19072 = vpow2.f32 %v2975_v3 }
 0x60d   : > { %v2954_v18 = vpop.xlane.xlu1 %2953 }
 0x60e   : > { %v2970_v13 = vsub.f32 %v2938_v60, %v2954_v18  ;;  %v2951_v10 = vpop.xlane.xlu0 %2950 }
 0x60f   : > { %v2969_v12 = vsub.f32 %v2937_v41, %v2951_v10 }
 0x610   : > { %v2981_v27 = vmul.f32 1.442695, %v2970_v13 }
 0x611   : > { %v2979_v62 = vmul.f32 1.442695, %v2969_v12 }
 0x612   : > { %19074 = vpow2.f32 %v2981_v27 }
 0x613   : > { %19076 = vpow2.f32 %v2979_v62 }
 0x614   : > { %v19071_v50 = vpop.eup %19070 }
 0x615   : > { %v19073_v40 = vpop.eup %19072  ;;  %v2960_v14 = vpop.xlane.xlu1 %2959  ;;  %v20604_v25 = vsel %vm584_vm3, %v19071_v50, 0.0 }
 0x616   : > { %v2972_v0 = vsub.f32 %v2940_v56, %v2960_v14  ;;  %v2957_v52 = vpop.xlane.xlu0 %2956  ;;  %v3002_v46 = vsel %vm1263_vm6, %v20604_v25, 0.0  ;;  %v20610_v60 = vsel %vm583_vm5, %v19073_v40, 0.0 }
 0x617   : > { %v2971_v41 = vsub.f32 %v2939_v45, %v2957_v52  ;;  %3003 = vadd.xlane.f32.xlu1 %v3002_v46  ;;  %v2999_v47 = vsel %vm1263_vm6, %v20610_v60, 0.0 }
 0x618   : > { %v2985_v38 = vmul.f32 1.442695, %v2972_v0  ;;  %3000 = vadd.xlane.f32.xlu0 %v2999_v47 }
 0x619   : > { %v2983_v51 = vmul.f32 1.442695, %v2971_v41  ;;  %v2966_v42 = vpop.xlane.xlu1 %2965 }
 0x61a   : > { %19078 = vpow2.f32 %v2985_v38  ;;  %v2974_v34 = vsub.f32 %v2942_v49, %v2966_v42  ;;  %v2963_v21 = vpop.xlane.xlu0 %2962  ;;  %v23502_v38 = vld [vmem:[#allocation21_spill] sm:$0xff] }
 0x61b   : > { %19080 = vpow2.f32 %v2983_v51  ;;  %v2973_v29 = vsub.f32 %v2941_v32, %v2963_v21 }
 0x61c   : > { %v19075_v56 = vpop.eup %19074  ;;  %v2989_v33 = vmul.f32 1.442695, %v2974_v34 }
 0x61d   : > { %v19077_v39 = vpop.eup %19076  ;;  %v2987_v26 = vmul.f32 1.442695, %v2973_v29  ;;  %v20616_v45 = vsel %vm586_vm12, %v19075_v56, 0.0 }
 0x61e   : > { %19082 = vpow2.f32 %v2989_v33  ;;  %v3008_v9 = vsel %vm1263_vm6, %v20616_v45, 0.0  ;;  %v2993_v48 = vsel %vm585_vm13, %v19077_v39, 0.0 }
 0x61f   : > { %19084 = vpow2.f32 %v2987_v26  ;;  %3009 = vadd.xlane.f32.xlu1 %v3008_v9  ;;  %v3005_v49 = vsel %vm1263_vm6, %v2993_v48, 0.0 }
 0x620   : > { %3006 = vadd.xlane.f32.xlu0 %v3005_v49 }
 0x624   : > { %v19079_v32 = vpop.eup %19078 }
 0x625   : > { %v19081_v11 = vpop.eup %19080  ;;  %v20625_v61 = vsel %vm588_vm15, %v19079_v32, 0.0 }
 0x626   : > { %v3014_v28 = vsel %vm1263_vm6, %v20625_v61, 0.0  ;;  %v20631_v57 = vsel %vm587_vm14, %v19081_v11, 0.0 }
 0x627   : > { %3015 = vadd.xlane.f32.xlu1 %v3014_v28  ;;  %v3011_v15 = vsel %vm1263_vm6, %v20631_v57, 0.0 }
 0x628   : > { %v19083_v8 = vpop.eup %19082  ;;  %3012 = vadd.xlane.f32.xlu0 %v3011_v15 }
 0x629   : > { %v19085_v3 = vpop.eup %19084  ;;  %v20637_v18 = vsel %vm590_vm4, %v19083_v8, 0.0 }
 0x62a   : > { %v3020_v13 = vsel %vm1263_vm6, %v20637_v18, 0.0  ;;  %v20643_v10 = vsel %vm589_vm0, %v19085_v3, 0.0 }
 0x62b   : > { %3021 = vadd.xlane.f32.xlu1 %v3020_v13  ;;  %v3017_v12 = vsel %vm1263_vm6, %v20643_v10, 0.0 }
 0x62c   : > { %3018 = vadd.xlane.f32.xlu0 %v3017_v12 }
 0x63c   : > { %18742 = vrot.lane.b32.xlu1 %v20102_v55, %s23413_s17 }
 0x640   : > { %18747 = vrot.lane.b32.xlu1 %v20116_v2, %s23413_s17 }
 0x642   : > { %18737 = vrot.lane.b32.xlu0 %v20086_v35, %s23413_s17 }
 0x644   : > { %3720 = vperm.xlu1 %18756, %v20076_v63  }
 0x646   : > { %18752 = vrot.lane.b32.xlu0 %v20133_v7, %s23413_s17  ;;  %s23562_s17 = smov 125  }
 0x648   : > { %3728 = vperm.xlu1 %18756, %v20096_v54  }
 0x64a   : > { %3724 = vperm.xlu0 %18757, %v20074_v58  }
 0x64c   : > { %3732 = vperm.xlu1 %18756, %v20092_v53  }
 0x64e   : > { %3736 = vperm.xlu0 %18757, %v20112_v1  }
 0x650   : > { %3740 = vperm.xlu1 %18756, %v20108_v43  }
 0x652   : > { %3744 = vperm.xlu0 %18757, %v20127_v5  }
 0x654   : > { %3748 = vperm.xlu1 %18756, %v20123_v4  }
 0x6a4   : > { %v3004_v27 = vpop.xlane.xlu1 %3003 }
 0x6a5   : > { %19086 = vrcp.f32 %v3004_v27  ;;  %v3001_v62 = vpop.xlane.xlu0 %3000 }
 0x6a6   : > { %19088 = vrcp.f32 %v3001_v62 }
 0x6ac   : > { %v3010_v50 = vpop.xlane.xlu1 %3009 }
 0x6ad   : > { %19090 = vrcp.f32 %v3010_v50  ;;  %v3007_v40 = vpop.xlane.xlu0 %3006 }
 0x6ae   : > { %19092 = vrcp.f32 %v3007_v40 }
 0x6af   : > { %v19087_v14 = vpop.eup %19086 }
 0x6b0   : > { %v19089_v0 = vpop.eup %19088  ;;  %v3026_v46 = vmul.f32 %v19087_v14, %v20604_v25  ;;  %v23505_v14 = vld [vmem:[#allocation15_spill] sm:$0xff] }
 0x6b1   : > { %v3024_v52 = vmul.f32 %v19089_v0, %v20610_v60 }
 0x6b3   : > { %16768 = vmatprep.mubr.msk.f32.mxu1 %vm1263_vm6, %v3024_v52 }
 0x6b4   : > { %v3016_v41 = vpop.xlane.xlu1 %3015  ;;  %16769 = vmatmul.mubr.msk.f32.vlgmr.msra.gmra.mrb[24].mxu1 %vm1263_vm6, %v3026_v46 }
 0x6b5   : > { %19094 = vrcp.f32 %v3016_v41  ;;  %17858 = vmatpush3.bf16.msra.mxu1 %v23501_v23  ;;  %v3013_v47 = vpop.xlane.xlu0 %3012 }
 0x6b6   : > { %17864 = vmatprep.subr.bf16.mxu1 %v23502_v38  ;;  %19096 = vrcp.f32 %v3013_v47 }
 0x6b7   : > { %v19091_v51 = vpop.eup %19090 }
 0x6b8   : > { %v19093_v42 = vpop.eup %19092  ;;  %v3022_v34 = vpop.xlane.xlu1 %3021  ;;  %v3030_v25 = vmul.f32 %v19091_v51, %v20616_v45 }
 0x6b9   : > { %19098 = vrcp.f32 %v3022_v34  ;;  %v3019_v21 = vpop.xlane.xlu0 %3018  ;;  %v3028_v60 = vmul.f32 %v19093_v42, %v2993_v48 }
 0x6ba   : > { %19100 = vrcp.f32 %v3019_v21 }
 0x6bb   : > { %16775 = vmatprep.mubr.msk.f32.mxu1 %vm1263_vm6, %v3028_v60 }
 0x6bc   : > { %v18743_v29 = vpop.permute.xlu1 %18742  ;;  %16776 = vmatmul.mubr.msk.f32.vlgmr.msra.gmra.mrb[20].mxu1 %vm1263_vm6, %v3030_v25 }
 0x6bd   : > { %v18745_v56 = vunpack.i.h.bf16 %v18743_v29  ;;  %v18744_v23 = vunpack.i.l.bf16 %v18743_v29  ;;  %17866 = vmatpush3.bf16.msra.mxu1 %v23502_v38  ;;  %v18738_v33 = vpop.permute.xlu0 %18737 }
 0x6be   : > { %v18740_v39 = vunpack.i.h.bf16 %v18738_v33  ;;  %v18739_v26 = vunpack.i.l.bf16 %v18738_v33 }
 0x6bf   : > { %v19095_v9 = vpop.eup %19094  ;;  %v17873_v49 = vpack.c.bf16 %v18745_v56, %v18744_v23 }
 0x6c0   : > { %v19097_v32 = vpop.eup %19096  ;;  %v17867_v11 = vpack.c.bf16 %v18740_v39, %v18739_v26  ;;  %v18748_v48 = vpop.permute.xlu1 %18747  ;;  %v3034_v3 = vmul.f32 %v19095_v9, %v20625_v61 }
 0x6c1   : > { %v18750_v28 = vunpack.i.h.bf16 %v18748_v48  ;;  %v18749_v15 = vunpack.i.l.bf16 %v18748_v48  ;;  %17875 = vmatprep.subr.msk.bf16.mxu1 %vm20080_vm2, %v17873_v49  ;;  %v18753_v45 = vpop.permute.xlu0 %18752  ;;  %v3032_v8 = vmul.f32 %v19097_v32, %v20631_v57 }
 0x6c2   : > { %17869 = vmatprep.subr.msk.bf16.mxu0 %vm20080_vm2, %v17867_v11  ;;  %v18755_v62 = vunpack.i.h.bf16 %v18753_v45  ;;  %v18754_v50 = vunpack.i.l.bf16 %v18753_v45 }
 0x6c3   : > { %v19099_v13 = vpop.eup %19098  ;;  %v17879_v12 = vpack.c.bf16 %v18750_v28, %v18749_v15  ;;  %16782 = vmatprep.mubr.msk.f32.mxu0 %vm1263_vm6, %v3032_v8 }
 0x6c4   : > { %v19101_v27 = vpop.eup %19100  ;;  %16783 = vmatmul.mubr.msk.f32.vlgmr.msra.gmra.mrb[14].mxu0 %vm1263_vm6, %v3034_v3  ;;  %v3038_v61 = vmul.f32 %v19099_v13, %v20637_v18  ;;  %v17885_v57 = vpack.c.bf16 %v18755_v62, %v18754_v50  ;;  %v23503_v18 = vld [vmem:[#allocation18_spill] sm:$0xff]  ;;  %v3721_v0 = vpop.permute.xlu1 %3720 }
 0x6c5   : > { %17872 = vmatpush3.bf16.xpose.msk.msra.mxu0 %vm20080_vm2, %v17867_v11  ;;  %v3036_v40 = vmul.f32 %v19101_v27, %v20643_v10  ;;  %16796 = vmatprep.mubr.msk.f32.mxu0 %vm23460_vm1, %v23497_v22  ;;  %v23504_v10 = vld [vmem:[#allocation11_spill] sm:$0xff] }
 0x6c6   : > { %17881 = vmatprep.subr.msk.bf16.mxu0 %vm20080_vm2, %v17879_v12 }
 0x6c7   : > { %16789 = vmatprep.mubr.msk.f32.mxu1 %vm1263_vm6, %v3036_v40 }
 0x6c8   : > { %16790 = vmatmul.mubr.msk.f32.vlgmr.msra.gmra.mrb[22].mxu1 %vm1263_vm6, %v3038_v61  ;;  %v3729_v52 = vpop.permute.xlu1 %3728 }
 0x6c9   : > { %17878 = vmatpush3.bf16.xpose.msk.msra.mxu1 %vm20080_vm2, %v17873_v49  ;;  %16803 = vmatprep.mubr.msk.f32.mxu1 %vm23460_vm1, %v23497_v22  ;;  %v3725_v46 = vpop.permute.xlu0 %3724 }
 0x6ca   : > { %17887 = vmatprep.subr.msk.bf16.mxu1 %vm20080_vm2, %v17885_v57 }
 0x6cc   : > { %16797 = vmatmul.mubr.msk.f32.vlgmr.msra.gmra.mrb[22].mxu0 %vm23460_vm1, %v23497_v22  ;;  %v3733_v41 = vpop.permute.xlu1 %3732 }
 0x6cd   : > { %17884 = vmatpush3.bf16.xpose.msk.msra.mxu0 %vm20080_vm2, %v17879_v12  ;;  %16810 = vmatprep.mubr.msk.f32.mxu0 %vm23460_vm1, %v23497_v22  ;;  %v3737_v9 = vpop.permute.xlu0 %3736 }
 0x6ce   : > { %17900 = vmatprep.subr.bf16.mxu0 %v23503_v18 }
 0x6d0   : > { %16804 = vmatmul.mubr.msk.f32.vlgmr.msra.gmra.mrb[28].mxu1 %vm23460_vm1, %v23497_v22  ;;  %v3741_v23 = vpop.permute.xlu1 %3740 }
 0x6d1   : > { %17890 = vmatpush3.bf16.xpose.msk.msra.mxu1 %vm20080_vm2, %v17885_v57  ;;  %16817 = vmatprep.mubr.msk.f32.mxu1 %vm23460_vm1, %v23497_v22 }
 0x6d2   : > { %17892 = vmatprep.subr.bf16.mxu1 %v23504_v10 }
 0x6d4   : > { %16811 = vmatmul.mubr.msk.f32.vlgmr.msra.gmra.mrb[24].mxu0 %vm23460_vm1, %v23497_v22  ;;  %v3749_v40 = vpop.permute.xlu1 %3748 }
 0x6d5   : > { %17902 = vmatpush3.bf16.msra.mxu0 %v23503_v18  ;;  %v3745_v18 = vpop.permute.xlu0 %3744 }
 0x6d8   : > { %16818 = vmatmul.mubr.msk.f32.vlgmr.msra.gmra.mrb[30].mxu1 %vm23460_vm1, %v23497_v22 }
 0x6d9   : > { %17894 = vmatpush3.bf16.msra.mxu1 %v23504_v10 }
 0x6da   : > { %17896 = vmatprep.subr.bf16.mxu1 %v23505_v14 }
 0x79f   : > { %v16798_v47 = vpop.f32.mrb[22].mxu0 }
 0x7a0   : > { %v3752_v38 = vadd.f32 %v16798_v47, %v3725_v46  ;;  %v3461_v51 = vpop.f32.mrb[23].mxu0 }
 0x7a1   : > { %v3751_v42 = vadd.f32 %v3721_v0, %v3461_v51 }
 0x7a2   : > { %v3768_v34 = vmul.f32 0.2, %v3752_v38  ;;  %vm3760_vm9 = vcmp.gt.f32.partialorder %v3752_v38, 0.0 }
 0x7a3   : > { %v3767_v21 = vmul.f32 0.2, %v3751_v42  ;;  %v16805_v60 = vpop.f32.mrb[28].mxu1  ;;  %vm3759_vm10 = vcmp.gt.f32.partialorder %v3751_v42, 0.0 }
 0x7a4   : > { %v3754_v25 = vadd.f32 %v16805_v60, %v3733_v41  ;;  %v3544_v29 = vpop.f32.mrb[29].mxu1  ;;  %v3776_v56 = vsel %vm3760_vm9, %v3752_v38, %v3768_v34 }
 0x7a5   : > { %v3753_v33 = vadd.f32 %v3729_v52, %v3544_v29  ;;  %v20720_v39 = vsel %vm584_vm3, %v3776_v56, -1e+30  ;;  %v3775_v26 = vsel %vm3759_vm10, %v3751_v42, %v3767_v21 }
 0x7a6   : > { %v3770_v49 = vmul.f32 0.2, %v3754_v25  ;;  %v3794_v32 = vsel %vm1263_vm6, %v20720_v39, -inf  ;;  %v3783_v11 = vsel %vm583_vm5, %v3775_v26, -1e+30  ;;  %vm3762_vm11 = vcmp.gt.f32.partialorder %v3754_v25, 0.0 }
 0x7a7   : > { %v3769_v48 = vmul.f32 0.2, %v3753_v33  ;;  %3795 = vmax.xlane.f32.xlu1 %v3794_v32  ;;  %v16812_v28 = vpop.f32.mrb[24].mxu0  ;;  %v3791_v15 = vsel %vm1263_vm6, %v3783_v11, -inf  ;;  %vm3761_vm7 = vcmp.gt.f32.partialorder %v3753_v33, 0.0 }
 0x7a8   : > { %v3756_v45 = vadd.f32 %v16812_v28, %v3741_v23  ;;  %3792 = vmax.xlane.f32.xlu0 %v3791_v15  ;;  %v3627_v8 = vpop.f32.mrb[25].mxu0  ;;  %v3778_v3 = vsel %vm3762_vm11, %v3754_v25, %v3770_v49  ;;  %v23427_v49 = vmov 12  }
 0x7a9   : > { %v3755_v13 = vadd.f32 %v3737_v9, %v3627_v8  ;;  %v3786_v12 = vsel %vm586_vm12, %v3778_v3, -1e+30  ;;  %v3777_v27 = vsel %vm3761_vm7, %v3753_v33, %v3769_v48  ;;  %18778 = vset.pattern.permute.xlu0 %v23427_v49  ;;  %18779 = vset.pattern.permute.xlu1 %v23427_v49 }
 0x7aa   : > { %v3772_v62 = vmul.f32 0.2, %v3756_v45  ;;  %v3800_v50 = vsel %vm1263_vm6, %v3786_v12, -inf  ;;  %vm3764_vm8 = vcmp.gt.f32.partialorder %v3756_v45, 0.0  ;;  %v3785_v52 = vsel %vm585_vm13, %v3777_v27, -1e+30 }
 0x7ab   : > { %vm3763_vm9 = vcmp.gt.f32.partialorder %v3755_v13, 0.0  ;;  %v3771_v61 = vmul.f32 0.2, %v3755_v13  ;;  %v16819_v57 = vpop.f32.mrb[30].mxu1  ;;  %v3797_v34 = vsel %vm1263_vm6, %v3785_v52, -inf }
 0x7ac   : > { %v3758_v10 = vadd.f32 %v16819_v57, %v3749_v40  ;;  %v3710_v0 = vpop.f32.mrb[31].mxu1  ;;  %3801 = vmax.xlane.f32.xlu0 %v3800_v50  ;;  %v3780_v47 = vsel %vm3764_vm8, %v3756_v45, %v3772_v62 }
 0x7ad   : > { %v3757_v46 = vadd.f32 %v3745_v18, %v3710_v0  ;;  %v3779_v41 = vsel %vm3763_vm9, %v3755_v13, %v3771_v61  ;;  %v3788_v60 = vsel %vm588_vm15, %v3780_v47, -1e+30 }
 0x7ae   : > { %v3774_v38 = vmul.f32 0.2, %v3758_v10  ;;  %v3787_v51 = vsel %vm587_vm14, %v3779_v41, -1e+30  ;;  %vm3766_vm10 = vcmp.gt.f32.partialorder %v3758_v10, 0.0  ;;  %v3806_v23 = vsel %vm1263_vm6, %v3788_v60, -inf }
 0x7af   : > { %vm3765_vm11 = vcmp.gt.f32.partialorder %v3757_v46, 0.0  ;;  %v3773_v42 = vmul.f32 0.2, %v3757_v46  ;;  %v3803_v21 = vsel %vm1263_vm6, %v3787_v51, -inf }
 0x7b0   : > { %3798 = vmax.xlane.f32.xlu0 %v3797_v34  ;;  %3804 = vmax.xlane.f32.xlu1 %v3803_v21  ;;  %v3782_v29 = vsel %vm3766_vm10, %v3758_v10, %v3774_v38 }
 0x7b1   : > { %v3781_v25 = vsel %vm3765_vm11, %v3757_v46, %v3773_v42  ;;  %v3790_v26 = vsel %vm590_vm4, %v3782_v29, -1e+30 }
 0x7b2   : > { %v20740_v56 = vsel %vm589_vm0, %v3781_v25, -1e+30  ;;  %v3812_v9 = vsel %vm1263_vm6, %v3790_v26, -inf }
 0x7b3   : > { %v3809_v33 = vsel %vm1263_vm6, %v20740_v56, -inf }
 0x7b4   : > { %3807 = vmax.xlane.f32.xlu0 %v3806_v23  ;;  %3810 = vmax.xlane.f32.xlu1 %v3809_v33 }
 0x7b8   : > { %3813 = vmax.xlane.f32.xlu0 %v3812_v9 }
 0x7c5   : > { %18759 = vrot.lane.b32.xlu1 %v20086_v35, %s23411_s21 }
 0x834   : > { %v3796_v32 = vpop.xlane.xlu1 %3795 }
 0x835   : > { %v3816_v48 = vsub.f32 %v20720_v39, %v3796_v32  ;;  %v3793_v28 = vpop.xlane.xlu0 %3792 }
 0x836   : > { %v3815_v15 = vsub.f32 %v3783_v11, %v3793_v28 }
 0x837   : > { %v3825_v45 = vmul.f32 1.442695, %v3816_v48 }
 0x838   : > { %v3823_v8 = vmul.f32 1.442695, %v3815_v15 }
 0x839   : > { %19102 = vpow2.f32 %v3825_v45  ;;  %v3802_v3 = vpop.xlane.xlu0 %3801 }
 0x83a   : > { %19104 = vpow2.f32 %v3823_v8  ;;  %v3818_v13 = vsub.f32 %v3786_v12, %v3802_v3 }
 0x83c   : > { %v3829_v27 = vmul.f32 1.442695, %v3818_v13 }
 0x83d   : > { %v3799_v62 = vpop.xlane.xlu0 %3798  ;;  %v3805_v50 = vpop.xlane.xlu1 %3804 }
 0x83e   : > { %19106 = vpow2.f32 %v3829_v27  ;;  %v3817_v40 = vsub.f32 %v3785_v52, %v3799_v62  ;;  %v3819_v61 = vsub.f32 %v3787_v51, %v3805_v50 }
 0x840   : > { %v3827_v57 = vmul.f32 1.442695, %v3817_v40  ;;  %v3831_v18 = vmul.f32 1.442695, %v3819_v61 }
 0x841   : > { %v3808_v10 = vpop.xlane.xlu0 %3807  ;;  %v3811_v0 = vpop.xlane.xlu1 %3810 }
 0x842   : > { %19108 = vpow2.f32 %v3827_v57  ;;  %v3820_v39 = vsub.f32 %v3788_v60, %v3808_v10  ;;  %v3821_v40 = vsub.f32 %v20740_v56, %v3811_v0 }
 0x843   : > { %v19103_v46 = vpop.eup %19102  ;;  %19110 = vpow2.f32 %v3831_v18 }
 0x844   : > { %v19105_v11 = vpop.eup %19104  ;;  %v3833_v41 = vmul.f32 1.442695, %v3820_v39  ;;  %v20755_v47 = vsel %vm584_vm3, %v19103_v46, 0.0  ;;  %v3835_v61 = vmul.f32 1.442695, %v3821_v40 }
 0x845   : > { %v3814_v12 = vpop.xlane.xlu0 %3813  ;;  %v18760_v38 = vpop.permute.xlu1 %18759  ;;  %v3850_v52 = vsel %vm1263_vm6, %v20755_v47, 0.0  ;;  %v20761_v51 = vsel %vm583_vm5, %v19105_v11, 0.0 }
 0x846   : > { %19112 = vpow2.f32 %v3833_v41  ;;  %v3822_v42 = vsub.f32 %v3790_v26, %v3814_v12  ;;  %v18762_v34 = vunpack.i.h.bf16 %v18760_v38  ;;  %v18761_v21 = vunpack.i.l.bf16 %v18760_v38  ;;  %3851 = vadd.xlane.f32.xlu0 %v3850_v52 }
 0x847   : > { %v3847_v60 = vsel %vm1263_vm6, %v20761_v51, 0.0 }
 0x848   : > { %v19107_v25 = vpop.eup %19106  ;;  %v3837_v29 = vmul.f32 1.442695, %v3822_v42  ;;  %v20765_v23 = vpack.c.bf16 %v18762_v34, %v18761_v21  ;;  %3848 = vadd.xlane.f32.xlu1 %v3847_v60  ;;  %v23506_v60 = vld [vmem:[#allocation22_spill] sm:$0xff] }
 0x849   : > { %v20769_v33 = vsel %vm586_vm12, %v19107_v25, 0.0 }
 0x84a   : > { %19114 = vpow2.f32 %v3837_v29  ;;  %17909 = vmatprep.subr.msk.bf16.mxu0 %vm20080_vm2, %v20765_v23  ;;  %v3856_v26 = vsel %vm1263_vm6, %v20769_v33, 0.0 }
 0x84b   : > { %3857 = vadd.xlane.f32.xlu0 %v3856_v26  ;;  %19116 = vpow2.f32 %v3835_v61 }
 0x84c   : > { %v19109_v9 = vpop.eup %19108 }
 0x84d   : > { %v19111_v32 = vpop.eup %19110  ;;  %v3841_v48 = vsel %vm585_vm13, %v19109_v9, 0.0 }
 0x84e   : > { %v3853_v28 = vsel %vm1263_vm6, %v3841_v48, 0.0  ;;  %v20781_v15 = vsel %vm587_vm14, %v19111_v32, 0.0 }
 0x84f   : > { %3854 = vadd.xlane.f32.xlu1 %v3853_v28  ;;  %v3859_v13 = vsel %vm1263_vm6, %v20781_v15, 0.0 }
 0x850   : > { %v19113_v45 = vpop.eup %19112 }
 0x851   : > { %v20785_v8 = vsel %vm588_vm15, %v19113_v45, 0.0 }
 0x852   : > { %v3862_v3 = vsel %vm1263_vm6, %v20785_v8, 0.0 }
 0x853   : > { %3863 = vadd.xlane.f32.xlu0 %v3862_v3  ;;  %3860 = vadd.xlane.f32.xlu1 %v3859_v13 }
 0x854   : > { %v19115_v27 = vpop.eup %19114 }
 0x855   : > { %v20793_v62 = vsel %vm590_vm4, %v19115_v27, 0.0  ;;  %v19117_v57 = vpop.eup %19116 }
 0x856   : > { %v3868_v50 = vsel %vm1263_vm6, %v20793_v62, 0.0  ;;  %v20808_v18 = vsel %vm589_vm0, %v19117_v57, 0.0 }
 0x857   : > { %3869 = vadd.xlane.f32.xlu0 %v3868_v50  ;;  %v3865_v10 = vsel %vm1263_vm6, %v20808_v18, 0.0 }
 0x864   : > { %18769 = vrot.lane.b32.xlu1 %v20102_v55, %s23411_s21 }
 0x86d   : > { %18764 = vrot.lane.b32.xlu0 %v20116_v2, %s23411_s21 }
 0x871   : > { %4568 = vperm.xlu0 %18778, %v20076_v63  }
 0x875   : > { %4576 = vperm.xlu0 %18778, %v20096_v54  }
 0x879   : > { %4580 = vperm.xlu0 %18778, %v20092_v53  }
 0x87d   : > { %4596 = vperm.xlu0 %18778, %v20123_v4  }
 0x888   : > { %3866 = vadd.xlane.f32.xlu1 %v3865_v10  ;;  %v23507_v10 = vld [vmem:[#allocation19_spill] sm:$0xff] }
 0x899   : > { %18774 = vrot.lane.b32.xlu1 %v20133_v7, %s23411_s21  ;;  %s23568_s21 = smov 124  }
 0x89d   : > { %4572 = vperm.xlu1 %18779, %v20074_v58  }
 0x8a1   : > { %4584 = vperm.xlu1 %18779, %v20112_v1  }
 0x8a5   : > { %4588 = vperm.xlu1 %18779, %v20108_v43  }
 0x8a9   : > { %4592 = vperm.xlu1 %18779, %v20127_v5  }
 0x8d3   : > { %v3852_v56 = vpop.xlane.xlu0 %3851 }
 0x8d4   : > { %19118 = vrcp.f32 %v3852_v56 }
 0x8d5   : > { %v3849_v0 = vpop.xlane.xlu1 %3848 }
 0x8d6   : > { %19120 = vrcp.f32 %v3849_v0 }
 0x8d8   : > { %v3858_v39 = vpop.xlane.xlu0 %3857 }
 0x8d9   : > { %19122 = vrcp.f32 %v3858_v39  ;;  %v23508_v39 = vld [vmem:[#allocation12_spill] sm:$0xff] }
 0x8dc   : > { %v3855_v46 = vpop.xlane.xlu1 %3854 }
 0x8dd   : > { %19124 = vrcp.f32 %v3855_v46 }
 0x8de   : > { %v19119_v11 = vpop.eup %19118 }
 0x8df   : > { %v3874_v42 = vmul.f32 %v19119_v11, %v20755_v47 }
 0x8e0   : > { %v19121_v41 = vpop.eup %19120  ;;  %v3864_v12 = vpop.xlane.xlu0 %3863 }
 0x8e1   : > { %v3861_v38 = vpop.xlane.xlu1 %3860  ;;  %19126 = vrcp.f32 %v3864_v12  ;;  %v3872_v52 = vmul.f32 %v19121_v41, %v20761_v51 }
 0x8e2   : > { %19128 = vrcp.f32 %v3861_v38 }
 0x8e3   : > { %16824 = vmatprep.mubr.msk.f32.mxu1 %vm1263_vm6, %v3872_v52  ;;  %v19123_v21 = vpop.eup %19122 }
 0x8e4   : > { %16825 = vmatmul.mubr.msk.f32.vlgmr.msra.gmra.mrb[24].mxu1 %vm1263_vm6, %v3874_v42  ;;  %v3870_v34 = vpop.xlane.xlu0 %3869  ;;  %v3878_v51 = vmul.f32 %v19123_v21, %v20769_v33 }
 0x8e5   : > { %17898 = vmatpush3.bf16.msra.mxu1 %v23505_v14  ;;  %v18770_v9 = vpop.permute.xlu1 %18769  ;;  %19130 = vrcp.f32 %v3870_v34 }
 0x8e6   : > { %17904 = vmatprep.subr.bf16.mxu1 %v23506_v60  ;;  %v18772_v13 = vunpack.i.h.bf16 %v18770_v9  ;;  %v18771_v14 = vunpack.i.l.bf16 %v18770_v9 }
 0x8e7   : > { %v19125_v25 = vpop.eup %19124 }
 0x8e8   : > { %v18765_v29 = vpop.permute.xlu0 %18764  ;;  %v3876_v26 = vmul.f32 %v19125_v25, %v3841_v48  ;;  %v17913_v33 = vpack.c.bf16 %v18772_v13, %v18771_v14 }
 0x8e9   : > { %v18767_v32 = vunpack.i.h.bf16 %v18765_v29  ;;  %v18766_v28 = vunpack.i.l.bf16 %v18765_v29 }
 0x8ea   : > { %16831 = vmatprep.mubr.msk.f32.mxu1 %vm1263_vm6, %v3876_v26 }
 0x8eb   : > { %v19127_v47 = vpop.eup %19126  ;;  %v17919_v45 = vpack.c.bf16 %v18767_v32, %v18766_v28  ;;  %16832 = vmatmul.mubr.msk.f32.vlgmr.msra.gmra.mrb[20].mxu1 %vm1263_vm6, %v3878_v51 }
 0x8ec   : > { %v19129_v3 = vpop.eup %19128  ;;  %17906 = vmatpush3.bf16.msra.mxu1 %v23506_v60  ;;  %v3882_v27 = vmul.f32 %v19127_v47, %v20785_v8 }
 0x8ed   : > { %17921 = vmatprep.subr.msk.bf16.mxu1 %vm20080_vm2, %v17919_v45  ;;  %v3880_v48 = vmul.f32 %v19129_v3, %v20781_v15 }
 0x8ef   : > { %16838 = vmatprep.mubr.msk.f32.mxu0 %vm1263_vm6, %v3880_v48  ;;  %v19131_v61 = vpop.eup %19130 }
 0x8f0   : > { %16839 = vmatmul.mubr.msk.f32.vlgmr.msra.gmra.mrb[14].mxu0 %vm1263_vm6, %v3882_v27  ;;  %v3886_v0 = vmul.f32 %v19131_v61, %v20793_v62  ;;  %v23509_v62 = vld [vmem:[#allocation16_spill] sm:$0xff] }
 0x8f1   : > { %17912 = vmatpush3.bf16.xpose.msk.msra.mxu0 %vm20080_vm2, %v20765_v23  ;;  %16852 = vmatprep.mubr.msk.f32.mxu0 %vm23460_vm1, %v23497_v22 }
 0x8f2   : > { %17915 = vmatprep.subr.msk.bf16.mxu0 %vm20080_vm2, %v17913_v33 }
 0x8f8   : > { %16853 = vmatmul.mubr.msk.f32.vlgmr.msra.gmra.mrb[26].mxu0 %vm23460_vm1, %v23497_v22 }
 0x8f9   : > { %17918 = vmatpush3.bf16.xpose.msk.msra.mxu0 %vm20080_vm2, %v17913_v33  ;;  %16859 = vmatprep.mubr.msk.f32.mxu0 %vm23460_vm1, %v23497_v22 }
 0x900   : > { %16860 = vmatmul.mubr.msk.f32.vlgmr.msra.gmra.mrb[28].mxu0 %vm23460_vm1, %v23497_v22 }
 0x901   : > { %16873 = vmatprep.mubr.msk.f32.mxu0 %vm23460_vm1, %v23497_v22 }
 0x915   : > { %v3867_v23 = vpop.xlane.xlu1 %3866 }
 0x916   : > { %19132 = vrcp.f32 %v3867_v23 }
 0x919   : > { %v18775_v15 = vpop.permute.xlu1 %18774 }
 0x91a   : > { %v18777_v8 = vunpack.i.h.bf16 %v18775_v15  ;;  %v18776_v50 = vunpack.i.l.bf16 %v18775_v15 }
 0x91c   : > { %v17925_v40 = vpack.c.bf16 %v18777_v8, %v18776_v50 }
 0x91d   : > { %v4573_v46 = vpop.permute.xlu1 %4572 }
 0x91e   : > { %17927 = vmatprep.subr.msk.bf16.mxu0 %vm20080_vm2, %v17925_v40 }
 0x91f   : > { %17930 = vmatpush3.bf16.xpose.msk.msra.mxu0 %vm20080_vm2, %v17925_v40 }
 0x920   : > { %v19133_v57 = vpop.eup %19132  ;;  %17940 = vmatprep.subr.bf16.mxu0 %v23507_v10 }
 0x921   : > { %v3884_v56 = vmul.f32 %v19133_v57, %v20808_v18  ;;  %v4569_v18 = vpop.permute.xlu0 %4568  ;;  %v4585_v8 = vpop.permute.xlu1 %4584 }
 0x923   : > { %16845 = vmatprep.mubr.msk.f32.mxu1 %vm1263_vm6, %v3884_v56 }
 0x924   : > { %16846 = vmatmul.mubr.msk.f32.vlgmr.msra.gmra.mrb[22].mxu1 %vm1263_vm6, %v3886_v0 }
 0x925   : > { %17924 = vmatpush3.bf16.xpose.msk.msra.mxu1 %vm20080_vm2, %v17919_v45  ;;  %16866 = vmatprep.mubr.msk.f32.mxu1 %vm23460_vm1, %v23497_v22  ;;  %v4577_v38 = vpop.permute.xlu0 %4576  ;;  %v4589_v61 = vpop.permute.xlu1 %4588 }
 0x926   : > { %17932 = vmatprep.subr.bf16.mxu1 %v23508_v39  ;;  %16874 = vmatmul.mubr.msk.f32.vlgmr.msra.gmra.mrb[30].mxu0 %vm23460_vm1, %v23497_v22 }
 0x927   : > { %17942 = vmatpush3.bf16.msra.mxu0 %v23507_v10 }
 0x929   : > { %v4581_v9 = vpop.permute.xlu0 %4580 }
 0x92c   : > { %16867 = vmatmul.mubr.msk.f32.vlgmr.msra.gmra.mrb[32].mxu1 %vm23460_vm1, %v23497_v22 }
 0x92d   : > { %17934 = vmatpush3.bf16.msra.mxu1 %v23508_v39  ;;  %v4597_v50 = vpop.permute.xlu0 %4596 }
 0x92e   : > { %17936 = vmatprep.subr.bf16.mxu1 %v23509_v62 }
 0x9cb   : > { %v16854_v11 = vpop.f32.mrb[26].mxu0 }
 0x9cc   : > { %v4600_v41 = vadd.f32 %v16854_v11, %v4573_v46  ;;  %v4309_v12 = vpop.f32.mrb[27].mxu0  ;;  %v4593_v46 = vpop.permute.xlu1 %4592 }
 0x9cd   : > { %v4599_v52 = vadd.f32 %v4569_v18, %v4309_v12 }
 0x9ce   : > { %vm4608_vm7 = vcmp.gt.f32.partialorder %v4600_v41, 0.0  ;;  %v4616_v42 = vmul.f32 0.2, %v4600_v41 }
 0x9cf   : > { %vm4607_vm8 = vcmp.gt.f32.partialorder %v4599_v52, 0.0  ;;  %v4615_v34 = vmul.f32 0.2, %v4599_v52 }
 0x9d0   : > { %v4624_v21 = vsel %vm4608_vm7, %v4600_v41, %v4616_v42 }
 0x9d1   : > { %v20874_v60 = vsel %vm584_vm3, %v4624_v21, -1e+30  ;;  %v4623_v25 = vsel %vm4607_vm8, %v4599_v52, %v4615_v34 }
 0x9d2   : > { %v4642_v29 = vsel %vm1263_vm6, %v20874_v60, -inf  ;;  %v20880_v26 = vsel %vm583_vm5, %v4623_v25, -1e+30 }
 0x9d3   : > { %4643 = vmax.xlane.f32.xlu0 %v4642_v29  ;;  %v16861_v32 = vpop.f32.mrb[28].mxu0  ;;  %v4639_v28 = vsel %vm1263_vm6, %v20880_v26, -inf }
 0x9d4   : > { %v4602_v51 = vadd.f32 %v16861_v32, %v4581_v9  ;;  %4640 = vmax.xlane.f32.xlu1 %v4639_v28  ;;  %v4392_v47 = vpop.f32.mrb[29].mxu0 }
 0x9d5   : > { %v4601_v45 = vadd.f32 %v4577_v38, %v4392_v47 }
 0x9d6   : > { %vm4610_vm9 = vcmp.gt.f32.partialorder %v4602_v51, 0.0  ;;  %v4618_v3 = vmul.f32 0.2, %v4602_v51 }
 0x9d7   : > { %vm4609_vm10 = vcmp.gt.f32.partialorder %v4601_v45, 0.0  ;;  %v4617_v13 = vmul.f32 0.2, %v4601_v45 }
 0x9d8   : > { %v4626_v27 = vsel %vm4610_vm9, %v4602_v51, %v4618_v3 }
 0x9d9   : > { %v4625_v14 = vsel %vm4609_vm10, %v4601_v45, %v4617_v13  ;;  %v4634_v23 = vsel %vm586_vm12, %v4626_v27, -1e+30  ;;  %v23425_v13 = vmov 13  }
 0x9da   : > { %v4633_v48 = vsel %vm585_vm13, %v4625_v14, -1e+30  ;;  %v4648_v15 = vsel %vm1263_vm6, %v4634_v23, -inf  ;;  %18800 = vset.pattern.permute.xlu1 %v23425_v13  ;;  %18801 = vset.pattern.permute.xlu0 %v23425_v13 }
 0x9db   : > { %v4645_v33 = vsel %vm1263_vm6, %v4633_v48, -inf }
 0x9dc   : > { %4646 = vmax.xlane.f32.xlu1 %v4645_v33 }
 0x9e0   : > { %4649 = vmax.xlane.f32.xlu1 %v4648_v15 }
 0x9f9   : > { %v16875_v40 = vpop.f32.mrb[30].mxu0 }
 0x9fa   : > { %v4606_v57 = vadd.f32 %v16875_v40, %v4597_v50  ;;  %v4558_v10 = vpop.f32.mrb[31].mxu0 }
 0x9fb   : > { %v4605_v38 = vadd.f32 %v4593_v46, %v4558_v10 }
 0x9fc   : > { %vm4614_vm11 = vcmp.gt.f32.partialorder %v4606_v57, 0.0  ;;  %v4622_v56 = vmul.f32 0.2, %v4606_v57 }
 0x9fd   : > { %v4621_v21 = vmul.f32 0.2, %v4605_v38  ;;  %vm4613_vm9 = vcmp.gt.f32.partialorder %v4605_v38, 0.0 }
 0x9fe   : > { %v4630_v0 = vsel %vm4614_vm11, %v4606_v57, %v4622_v56 }
 0x9ff   : > { %v16868_v39 = vpop.f32.mrb[32].mxu1  ;;  %v20892_v18 = vsel %vm590_vm4, %v4630_v0, -1e+30  ;;  %v4629_v51 = vsel %vm4613_vm9, %v4605_v38, %v4621_v21 }
 0xa00   : > { %v4604_v11 = vadd.f32 %v16868_v39, %v4589_v61  ;;  %v4475_v41 = vpop.f32.mrb[33].mxu1  ;;  %v4660_v12 = vsel %vm1263_vm6, %v20892_v18, -inf  ;;  %v4637_v45 = vsel %vm589_vm0, %v4629_v51, -1e+30 }
 0xa01   : > { %v4603_v52 = vadd.f32 %v4585_v8, %v4475_v41  ;;  %4661 = vmax.xlane.f32.xlu1 %v4660_v12  ;;  %v4657_v3 = vsel %vm1263_vm6, %v4637_v45, -inf }
 0xa02   : > { %vm4612_vm7 = vcmp.gt.f32.partialorder %v4604_v11, 0.0  ;;  %v4620_v42 = vmul.f32 0.2, %v4604_v11 }
 0xa03   : > { %vm4611_vm8 = vcmp.gt.f32.partialorder %v4603_v52, 0.0  ;;  %v4619_v34 = vmul.f32 0.2, %v4603_v52 }
 0xa04   : > { %v4628_v29 = vsel %vm4612_vm7, %v4604_v11, %v4620_v42 }
 0xa05   : > { %v4627_v25 = vsel %vm4611_vm8, %v4603_v52, %v4619_v34  ;;  %v4636_v28 = vsel %vm588_vm15, %v4628_v29, -1e+30 }
 0xa06   : > { %v4635_v9 = vsel %vm587_vm14, %v4627_v25, -1e+30  ;;  %v4654_v47 = vsel %vm1263_vm6, %v4636_v28, -inf }
 0xa07   : > { %v4651_v32 = vsel %vm1263_vm6, %v4635_v9, -inf }
 0xa08   : > { %4652 = vmax.xlane.f32.xlu0 %v4651_v32 }
 0xa0c   : > { %4655 = vmax.xlane.f32.xlu0 %v4654_v47 }
 0xa10   : > { %4658 = vmax.xlane.f32.xlu0 %v4657_v3 }
 0xa60   : > { %v4644_v14 = vpop.xlane.xlu0 %4643 }
 0xa61   : > { %v4664_v27 = vsub.f32 %v20874_v60, %v4644_v14  ;;  %v4641_v33 = vpop.xlane.xlu1 %4640 }
 0xa62   : > { %v4663_v15 = vsub.f32 %v20880_v26, %v4641_v33 }
 0xa63   : > { %v4673_v8 = vmul.f32 1.442695, %v4664_v27 }
 0xa64   : > { %v4671_v50 = vmul.f32 1.442695, %v4663_v15 }
 0xa65   : > { %19134 = vpow2.f32 %v4673_v8 }
 0xa66   : > { %19136 = vpow2.f32 %v4671_v50 }
 0xa69   : > { %v4647_v40 = vpop.xlane.xlu1 %4646 }
 0xa6a   : > { %v4665_v61 = vsub.f32 %v4633_v48, %v4647_v40 }
 0xa6c   : > { %v4675_v57 = vmul.f32 1.442695, %v4665_v61 }
 0xa6d   : > { %v4650_v10 = vpop.xlane.xlu1 %4649 }
 0xa6e   : > { %v4666_v56 = vsub.f32 %v4634_v23, %v4650_v10  ;;  %19138 = vpow2.f32 %v4675_v57 }
 0xa6f   : > { %v19135_v0 = vpop.eup %19134 }
 0xa70   : > { %v19137_v39 = vpop.eup %19136  ;;  %v4677_v46 = vmul.f32 1.442695, %v4666_v56  ;;  %v20911_v11 = vsel %vm584_vm3, %v19135_v0, 0.0 }
 0xa71   : > { %v4698_v60 = vsel %vm1263_vm6, %v20911_v11, 0.0  ;;  %v20917_v26 = vsel %vm583_vm5, %v19137_v39, 0.0 }
 0xa72   : > { %19140 = vpow2.f32 %v4677_v46  ;;  %4699 = vadd.xlane.f32.xlu1 %v4698_v60  ;;  %v4695_v48 = vsel %vm1263_vm6, %v20917_v26, 0.0 }
 0xa73   : > { %4696 = vadd.xlane.f32.xlu0 %v4695_v48 }
 0xa78   : > { %v19139_v23 = vpop.eup %19138 }
 0xa79   : > { %v20929_v52 = vsel %vm585_vm13, %v19139_v23, 0.0 }
 0xa7a   : > { %v4701_v42 = vsel %vm1263_vm6, %v20929_v52, 0.0 }
 0xa7c   : > { %v19141_v41 = vpop.eup %19140 }
 0xa7d   : > { %v20923_v12 = vsel %vm586_vm12, %v19141_v41, 0.0 }
 0xa7e   : > { %v4704_v38 = vsel %vm1263_vm6, %v20923_v12, 0.0 }
 0xa7f   : > { %4705 = vadd.xlane.f32.xlu1 %v4704_v38 }
 0xa83   : > { %4702 = vadd.xlane.f32.xlu1 %v4701_v42 }
 0xa8e   : > { %v4662_v34 = vpop.xlane.xlu1 %4661 }
 0xa8f   : > { %v4670_v21 = vsub.f32 %v20892_v18, %v4662_v34  ;;  %v23510_v34 = vld [vmem:[#allocation23_spill] sm:$0xff] }
 0xa91   : > { %v4685_v25 = vmul.f32 1.442695, %v4670_v21 }
 0xa93   : > { %19142 = vpow2.f32 %v4685_v25 }
 0xa95   : > { %v4653_v29 = vpop.xlane.xlu0 %4652 }
 0xa96   : > { %v4667_v32 = vsub.f32 %v4635_v9, %v4653_v29 }
 0xa98   : > { %v4679_v51 = vmul.f32 1.442695, %v4667_v32 }
 0xa99   : > { %v4656_v47 = vpop.xlane.xlu0 %4655 }
 0xa9a   : > { %v4668_v3 = vsub.f32 %v4636_v28, %v4656_v47  ;;  %19144 = vpow2.f32 %v4679_v51 }
 0xa9c   : > { %v4681_v14 = vmul.f32 1.442695, %v4668_v3 }
 0xa9d   : > { %v19143_v27 = vpop.eup %19142  ;;  %v4659_v33 = vpop.xlane.xlu0 %4658 }
 0xa9e   : > { %19146 = vpow2.f32 %v4681_v14  ;;  %v4669_v15 = vsub.f32 %v4637_v45, %v4659_v33  ;;  %v20936_v8 = vsel %vm590_vm4, %v19143_v27, 0.0 }
 0xa9f   : > { %v4716_v18 = vsel %vm1263_vm6, %v20936_v8, 0.0 }
 0xaa0   : > { %v4683_v50 = vmul.f32 1.442695, %v4669_v15  ;;  %4717 = vadd.xlane.f32.xlu1 %v4716_v18 }
 0xaa2   : > { %19148 = vpow2.f32 %v4683_v50 }
 0xaa4   : > { %v19145_v9 = vpop.eup %19144 }
 0xaa5   : > { %v20948_v45 = vsel %vm587_vm14, %v19145_v9, 0.0 }
 0xaa6   : > { %v4707_v10 = vsel %vm1263_vm6, %v20948_v45, 0.0 }
 0xaa8   : > { %v19147_v40 = vpop.eup %19146 }
 0xaa9   : > { %v20942_v28 = vsel %vm588_vm15, %v19147_v40, 0.0 }
 0xaaa   : > { %v4710_v61 = vsel %vm1263_vm6, %v20942_v28, 0.0 }
 0xaab   : > { %4711 = vadd.xlane.f32.xlu0 %v4710_v61 }
 0xaac   : > { %v19149_v57 = vpop.eup %19148 }
 0xaad   : > { %v20954_v56 = vsel %vm589_vm0, %v19149_v57, 0.0 }
 0xaae   : > { %v4713_v0 = vsel %vm1263_vm6, %v20954_v56, 0.0 }
 0xaaf   : > { %4708 = vadd.xlane.f32.xlu0 %v4707_v10 }
 0xab1   : > { %18786 = vrot.lane.b32.xlu1 %v20116_v2, %s23409_s18 }
 0xab3   : > { %4714 = vadd.xlane.f32.xlu0 %v4713_v0 }
 0xab5   : > { %18791 = vrot.lane.b32.xlu1 %v20102_v55, %s23409_s18 }
 0xab9   : > { %5416 = vperm.xlu1 %18800, %v20076_v63  }
 0xabd   : > { %5432 = vperm.xlu1 %18800, %v20112_v1  }
 0xac1   : > { %5436 = vperm.xlu1 %18800, %v20108_v43  }
 0xac5   : > { %5428 = vperm.xlu1 %18800, %v20092_v53  }
 0xac9   : > { %18781 = vrot.lane.b32.xlu0 %v20086_v35, %s23409_s18  ;;  %5444 = vperm.xlu1 %18800, %v20123_v4  }
 0xacd   : > { %18796 = vrot.lane.b32.xlu0 %v20133_v7, %s23409_s18 }
 0xad1   : > { %5420 = vperm.xlu0 %18801, %v20074_v58  }
 0xad5   : > { %5424 = vperm.xlu0 %18801, %v20096_v54  }
 0xad9   : > { %5440 = vperm.xlu0 %18801, %v20127_v5  }
 0xaff   : > { %v4700_v39 = vpop.xlane.xlu1 %4699 }
 0xb00   : > { %19150 = vrcp.f32 %v4700_v39  ;;  %v4697_v46 = vpop.xlane.xlu0 %4696 }
 0xb01   : > { %19152 = vrcp.f32 %v4697_v46 }
 0xb0a   : > { %v19151_v60 = vpop.eup %19150 }
 0xb0b   : > { %v19153_v48 = vpop.eup %19152  ;;  %v4722_v38 = vmul.f32 %v19151_v60, %v20911_v11 }
 0xb0c   : > { %v4706_v23 = vpop.xlane.xlu1 %4705  ;;  %v4720_v41 = vmul.f32 %v19153_v48, %v20917_v26 }
 0xb0d   : > { %19154 = vrcp.f32 %v4706_v23 }
 0xb0e   : > { %16880 = vmatprep.mubr.msk.f32.mxu1 %vm1263_vm6, %v4720_v41 }
 0xb0f   : > { %16881 = vmatmul.mubr.msk.f32.vlgmr.msra.gmra.mrb[24].mxu1 %vm1263_vm6, %v4722_v38  ;;  %v23513_v38 = vld [vmem:[#allocation25_spill] sm:$0xff] }
 0xb10   : > { %17938 = vmatpush3.bf16.msra.mxu1 %v23509_v62  ;;  %v4703_v42 = vpop.xlane.xlu1 %4702 }
 0xb11   : > { %19156 = vrcp.f32 %v4703_v42  ;;  %17944 = vmatprep.subr.bf16.mxu1 %v23510_v34 }
 0xb17   : > { %v19155_v21 = vpop.eup %19154 }
 0xb18   : > { %v4726_v32 = vmul.f32 %v19155_v21, %v20923_v12 }
 0xb1b   : > { %v19157_v25 = vpop.eup %19156 }
 0xb1c   : > { %v4724_v29 = vmul.f32 %v19157_v25, %v20929_v52 }
 0xb1e   : > { %16887 = vmatprep.mubr.msk.f32.mxu1 %vm1263_vm6, %v4724_v29 }
 0xb1f   : > { %16888 = vmatmul.mubr.msk.f32.vlgmr.msra.gmra.mrb[20].mxu1 %vm1263_vm6, %v4726_v32 }
 0xb20   : > { %17946 = vmatpush3.bf16.msra.mxu1 %v23510_v34 }
 0xb2d   : > { %v4718_v11 = vpop.xlane.xlu1 %4717 }
 0xb31   : > { %v18787_v26 = vpop.permute.xlu1 %18786 }
 0xb32   : > { %v18789_v9 = vunpack.i.h.bf16 %v18787_v26  ;;  %v18788_v40 = vunpack.i.l.bf16 %v18787_v26 }
 0xb34   : > { %v17959_v60 = vpack.c.bf16 %v18789_v9, %v18788_v40 }
 0xb35   : > { %v18792_v51 = vpop.permute.xlu1 %18791 }
 0xb36   : > { %v18794_v62 = vunpack.i.h.bf16 %v18792_v51  ;;  %v18793_v47 = vunpack.i.l.bf16 %v18792_v51 }
 0xb38   : > { %v17953_v3 = vpack.c.bf16 %v18794_v62, %v18793_v47  ;;  %v4712_v14 = vpop.xlane.xlu0 %4711 }
 0xb39   : > { %19158 = vrcp.f32 %v4712_v14  ;;  %v5417_v42 = vpop.permute.xlu1 %5416 }
 0xb3a   : > { %17955 = vmatprep.subr.msk.bf16.mxu1 %vm20080_vm2, %v17953_v3 }
 0xb3c   : > { %v4709_v52 = vpop.xlane.xlu0 %4708 }
 0xb3d   : > { %19160 = vrcp.f32 %v4709_v52  ;;  %v5433_v34 = vpop.permute.xlu1 %5432 }
 0xb3e   : > { %19162 = vrcp.f32 %v4718_v11 }
 0xb40   : > { %v4715_v12 = vpop.xlane.xlu0 %4714 }
 0xb41   : > { %19164 = vrcp.f32 %v4715_v12  ;;  %v5437_v25 = vpop.permute.xlu1 %5436 }
 0xb43   : > { %v19159_v18 = vpop.eup %19158 }
 0xb44   : > { %v18782_v27 = vpop.permute.xlu0 %18781  ;;  %v4730_v0 = vmul.f32 %v19159_v18, %v20942_v28 }
 0xb45   : > { %v18784_v33 = vunpack.i.h.bf16 %v18782_v27  ;;  %v18783_v15 = vunpack.i.l.bf16 %v18782_v27  ;;  %v5429_v12 = vpop.permute.xlu1 %5428 }
 0xb47   : > { %v19161_v50 = vpop.eup %19160  ;;  %v17947_v61 = vpack.c.bf16 %v18784_v33, %v18783_v15 }
 0xb48   : > { %v18797_v57 = vpop.permute.xlu0 %18796  ;;  %v4728_v10 = vmul.f32 %v19161_v50, %v20948_v45  ;;  %v19163_v39 = vpop.eup %19162 }
 0xb49   : > { %17949 = vmatprep.subr.msk.bf16.mxu0 %vm20080_vm2, %v17947_v61  ;;  %v18799_v48 = vunpack.i.h.bf16 %v18797_v57  ;;  %v18798_v23 = vunpack.i.l.bf16 %v18797_v57  ;;  %v4734_v28 = vmul.f32 %v19163_v39, %v20936_v8  ;;  %v23511_v8 = vld [vmem:[#allocation24_spill] sm:$0xff] }
 0xb4a   : > { %16894 = vmatprep.mubr.msk.f32.mxu0 %vm1263_vm6, %v4728_v10 }
 0xb4b   : > { %v19165_v46 = vpop.eup %19164  ;;  %16895 = vmatmul.mubr.msk.f32.vlgmr.msra.gmra.mrb[14].mxu0 %vm1263_vm6, %v4730_v0  ;;  %v17965_v45 = vpack.c.bf16 %v18799_v48, %v18798_v23  ;;  %v5445_v23 = vpop.permute.xlu1 %5444 }
 0xb4c   : > { %17952 = vmatpush3.bf16.xpose.msk.msra.mxu0 %vm20080_vm2, %v17947_v61  ;;  %v4732_v41 = vmul.f32 %v19165_v46, %v20954_v56  ;;  %16908 = vmatprep.mubr.msk.f32.mxu0 %vm23460_vm1, %v23497_v22  ;;  %v23512_v56 = vld [vmem:[#allocation13_spill] sm:$0xff] }
 0xb4d   : > { %17961 = vmatprep.subr.msk.bf16.mxu0 %vm20080_vm2, %v17959_v60 }
 0xb4e   : > { %16901 = vmatprep.mubr.msk.f32.mxu1 %vm1263_vm6, %v4732_v41 }
 0xb4f   : > { %16902 = vmatmul.mubr.msk.f32.vlgmr.msra.gmra.mrb[22].mxu1 %vm1263_vm6, %v4734_v28 }
 0xb50   : > { %17958 = vmatpush3.bf16.xpose.msk.msra.mxu1 %vm20080_vm2, %v17953_v3  ;;  %16915 = vmatprep.mubr.msk.f32.mxu1 %vm23460_vm1, %v23497_v22  ;;  %v5421_v21 = vpop.permute.xlu0 %5420 }
 0xb51   : > { %17967 = vmatprep.subr.msk.bf16.mxu1 %vm20080_vm2, %v17965_v45 }
 0xb53   : > { %16909 = vmatmul.mubr.msk.f32.vlgmr.msra.gmra.mrb[32].mxu0 %vm23460_vm1, %v23497_v22 }
 0xb54   : > { %17964 = vmatpush3.bf16.xpose.msk.msra.mxu0 %vm20080_vm2, %v17959_v60  ;;  %16922 = vmatprep.mubr.msk.f32.mxu0 %vm23460_vm1, %v23497_v22  ;;  %v5425_v3 = vpop.permute.xlu0 %5424 }
 0xb55   : > { %17980 = vmatprep.subr.bf16.mxu0 %v23511_v8 }
 0xb57   : > { %16916 = vmatmul.mubr.msk.f32.vlgmr.msra.gmra.mrb[34].mxu1 %vm23460_vm1, %v23497_v22 }
 0xb58   : > { %17970 = vmatpush3.bf16.xpose.msk.msra.mxu1 %vm20080_vm2, %v17965_v45  ;;  %16929 = vmatprep.mubr.msk.f32.mxu1 %vm23460_vm1, %v23497_v22 }
 0xb59   : > { %17972 = vmatprep.subr.bf16.mxu1 %v23512_v56 }
 0xb5b   : > { %16923 = vmatmul.mubr.msk.f32.vlgmr.msra.gmra.mrb[34].mxu0 %vm23460_vm1, %v23497_v22 }
 0xb5c   : > { %17982 = vmatpush3.bf16.msra.mxu0 %v23511_v8  ;;  %v5441_v8 = vpop.permute.xlu0 %5440 }
 0xb5f   : > { %16930 = vmatmul.mubr.msk.f32.vlgmr.msra.gmra.mrb[36].mxu1 %vm23460_vm1, %v23497_v22 }
 0xb60   : > { %17974 = vmatpush3.bf16.msra.mxu1 %v23512_v56 }
 0xb61   : > { %17976 = vmatprep.subr.bf16.mxu1 %v23513_v38 }
 0xc26   : > { %v16910_v29 = vpop.f32.mrb[32].mxu0 }
 0xc27   : > { %v5448_v32 = vadd.f32 %v16910_v29, %v5421_v21  ;;  %v5157_v11 = vpop.f32.mrb[33].mxu0 }
 0xc28   : > { %v5447_v26 = vadd.f32 %v5417_v42, %v5157_v11 }
 0xc29   : > { %vm5456_vm10 = vcmp.gt.f32.partialorder %v5448_v32, 0.0  ;;  %v5464_v51 = vmul.f32 0.2, %v5448_v32 }
 0xc2a   : > { %vm5455_vm11 = vcmp.gt.f32.partialorder %v5447_v26, 0.0  ;;  %v5463_v62 = vmul.f32 0.2, %v5447_v26  ;;  %v16917_v47 = vpop.f32.mrb[34].mxu1 }
 0xc2b   : > { %v5240_v14 = vpop.f32.mrb[35].mxu1  ;;  %v5472_v52 = vsel %vm5456_vm10, %v5448_v32, %v5464_v51  ;;  %v5450_v57 = vadd.f32 %v16917_v47, %v5429_v12 }
 0xc2c   : > { %v5449_v27 = vadd.f32 %v5425_v3, %v5240_v14  ;;  %v21032_v33 = vsel %vm584_vm3, %v5472_v52, -1e+30  ;;  %v5471_v15 = vsel %vm5455_vm11, %v5447_v26, %v5463_v62 }
 0xc2d   : > { %v5490_v18 = vsel %vm1263_vm6, %v21032_v33, -inf  ;;  %v5479_v50 = vsel %vm583_vm5, %v5471_v15, -1e+30  ;;  %v5466_v56 = vmul.f32 0.2, %v5450_v57  ;;  %vm5458_vm10 = vcmp.gt.f32.partialorder %v5450_v57, 0.0 }
 0xc2e   : > { %vm5457_vm7 = vcmp.gt.f32.partialorder %v5449_v27, 0.0  ;;  %v5465_v9 = vmul.f32 0.2, %v5449_v27  ;;  %5491 = vmax.xlane.f32.xlu1 %v5490_v18  ;;  %v16924_v40 = vpop.f32.mrb[34].mxu0  ;;  %v5487_v61 = vsel %vm1263_vm6, %v5479_v50, -inf }
 0xc2f   : > { %v5452_v10 = vadd.f32 %v16924_v40, %v5437_v25  ;;  %5488 = vmax.xlane.f32.xlu0 %v5487_v61  ;;  %v5323_v0 = vpop.f32.mrb[35].mxu0  ;;  %v5474_v47 = vsel %vm5458_vm10, %v5450_v57, %v5466_v56  ;;  %v23423_v61 = vmov 14  }
 0xc30   : > { %v5451_v39 = vadd.f32 %v5433_v34, %v5323_v0  ;;  %v5473_v46 = vsel %vm5457_vm7, %v5449_v27, %v5465_v9  ;;  %v5482_v27 = vsel %vm586_vm12, %v5474_v47, -1e+30  ;;  %18822 = vset.pattern.permute.xlu0 %v23423_v61  ;;  %18823 = vset.pattern.permute.xlu1 %v23423_v61 }
 0xc31   : > { %vm5460_vm8 = vcmp.gt.f32.partialorder %v5452_v10, 0.0  ;;  %v5468_v60 = vmul.f32 0.2, %v5452_v10  ;;  %v5481_v48 = vsel %vm585_vm13, %v5473_v46, -1e+30  ;;  %v5496_v18 = vsel %vm1263_vm6, %v5482_v27, -inf }
 0xc32   : > { %vm5459_vm9 = vcmp.gt.f32.partialorder %v5451_v39, 0.0  ;;  %v5467_v41 = vmul.f32 0.2, %v5451_v39  ;;  %v16931_v28 = vpop.f32.mrb[36].mxu1  ;;  %v5493_v45 = vsel %vm1263_vm6, %v5481_v48, -inf }
 0xc33   : > { %v5454_v42 = vadd.f32 %v16931_v28, %v5445_v23  ;;  %v5406_v21 = vpop.f32.mrb[37].mxu1  ;;  %5494 = vmax.xlane.f32.xlu1 %v5493_v45  ;;  %v5476_v25 = vsel %vm5460_vm8, %v5452_v10, %v5468_v60 }
 0xc34   : > { %v5453_v34 = vadd.f32 %v5441_v8, %v5406_v21  ;;  %v5484_v29 = vsel %vm588_vm15, %v5476_v25, -1e+30  ;;  %v5475_v32 = vsel %vm5459_vm9, %v5451_v39, %v5467_v41 }
 0xc35   : > { %v5502_v11 = vsel %vm1263_vm6, %v5484_v29, -inf  ;;  %v5483_v51 = vsel %vm587_vm14, %v5475_v32, -1e+30  ;;  %v5470_v62 = vmul.f32 0.2, %v5454_v42  ;;  %vm5462_vm7 = vcmp.gt.f32.partialorder %v5454_v42, 0.0 }
 0xc36   : > { %vm5461_vm11 = vcmp.gt.f32.partialorder %v5453_v34, 0.0  ;;  %v5469_v26 = vmul.f32 0.2, %v5453_v34  ;;  %5503 = vmax.xlane.f32.xlu0 %v5502_v11  ;;  %v5499_v14 = vsel %vm1263_vm6, %v5483_v51, -inf }
 0xc37   : > { %v5478_v15 = vsel %vm5462_vm7, %v5454_v42, %v5470_v62 }
 0xc38   : > { %v5477_v3 = vsel %vm5461_vm11, %v5453_v34, %v5469_v26  ;;  %v5486_v9 = vsel %vm590_vm4, %v5478_v15, -1e+30 }
 0xc39   : > { %v21050_v52 = vsel %vm589_vm0, %v5477_v3, -1e+30  ;;  %v5508_v40 = vsel %vm1263_vm6, %v5486_v9, -inf }
 0xc3a   : > { %5500 = vmax.xlane.f32.xlu0 %v5499_v14  ;;  %v5505_v12 = vsel %vm1263_vm6, %v21050_v52, -inf }
 0xc3b   : > { %5506 = vmax.xlane.f32.xlu1 %v5505_v12 }
 0xc3e   : > { %5497 = vmax.xlane.f32.xlu0 %v5496_v18 }
 0xc42   : > { %5509 = vmax.xlane.f32.xlu0 %v5508_v40 }
 0xc4c   : > { %18803 = vrot.lane.b32.xlu1 %v20086_v35, %s23407_s28 }
 0xcbb   : > { %v5492_v57 = vpop.xlane.xlu1 %5491 }
 0xcbc   : > { %v5512_v10 = vsub.f32 %v21032_v33, %v5492_v57  ;;  %v5489_v0 = vpop.xlane.xlu0 %5488 }
 0xcbd   : > { %v5511_v39 = vsub.f32 %v5479_v50, %v5489_v0 }
 0xcbe   : > { %v5521_v46 = vmul.f32 1.442695, %v5512_v10 }
 0xcbf   : > { %v5519_v60 = vmul.f32 1.442695, %v5511_v39 }
 0xcc0   : > { %19166 = vpow2.f32 %v5521_v46  ;;  %v5495_v23 = vpop.xlane.xlu1 %5494 }
 0xcc1   : > { %19168 = vpow2.f32 %v5519_v60  ;;  %v5513_v41 = vsub.f32 %v5481_v48, %v5495_v23 }
 0xcc3   : > { %v5504_v28 = vpop.xlane.xlu0 %5503  ;;  %v5523_v56 = vmul.f32 1.442695, %v5513_v41 }
 0xcc4   : > { %v5516_v45 = vsub.f32 %v5484_v29, %v5504_v28 }
 0xcc6   : > { %v5529_v8 = vmul.f32 1.442695, %v5516_v45 }
 0xcc7   : > { %v5501_v42 = vpop.xlane.xlu0 %5500 }
 0xcc8   : > { %19170 = vpow2.f32 %v5529_v8  ;;  %v5515_v21 = vsub.f32 %v5483_v51, %v5501_v42  ;;  %v5507_v25 = vpop.xlane.xlu1 %5506 }
 0xcc9   : > { %19172 = vpow2.f32 %v5523_v56 }
 0xcca   : > { %v19167_v34 = vpop.eup %19166  ;;  %v5527_v32 = vmul.f32 1.442695, %v5515_v21  ;;  %v5517_v21 = vsub.f32 %v21050_v52, %v5507_v25 }
 0xccb   : > { %v19169_v11 = vpop.eup %19168  ;;  %v5498_v33 = vpop.xlane.xlu0 %5497  ;;  %v21067_v50 = vsel %vm584_vm3, %v19167_v34, 0.0 }
 0xccc   : > { %19174 = vpow2.f32 %v5527_v32  ;;  %v5514_v26 = vsub.f32 %v5482_v27, %v5498_v33  ;;  %v18804_v48 = vpop.permute.xlu1 %18803  ;;  %v5546_v29 = vsel %vm1263_vm6, %v21067_v50, 0.0  ;;  %v5535_v62 = vsel %vm583_vm5, %v19169_v11, 0.0 }
 0xccd   : > { %v18806_v51 = vunpack.i.h.bf16 %v18804_v48  ;;  %v18805_v47 = vunpack.i.l.bf16 %v18804_v48  ;;  %5547 = vadd.xlane.f32.xlu0 %v5546_v29  ;;  %v5543_v3 = vsel %vm1263_vm6, %v5535_v62, 0.0  ;;  %v5531_v34 = vmul.f32 1.442695, %v5517_v21 }
 0xcce   : > { %v5525_v14 = vmul.f32 1.442695, %v5514_v26  ;;  %5544 = vadd.xlane.f32.xlu1 %v5543_v3 }
 0xccf   : > { %v21074_v12 = vpack.c.bf16 %v18806_v51, %v18805_v47  ;;  %v5510_v15 = vpop.xlane.xlu0 %5509 }
 0xcd0   : > { %19176 = vpow2.f32 %v5525_v14  ;;  %v5518_v18 = vsub.f32 %v5486_v9, %v5510_v15 }
 0xcd1   : > { %17989 = vmatprep.subr.msk.bf16.mxu0 %vm20080_vm2, %v21074_v12 }
 0xcd2   : > { %v19171_v27 = vpop.eup %19170  ;;  %v5533_v40 = vmul.f32 1.442695, %v5518_v18  ;;  %v23514_v18 = vld [vmem:[#allocation26_spill] sm:$0xff] }
 0xcd3   : > { %v21081_v57 = vsel %vm588_vm15, %v19171_v27, 0.0  ;;  %v19173_v0 = vpop.eup %19172 }
 0xcd4   : > { %19178 = vpow2.f32 %v5533_v40  ;;  %v5558_v10 = vsel %vm1263_vm6, %v21081_v57, 0.0  ;;  %v21090_v60 = vsel %vm585_vm13, %v19173_v0, 0.0 }
 0xcd5   : > { %5559 = vadd.xlane.f32.xlu0 %v5558_v10  ;;  %v5549_v28 = vsel %vm1263_vm6, %v21090_v60, 0.0  ;;  %19180 = vpow2.f32 %v5531_v34 }
 0xcd6   : > { %v19175_v39 = vpop.eup %19174 }
 0xcd7   : > { %v5539_v9 = vsel %vm587_vm14, %v19175_v39, 0.0 }
 0xcd8   : > { %v5555_v46 = vsel %vm1263_vm6, %v5539_v9, 0.0 }
 0xcd9   : > { %5556 = vadd.xlane.f32.xlu1 %v5555_v46 }
 0xcda   : > { %v19177_v23 = vpop.eup %19176 }
 0xcdb   : > { %v21094_v41 = vsel %vm586_vm12, %v19177_v23, 0.0 }
 0xcdc   : > { %v5552_v45 = vsel %vm1263_vm6, %v21094_v41, 0.0 }
 0xcdd   : > { %5550 = vadd.xlane.f32.xlu1 %v5549_v28  ;;  %5553 = vadd.xlane.f32.xlu0 %v5552_v45 }
 0xcde   : > { %v19179_v8 = vpop.eup %19178 }
 0xcdf   : > { %v21102_v56 = vsel %vm590_vm4, %v19179_v8, 0.0  ;;  %v19181_v32 = vpop.eup %19180 }
 0xce0   : > { %v5564_v42 = vsel %vm1263_vm6, %v21102_v56, 0.0  ;;  %v21117_v11 = vsel %vm589_vm0, %v19181_v32, 0.0 }
 0xce1   : > { %5565 = vadd.xlane.f32.xlu0 %v5564_v42  ;;  %v5561_v33 = vsel %vm1263_vm6, %v21117_v11, 0.0 }
 0xcee   : > { %18813 = vrot.lane.b32.xlu1 %v20116_v2, %s23407_s28 }
 0xcf7   : > { %18808 = vrot.lane.b32.xlu0 %v20102_v55, %s23407_s28 }
 0xcfb   : > { %6264 = vperm.xlu0 %18822, %v20076_v63  }
 0xcff   : > { %6276 = vperm.xlu0 %18822, %v20092_v53  }
 0xd03   : > { %6284 = vperm.xlu0 %18822, %v20108_v43  }
 0xd07   : > { %6292 = vperm.xlu0 %18822, %v20123_v4  }
 0xd12   : > { %5562 = vadd.xlane.f32.xlu1 %v5561_v33 }
 0xd23   : > { %18818 = vrot.lane.b32.xlu1 %v20133_v7, %s23407_s28  ;;  %s22957_s28 = scalar_lea.vmem %s23352_s2, %s19799_s20 }
 0xd24   : > { %v591_v24 = vld [vmem:[%s22957_s28] sm:$0xff] }
 0xd27   : > { %6268 = vperm.xlu1 %18823, %v20074_v58  }
 0xd2b   : > { %6272 = vperm.xlu1 %18823, %v20096_v54  }
 0xd2f   : > { %6280 = vperm.xlu1 %18823, %v20112_v1  }
 0xd33   : > { %6288 = vperm.xlu1 %18823, %v20127_v5  }
 0xd5a   : > { %v5548_v52 = vpop.xlane.xlu0 %5547 }
 0xd5b   : > { %19182 = vrcp.f32 %v5548_v52  ;;  %v5545_v25 = vpop.xlane.xlu1 %5544 }
 0xd5c   : > { %19184 = vrcp.f32 %v5545_v25  ;;  %v23515_v25 = vld [vmem:[#allocation27_spill] sm:$0xff] }
 0xd62   : > { %v5560_v26 = vpop.xlane.xlu0 %5559 }
 0xd63   : > { %19186 = vrcp.f32 %v5560_v26 }
 0xd65   : > { %v19183_v48 = vpop.eup %19182 }
 0xd66   : > { %v19185_v29 = vpop.eup %19184  ;;  %v5557_v51 = vpop.xlane.xlu1 %5556  ;;  %v5570_v3 = vmul.f32 %v19183_v48, %v21067_v50 }
 0xd67   : > { %19188 = vrcp.f32 %v5557_v51  ;;  %v5568_v47 = vmul.f32 %v19185_v29, %v5535_v62  ;;  %v23516_v29 = vld [vmem:[#allocation28_spill] sm:$0xff] }
 0xd69   : > { %16936 = vmatprep.mubr.msk.f32.mxu1 %vm1263_vm6, %v5568_v47 }
 0xd6a   : > { %v5551_v14 = vpop.xlane.xlu1 %5550  ;;  %16937 = vmatmul.mubr.msk.f32.vlgmr.msra.gmra.mrb[24].mxu1 %vm1263_vm6, %v5570_v3  ;;  %v5554_v15 = vpop.xlane.xlu0 %5553 }
 0xd6b   : > { %19190 = vrcp.f32 %v5551_v14  ;;  %17978 = vmatpush3.bf16.msra.mxu1 %v23513_v38 }
 0xd6c   : > { %19192 = vrcp.f32 %v5554_v15  ;;  %17984 = vmatprep.subr.bf16.mxu1 %v23514_v18 }
 0xd6d   : > { %v19187_v40 = vpop.eup %19186 }
 0xd6e   : > { %v5566_v27 = vpop.xlane.xlu0 %5565  ;;  %v18814_v0 = vpop.permute.xlu1 %18813  ;;  %v5578_v23 = vmul.f32 %v19187_v40, %v21081_v57 }
 0xd6f   : > { %v18816_v45 = vunpack.i.h.bf16 %v18814_v0  ;;  %v18815_v8 = vunpack.i.l.bf16 %v18814_v0  ;;  %19194 = vrcp.f32 %v5566_v27 }
 0xd71   : > { %v19189_v10 = vpop.eup %19188 }
 0xd72   : > { %v18809_v39 = vpop.permute.xlu0 %18808  ;;  %v5576_v62 = vmul.f32 %v19189_v10, %v5539_v9  ;;  %v17999_v9 = vpack.c.bf16 %v18816_v45, %v18815_v8 }
 0xd73   : > { %v18811_v46 = vunpack.i.h.bf16 %v18809_v39  ;;  %v18810_v50 = vunpack.i.l.bf16 %v18809_v39 }
 0xd74   : > { %16950 = vmatprep.mubr.msk.f32.mxu0 %vm1263_vm6, %v5576_v62 }
 0xd75   : > { %v19191_v28 = vpop.eup %19190  ;;  %v17993_v42 = vpack.c.bf16 %v18811_v46, %v18810_v50  ;;  %16951 = vmatmul.mubr.msk.f32.vlgmr.msra.gmra.mrb[14].mxu0 %vm1263_vm6, %v5578_v23 }
 0xd76   : > { %v19193_v38 = vpop.eup %19192  ;;  %17992 = vmatpush3.bf16.xpose.msk.msra.mxu0 %vm20080_vm2, %v21074_v12  ;;  %v5572_v21 = vmul.f32 %v19191_v28, %v21090_v60  ;;  %16964 = vmatprep.mubr.msk.f32.mxu0 %vm23460_vm1, %v23497_v22 }
 0xd77   : > { %17995 = vmatprep.subr.msk.bf16.mxu0 %vm20080_vm2, %v17993_v42  ;;  %v5574_v57 = vmul.f32 %v19193_v38, %v21094_v41 }
 0xd78   : > { %16943 = vmatprep.mubr.msk.f32.mxu1 %vm1263_vm6, %v5572_v21 }
 0xd79   : > { %16944 = vmatmul.mubr.msk.f32.vlgmr.msra.gmra.mrb[20].mxu1 %vm1263_vm6, %v5574_v57  ;;  %v19195_v33 = vpop.eup %19194 }
 0xd7a   : > { %17986 = vmatpush3.bf16.msra.mxu1 %v23514_v18  ;;  %v5582_v48 = vmul.f32 %v19195_v33, %v21102_v56  ;;  %v23517_v56 = vld [vmem:[#allocation29_spill] sm:$0xff]  ;;  %v6265_v47 = vpop.permute.xlu0 %6264 }
 0xd7b   : > { %18001 = vmatprep.subr.msk.bf16.mxu1 %vm20080_vm2, %v17999_v9 }
 0xd7d   : > { %16965 = vmatmul.mubr.msk.f32.vlgmr.msra.gmra.mrb[36].mxu0 %vm23460_vm1, %v23497_v22 }
 0xd7e   : > { %17998 = vmatpush3.bf16.xpose.msk.msra.mxu0 %vm20080_vm2, %v17993_v42  ;;  %16971 = vmatprep.mubr.msk.f32.mxu0 %vm23460_vm1, %v23497_v22  ;;  %v6277_v46 = vpop.permute.xlu0 %6276 }
 0xd85   : > { %16972 = vmatmul.mubr.msk.f32.vlgmr.msra.gmra.mrb[38].mxu0 %vm23460_vm1, %v23497_v22 }
 0xd86   : > { %16985 = vmatprep.mubr.msk.f32.mxu0 %vm23460_vm1, %v23497_v22 }
 0xd9f   : > { %v5563_v12 = vpop.xlane.xlu1 %5562 }
 0xda0   : > { %19196 = vrcp.f32 %v5563_v12 }
 0xda3   : > { %v18819_v60 = vpop.permute.xlu1 %18818 }
 0xda4   : > { %v18821_v41 = vunpack.i.h.bf16 %v18819_v60  ;;  %v18820_v34 = vunpack.i.l.bf16 %v18819_v60 }
 0xda6   : > { %v18005_v32 = vpack.c.bf16 %v18821_v41, %v18820_v34 }
 0xda8   : > { %18007 = vmatprep.subr.msk.bf16.mxu0 %vm20080_vm2, %v18005_v32 }
 0xda9   : > { %18010 = vmatpush3.bf16.xpose.msk.msra.mxu0 %vm20080_vm2, %v18005_v32  ;;  %v6285_v32 = vpop.permute.xlu0 %6284 }
 0xdaa   : > { %v19197_v52 = vpop.eup %19196  ;;  %18020 = vmatprep.subr.bf16.mxu0 %v23515_v25 }
 0xdab   : > { %v5580_v26 = vmul.f32 %v19197_v52, %v21117_v11  ;;  %v6269_v11 = vpop.permute.xlu1 %6268 }
 0xdad   : > { %16957 = vmatprep.mubr.msk.f32.mxu1 %vm1263_vm6, %v5580_v26  ;;  %v6293_v26 = vpop.permute.xlu0 %6292 }
 0xdae   : > { %16958 = vmatmul.mubr.msk.f32.vlgmr.msra.gmra.mrb[22].mxu1 %vm1263_vm6, %v5582_v48 }
 0xdaf   : > { %18004 = vmatpush3.bf16.xpose.msk.msra.mxu1 %vm20080_vm2, %v17999_v9  ;;  %16978 = vmatprep.mubr.msk.f32.mxu1 %vm23460_vm1, %v23497_v22  ;;  %v6273_v28 = vpop.permute.xlu1 %6272 }
 0xdb0   : > { %18012 = vmatprep.subr.bf16.mxu1 %v23516_v29  ;;  %16986 = vmatmul.mubr.msk.f32.vlgmr.msra.gmra.mrb[40].mxu0 %vm23460_vm1, %v23497_v22 }
 0xdb1   : > { %18022 = vmatpush3.bf16.msra.mxu0 %v23515_v25 }
 0xdb3   : > { %v6281_v33 = vpop.permute.xlu1 %6280 }
 0xdb6   : > { %16979 = vmatmul.mubr.msk.f32.vlgmr.msra.gmra.mrb[38].mxu1 %vm23460_vm1, %v23497_v22 }
 0xdb7   : > { %18014 = vmatpush3.bf16.msra.mxu1 %v23516_v29  ;;  %v6289_v48 = vpop.permute.xlu1 %6288 }
 0xdb8   : > { %18016 = vmatprep.subr.bf16.mxu1 %v23517_v56 }
 0xe50   : > { %v16966_v51 = vpop.f32.mrb[36].mxu0 }
 0xe51   : > { %v6296_v3 = vadd.f32 %v16966_v51, %v6269_v11  ;;  %v6005_v14 = vpop.f32.mrb[37].mxu0 }
 0xe52   : > { %v6295_v15 = vadd.f32 %v6265_v47, %v6005_v14 }
 0xe53   : > { %vm6304_vm8 = vcmp.gt.f32.partialorder %v6296_v3, 0.0  ;;  %v6312_v18 = vmul.f32 0.2, %v6296_v3 }
 0xe54   : > { %vm6303_vm9 = vcmp.gt.f32.partialorder %v6295_v15, 0.0  ;;  %v6311_v27 = vmul.f32 0.2, %v6295_v15 }
 0xe55   : > { %v6320_v40 = vsel %vm6304_vm8, %v6296_v3, %v6312_v18 }
 0xe56   : > { %v21182_v10 = vsel %vm584_vm3, %v6320_v40, -1e+30  ;;  %v6319_v0 = vsel %vm6303_vm9, %v6295_v15, %v6311_v27 }
 0xe57   : > { %v6338_v39 = vsel %vm1263_vm6, %v21182_v10, -inf  ;;  %v21188_v62 = vsel %vm583_vm5, %v6319_v0, -1e+30 }
 0xe58   : > { %6339 = vmax.xlane.f32.xlu0 %v6338_v39  ;;  %v16973_v50 = vpop.f32.mrb[38].mxu0  ;;  %v6335_v23 = vsel %vm1263_vm6, %v21188_v62, -inf }
 0xe59   : > { %v6298_v45 = vadd.f32 %v16973_v50, %v6277_v46  ;;  %6336 = vmax.xlane.f32.xlu1 %v6335_v23  ;;  %v6088_v8 = vpop.f32.mrb[39].mxu0 }
 0xe5a   : > { %v6297_v42 = vadd.f32 %v6273_v28, %v6088_v8 }
 0xe5b   : > { %vm6306_vm10 = vcmp.gt.f32.partialorder %v6298_v45, 0.0  ;;  %v6314_v38 = vmul.f32 0.2, %v6298_v45 }
 0xe5c   : > { %vm6305_vm11 = vcmp.gt.f32.partialorder %v6297_v42, 0.0  ;;  %v6313_v21 = vmul.f32 0.2, %v6297_v42 }
 0xe5d   : > { %v6322_v57 = vsel %vm6306_vm10, %v6298_v45, %v6314_v38 }
 0xe5e   : > { %v6330_v9 = vsel %vm586_vm12, %v6322_v57, -1e+30  ;;  %v6321_v12 = vsel %vm6305_vm11, %v6297_v42, %v6313_v21 }
 0xe5f   : > { %v6344_v60 = vsel %vm1263_vm6, %v6330_v9, -inf  ;;  %v6329_v41 = vsel %vm585_vm13, %v6321_v12, -1e+30  ;;  %v23421_v12 = vmov 15  }
 0xe60   : > { %6345 = vmax.xlane.f32.xlu1 %v6344_v60  ;;  %v6341_v34 = vsel %vm1263_vm6, %v6329_v41, -inf  ;;  %18845 = vset.pattern.permute.xlu0 %v23421_v12 }
 0xe61   : > { %6342 = vmax.xlane.f32.xlu0 %v6341_v34  ;;  %18844 = vset.pattern.permute.xlu1 %v23421_v12 }
 0xe83   : > { %v16987_v52 = vpop.f32.mrb[40].mxu0 }
 0xe84   : > { %v6254_v25 = vpop.f32.mrb[41].mxu0  ;;  %v6302_v29 = vadd.f32 %v16987_v52, %v6293_v26 }
 0xe85   : > { %v6301_v11 = vadd.f32 %v6289_v48, %v6254_v25 }
 0xe86   : > { %v6318_v47 = vmul.f32 0.2, %v6302_v29  ;;  %vm6310_vm7 = vcmp.gt.f32.partialorder %v6302_v29, 0.0 }
 0xe87   : > { %v6317_v15 = vmul.f32 0.2, %v6301_v11  ;;  %vm6309_vm8 = vcmp.gt.f32.partialorder %v6301_v11, 0.0 }
 0xe88   : > { %v6326_v39 = vsel %vm6310_vm7, %v6302_v29, %v6318_v47 }
 0xe89   : > { %v16980_v51 = vpop.f32.mrb[38].mxu1  ;;  %v6325_v23 = vsel %vm6309_vm8, %v6301_v11, %v6317_v15  ;;  %v6334_v42 = vsel %vm590_vm4, %v6326_v39, -1e+30 }
 0xe8a   : > { %v6300_v3 = vadd.f32 %v16980_v51, %v6285_v32  ;;  %v6171_v14 = vpop.f32.mrb[39].mxu1  ;;  %v6333_v38 = vsel %vm589_vm0, %v6325_v23, -1e+30  ;;  %v6356_v21 = vsel %vm1263_vm6, %v6334_v42, -inf }
 0xe8b   : > { %v6299_v18 = vadd.f32 %v6281_v33, %v6171_v14  ;;  %v6353_v57 = vsel %vm1263_vm6, %v6333_v38, -inf }
 0xe8c   : > { %vm6308_vm9 = vcmp.gt.f32.partialorder %v6300_v3, 0.0  ;;  %v6316_v27 = vmul.f32 0.2, %v6300_v3 }
 0xe8d   : > { %vm6307_vm10 = vcmp.gt.f32.partialorder %v6299_v18, 0.0  ;;  %v6315_v40 = vmul.f32 0.2, %v6299_v18 }
 0xe8e   : > { %v6324_v0 = vsel %vm6308_vm9, %v6300_v3, %v6316_v27 }
 0xe8f   : > { %v6332_v46 = vsel %vm588_vm15, %v6324_v0, -1e+30  ;;  %v6323_v50 = vsel %vm6307_vm10, %v6299_v18, %v6315_v40 }
 0xe90   : > { %v6350_v28 = vsel %vm1263_vm6, %v6332_v46, -inf  ;;  %v6331_v45 = vsel %vm587_vm14, %v6323_v50, -1e+30 }
 0xe91   : > { %6351 = vmax.xlane.f32.xlu1 %v6350_v28  ;;  %v6347_v8 = vsel %vm1263_vm6, %v6331_v45, -inf }
 0xe92   : > { %6348 = vmax.xlane.f32.xlu0 %v6347_v8 }
 0xe95   : > { %6357 = vmax.xlane.f32.xlu1 %v6356_v21 }
 0xe96   : > { %6354 = vmax.xlane.f32.xlu0 %v6353_v57 }
 0xee5   : > { %v6340_v60 = vpop.xlane.xlu0 %6339 }
 0xee6   : > { %v6360_v34 = vsub.f32 %v21182_v10, %v6340_v60  ;;  %v6337_v32 = vpop.xlane.xlu1 %6336 }
 0xee7   : > { %v6359_v33 = vsub.f32 %v21188_v62, %v6337_v32 }
 0xee8   : > { %v6369_v52 = vmul.f32 1.442695, %v6360_v34 }
 0xee9   : > { %v6367_v25 = vmul.f32 1.442695, %v6359_v33 }
 0xeea   : > { %19198 = vpow2.f32 %v6369_v52 }
 0xeeb   : > { %19200 = vpow2.f32 %v6367_v25 }
 0xeed   : > { %v6346_v26 = vpop.xlane.xlu1 %6345 }
 0xeee   : > { %v6362_v48 = vsub.f32 %v6330_v9, %v6346_v26  ;;  %v6343_v29 = vpop.xlane.xlu0 %6342 }
 0xeef   : > { %v6361_v11 = vsub.f32 %v6329_v41, %v6343_v29 }
 0xef0   : > { %v6373_v51 = vmul.f32 1.442695, %v6362_v48 }
 0xef1   : > { %v6371_v47 = vmul.f32 1.442695, %v6361_v11 }
 0xef2   : > { %19202 = vpow2.f32 %v6373_v51 }
 0xef3   : > { %19204 = vpow2.f32 %v6371_v47 }
 0xef4   : > { %v19199_v3 = vpop.eup %19198 }
 0xef5   : > { %v19201_v14 = vpop.eup %19200  ;;  %v21216_v10 = vsel %vm584_vm3, %v19199_v3, 0.0 }
 0xef6   : > { %v6394_v62 = vsel %vm1263_vm6, %v21216_v10, 0.0  ;;  %v21222_v15 = vsel %vm583_vm5, %v19201_v14, 0.0 }
 0xef7   : > { %6395 = vadd.xlane.f32.xlu1 %v6394_v62  ;;  %v6391_v9 = vsel %vm1263_vm6, %v21222_v15, 0.0 }
 0xef8   : > { %6392 = vadd.xlane.f32.xlu0 %v6391_v9 }
 0xefc   : > { %v19203_v41 = vpop.eup %19202 }
 0xefd   : > { %v19205_v18 = vpop.eup %19204  ;;  %v21228_v27 = vsel %vm586_vm12, %v19203_v41, 0.0 }
 0xefe   : > { %v6400_v40 = vsel %vm1263_vm6, %v21228_v27, 0.0  ;;  %v21234_v0 = vsel %vm585_vm13, %v19205_v18, 0.0 }
 0xeff   : > { %6401 = vadd.xlane.f32.xlu1 %v6400_v40  ;;  %v6397_v39 = vsel %vm1263_vm6, %v21234_v0, 0.0 }
 0xf00   : > { %6398 = vadd.xlane.f32.xlu0 %v6397_v39 }
 0xf1e   : > { %v6352_v50 = vpop.xlane.xlu1 %6351 }
 0xf1f   : > { %v6364_v23 = vsub.f32 %v6332_v46, %v6352_v50  ;;  %v6349_v28 = vpop.xlane.xlu0 %6348 }
 0xf20   : > { %v6363_v8 = vsub.f32 %v6331_v45, %v6349_v28 }
 0xf21   : > { %v6377_v21 = vmul.f32 1.442695, %v6364_v23 }
 0xf22   : > { %v6375_v57 = vmul.f32 1.442695, %v6363_v8  ;;  %v6358_v60 = vpop.xlane.xlu1 %6357 }
 0xf23   : > { %19206 = vpow2.f32 %v6377_v21  ;;  %v6366_v34 = vsub.f32 %v6334_v42, %v6358_v60  ;;  %v6355_v32 = vpop.xlane.xlu0 %6354 }
 0xf24   : > { %19208 = vpow2.f32 %v6375_v57  ;;  %v6365_v33 = vsub.f32 %v6333_v38, %v6355_v32 }
 0xf25   : > { %v6381_v52 = vmul.f32 1.442695, %v6366_v34 }
 0xf26   : > { %v6379_v25 = vmul.f32 1.442695, %v6365_v33 }
 0xf27   : > { %19210 = vpow2.f32 %v6381_v52 }
 0xf28   : > { %19212 = vpow2.f32 %v6379_v25 }
 0xf2d   : > { %v19207_v26 = vpop.eup %19206 }
 0xf2e   : > { %v19209_v48 = vpop.eup %19208  ;;  %v21240_v29 = vsel %vm588_vm15, %v19207_v26, 0.0 }
 0xf2f   : > { %v6406_v46 = vsel %vm1263_vm6, %v21240_v29, 0.0  ;;  %v21246_v45 = vsel %vm587_vm14, %v19209_v48, 0.0 }
 0xf30   : > { %6407 = vadd.xlane.f32.xlu1 %v6406_v46  ;;  %v6403_v42 = vsel %vm1263_vm6, %v21246_v45, 0.0 }
 0xf31   : > { %v19211_v38 = vpop.eup %19210  ;;  %6404 = vadd.xlane.f32.xlu0 %v6403_v42 }
 0xf32   : > { %v19213_v11 = vpop.eup %19212  ;;  %v21252_v51 = vsel %vm590_vm4, %v19211_v38, 0.0 }
 0xf33   : > { %v6412_v47 = vsel %vm1263_vm6, %v21252_v51, 0.0  ;;  %v21258_v3 = vsel %vm589_vm0, %v19213_v11, 0.0  ;;  %v23520_v11 = vld [vmem:[#allocation31_spill] sm:$0xff] }
 0xf34   : > { %6413 = vadd.xlane.f32.xlu1 %v6412_v47  ;;  %v6409_v14 = vsel %vm1263_vm6, %v21258_v3, 0.0  ;;  %v23522_v47 = vld [vmem:[#allocation33_spill] sm:$0xff] }
 0xf35   : > { %6410 = vadd.xlane.f32.xlu0 %v6409_v14 }
 0xf45   : > { %18830 = vrot.lane.b32.xlu1 %v20102_v55, %s23405_s30 }
 0xf49   : > { %18835 = vrot.lane.b32.xlu1 %v20116_v2, %s23405_s30 }
 0xf4b   : > { %18825 = vrot.lane.b32.xlu0 %v20086_v35, %s23405_s30  ;;  %v23518_v35 = vmov 9  }
 0xf4d   : > { %7112 = vperm.xlu1 %18844, %v20076_v63  }
 0xf4f   : > { %18840 = vrot.lane.b32.xlu0 %v20133_v7, %s23405_s30  ;;  %s23574_s30 = smov 123  }
 0xf51   : > { %7120 = vperm.xlu1 %18844, %v20096_v54  }
 0xf53   : > { %7116 = vperm.xlu0 %18845, %v20074_v58  }
 0xf55   : > { %7124 = vperm.xlu1 %18844, %v20092_v53  }
 0xf57   : > { %7128 = vperm.xlu0 %18845, %v20112_v1  }
 0xf59   : > { %7132 = vperm.xlu1 %18844, %v20108_v43  }
 0xf5b   : > { %7136 = vperm.xlu0 %18845, %v20127_v5  }
 0xf5d   : > { %7140 = vperm.xlu1 %18844, %v20123_v4   ;;  %v23519_v4 = vld [vmem:[#allocation30_spill] sm:$0xff] }
 0xf5f   : > { %18866 = vset.pattern.permute.xlu0 %v23518_v35 }
 0xf61   : > { %18867 = vset.pattern.permute.xlu1 %v23518_v35 }
 0xf84   : > { %v6396_v63 = vpop.xlane.xlu1 %6395 }
 0xf85   : > { %19214 = vrcp.f32 %v6396_v63  ;;  %v6393_v55 = vpop.xlane.xlu0 %6392 }
 0xf86   : > { %19216 = vrcp.f32 %v6393_v55 }
 0xf8c   : > { %v6402_v54 = vpop.xlane.xlu1 %6401 }
 0xf8d   : > { %19218 = vrcp.f32 %v6402_v54  ;;  %v6399_v58 = vpop.xlane.xlu0 %6398 }
 0xf8e   : > { %19220 = vrcp.f32 %v6399_v58 }
 0xf8f   : > { %v19215_v53 = vpop.eup %19214 }
 0xf90   : > { %v19217_v1 = vpop.eup %19216  ;;  %v6418_v2 = vmul.f32 %v19215_v53, %v21216_v10 }
 0xf91   : > { %v6416_v43 = vmul.f32 %v19217_v1, %v21222_v15 }
 0xf93   : > { %16992 = vmatprep.mubr.msk.f32.mxu1 %vm1263_vm6, %v6416_v43 }
 0xf94   : > { %16993 = vmatmul.mubr.msk.f32.vlgmr.msra.gmra.mrb[24].mxu1 %vm1263_vm6, %v6418_v2 }
 0xf95   : > { %18018 = vmatpush3.bf16.msra.mxu1 %v23517_v56 }
 0xf96   : > { %18024 = vmatprep.subr.bf16.mxu1 %v23519_v4 }
 0xf97   : > { %v19219_v5 = vpop.eup %19218 }
 0xf98   : > { %v19221_v7 = vpop.eup %19220  ;;  %v6422_v9 = vmul.f32 %v19219_v5, %v21228_v27 }
 0xf99   : > { %v6420_v62 = vmul.f32 %v19221_v7, %v21234_v0 }
 0xf9b   : > { %16999 = vmatprep.mubr.msk.f32.mxu1 %vm1263_vm6, %v6420_v62 }
 0xf9c   : > { %17000 = vmatmul.mubr.msk.f32.vlgmr.msra.gmra.mrb[20].mxu1 %vm1263_vm6, %v6422_v9 }
 0xf9d   : > { %18026 = vmatpush3.bf16.msra.mxu1 %v23519_v4 }
 0xfbd   : > { %v6408_v10 = vpop.xlane.xlu1 %6407 }
 0xfbe   : > { %19222 = vrcp.f32 %v6408_v10  ;;  %v6405_v15 = vpop.xlane.xlu0 %6404 }
 0xfbf   : > { %19224 = vrcp.f32 %v6405_v15 }
 0xfc1   : > { %v6414_v41 = vpop.xlane.xlu1 %6413 }
 0xfc2   : > { %19226 = vrcp.f32 %v6414_v41  ;;  %v6411_v56 = vpop.xlane.xlu0 %6410 }
 0xfc3   : > { %19228 = vrcp.f32 %v6411_v56 }
 0xfc5   : > { %v18831_v18 = vpop.permute.xlu1 %18830 }
 0xfc6   : > { %v18833_v40 = vunpack.i.h.bf16 %v18831_v18  ;;  %v18832_v39 = vunpack.i.l.bf16 %v18831_v18  ;;  %v18826_v0 = vpop.permute.xlu0 %18825 }
 0xfc7   : > { %v18828_v50 = vunpack.i.h.bf16 %v18826_v0  ;;  %v18827_v27 = vunpack.i.l.bf16 %v18826_v0 }
 0xfc8   : > { %v19223_v23 = vpop.eup %19222  ;;  %v18033_v28 = vpack.c.bf16 %v18833_v40, %v18832_v39 }
 0xfc9   : > { %v19225_v8 = vpop.eup %19224  ;;  %v18027_v21 = vpack.c.bf16 %v18828_v50, %v18827_v27  ;;  %v18836_v57 = vpop.permute.xlu1 %18835  ;;  %v6426_v52 = vmul.f32 %v19223_v23, %v21240_v29 }
 0xfca   : > { %v18838_v60 = vunpack.i.h.bf16 %v18836_v57  ;;  %v18837_v34 = vunpack.i.l.bf16 %v18836_v57  ;;  %18035 = vmatprep.subr.msk.bf16.mxu1 %vm20080_vm2, %v18033_v28  ;;  %v18841_v32 = vpop.permute.xlu0 %18840  ;;  %v6424_v33 = vmul.f32 %v19225_v8, %v21246_v45 }
 0xfcb   : > { %18029 = vmatprep.subr.msk.bf16.mxu0 %vm20080_vm2, %v18027_v21  ;;  %v18843_v46 = vunpack.i.h.bf16 %v18841_v32  ;;  %v18842_v42 = vunpack.i.l.bf16 %v18841_v32 }
 0xfcc   : > { %v19227_v25 = vpop.eup %19226  ;;  %v18039_v26 = vpack.c.bf16 %v18838_v60, %v18837_v34  ;;  %17006 = vmatprep.mubr.msk.f32.mxu0 %vm1263_vm6, %v6424_v33 }
 0xfcd   : > { %v19229_v48 = vpop.eup %19228  ;;  %17007 = vmatmul.mubr.msk.f32.vlgmr.msra.gmra.mrb[14].mxu0 %vm1263_vm6, %v6426_v52  ;;  %v6430_v29 = vmul.f32 %v19227_v25, %v21252_v51  ;;  %v18045_v45 = vpack.c.bf16 %v18843_v46, %v18842_v42  ;;  %v23521_v51 = vld [vmem:[#allocation32_spill] sm:$0xff] }
 0xfce   : > { %18032 = vmatpush3.bf16.xpose.msk.msra.mxu0 %vm20080_vm2, %v18027_v21  ;;  %v6428_v38 = vmul.f32 %v19229_v48, %v21258_v3  ;;  %17020 = vmatprep.mubr.msk.f32.mxu0 %vm23460_vm1, %v23497_v22  ;;  %v7113_v3 = vpop.permute.xlu1 %7112 }
 0xfcf   : > { %18041 = vmatprep.subr.msk.bf16.mxu0 %vm20080_vm2, %v18039_v26 }
 0xfd0   : > { %17013 = vmatprep.mubr.msk.f32.mxu1 %vm1263_vm6, %v6428_v38 }
 0xfd1   : > { %17014 = vmatmul.mubr.msk.f32.vlgmr.msra.gmra.mrb[22].mxu1 %vm1263_vm6, %v6430_v29 }
 0xfd2   : > { %18038 = vmatpush3.bf16.xpose.msk.msra.mxu1 %vm20080_vm2, %v18033_v28  ;;  %17027 = vmatprep.mubr.msk.f32.mxu1 %vm23460_vm1, %v23497_v22  ;;  %v7121_v14 = vpop.permute.xlu1 %7120  ;;  %v7117_v63 = vpop.permute.xlu0 %7116 }
 0xfd3   : > { %18047 = vmatprep.subr.msk.bf16.mxu1 %vm20080_vm2, %v18045_v45 }
 0xfd5   : > { %17021 = vmatmul.mubr.msk.f32.vlgmr.msra.gmra.mrb[42].mxu0 %vm23460_vm1, %v23497_v22 }
 0xfd6   : > { %18044 = vmatpush3.bf16.xpose.msk.msra.mxu0 %vm20080_vm2, %v18039_v26  ;;  %17034 = vmatprep.mubr.msk.f32.mxu0 %vm23460_vm1, %v23497_v22  ;;  %v7125_v55 = vpop.permute.xlu1 %7124  ;;  %v7129_v56 = vpop.permute.xlu0 %7128 }
 0xfd7   : > { %18060 = vmatprep.subr.bf16.mxu0 %v23520_v11 }
 0xfd9   : > { %17028 = vmatmul.mubr.msk.f32.vlgmr.msra.gmra.mrb[40].mxu1 %vm23460_vm1, %v23497_v22 }
 0xfda   : > { %18050 = vmatpush3.bf16.xpose.msk.msra.mxu1 %vm20080_vm2, %v18045_v45  ;;  %17041 = vmatprep.mubr.msk.f32.mxu1 %vm23460_vm1, %v23497_v22  ;;  %v7133_v9 = vpop.permute.xlu1 %7132  ;;  %v7137_v26 = vpop.permute.xlu0 %7136 }
 0xfdb   : > { %18052 = vmatprep.subr.bf16.mxu1 %v23521_v51 }
 0xfdd   : > { %17035 = vmatmul.mubr.msk.f32.vlgmr.msra.gmra.mrb[44].mxu0 %vm23460_vm1, %v23497_v22 }
 0xfde   : > { %18062 = vmatpush3.bf16.msra.mxu0 %v23520_v11  ;;  %v7141_v32 = vpop.permute.xlu1 %7140 }
 0xfe1   : > { %17042 = vmatmul.mubr.msk.f32.vlgmr.msra.gmra.mrb[42].mxu1 %vm23460_vm1, %v23497_v22 }
 0xfe2   : > { %18054 = vmatpush3.bf16.msra.mxu1 %v23521_v51 }
 0xfe3   : > { %18056 = vmatprep.subr.bf16.mxu1 %v23522_v47 }
0x10a8   : > { %v17022_v54 = vpop.f32.mrb[42].mxu0 }
0x10a9   : > { %v7144_v58 = vadd.f32 %v17022_v54, %v7117_v63  ;;  %v6853_v53 = vpop.f32.mrb[43].mxu0 }
0x10aa   : > { %v7143_v1 = vadd.f32 %v7113_v3, %v6853_v53 }
0x10ab   : > { %vm7152_vm11 = vcmp.gt.f32.partialorder %v7144_v58, 0.0  ;;  %v7160_v43 = vmul.f32 0.2, %v7144_v58 }
0x10ac   : > { %vm7151_vm7 = vcmp.gt.f32.partialorder %v7143_v1, 0.0  ;;  %v7159_v2 = vmul.f32 0.2, %v7143_v1  ;;  %v17029_v4 = vpop.f32.mrb[40].mxu1 }
0x10ad   : > { %v7146_v5 = vadd.f32 %v17029_v4, %v7125_v55  ;;  %v6936_v7 = vpop.f32.mrb[41].mxu1  ;;  %v7168_v62 = vsel %vm7152_vm11, %v7144_v58, %v7160_v43 }
0x10ae   : > { %v7145_v10 = vadd.f32 %v7121_v14, %v6936_v7  ;;  %v7176_v15 = vsel %vm584_vm3, %v7168_v62, -1e+30  ;;  %v7167_v41 = vsel %vm7151_vm7, %v7143_v1, %v7159_v2 }
0x10af   : > { %vm7154_vm8 = vcmp.gt.f32.partialorder %v7146_v5, 0.0  ;;  %v7162_v18 = vmul.f32 0.2, %v7146_v5  ;;  %v7186_v40 = vsel %vm1263_vm6, %v7176_v15, -inf  ;;  %v7175_v39 = vsel %vm583_vm5, %v7167_v41, -1e+30 }
0x10b0   : > { %vm7153_vm9 = vcmp.gt.f32.partialorder %v7145_v10, 0.0  ;;  %v7161_v0 = vmul.f32 0.2, %v7145_v10  ;;  %7187 = vmax.xlane.f32.xlu1 %v7186_v40  ;;  %v17036_v50 = vpop.f32.mrb[44].mxu0  ;;  %v7183_v27 = vsel %vm1263_vm6, %v7175_v39, -inf }
0x10b1   : > { %v7148_v23 = vadd.f32 %v17036_v50, %v7133_v9  ;;  %7184 = vmax.xlane.f32.xlu0 %v7183_v27  ;;  %v7019_v28 = vpop.f32.mrb[45].mxu0  ;;  %v7170_v57 = vsel %vm7154_vm8, %v7146_v5, %v7162_v18 }
0x10b2   : > { %v7147_v8 = vadd.f32 %v7129_v56, %v7019_v28  ;;  %v7169_v21 = vsel %vm7153_vm9, %v7145_v10, %v7161_v0  ;;  %v7178_v42 = vsel %vm586_vm12, %v7170_v57, -1e+30 }
0x10b3   : > { %vm7156_vm10 = vcmp.gt.f32.partialorder %v7148_v23, 0.0  ;;  %v7164_v60 = vmul.f32 0.2, %v7148_v23  ;;  %v7177_v34 = vsel %vm585_vm13, %v7169_v21, -1e+30  ;;  %v7192_v14 = vsel %vm1263_vm6, %v7178_v42, -inf }
0x10b4   : > { %vm7155_vm11 = vcmp.gt.f32.partialorder %v7147_v8, 0.0  ;;  %v7163_v33 = vmul.f32 0.2, %v7147_v8  ;;  %v17043_v52 = vpop.f32.mrb[42].mxu1  ;;  %v7189_v25 = vsel %vm1263_vm6, %v7177_v34, -inf }
0x10b5   : > { %v7150_v48 = vadd.f32 %v17043_v52, %v7141_v32  ;;  %v7102_v46 = vpop.f32.mrb[43].mxu1  ;;  %7190 = vmax.xlane.f32.xlu0 %v7189_v25  ;;  %v7172_v45 = vsel %vm7156_vm10, %v7148_v23, %v7164_v60 }
0x10b6   : > { %v7149_v38 = vadd.f32 %v7137_v26, %v7102_v46  ;;  %v7171_v29 = vsel %vm7155_vm11, %v7147_v8, %v7163_v33  ;;  %v7180_v55 = vsel %vm588_vm15, %v7172_v45, -1e+30 }
0x10b7   : > { %vm7158_vm7 = vcmp.gt.f32.partialorder %v7150_v48, 0.0  ;;  %v7166_v11 = vmul.f32 0.2, %v7150_v48  ;;  %v7179_v51 = vsel %vm587_vm14, %v7171_v29, -1e+30  ;;  %v7198_v1 = vsel %vm1263_vm6, %v7180_v55, -inf }
0x10b8   : > { %vm7157_vm8 = vcmp.gt.f32.partialorder %v7149_v38, 0.0  ;;  %v7165_v3 = vmul.f32 0.2, %v7149_v38  ;;  %v7195_v63 = vsel %vm1263_vm6, %v7179_v51, -inf }
0x10b9   : > { %7193 = vmax.xlane.f32.xlu0 %v7192_v14  ;;  %7196 = vmax.xlane.f32.xlu1 %v7195_v63  ;;  %v7174_v58 = vsel %vm7158_vm7, %v7150_v48, %v7166_v11 }
0x10ba   : > { %v7173_v54 = vsel %vm7157_vm8, %v7149_v38, %v7165_v3  ;;  %v7182_v2 = vsel %vm590_vm4, %v7174_v58, -1e+30 }
0x10bb   : > { %v7181_v53 = vsel %vm589_vm0, %v7173_v54, -1e+30  ;;  %v7204_v4 = vsel %vm1263_vm6, %v7182_v2, -inf }
0x10bc   : > { %v7201_v43 = vsel %vm1263_vm6, %v7181_v53, -inf }
0x10bd   : > { %7199 = vmax.xlane.f32.xlu0 %v7198_v1  ;;  %7202 = vmax.xlane.f32.xlu1 %v7201_v43 }
0x10c1   : > { %7205 = vmax.xlane.f32.xlu0 %v7204_v4 }
0x113d   : > { %v7188_v5 = vpop.xlane.xlu1 %7187 }
0x113e   : > { %v7208_v7 = vsub.f32 %v7176_v15, %v7188_v5  ;;  %v7185_v62 = vpop.xlane.xlu0 %7184 }
0x113f   : > { %v7207_v9 = vsub.f32 %v7175_v39, %v7185_v62 }
0x1140   : > { %v7217_v10 = vmul.f32 1.442695, %v7208_v7 }
0x1141   : > { %v7215_v41 = vmul.f32 1.442695, %v7207_v9  ;;  %v7715_v9 = vld [vmem:[%s23357_s7] sm:$0xff] }
0x1142   : > { %19230 = vpow2.f32 %v7217_v10  ;;  %v7191_v56 = vpop.xlane.xlu0 %7190  ;;  %v7716_v10 = vld [vmem:[%s23357_s7 + $0x8] sm:$0xff] }
0x1143   : > { %19232 = vpow2.f32 %v7215_v41  ;;  %v7209_v18 = vsub.f32 %v7177_v34, %v7191_v56  ;;  %v18067_v41 = vpack.c.bf16 %v7716_v10, %v7715_v9  ;;  %v7729_v9 = vld [vmem:[%s23357_s7 + $0x70] sm:$0xff]  ;;  %v7730_v10 = vld [vmem:[%s23357_s7 + $0x78] sm:$0xff] }
0x1145   : > { %v7219_v40 = vmul.f32 1.442695, %v7209_v18  ;;  %18068 = vmatprep.subr.bf16.mxu0 %v18067_v41 }
0x1146   : > { %v7194_v0 = vpop.xlane.xlu0 %7193  ;;  %v7197_v50 = vpop.xlane.xlu1 %7196 }
0x1147   : > { %19234 = vpow2.f32 %v7219_v40  ;;  %v7210_v27 = vsub.f32 %v7178_v42, %v7194_v0  ;;  %v7211_v23 = vsub.f32 %v7179_v51, %v7197_v50 }
0x1149   : > { %v7221_v28 = vmul.f32 1.442695, %v7210_v27  ;;  %v7223_v8 = vmul.f32 1.442695, %v7211_v23 }
0x114a   : > { %v7200_v21 = vpop.xlane.xlu0 %7199  ;;  %v7203_v57 = vpop.xlane.xlu1 %7202 }
0x114b   : > { %19236 = vpow2.f32 %v7221_v28  ;;  %v7212_v15 = vsub.f32 %v7180_v55, %v7200_v21  ;;  %v7213_v60 = vsub.f32 %v7181_v53, %v7203_v57 }
0x114c   : > { %v19231_v39 = vpop.eup %19230  ;;  %19238 = vpow2.f32 %v7223_v8 }
0x114d   : > { %v19233_v32 = vpop.eup %19232  ;;  %v7225_v33 = vmul.f32 1.442695, %v7212_v15  ;;  %v7227_v52 = vmul.f32 1.442695, %v7213_v60  ;;  %v7232_v34 = vsel %vm584_vm3, %v19231_v39, 0.0 }
0x114e   : > { %v7206_v25 = vpop.xlane.xlu0 %7205  ;;  %v7242_v26 = vsel %vm1263_vm6, %v7232_v34, 0.0  ;;  %v7231_v48 = vsel %vm583_vm5, %v19233_v32, 0.0  ;;  %v23523_v32 = vld [vmem:[#allocation34_spill] sm:$0xff] }
0x114f   : > { %19240 = vpow2.f32 %v7225_v33  ;;  %v7214_v46 = vsub.f32 %v7182_v2, %v7206_v25  ;;  %7243 = vadd.xlane.f32.xlu0 %v7242_v26  ;;  %v7239_v42 = vsel %vm1263_vm6, %v7231_v48, 0.0 }
0x1150   : > { %19242 = vpow2.f32 %v7227_v52  ;;  %7240 = vadd.xlane.f32.xlu1 %v7239_v42 }
0x1151   : > { %v19235_v38 = vpop.eup %19234  ;;  %v7229_v29 = vmul.f32 1.442695, %v7214_v46 }
0x1152   : > { %v7233_v45 = vsel %vm585_vm13, %v19235_v38, 0.0 }
0x1153   : > { %19244 = vpow2.f32 %v7229_v29  ;;  %v7245_v11 = vsel %vm1263_vm6, %v7233_v45, 0.0  ;;  %v7717_v29 = vld [vmem:[%s23357_s7 + $0x10] sm:$0xff] }
0x1154   : > { %7246 = vadd.xlane.f32.xlu1 %v7245_v11 }
0x1155   : > { %v19237_v51 = vpop.eup %19236 }
0x1156   : > { %v19239_v3 = vpop.eup %19238  ;;  %v7234_v14 = vsel %vm586_vm12, %v19237_v51, 0.0  ;;  %v7719_v51 = vld [vmem:[%s23357_s7 + $0x20] sm:$0xff] }
0x1157   : > { %v7248_v63 = vsel %vm1263_vm6, %v7234_v14, 0.0  ;;  %v7235_v55 = vsel %vm587_vm14, %v19239_v3, 0.0  ;;  %v7720_v3 = vld [vmem:[%s23357_s7 + $0x28] sm:$0xff] }
0x1158   : > { %7249 = vadd.xlane.f32.xlu0 %v7248_v63  ;;  %v7251_v54 = vsel %vm1263_vm6, %v7235_v55, 0.0  ;;  %v7721_v63 = vld [vmem:[%s23357_s7 + $0x30] sm:$0xff] }
0x1159   : > { %v19241_v58 = vpop.eup %19240  ;;  %7252 = vadd.xlane.f32.xlu1 %v7251_v54 }
0x115a   : > { %v19243_v53 = vpop.eup %19242  ;;  %v7236_v1 = vsel %vm588_vm15, %v19241_v58, 0.0  ;;  %v7723_v58 = vld [vmem:[%s23357_s7 + $0x40] sm:$0xff] }
0x115b   : > { %v7254_v43 = vsel %vm1263_vm6, %v7236_v1, 0.0  ;;  %v7237_v2 = vsel %vm589_vm0, %v19243_v53, 0.0  ;;  %v7724_v53 = vld [vmem:[%s23357_s7 + $0x48] sm:$0xff] }
0x115c   : > { %7255 = vadd.xlane.f32.xlu0 %v7254_v43  ;;  %v7257_v4 = vsel %vm1263_vm6, %v7237_v2, 0.0  ;;  %v7725_v43 = vld [vmem:[%s23357_s7 + $0x50] sm:$0xff] }
0x115d   : > { %v19245_v5 = vpop.eup %19244  ;;  %7258 = vadd.xlane.f32.xlu1 %v7257_v4 }
0x115e   : > { %v7238_v7 = vsel %vm590_vm4, %v19245_v5, 0.0  ;;  %v7727_v5 = vld [vmem:[%s23357_s7 + $0x60] sm:$0xff] }
0x115f   : > { %v7260_v62 = vsel %vm1263_vm6, %v7238_v7, 0.0 }
0x1160   : > { %7261 = vadd.xlane.f32.xlu0 %v7260_v62 }
0x11dc   : > { %v7244_v56 = vpop.xlane.xlu0 %7243 }
0x11dd   : > { %19246 = vrcp.f32 %v7244_v56  ;;  %v7241_v18 = vpop.xlane.xlu1 %7240  ;;  %v7836_v56 = vld [vmem:[%s23359_s9] sm:$0xff] }
0x11de   : > { %19248 = vrcp.f32 %v7241_v18  ;;  %v7837_v18 = vld [vmem:[%s23359_s9 + $0x8] sm:$0xff] }
0x11e1   : > { %v7247_v40 = vpop.xlane.xlu1 %7246 }
0x11e2   : > { %19250 = vrcp.f32 %v7247_v40  ;;  %v7838_v40 = vld [vmem:[%s23359_s9 + $0x10] sm:$0xff] }
0x11e5   : > { %v7250_v0 = vpop.xlane.xlu0 %7249 }
0x11e6   : > { %19252 = vrcp.f32 %v7250_v0  ;;  %v7253_v50 = vpop.xlane.xlu1 %7252  ;;  %v18099_v0 = vpack.c.bf16 %v7837_v18, %v7836_v56 }
0x11e7   : > { %v19247_v27 = vpop.eup %19246  ;;  %19254 = vrcp.f32 %v7253_v50  ;;  %v7839_v50 = vld [vmem:[%s23359_s9 + $0x18] sm:$0xff] }
0x11e8   : > { %v19249_v23 = vpop.eup %19248  ;;  %v7266_v57 = vmul.f32 %v19247_v27, %v7232_v34  ;;  %v18103_v27 = vpack.c.bf16 %v7839_v50, %v7838_v40 }
0x11e9   : > { %v7256_v28 = vpop.xlane.xlu0 %7255  ;;  %v7264_v8 = vmul.f32 %v19249_v23, %v7231_v48  ;;  %v7840_v23 = vld [vmem:[%s23359_s9 + $0x20] sm:$0xff] }
0x11ea   : > { %19256 = vrcp.f32 %v7256_v28  ;;  %v7259_v21 = vpop.xlane.xlu1 %7258  ;;  %v7841_v28 = vld [vmem:[%s23359_s9 + $0x28] sm:$0xff] }
0x11eb   : > { %19258 = vrcp.f32 %v7259_v21  ;;  %17048 = vmatprep.mubr.msk.f32.mxu1 %vm1263_vm6, %v7264_v8  ;;  %v18107_v8 = vpack.c.bf16 %v7841_v28, %v7840_v23  ;;  %v7842_v21 = vld [vmem:[%s23359_s9 + $0x30] sm:$0xff] }
0x11ec   : > { %v19251_v15 = vpop.eup %19250  ;;  %17049 = vmatmul.mubr.msk.f32.vlgmr.msra.gmra.mrb[24].mxu1 %vm1263_vm6, %v7266_v57  ;;  %v7843_v57 = vld [vmem:[%s23359_s9 + $0x38] sm:$0xff] }
0x11ed   : > { %18058 = vmatpush3.bf16.msra.mxu1 %v23522_v47  ;;  %v7262_v60 = vpop.xlane.xlu0 %7261  ;;  %v7268_v39 = vmul.f32 %v19251_v15, %v7233_v45  ;;  %v7718_v45 = vld [vmem:[%s23357_s7 + $0x18] sm:$0xff]  ;;  %v18111_v15 = vpack.c.bf16 %v7843_v57, %v7842_v21 }
0x11ee   : > { %19260 = vrcp.f32 %v7262_v60  ;;  %18064 = vmatprep.subr.bf16.mxu1 %v23523_v32  ;;  %v18071_v11 = vpack.c.bf16 %v7718_v45, %v7717_v29  ;;  %v7844_v60 = vld [vmem:[%s23359_s9 + $0x40] sm:$0xff] }
0x11ef   : > { %17055 = vmatprep.mubr.msk.f32.mxu1 %vm1263_vm6, %v7268_v39  ;;  %v7845_v39 = vld [vmem:[%s23359_s9 + $0x48] sm:$0xff]  ;;  %v15664_v29 = vld [vmem:[%s23354_s4] ss:$0 sm:$0xff] }
0x11f0   : > { %v19253_v33 = vpop.eup %19252 }
0x11f1   : > { %v19255_v52 = vpop.eup %19254  ;;  %v7270_v25 = vmul.f32 %v19253_v33, %v7234_v14  ;;  %v18075_v14 = vpack.c.bf16 %v7720_v3, %v7719_v51  ;;  %v7846_v33 = vld [vmem:[%s23359_s9 + $0x50] sm:$0xff] }
0x11f2   : > { %v7272_v26 = vmul.f32 %v19255_v52, %v7235_v55  ;;  %v7722_v55 = vld [vmem:[%s23357_s7 + $0x38] sm:$0xff] }
0x11f3   : > { %17056 = vmatmul.mubr.msk.f32.vlgmr.msra.gmra.mrb[20].mxu1 %vm1263_vm6, %v7270_v25  ;;  %v18079_v54 = vpack.c.bf16 %v7722_v55, %v7721_v63  ;;  %v7847_v52 = vld [vmem:[%s23359_s9 + $0x58] sm:$0xff] }
0x11f4   : > { %v19257_v34 = vpop.eup %19256  ;;  %17062 = vmatprep.mubr.msk.f32.mxu0 %vm1263_vm6, %v7272_v26  ;;  %18066 = vmatpush3.bf16.msra.mxu1 %v23523_v32  ;;  %v18115_v32 = vpack.c.bf16 %v7845_v39, %v7844_v60  ;;  %v18119_v25 = vpack.c.bf16 %v7847_v52, %v7846_v33  ;;  %v7848_v26 = vld [vmem:[%s23359_s9 + $0x60] sm:$0xff] }
0x11f5   : > { %v19259_v48 = vpop.eup %19258  ;;  %v7274_v47 = vmul.f32 %v19257_v34, %v7236_v1  ;;  %v18083_v1 = vpack.c.bf16 %v7724_v53, %v7723_v58  ;;  %18100 = vmatprep.subr.bf16.mxu1 %v18099_v0  ;;  %v7849_v34 = vld [vmem:[%s23359_s9 + $0x68] sm:$0xff]  ;;  %v7690_v58 = vlaneseq }
0x11f6   : > { %v7276_v46 = vmul.f32 %v19259_v48, %v7237_v2  ;;  %v7726_v2 = vld [vmem:[%s23357_s7 + $0x58] sm:$0xff]  ;;  %v18123_v48 = vpack.c.bf16 %v7849_v34, %v7848_v26 }
0x11f7   : > { %17063 = vmatmul.mubr.msk.f32.vlgmr.msra.gmra.mrb[14].mxu0 %vm1263_vm6, %v7274_v47  ;;  %v18087_v4 = vpack.c.bf16 %v7726_v2, %v7725_v43  ;;  %v7850_v47 = vld [vmem:[%s23359_s9 + $0x70] sm:$0xff] }
0x11f8   : > { %v19261_v42 = vpop.eup %19260  ;;  %17069 = vmatprep.mubr.msk.f32.mxu1 %vm1263_vm6, %v7276_v46  ;;  %18070 = vmatpush3.bf16.msra.mxu0 %v18067_v41  ;;  %v18095_v41 = vpack.c.bf16 %v7730_v10, %v7729_v9  ;;  %v7851_v46 = vld [vmem:[%s23359_s9 + $0x78] sm:$0xff] }
0x11f9   : > { %v7278_v38 = vmul.f32 %v19261_v42, %v7238_v7  ;;  %18072 = vmatprep.subr.bf16.mxu0 %v18071_v11  ;;  %v7728_v7 = vld [vmem:[%s23357_s7 + $0x68] sm:$0xff]  ;;  %v18127_v42 = vpack.c.bf16 %v7851_v46, %v7850_v47 }
0x11fa   : > { %v18091_v62 = vpack.c.bf16 %v7728_v7, %v7727_v5  ;;  %v21496_v7 = vshrl.u32 %v7690_v58, 7 }
0x11fb   : > { %17070 = vmatmul.mubr.msk.f32.vlgmr.msra.gmra.mrb[22].mxu1 %vm1263_vm6, %v7278_v38 }
0x11fc   : > { %18074 = vmatpush3.bf16.msra.mxu0 %v18071_v11  ;;  %18102 = vmatpush3.bf16.msra.mxu1 %v18099_v0  ;;  %23524 = vst [vmem:[#allocation20_spill] sm:$0xff] %v21496_v7  ;;  %v23420_v40 = vsub.s32 0, %v21496_v7  ;;  %v23419_v60 = vsub.s32 1, %v21496_v7 }
0x11fd   : > { %18076 = vmatprep.subr.bf16.mxu0 %v18075_v14  ;;  %18104 = vmatprep.subr.bf16.mxu1 %v18103_v27 }
0x1200   : > { %18078 = vmatpush3.bf16.msra.mxu0 %v18075_v14  ;;  %18106 = vmatpush3.bf16.msra.mxu1 %v18103_v27  ;;  %v599_v27 = vld [vmem:[%s23356_s6] sm:$0x3] }
0x1201   : > { %18080 = vmatprep.subr.bf16.mxu0 %v18079_v54  ;;  %18108 = vmatprep.subr.bf16.mxu1 %v18107_v8  ;;  %v7705_v46 = vrot.slane %v599_v27, %v23419_v60 }
0x1204   : > { %18082 = vmatpush3.bf16.msra.mxu0 %v18079_v54  ;;  %18110 = vmatpush3.bf16.msra.mxu1 %v18107_v8 }
0x1205   : > { %18084 = vmatprep.subr.bf16.mxu0 %v18083_v1  ;;  %18112 = vmatprep.subr.bf16.mxu1 %v18111_v15 }
0x1208   : > { %18086 = vmatpush3.bf16.msra.mxu0 %v18083_v1  ;;  %18114 = vmatpush3.bf16.msra.mxu1 %v18111_v15 }
0x1209   : > { %18088 = vmatprep.subr.bf16.mxu0 %v18087_v4  ;;  %18116 = vmatprep.subr.bf16.mxu1 %v18115_v32 }
0x120c   : > { %18090 = vmatpush3.bf16.msra.mxu0 %v18087_v4  ;;  %18118 = vmatpush3.bf16.msra.mxu1 %v18115_v32  ;;  %v7693_v32 = vrot.slane %v599_v27, %v23420_v40 }
0x120d   : > { %18092 = vmatprep.subr.bf16.mxu0 %v18091_v62  ;;  %18120 = vmatprep.subr.bf16.mxu1 %v18119_v25 }
0x1210   : > { %18094 = vmatpush3.bf16.msra.mxu0 %v18091_v62  ;;  %18122 = vmatpush3.bf16.msra.mxu1 %v18119_v25 }
0x1211   : > { %18096 = vmatprep.subr.bf16.mxu0 %v18095_v41  ;;  %18124 = vmatprep.subr.bf16.mxu1 %v18123_v48 }
0x1214   : > { %18098 = vmatpush3.bf16.msra.mxu0 %v18095_v41  ;;  %18126 = vmatpush3.bf16.msra.mxu1 %v18123_v48 }
0x1215   : > { %18128 = vmatprep.subr.bf16.mxu1 %v18127_v42 }
0x1218   : > { %18130 = vmatpush3.bf16.msra.mxu1 %v18127_v42 }
0x12bf   : > { %v17050_v38 = vpop.f32.mrb[24].mxu1 }
0x12c0   : > { %v18517_v45 = vadd.f32 %v17050_v38, %v20564_v17  ;;  %v7367_v11 = vpop.f32.mrb[25].mxu1 }
0x12c1   : > { %v18518_v51 = vadd.f32 %v7367_v11, %v20566_v31 }
0x12c2   : > { %v7635_v3 = vadd.f32 %v18517_v45, %v15664_v29 }
0x12c3   : > { %v7634_v14 = vadd.f32 %v18518_v51, %v15664_v29 }
0x12c4   : > { %v7651_v63 = vmin.f32 %v7635_v3, 0.0  ;;  %vm7643_vm9 = vcmp.gt.f32.partialorder %v7635_v3, 0.0 }
0x12c5   : > { %v7650_v55 = vmin.f32 %v7634_v14, 0.0  ;;  %vm7642_vm10 = vcmp.gt.f32.partialorder %v7634_v14, 0.0 }
0x12c6   : > { %v7660_v54 = vmul.f32 1.442695, %v7651_v63  ;;  %v17057_v53 = vpop.f32.mrb[20].mxu1 }
0x12c7   : > { %v7658_v1 = vmul.f32 1.442695, %v7650_v55  ;;  %v7637_v43 = vadd.f32 %v17057_v53, %v15664_v29  ;;  %v7448_v2 = vpop.f32.mrb[21].mxu1 }
0x12c8   : > { %19262 = vpow2.f32 %v7660_v54  ;;  %v7636_v4 = vadd.f32 %v15664_v29, %v7448_v2 }
0x12c9   : > { %19264 = vpow2.f32 %v7658_v1  ;;  %v7653_v5 = vmin.f32 %v7637_v43, 0.0  ;;  %vm7645_vm11 = vcmp.gt.f32.partialorder %v7637_v43, 0.0 }
0x12ca   : > { %v7652_v17 = vmin.f32 %v7636_v4, 0.0  ;;  %v17064_v62 = vpop.f32.mrb[14].mxu0  ;;  %vm7644_vm7 = vcmp.gt.f32.partialorder %v7636_v4, 0.0 }
0x12cb   : > { %v7664_v9 = vmul.f32 1.442695, %v7653_v5  ;;  %v7639_v31 = vadd.f32 %v17064_v62, %v15664_v29  ;;  %v7529_v10 = vpop.f32.mrb[15].mxu0 }
0x12cc   : > { %v7662_v41 = vmul.f32 1.442695, %v7652_v17  ;;  %v7638_v56 = vadd.f32 %v15664_v29, %v7529_v10 }
0x12cd   : > { %19266 = vpow2.f32 %v7664_v9  ;;  %v7655_v18 = vmin.f32 %v7639_v31, 0.0  ;;  %vm7647_vm8 = vcmp.gt.f32.partialorder %v7639_v31, 0.0 }
0x12ce   : > { %19268 = vpow2.f32 %v7662_v41  ;;  %v7654_v0 = vmin.f32 %v7638_v56, 0.0  ;;  %v17071_v50 = vpop.f32.mrb[22].mxu1 }
0x12cf   : > { %v7668_v23 = vmul.f32 1.442695, %v7655_v18  ;;  %v7641_v28 = vadd.f32 %v17071_v50, %v15664_v29  ;;  %v7610_v8 = vpop.f32.mrb[23].mxu1 }
0x12d0   : > { %v7666_v21 = vmul.f32 1.442695, %v7654_v0  ;;  %v7640_v57 = vadd.f32 %v15664_v29, %v7610_v8 }
0x12d1   : > { %19270 = vpow2.f32 %v7668_v23  ;;  %v7657_v15 = vmin.f32 %v7641_v28, 0.0 }
0x12d2   : > { %v19263_v39 = vpop.eup %19262  ;;  %19272 = vpow2.f32 %v7666_v21  ;;  %v7656_v33 = vmin.f32 %v7640_v57, 0.0 }
0x12d3   : > { %v19265_v52 = vpop.eup %19264  ;;  %v15666_v25 = vadd.f32 -1.0, %v19263_v39  ;;  %v7672_v26 = vmul.f32 1.442695, %v7657_v15 }
0x12d4   : > { %v15665_v34 = vadd.f32 -1.0, %v19265_v52  ;;  %v7670_v48 = vmul.f32 1.442695, %v7656_v33  ;;  %v21512_v52 = vld [vmem:[%s23365_s15 + $0x1] ss:$0 sm:$0xff] }
0x12d5   : > { %v7683_v47 = vsel %vm7643_vm9, %v7635_v3, %v15666_v25  ;;  %19274 = vpow2.f32 %v7672_v26  ;;  %vm7646_vm9 = vcmp.gt.f32.partialorder %v7638_v56, 0.0  ;;  %v21534_v26 = vld [vmem:[%s23365_s15 + $0x4] ss:$0 sm:$0xff] }
0x12d6   : > { %v7695_v42 = vmul.f32 %v7693_v32, %v7683_v47  ;;  %19276 = vpow2.f32 %v7670_v48  ;;  %v7682_v38 = vsel %vm7642_vm10, %v7634_v14, %v15665_v34  ;;  %vm7649_vm10 = vcmp.gt.f32.partialorder %v7641_v28, 0.0  ;;  %v21539_v34 = vld [vmem:[%s23365_s15 + $0x5] ss:$0 sm:$0xff] }
0x12d7   : > { %v19267_v29 = vpop.eup %19266  ;;  %v7694_v45 = vmul.f32 %v7693_v32, %v7682_v38 }
0x12d8   : > { %v19269_v11 = vpop.eup %19268  ;;  %v15668_v51 = vadd.f32 -1.0, %v19267_v29  ;;  %v7707_v58 = vadd.f32 %v7705_v46, %v7695_v42 }
0x12d9   : > { %v15667_v63 = vadd.f32 -1.0, %v19269_v11  ;;  %v7706_v55 = vadd.f32 %v7705_v46, %v7694_v45 }
0x12da   : > { %v7685_v54 = vsel %vm7645_vm11, %v7637_v43, %v15668_v51  ;;  %vm7648_vm11 = vcmp.gt.f32.partialorder %v7640_v57, 0.0 }
0x12db   : > { %v19271_v53 = vpop.eup %19270  ;;  %v7684_v3 = vsel %vm7644_vm7, %v7636_v4, %v15667_v63  ;;  %17104 = vmatprep.mubr.f32.mxu0 %v7706_v55  ;;  %v7697_v1 = vmul.f32 %v7693_v32, %v7685_v54  ;;  %v21563_v63 = vld [vmem:[%s23365_s15 + $0x6] ss:$0 sm:$0xff] }
0x12dc   : > { %v19273_v2 = vpop.eup %19272  ;;  %v15670_v5 = vadd.f32 -1.0, %v19271_v53  ;;  %17105 = vmatmul.mubr.f32.vlgmr.msra.gmra.mrb[46].mxu0 %v7707_v58  ;;  %v7696_v17 = vmul.f32 %v7693_v32, %v7684_v3 }
0x12dd   : > { %v15669_v14 = vadd.f32 -1.0, %v19273_v2  ;;  %v7709_v18 = vadd.f32 %v7705_v46, %v7697_v1 }
0x12de   : > { %v7687_v62 = vsel %vm7647_vm8, %v7639_v31, %v15670_v5  ;;  %v7708_v9 = vadd.f32 %v7705_v46, %v7696_v17 }
0x12df   : > { %v19275_v10 = vpop.eup %19274  ;;  %v7686_v41 = vsel %vm7646_vm9, %v7638_v56, %v15669_v14  ;;  %v7699_v0 = vmul.f32 %v7693_v32, %v7687_v62 }
0x12e0   : > { %v19277_v43 = vpop.eup %19276  ;;  %v15672_v50 = vadd.f32 -1.0, %v19275_v10  ;;  %17107 = vmatprep.mubr.f32.mxu0 %v7708_v9  ;;  %v7698_v27 = vmul.f32 %v7693_v32, %v7686_v41 }
0x12e1   : > { %v15671_v4 = vadd.f32 -1.0, %v19277_v43  ;;  %17108 = vmatmul.mubr.f32.gmra.mrb[48].mxu0 %v7709_v18  ;;  %v7711_v15 = vadd.f32 %v7705_v46, %v7699_v0 }
0x12e2   : > { %v7689_v23 = vsel %vm7649_vm10, %v7641_v28, %v15672_v50  ;;  %v7710_v8 = vadd.f32 %v7705_v46, %v7698_v27  ;;  %v21517_v28 = vld [vmem:[%s23365_s15] ss:$0 sm:$0xff] }
0x12e3   : > { %v7688_v21 = vsel %vm7648_vm11, %v7640_v57, %v15671_v4  ;;  %v7701_v39 = vmul.f32 %v7693_v32, %v7689_v23  ;;  %v21522_v57 = vld [vmem:[%s23365_s15 + $0x2] ss:$0 sm:$0xff] }
0x12e4   : > { %17110 = vmatprep.mubr.f32.mxu0 %v7710_v8  ;;  %v7700_v31 = vmul.f32 %v7693_v32, %v7688_v21  ;;  %v21527_v32 = vld [vmem:[%s23365_s15 + $0x3] ss:$0 sm:$0xff] }
0x12e5   : > { %17111 = vmatmul.mubr.f32.gmra.mrb[50].mxu0 %v7711_v15  ;;  %v7713_v56 = vadd.f32 %v7705_v46, %v7701_v39 }
0x12e6   : > { %v7712_v33 = vadd.f32 %v7705_v46, %v7700_v31 }
0x12e8   : > { %17113 = vmatprep.mubr.f32.mxu0 %v7712_v33 }
0x12e9   : > { %17114 = vmatmul.mubr.f32.gmra.mrb[52].mxu0 %v7713_v56 }
0x12ea   : > { %17164 = vmatprep.mubr.msk.f32.mxu0 %vm23460_vm1, %v23497_v22 }
0x13af   : > { %v21529_v25 = vpop.f32.mrb[46].mxu0 }
0x13b0   : > { %v21541_v48 = vpop.f32.mrb[47].mxu0  ;;  %v8972_v47 = vmul.f32 %v21529_v25, %v21512_v52  ;;  %v8457_v46 = vmul.f32 %v21529_v25, %v21517_v28  ;;  %v10135_v42 = vmul.f32 %v21529_v25, %v21522_v57  ;;  %v10982_v38 = vmul.f32 %v21529_v25, %v21527_v32 }
0x13b1   : > { %17148 = vmatprep.mubr.f32.mxu1 %v21541_v48  ;;  %v8971_v29 = vmul.f32 %v21512_v52, %v21541_v48  ;;  %v8456_v45 = vmul.f32 %v21517_v28, %v21541_v48  ;;  %v10134_v11 = vmul.f32 %v21522_v57, %v21541_v48  ;;  %v10981_v51 = vmul.f32 %v21527_v32, %v21541_v48 }
0x13b2   : > { %17149 = vmatmul.mubr.f32.vlgmr.msra.gmra.mrb[44].mxu1 %v21529_v25  ;;  %v11828_v55 = vmul.f32 %v21534_v26, %v21541_v48  ;;  %v11829_v54 = vmul.f32 %v21529_v25, %v21534_v26  ;;  %v12675_v58 = vmul.f32 %v21539_v34, %v21541_v48  ;;  %v12676_v53 = vmul.f32 %v21529_v25, %v21539_v34 }
0x13b3   : > { %v21574_v3 = vpack.c.bf16 %v8972_v47, %v8971_v29  ;;  %v21576_v1 = vpack.c.bf16 %v8457_v46, %v8456_v45  ;;  %v21578_v2 = vpack.c.bf16 %v10135_v42, %v10134_v11  ;;  %v21580_v5 = vpack.c.bf16 %v10982_v38, %v10981_v51 }
0x13b4   : > { %v21582_v17 = vpop.f32.mrb[48].mxu0  ;;  %v21584_v14 = vpack.c.bf16 %v11829_v54, %v11828_v55  ;;  %v21586_v62 = vpack.c.bf16 %v12676_v53, %v12675_v58  ;;  %v21590_v9 = vmul.f32 %v21563_v63, %v21541_v48  ;;  %v21594_v10 = vmul.f32 %v21529_v25, %v21563_v63 }
0x13b5   : > { %23525 = vst [vmem:[#allocation10_spill] sm:$0xff] %v21578_v2  ;;  %23526 = vst [vmem:[#allocation17_spill] sm:$0xff] %v21580_v5  ;;  %v21596_v41 = vpop.f32.mrb[49].mxu0  ;;  %v8974_v18 = vmul.f32 %v21582_v17, %v21512_v52  ;;  %v8459_v0 = vmul.f32 %v21582_v17, %v21517_v28  ;;  %v10137_v43 = vmul.f32 %v21582_v17, %v21522_v57 }
0x13b6   : > { %23527 = vst [vmem:[#allocation14_spill] sm:$0xff] %v21584_v14  ;;  %23528 = vst [vmem:[#allocation21_spill] sm:$0xff] %v21586_v62  ;;  %v10984_v50 = vmul.f32 %v21582_v17, %v21527_v32  ;;  %17151 = vmatprep.mubr.f32.mxu1 %v21596_v41  ;;  %v8973_v27 = vmul.f32 %v21512_v52, %v21596_v41  ;;  %v8458_v4 = vmul.f32 %v21517_v28, %v21596_v41 }
0x13b7   : > { %v10136_v23 = vmul.f32 %v21522_v57, %v21596_v41  ;;  %v10983_v8 = vmul.f32 %v21527_v32, %v21596_v41  ;;  %17152 = vmatmul.mubr.f32.gmra.mrb[46].mxu1 %v21582_v17  ;;  %v11830_v21 = vmul.f32 %v21534_v26, %v21596_v41  ;;  %v11831_v15 = vmul.f32 %v21582_v17, %v21534_v26 }
0x13b8   : > { %v12677_v39 = vmul.f32 %v21539_v34, %v21596_v41  ;;  %v12678_v31 = vmul.f32 %v21582_v17, %v21539_v34  ;;  %v17112_v33 = vpop.f32.mrb[50].mxu0  ;;  %v21624_v56 = vpack.c.bf16 %v8974_v18, %v8973_v27  ;;  %v21626_v47 = vpack.c.bf16 %v8459_v0, %v8458_v4 }
0x13b9   : > { %v21628_v46 = vpack.c.bf16 %v10137_v43, %v10136_v23  ;;  %v21630_v42 = vpack.c.bf16 %v10984_v50, %v10983_v8  ;;  %v7817_v38 = vpop.f32.mrb[51].mxu0  ;;  %v8976_v29 = vmul.f32 %v17112_v33, %v21512_v52  ;;  %v8461_v45 = vmul.f32 %v17112_v33, %v21517_v28 }
0x13ba   : > { %23529 = vst [vmem:[#allocation18_spill] sm:$0xff] %v21626_v47  ;;  %v10139_v11 = vmul.f32 %v17112_v33, %v21522_v57  ;;  %v10986_v51 = vmul.f32 %v17112_v33, %v21527_v32  ;;  %17154 = vmatprep.mubr.f32.mxu1 %v7817_v38  ;;  %v8975_v55 = vmul.f32 %v21512_v52, %v7817_v38 }
0x13bb   : > { %23530 = vst [vmem:[#allocation11_spill] sm:$0xff] %v21628_v46  ;;  %23531 = vst [vmem:[#allocation15_spill] sm:$0xff] %v21630_v42  ;;  %v8460_v54 = vmul.f32 %v21517_v28, %v7817_v38  ;;  %v10138_v58 = vmul.f32 %v21522_v57, %v7817_v38  ;;  %v10985_v53 = vmul.f32 %v21527_v32, %v7817_v38  ;;  %17155 = vmatmul.mubr.f32.gmra.mrb[48].mxu1 %v17112_v33 }
0x13bc   : > { %v21640_v18 = vpack.c.bf16 %v11831_v15, %v11830_v21  ;;  %v11832_v0 = vmul.f32 %v21534_v26, %v7817_v38  ;;  %v11833_v43 = vmul.f32 %v17112_v33, %v21534_v26  ;;  %v12679_v50 = vmul.f32 %v21539_v34, %v7817_v38  ;;  %v17115_v27 = vpop.f32.mrb[52].mxu0 }
0x13bd   : > { %v21645_v4 = vpack.c.bf16 %v8976_v29, %v8975_v55  ;;  %v21647_v23 = vpack.c.bf16 %v8461_v45, %v8460_v54  ;;  %v21649_v8 = vpack.c.bf16 %v10139_v11, %v10138_v58  ;;  %v21651_v60 = vpack.c.bf16 %v10986_v51, %v10985_v53  ;;  %v7827_v40 = vpop.f32.mrb[53].mxu0 }
0x13be   : > { %23532 = vst [vmem:[#allocation22_spill] sm:$0xff] %v21640_v18  ;;  %v8978_v12 = vmul.f32 %v17115_v27, %v21512_v52  ;;  %v8463_v21 = vmul.f32 %v17115_v27, %v21517_v28  ;;  %v10141_v15 = vmul.f32 %v17115_v27, %v21522_v57  ;;  %v10988_v61 = vmul.f32 %v17115_v27, %v21527_v32 }
0x13bf   : > { %23533 = vst [vmem:[#allocation19_spill] sm:$0xff] %v21649_v8  ;;  %23534 = vst [vmem:[#allocation12_spill] sm:$0xff] %v21651_v60  ;;  %17157 = vmatprep.mubr.f32.mxu1 %v7827_v40  ;;  %v8977_v13 = vmul.f32 %v21512_v52, %v7827_v40  ;;  %v8462_v29 = vmul.f32 %v21517_v28, %v7827_v40  ;;  %v10140_v45 = vmul.f32 %v21522_v57, %v7827_v40 }
0x13c0   : > { %v10987_v11 = vmul.f32 %v21527_v32, %v7827_v40  ;;  %17158 = vmatmul.mubr.f32.gmra.mrb[50].mxu1 %v17115_v27  ;;  %v21661_v51 = vpack.c.bf16 %v11833_v43, %v11832_v0  ;;  %v11834_v55 = vmul.f32 %v21534_v26, %v7827_v40  ;;  %v11835_v54 = vmul.f32 %v17115_v27, %v21534_v26 }
0x13c1   : > { %v12680_v58 = vmul.f32 %v17112_v33, %v21539_v34  ;;  %17178 = vmatprep.mubr.msk.f32.mxu1 %vm23460_vm1, %v23497_v22  ;;  %v21668_v53 = vpack.c.bf16 %v8978_v12, %v8977_v13  ;;  %v21670_v52 = vpack.c.bf16 %v8463_v21, %v8462_v29  ;;  %v21672_v28 = vpack.c.bf16 %v10141_v15, %v10140_v45 }
0x13c2   : > { %23535 = vst [vmem:[#allocation16_spill] sm:$0xff] %v21661_v51  ;;  %v21674_v57 = vpack.c.bf16 %v10988_v61, %v10987_v11  ;;  %v21676_v32 = vpack.c.bf16 %v11835_v54, %v11834_v55  ;;  %v21680_v43 = vpack.c.bf16 %v12678_v31, %v12677_v39  ;;  %v12681_v26 = vmul.f32 %v21539_v34, %v7827_v40  ;;  %v15871_v61 = vld [vmem:[%s23365_s15 + $0x7] ss:$0 sm:$0xff] }
0x13c3   : > { %23536 = vst [vmem:[#allocation23_spill] sm:$0xff] %v21670_v52  ;;  %23537 = vst [vmem:[#allocation24_spill] sm:$0xff] %v21672_v28  ;;  %v21678_v0 = vpack.c.bf16 %v12680_v58, %v12679_v50  ;;  %v12682_v49 = vmul.f32 %v17115_v27, %v21539_v34  ;;  %v13526_v16 = vmul.f32 %v21563_v63, %v7817_v38 }
0x13c4   : > { %23538 = vst [vmem:[#allocation13_spill] sm:$0xff] %v21674_v57  ;;  %23539 = vst [vmem:[#allocation25_spill] sm:$0xff] %v21676_v32  ;;  %v13527_v13 = vmul.f32 %v17112_v33, %v21563_v63  ;;  %v21688_v12 = vpack.c.bf16 %v21594_v10, %v21590_v9  ;;  %v13524_v39 = vmul.f32 %v21563_v63, %v21596_v41 }
0x13c5   : > { %23540 = vst [vmem:[#allocation26_spill] sm:$0xff] %v21678_v0  ;;  %23541 = vst [vmem:[#allocation27_spill] sm:$0xff] %v21680_v43  ;;  %v13525_v31 = vmul.f32 %v21582_v17, %v21563_v63  ;;  %v13528_v34 = vmul.f32 %v21563_v63, %v7827_v40  ;;  %v13529_v50 = vmul.f32 %v17115_v27, %v21563_v63 }
0x13c6   : > { %23542 = vst [vmem:[#allocation28_spill] sm:$0xff] %v21688_v12  ;;  %v21699_v21 = vpack.c.bf16 %v12682_v49, %v12681_v26  ;;  %v21701_v15 = vpack.c.bf16 %v13527_v13, %v13526_v16  ;;  %v14373_v9 = vmul.f32 %v15871_v61, %v7817_v38  ;;  %v14374_v10 = vmul.f32 %v17112_v33, %v15871_v61 }
0x13c7   : > { %v21703_v29 = vpack.c.bf16 %v13525_v31, %v13524_v39  ;;  %v21705_v45 = vpack.c.bf16 %v13529_v50, %v13528_v34  ;;  %v14369_v11 = vmul.f32 %v15871_v61, %v21541_v48  ;;  %v14370_v55 = vmul.f32 %v21529_v25, %v15871_v61 }
0x13c8   : > { %23543 = vst [vmem:[#allocation29_spill] sm:$0xff] %v21699_v21  ;;  %23544 = vst [vmem:[#allocation30_spill] sm:$0xff] %v21701_v15  ;;  %v21709_v54 = vpack.c.bf16 %v14374_v10, %v14373_v9  ;;  %v14371_v58 = vmul.f32 %v15871_v61, %v21596_v41  ;;  %v14372_v63 = vmul.f32 %v21582_v17, %v15871_v61 }
0x13c9   : > { %23545 = vst [vmem:[#allocation31_spill] sm:$0xff] %v21703_v29  ;;  %23546 = vst [vmem:[#allocation32_spill] sm:$0xff] %v21705_v45  ;;  %v14375_v49 = vmul.f32 %v15871_v61, %v7827_v40  ;;  %v21713_v26 = vpack.c.bf16 %v14370_v55, %v14369_v11  ;;  %v14376_v16 = vmul.f32 %v17115_v27, %v15871_v61 }
0x13ca   : > { %23547 = vst [vmem:[#allocation33_spill] sm:$0xff] %v21709_v54  ;;  %v21715_v38 = vpack.c.bf16 %v14372_v63, %v14371_v58  ;;  %v23552_v58 = vmov 8   ;;  %v23553_v63 = vmov 10  }
0x13cb   : > { %23548 = vst [vmem:[#allocation34_spill] sm:$0xff] %v21713_v26  ;;  %v21717_v33 = vpack.c.bf16 %v14376_v16, %v14375_v49 }
0x13cc   : > { %23549 = vst [vmem:[#allocation35_spill] sm:$0xff] %v21715_v38 }
0x13cd   : > { %23550 = vst [vmem:[#allocation36_spill] sm:$0xff] %v21717_v33 }
0x1485   : > { %v21719_v13 = vpop.f32.mrb[44].mxu1 }
0x1486   : > { %v21721_v39 = vpop.f32.mrb[45].mxu1 }
0x1487   : > { %v21725_v25 = vpack.i.bf16 %v21719_v13, %v21721_v39  ;;  %v18131_v48 = vpack.c.bf16 %v21719_v13, %v21721_v39 }
0x1489   : > { %18847 = vrot.lane.b32.xlu1 %v21725_v25, %s23551_s19  ;;  %18133 = vmatprep.subr.msk.bf16.mxu0 %vm20080_vm2, %v18131_v48 }
0x148a   : > { %v21733_v40 = vpop.f32.mrb[46].mxu1  ;;  %18136 = vmatpush3.bf16.xpose.msk.msra.mxu0 %vm20080_vm2, %v18131_v48 }
0x148b   : > { %v21737_v17 = vpop.f32.mrb[47].mxu1 }
0x148c   : > { %v21741_v41 = vpack.i.bf16 %v21733_v40, %v21737_v17  ;;  %v18137_v27 = vpack.c.bf16 %v21733_v40, %v21737_v17 }
0x148e   : > { %18852 = vrot.lane.b32.xlu0 %v21741_v41, %s23551_s19  ;;  %v21747_v61 = vpop.f32.mrb[48].mxu1  ;;  %18139 = vmatprep.subr.msk.bf16.mxu0 %vm20080_vm2, %v18137_v27 }
0x148f   : > { %v21751_v31 = vpop.f32.mrb[49].mxu1 }
0x1490   : > { %v21755_v34 = vpack.i.bf16 %v21747_v61, %v21751_v31  ;;  %v18143_v50 = vpack.c.bf16 %v21747_v61, %v21751_v31 }
0x1491   : > { %17165 = vmatmul.mubr.msk.f32.vlgmr.msra.gmra.mrb[54].mxu0 %vm23460_vm1, %v23497_v22 }
0x1492   : > { %8797 = vperm.xlu0 %18866, %v21721_v39   ;;  %18857 = vrot.lane.b32.xlu1 %v21755_v34, %s23551_s19 }
0x1493   : > { %v21764_v9 = vpop.f32.mrb[50].mxu1  ;;  %18142 = vmatpush3.bf16.xpose.msk.msra.mxu0 %vm20080_vm2, %v18137_v27  ;;  %18145 = vmatprep.subr.msk.bf16.mxu1 %vm20080_vm2, %v18143_v50 }
0x1494   : > { %v21770_v10 = vpop.f32.mrb[51].mxu1  ;;  %18148 = vmatpush3.bf16.xpose.msk.msra.mxu1 %vm20080_vm2, %v18143_v50  ;;  %17171 = vmatprep.mubr.msk.f32.mxu0 %vm23460_vm1, %v23497_v22 }
0x1495   : > { %v21776_v11 = vpack.i.bf16 %v21764_v9, %v21770_v10  ;;  %v18149_v55 = vpack.c.bf16 %v21764_v9, %v21770_v10 }
0x1496   : > { %8805 = vperm.xlu0 %18866, %v21737_v17  }
0x1497   : > { %18862 = vrot.lane.b32.xlu1 %v21776_v11, %s23551_s19  ;;  %18151 = vmatprep.subr.msk.bf16.mxu0 %vm20080_vm2, %v18149_v55  ;;  %s15910_s19 = sshll.u32 %s19753_s25, 6  ;;  %s19646_s25 = smov [#allocation2]  }
0x1498   : > { %s19566_s18 = sshll.u32 %s19646_s25, 4  ;;  %s19567_s18 = int_to_ptr.vmem [resolvable:$false] %s19566_s18 }
0x149a   : > { %17172 = vmatmul.mubr.msk.f32.vlgmr.msra.gmra.mrb[56].mxu0 %vm23460_vm1, %v23497_v22  ;;  %8809 = vperm.xlu0 %18866, %v21733_v40  }
0x149b   : > { %17179 = vmatmul.mubr.msk.f32.vlgmr.msra.gmra.mrb[52].mxu1 %vm23460_vm1, %v23497_v22  ;;  %8801 = vperm.xlu1 %18867, %v21719_v13  }
0x149c   : > { %18154 = vmatpush3.bf16.xpose.msk.msra.mxu0 %vm20080_vm2, %v18149_v55  ;;  %17185 = vmatprep.mubr.msk.f32.mxu0 %vm23460_vm1, %v23497_v22 }
0x149d   : > { %17192 = vmatprep.mubr.msk.f32.mxu1 %vm23460_vm1, %v23497_v22 }
0x149e   : > { %8825 = vperm.xlu0 %18866, %v21764_v9  }
0x149f   : > { %8813 = vperm.xlu1 %18867, %v21751_v31  }
0x14a2   : > { %18869 = vset.pattern.permute.xlu0 %v23552_v58 }
0x14a3   : > { %17186 = vmatmul.mubr.msk.f32.vlgmr.msra.gmra.mrb[58].mxu0 %vm23460_vm1, %v23497_v22  ;;  %8817 = vperm.xlu1 %18867, %v21747_v61  }
0x14a4   : > { %8298 = vperm.xlu0 %18869, %v21751_v31   ;;  %17199 = vmatprep.mubr.msk.f32.mxu0 %vm23460_vm1, %v23497_v22 }
0x14a7   : > { %18868 = vset.pattern.permute.xlu1 %v23552_v58 }
0x14a8   : > { %8290 = vperm.xlu0 %18869, %v21737_v17   ;;  %8282 = vperm.xlu1 %18868, %v21721_v39  }
0x14ac   : > { %8306 = vperm.xlu0 %18869, %v21770_v10   ;;  %18870 = vset.pattern.permute.xlu1 %v23518_v35 }
0x14ad   : > { %8821 = vperm.xlu1 %18870, %v21770_v10  }
0x14b0   : > { %18892 = vset.pattern.permute.xlu0 %v23553_v63 }
0x14b1   : > { %18871 = vset.pattern.permute.xlu1 %v23552_v58 }
0x14b2   : > { %8286 = vperm.xlu1 %18871, %v21719_v13  }
0x14b6   : > { %8302 = vperm.xlu1 %18871, %v21747_v61  }
0x14ba   : > { %8294 = vperm.xlu1 %18871, %v21733_v40  }
0x14be   : > { %8310 = vperm.xlu1 %18871, %v21764_v9  }
0x14c2   : > { %18893 = vset.pattern.permute.xlu1 %v23553_v63 }
0x14fb   : > { %v18848_v49 = vpop.permute.xlu1 %18847 }
0x14fc   : > { %v18850_v16 = vunpack.i.h.bf16 %v18848_v49  ;;  %v18849_v48 = vunpack.i.l.bf16 %v18848_v49 }
0x14fe   : > { %v18155_v35 = vpack.c.bf16 %v18850_v16, %v18849_v48 }
0x1500   : > { %v18853_v27 = vpop.permute.xlu0 %18852  ;;  %18157 = vmatprep.subr.msk.bf16.mxu1 %vm20080_vm2, %v18155_v35 }
0x1501   : > { %v18855_v50 = vunpack.i.h.bf16 %v18853_v27  ;;  %v18854_v55 = vunpack.i.l.bf16 %v18853_v27  ;;  %18160 = vmatpush3.bf16.xpose.msk.msra.mxu1 %vm20080_vm2, %v18155_v35 }
0x1503   : > { %v18161_v58 = vpack.c.bf16 %v18855_v50, %v18854_v55 }
0x1504   : > { %v18858_v7 = vpop.permute.xlu1 %18857 }
0x1505   : > { %v18860_v33 = vunpack.i.h.bf16 %v18858_v7  ;;  %v18859_v38 = vunpack.i.l.bf16 %v18858_v7  ;;  %18163 = vmatprep.subr.msk.bf16.mxu0 %vm20080_vm2, %v18161_v58 }
0x1506   : > { %18166 = vmatpush3.bf16.xpose.msk.msra.mxu0 %vm20080_vm2, %v18161_v58 }
0x1507   : > { %v18167_v63 = vpack.c.bf16 %v18860_v33, %v18859_v38 }
0x1508   : > { %17193 = vmatmul.mubr.msk.f32.vlgmr.msra.gmra.mrb[54].mxu1 %vm23460_vm1, %v23497_v22 }
0x1509   : > { %v18863_v49 = vpop.permute.xlu1 %18862  ;;  %18169 = vmatprep.subr.msk.bf16.mxu1 %vm20080_vm2, %v18167_v63  ;;  %17206 = vmatprep.mubr.msk.f32.mxu1 %vm23460_vm1, %v23497_v22 }
0x150a   : > { %v18865_v16 = vunpack.i.h.bf16 %v18863_v49  ;;  %v18864_v48 = vunpack.i.l.bf16 %v18863_v49  ;;  %18172 = vmatpush3.bf16.xpose.msk.msra.mxu1 %vm20080_vm2, %v18167_v63 }
0x150b   : > { %18180 = vmatprep.subr.bf16.mxu1 %v21574_v3 }
0x150c   : > { %v18173_v7 = vpack.c.bf16 %v18865_v16, %v18864_v48 }
0x150d   : > { %17200 = vmatmul.mubr.msk.f32.vlgmr.msra.gmra.mrb[60].mxu0 %vm23460_vm1, %v23497_v22 }
0x150e   : > { %18175 = vmatprep.subr.msk.bf16.mxu0 %vm20080_vm2, %v18173_v7  ;;  %17213 = vmatprep.mubr.msk.f32.mxu0 %vm23460_vm1, %v23497_v22 }
0x150f   : > { %18178 = vmatpush3.bf16.xpose.msk.msra.mxu0 %vm20080_vm2, %v18173_v7 }
0x1510   : > { %18188 = vmatprep.subr.bf16.mxu0 %v21645_v4 }
0x1511   : > { %17207 = vmatmul.mubr.msk.f32.vlgmr.msra.gmra.mrb[56].mxu1 %vm23460_vm1, %v23497_v22 }
0x1512   : > { %18182 = vmatpush3.bf16.msra.mxu1 %v21574_v3 }
0x1513   : > { %18184 = vmatprep.subr.bf16.mxu1 %v21624_v56 }
0x1516   : > { %17214 = vmatmul.mubr.msk.f32.vlgmr.msra.gmra.mrb[62].mxu0 %vm23460_vm1, %v23497_v22 }
0x1517   : > { %18190 = vmatpush3.bf16.msra.mxu0 %v21645_v4 }
0x1518   : > { %18204 = vmatprep.subr.bf16.mxu0 %v21647_v23 }
0x151a   : > { %v8802_v38 = vpop.permute.xlu1 %8801 }
0x151e   : > { %v8814_v33 = vpop.permute.xlu1 %8813 }
0x1522   : > { %v8818_v35 = vpop.permute.xlu1 %8817 }
0x1527   : > { %v8283_v50 = vpop.permute.xlu1 %8282 }
0x1564   : > { %v17166_v27 = vpop.f32.mrb[54].mxu0 }
0x1565   : > { %v8029_v55 = vpop.f32.mrb[55].mxu0 }
0x1566   : > { %v8313_v58 = vadd.f32 %v8283_v50, %v8029_v55  ;;  %v8798_v55 = vpop.permute.xlu0 %8797 }
0x1568   : > { %vm8321_vm7 = vcmp.gt.f32.partialorder %v8313_v58, 0.0  ;;  %v8329_v63 = vmul.f32 0.2, %v8313_v58 }
0x156a   : > { %v8337_v49 = vsel %vm8321_vm7, %v8313_v58, %v8329_v63  ;;  %v8806_v58 = vpop.permute.xlu0 %8805 }
0x156b   : > { %v21857_v3 = vsel %vm583_vm5, %v8337_v49, -1e+30  ;;  %v8822_v49 = vpop.permute.xlu1 %8821 }
0x156c   : > { %v8353_v16 = vsel %vm1263_vm6, %v21857_v3, -inf }
0x156d   : > { %v21861_v4 = vpop.f32.mrb[56].mxu0  ;;  %8354 = vmax.xlane.f32.xlu1 %v8353_v16 }
0x156e   : > { %v8110_v48 = vpop.f32.mrb[57].mxu0  ;;  %v21863_v7 = vpop.f32.mrb[52].mxu1 }
0x156f   : > { %v8191_v26 = vpop.f32.mrb[53].mxu1  ;;  %v8810_v63 = vpop.permute.xlu0 %8809 }
0x1570   : > { %v8287_v51 = vpop.permute.xlu1 %8286 }
0x1571   : > { %v8314_v5 = vadd.f32 %v17166_v27, %v8287_v51 }
0x1573   : > { %v8826_v45 = vpop.permute.xlu0 %8825  ;;  %vm8322_vm7 = vcmp.gt.f32.partialorder %v8314_v5, 0.0 }
0x1576   : > { %v21865_v54 = vpop.f32.mrb[58].mxu0 }
0x1577   : > { %v21867_v50 = vpop.f32.mrb[59].mxu0  ;;  %v8299_v62 = vpop.permute.xlu0 %8298 }
0x15db   : > { %v17194_v29 = vpop.f32.mrb[54].mxu1 }
0x15dc   : > { %v8829_v12 = vadd.f32 %v17194_v29, %v8802_v38  ;;  %v8538_v15 = vpop.f32.mrb[55].mxu1 }
0x15dd   : > { %v8828_v21 = vadd.f32 %v8798_v55, %v8538_v15 }
0x15de   : > { %vm8837_vm8 = vcmp.gt.f32.partialorder %v8829_v12, 0.0  ;;  %v8845_v43 = vmul.f32 0.2, %v8829_v12 }
0x15df   : > { %vm8836_vm9 = vcmp.gt.f32.partialorder %v8828_v21, 0.0  ;;  %v8844_v16 = vmul.f32 0.2, %v8828_v21 }
0x15e0   : > { %v17201_v0 = vpop.f32.mrb[60].mxu0  ;;  %v8853_v32 = vsel %vm8837_vm8, %v8829_v12, %v8845_v43  ;;  %v8317_v12 = vadd.f32 %v8299_v62, %v8191_v26 }
0x15e1   : > { %v8831_v18 = vadd.f32 %v17201_v0, %v8810_v63  ;;  %v8621_v14 = vpop.f32.mrb[61].mxu0  ;;  %v21871_v57 = vsel %vm584_vm3, %v8853_v32, -1e+30  ;;  %v8852_v42 = vsel %vm8836_vm9, %v8828_v21, %v8844_v16  ;;  %v8330_v63 = vmul.f32 0.2, %v8314_v5 }
0x15e2   : > { %v8830_v60 = vadd.f32 %v8806_v58, %v8621_v14  ;;  %v8871_v15 = vsel %vm1263_vm6, %v21871_v57, -inf  ;;  %v21877_v29 = vsel %vm583_vm5, %v8852_v42, -1e+30  ;;  %v8291_v58 = vpop.permute.xlu0 %8290 }
0x15e3   : > { %vm8839_vm10 = vcmp.gt.f32.partialorder %v8831_v18, 0.0  ;;  %v8847_v38 = vmul.f32 0.2, %v8831_v18  ;;  %8872 = vmax.xlane.f32.xlu1 %v8871_v15  ;;  %v8868_v0 = vsel %vm1263_vm6, %v21877_v29, -inf }
0x15e4   : > { %vm8838_vm11 = vcmp.gt.f32.partialorder %v8830_v60, 0.0  ;;  %v8846_v43 = vmul.f32 0.2, %v8830_v60  ;;  %8869 = vmax.xlane.f32.xlu0 %v8868_v0  ;;  %v17208_v32 = vpop.f32.mrb[56].mxu1  ;;  %v8303_v0 = vpop.permute.xlu1 %8302 }
0x15e5   : > { %v8833_v51 = vadd.f32 %v17208_v32, %v8818_v35  ;;  %v8704_v14 = vpop.f32.mrb[57].mxu1  ;;  %v8855_v21 = vsel %vm8839_vm10, %v8831_v18, %v8847_v38  ;;  %v8333_v35 = vmul.f32 0.2, %v8317_v12  ;;  %vm8325_vm10 = vcmp.gt.f32.partialorder %v8317_v12, 0.0 }
0x15e6   : > { %v8832_v27 = vadd.f32 %v8814_v33, %v8704_v14  ;;  %v21883_v42 = vsel %vm586_vm12, %v8855_v21, -1e+30  ;;  %v8854_v55 = vsel %vm8838_vm11, %v8830_v60, %v8846_v43  ;;  %v8315_v33 = vadd.f32 %v8291_v58, %v8110_v48  ;;  %v8307_v48 = vpop.permute.xlu0 %8306 }
0x15e7   : > { %vm8841_vm8 = vcmp.gt.f32.partialorder %v8833_v51, 0.0  ;;  %v8849_v16 = vmul.f32 0.2, %v8833_v51  ;;  %v8877_v15 = vsel %vm1263_vm6, %v21883_v42, -inf  ;;  %v21889_v18 = vsel %vm585_vm13, %v8854_v55, -1e+30 }
0x15e8   : > { %vm8840_vm9 = vcmp.gt.f32.partialorder %v8832_v27, 0.0  ;;  %v8848_v62 = vmul.f32 0.2, %v8832_v27  ;;  %8878 = vmax.xlane.f32.xlu0 %v8877_v15  ;;  %v8874_v28 = vsel %vm1263_vm6, %v21889_v18, -inf  ;;  %v8341_v58 = vsel %vm8325_vm10, %v8317_v12, %v8333_v35 }
0x15e9   : > { %v17215_v26 = vpop.f32.mrb[62].mxu0  ;;  %v8857_v43 = vsel %vm8841_vm8, %v8833_v51, %v8849_v16  ;;  %v8295_v16 = vpop.permute.xlu1 %8294 }
0x15ea   : > { %v8835_v38 = vadd.f32 %v17215_v26, %v8826_v45  ;;  %v8787_v60 = vpop.f32.mrb[63].mxu0  ;;  %v21893_v14 = vsel %vm588_vm15, %v8857_v43, -1e+30  ;;  %v8856_v21 = vsel %vm8840_vm9, %v8832_v27, %v8848_v62  ;;  %v8338_v27 = vsel %vm8322_vm7, %v8314_v5, %v8330_v63 }
0x15eb   : > { %v8834_v32 = vadd.f32 %v8822_v49, %v8787_v60  ;;  %v8883_v15 = vsel %vm1263_vm6, %v21893_v14, -inf  ;;  %v21901_v45 = vsel %vm587_vm14, %v8856_v21, -1e+30  ;;  %v8318_v49 = vadd.f32 %v21863_v7, %v8303_v0 }
0x15ec   : > { %8875 = vmax.xlane.f32.xlu0 %v8874_v28  ;;  %8884 = vmax.xlane.f32.xlu1 %v8883_v15  ;;  %v8851_v51 = vmul.f32 0.2, %v8835_v38  ;;  %v8331_v62 = vmul.f32 0.2, %v8315_v33  ;;  %v8319_v26 = vadd.f32 %v8307_v48, %v21867_v50  ;;  %vm8843_vm8 = vcmp.gt.f32.partialorder %v8835_v38, 0.0 }
0x15ed   : > { %vm8842_vm11 = vcmp.gt.f32.partialorder %v8834_v32, 0.0  ;;  %v8850_v55 = vmul.f32 0.2, %v8834_v32  ;;  %vm8323_vm9 = vcmp.gt.f32.partialorder %v8315_v33, 0.0  ;;  %v8880_v28 = vsel %vm1263_vm6, %v21901_v45, -inf  ;;  %v8311_v15 = vpop.permute.xlu1 %8310 }
0x15ee   : > { %v21916_v5 = vsel %vm587_vm14, %v8341_v58, -1e+30  ;;  %v8316_v50 = vadd.f32 %v21861_v4, %v8295_v16  ;;  %v8334_v12 = vmul.f32 0.2, %v8318_v49  ;;  %v8346_v63 = vsel %vm584_vm3, %v8338_v27, -1e+30 }
0x15ef   : > { %v8858_v60 = vsel %vm8842_vm11, %v8834_v32, %v8850_v55  ;;  %v8859_v0 = vsel %vm8843_vm8, %v8835_v38, %v8851_v51  ;;  %vm8326_vm7 = vcmp.gt.f32.partialorder %v8318_v49, 0.0  ;;  %v8335_v35 = vmul.f32 0.2, %v8319_v26 }
0x15f0   : > { %v21910_v43 = vsel %vm589_vm0, %v8858_v60, -1e+30  ;;  %8881 = vmax.xlane.f32.xlu0 %v8880_v28  ;;  %v8339_v32 = vsel %vm8323_vm9, %v8315_v33, %v8331_v62  ;;  %vm8327_vm10 = vcmp.gt.f32.partialorder %v8319_v26, 0.0  ;;  %v8365_v21 = vsel %vm1263_vm6, %v21916_v5, -inf }
0x15f1   : > { %v8886_v7 = vsel %vm1263_vm6, %v21910_v43, -inf  ;;  %v8356_v55 = vsel %vm1263_vm6, %v8346_v63, -inf  ;;  %v21926_v4 = vsel %vm590_vm4, %v8859_v0, -1e+30  ;;  %v8332_v48 = vmul.f32 0.2, %v8316_v50 }
0x15f2   : > { %8887 = vmax.xlane.f32.xlu1 %v8886_v7  ;;  %v8320_v58 = vadd.f32 %v21865_v54, %v8311_v15  ;;  %v8347_v38 = vsel %vm585_vm13, %v8339_v32, -1e+30  ;;  %v8342_v33 = vsel %vm8326_vm7, %v8318_v49, %v8334_v12  ;;  %vm8324_vm11 = vcmp.gt.f32.partialorder %v8316_v50, 0.0 }
0x15f3   : > { %v8343_v51 = vsel %vm8327_vm10, %v8319_v26, %v8335_v35  ;;  %v8889_v27 = vsel %vm1263_vm6, %v21926_v4, -inf  ;;  %v8359_v16 = vsel %vm1263_vm6, %v8347_v38, -inf  ;;  %v8350_v62 = vsel %vm588_vm15, %v8342_v33, -1e+30 }
0x15f4   : > { %8366 = vmax.xlane.f32.xlu0 %v8365_v21  ;;  %v8336_v60 = vmul.f32 0.2, %v8320_v58  ;;  %v21938_v54 = vsel %vm589_vm0, %v8343_v51, -1e+30  ;;  %v8340_v28 = vsel %vm8324_vm11, %v8316_v50, %v8332_v48  ;;  %vm8328_vm8 = vcmp.gt.f32.partialorder %v8320_v58, 0.0 }
0x15f5   : > { %v8368_v49 = vsel %vm1263_vm6, %v8350_v62, -inf  ;;  %v8371_v26 = vsel %vm1263_vm6, %v21938_v54, -inf  ;;  %v21945_v7 = vsel %vm586_vm12, %v8340_v28, -1e+30 }
0x15f6   : > { %8357 = vmax.xlane.f32.xlu1 %v8356_v55  ;;  %v8344_v12 = vsel %vm8328_vm8, %v8320_v58, %v8336_v60  ;;  %v8362_v0 = vsel %vm1263_vm6, %v21945_v7, -inf }
0x15f7   : > { %v21951_v50 = vsel %vm590_vm4, %v8344_v12, -1e+30 }
0x15f8   : > { %8890 = vmax.xlane.f32.xlu0 %v8889_v27  ;;  %v8374_v35 = vsel %vm1263_vm6, %v21951_v50, -inf }
0x15fa   : > { %8360 = vmax.xlane.f32.xlu1 %v8359_v16  ;;  %v8355_v32 = vpop.xlane.xlu1 %8354 }
0x15fb   : > { %v8377_v58 = vsub.f32 %v21857_v3, %v8355_v32 }
0x15fc   : > { %8369 = vmax.xlane.f32.xlu0 %v8368_v49 }
0x15fd   : > { %v8385_v60 = vmul.f32 1.442695, %v8377_v58 }
0x15fe   : > { %8372 = vmax.xlane.f32.xlu1 %v8371_v26 }
0x15ff   : > { %19278 = vpow2.f32 %v8385_v60 }
0x1600   : > { %8363 = vmax.xlane.f32.xlu0 %v8362_v0 }
0x1604   : > { %8375 = vmax.xlane.f32.xlu0 %v8374_v35 }
0x1670   : > { %v8873_v15 = vpop.xlane.xlu1 %8872 }
0x1671   : > { %v8870_v21 = vpop.xlane.xlu0 %8869  ;;  %v8893_v3 = vsub.f32 %v21871_v57, %v8873_v15 }
0x1672   : > { %v8892_v46 = vsub.f32 %v21877_v29, %v8870_v21  ;;  %v19279_v21 = vpop.eup %19278 }
0x1674   : > { %v8900_v47 = vmul.f32 1.442695, %v8892_v46 }
0x1675   : > { %v8879_v55 = vpop.xlane.xlu0 %8878 }
0x1679   : > { %v8876_v48 = vpop.xlane.xlu0 %8875  ;;  %v8885_v33 = vpop.xlane.xlu1 %8884 }
0x167a   : > { %v8897_v58 = vsub.f32 %v21893_v14, %v8885_v33 }
0x167c   : > { %v8910_v29 = vmul.f32 1.442695, %v8897_v58 }
0x167d   : > { %v8882_v51 = vpop.xlane.xlu0 %8881 }
0x167f   : > { %v8888_v27 = vpop.xlane.xlu1 %8887 }
0x1681   : > { %v8367_v16 = vpop.xlane.xlu0 %8366 }
0x1682   : > { %v8381_v26 = vsub.f32 %v21916_v5, %v8367_v16  ;;  %v8902_v5 = vmul.f32 1.442695, %v8893_v3  ;;  %v8895_v16 = vsub.f32 %v21883_v42, %v8879_v55  ;;  %v21972_v42 = vsel %vm583_vm5, %v19279_v21, 0.0 }
0x1683   : > { %v8358_v28 = vpop.xlane.xlu1 %8357  ;;  %v8898_v55 = vsub.f32 %v21910_v43, %v8888_v27 }
0x1684   : > { %v8378_v49 = vsub.f32 %v8346_v63, %v8358_v28  ;;  %v8393_v2 = vmul.f32 1.442695, %v8381_v26  ;;  %v8906_v57 = vmul.f32 1.442695, %v8895_v16 }
0x1685   : > { %v8891_v0 = vpop.xlane.xlu0 %8890  ;;  %v8912_v27 = vmul.f32 1.442695, %v8898_v55 }
0x1686   : > { %v8387_v12 = vmul.f32 1.442695, %v8378_v49 }
0x1687   : > { %v8361_v35 = vpop.xlane.xlu1 %8360 }
0x1688   : > { %19280 = vpow2.f32 %v8387_v12  ;;  %v8379_v8 = vsub.f32 %v8347_v38, %v8361_v35  ;;  %v8896_v38 = vsub.f32 %v21901_v45, %v8882_v51 }
0x1689   : > { %v8370_v22 = vpop.xlane.xlu0 %8369 }
0x168a   : > { %v8389_v52 = vmul.f32 1.442695, %v8379_v8  ;;  %v8382_v32 = vsub.f32 %v8350_v62, %v8370_v22  ;;  %v8894_v22 = vsub.f32 %v21889_v18, %v8876_v48  ;;  %v8899_v62 = vsub.f32 %v21926_v4, %v8891_v0 }
0x168b   : > { %v8373_v8 = vpop.xlane.xlu1 %8372 }
0x168c   : > { %19282 = vpow2.f32 %v8389_v52  ;;  %v8395_v63 = vmul.f32 1.442695, %v8382_v32  ;;  %v8383_v52 = vsub.f32 %v21938_v54, %v8373_v8  ;;  %v8904_v18 = vmul.f32 1.442695, %v8894_v22 }
0x168d   : > { %19284 = vpow2.f32 %v8393_v2  ;;  %v8908_v2 = vmul.f32 1.442695, %v8896_v38  ;;  %v8364_v45 = vpop.xlane.xlu0 %8363  ;;  %v8409_v54 = vsel %vm1263_vm6, %v21972_v42, 0.0  ;;  %v8914_v4 = vmul.f32 1.442695, %v8899_v62 }
0x168e   : > { %19286 = vpow2.f32 %v8395_v63  ;;  %v8397_v48 = vmul.f32 1.442695, %v8383_v52  ;;  %v8380_v26 = vsub.f32 %v21945_v7, %v8364_v45 }
0x168f   : > { %19288 = vpow2.f32 %v8900_v47 }
0x1690   : > { %19290 = vpow2.f32 %v8902_v5  ;;  %v8391_v58 = vmul.f32 1.442695, %v8380_v26 }
0x1691   : > { %19292 = vpow2.f32 %v8910_v29  ;;  %v8376_v12 = vpop.xlane.xlu0 %8375 }
0x1692   : > { %v19281_v60 = vpop.eup %19280  ;;  %19294 = vpow2.f32 %v8906_v57  ;;  %v8384_v63 = vsub.f32 %v21951_v50, %v8376_v12 }
0x1693   : > { %v21965_v46 = vsel %vm584_vm3, %v19281_v60, 0.0  ;;  %19296 = vpow2.f32 %v8908_v2 }
0x1694   : > { %v8412_v47 = vsel %vm1263_vm6, %v21965_v46, 0.0  ;;  %19298 = vpow2.f32 %v8904_v18  ;;  %v8399_v50 = vmul.f32 1.442695, %v8384_v63 }
0x1695   : > { %8413 = vadd.xlane.f32.xlu1 %v8412_v47  ;;  %19300 = vpow2.f32 %v8397_v48 }
0x1696   : > { %v19283_v14 = vpop.eup %19282  ;;  %19302 = vpow2.f32 %v8914_v4 }
0x1697   : > { %v19285_v15 = vpop.eup %19284  ;;  %v21980_v51 = vsel %vm585_vm13, %v19283_v14, 0.0  ;;  %19304 = vpow2.f32 %v8912_v27 }
0x1698   : > { %v19287_v33 = vpop.eup %19286  ;;  %v8415_v0 = vsel %vm1263_vm6, %v21980_v51, 0.0  ;;  %v21993_v35 = vsel %vm587_vm14, %v19285_v15, 0.0  ;;  %19306 = vpow2.f32 %v8391_v58  ;;  %v23555_v58 = vmov 11  }
0x1699   : > { %8410 = vadd.xlane.f32.xlu1 %v8409_v54  ;;  %v19289_v28 = vpop.eup %19288  ;;  %v21984_v49 = vsel %vm588_vm15, %v19287_v33, 0.0  ;;  %v8421_v5 = vsel %vm1263_vm6, %v21993_v35, 0.0  ;;  %19308 = vpow2.f32 %v8399_v50 }
0x169a   : > { %v8424_v43 = vsel %vm1263_vm6, %v21984_v49, 0.0  ;;  %v19291_v3 = vpop.eup %19290  ;;  %v21997_v32 = vsel %vm583_vm5, %v19289_v28, 0.0 }
0x169b   : > { %8425 = vadd.xlane.f32.xlu0 %v8424_v43  ;;  %v19293_v7 = vpop.eup %19292  ;;  %v8924_v16 = vsel %vm1263_vm6, %v21997_v32, 0.0  ;;  %v22006_v29 = vsel %vm584_vm3, %v19291_v3, 0.0 }
0x169c   : > { %v19295_v38 = vpop.eup %19294  ;;  %v22010_v21 = vsel %vm588_vm15, %v19293_v7, 0.0  ;;  %v8927_v60 = vsel %vm1263_vm6, %v22006_v29, 0.0 }
0x169d   : > { %8416 = vadd.xlane.f32.xlu1 %v8415_v0  ;;  %v19297_v8 = vpop.eup %19296  ;;  %v8939_v57 = vsel %vm1263_vm6, %v22010_v21, 0.0  ;;  %v22018_v22 = vsel %vm586_vm12, %v19295_v38, 0.0 }
0x169e   : > { %v19299_v2 = vpop.eup %19298  ;;  %v22022_v52 = vsel %vm587_vm14, %v19297_v8, 0.0  ;;  %v8933_v14 = vsel %vm1263_vm6, %v22018_v22, 0.0 }
0x169f   : > { %8422 = vadd.xlane.f32.xlu0 %v8421_v5  ;;  %v19301_v47 = vpop.eup %19300  ;;  %v8936_v45 = vsel %vm1263_vm6, %v22022_v52, 0.0  ;;  %v22030_v18 = vsel %vm585_vm13, %v19299_v2, 0.0 }
0x16a0   : > { %v19303_v62 = vpop.eup %19302  ;;  %v22034_v15 = vsel %vm589_vm0, %v19301_v47, 0.0  ;;  %v8930_v48 = vsel %vm1263_vm6, %v22030_v18, 0.0 }
0x16a1   : > { %8925 = vadd.xlane.f32.xlu1 %v8924_v16  ;;  %v19305_v55 = vpop.eup %19304  ;;  %v8427_v54 = vsel %vm1263_vm6, %v22034_v15, 0.0  ;;  %v22042_v33 = vsel %vm590_vm4, %v19303_v62, 0.0 }
0x16a2   : > { %v19307_v28 = vpop.eup %19306  ;;  %v22046_v4 = vsel %vm589_vm0, %v19305_v55, 0.0  ;;  %v8945_v26 = vsel %vm1263_vm6, %v22042_v33, 0.0 }
0x16a3   : > { %8928 = vadd.xlane.f32.xlu0 %v8927_v60  ;;  %v8942_v43 = vsel %vm1263_vm6, %v22046_v4, 0.0  ;;  %v22054_v27 = vsel %vm586_vm12, %v19307_v28, 0.0  ;;  %v19309_v12 = vpop.eup %19308 }
0x16a4   : > { %v8418_v0 = vsel %vm1263_vm6, %v22054_v27, 0.0  ;;  %v22060_v3 = vsel %vm590_vm4, %v19309_v12, 0.0 }
0x16a5   : > { %8940 = vadd.xlane.f32.xlu1 %v8939_v57  ;;  %v8430_v7 = vsel %vm1263_vm6, %v22060_v3, 0.0 }
0x16a7   : > { %8934 = vadd.xlane.f32.xlu0 %v8933_v14 }
0x16a9   : > { %8937 = vadd.xlane.f32.xlu1 %v8936_v45 }
0x16ab   : > { %8931 = vadd.xlane.f32.xlu0 %v8930_v48 }
0x16ad   : > { %8428 = vadd.xlane.f32.xlu1 %v8427_v54 }
0x16af   : > { %8946 = vadd.xlane.f32.xlu0 %v8945_v26 }
0x16b1   : > { %8943 = vadd.xlane.f32.xlu1 %v8942_v43 }
0x16b3   : > { %8419 = vadd.xlane.f32.xlu0 %v8418_v0 }
0x16b7   : > { %8431 = vadd.xlane.f32.xlu0 %v8430_v7 }
0x16c2   : > { %18873 = vrot.lane.b32.xlu1 %v21725_v25, %s23554_s29 }
0x16c6   : > { %18883 = vrot.lane.b32.xlu1 %v21755_v34, %s23554_s29 }
0x16ca   : > { %18888 = vrot.lane.b32.xlu1 %v21776_v11, %s23554_s29 }
0x16cd   : > { %18878 = vrot.lane.b32.xlu0 %v21741_v41, %s23554_s29 }
0x16ce   : > { %9964 = vperm.xlu1 %18893, %v21719_v13  }
0x16d1   : > { %9960 = vperm.xlu0 %18892, %v21721_v39  }
0x16d2   : > { %9968 = vperm.xlu1 %18893, %v21737_v17  }
0x16d5   : > { %9972 = vperm.xlu0 %18892, %v21733_v40  }
0x16d6   : > { %9976 = vperm.xlu1 %18893, %v21751_v31  }
0x16d9   : > { %9980 = vperm.xlu0 %18892, %v21747_v61  }
0x16da   : > { %9984 = vperm.xlu1 %18893, %v21770_v10  }
0x16dd   : > { %9988 = vperm.xlu0 %18892, %v21764_v9  }
0x16de   : > { %18914 = vset.pattern.permute.xlu1 %v23555_v58 }
0x16e1   : > { %18915 = vset.pattern.permute.xlu0 %v23555_v58 }
0x1722   : > { %v8414_v63 = vpop.xlane.xlu1 %8413 }
0x1726   : > { %v8411_v5 = vpop.xlane.xlu1 %8410 }
0x1728   : > { %v8426_v16 = vpop.xlane.xlu0 %8425 }
0x172a   : > { %v8417_v38 = vpop.xlane.xlu1 %8416 }
0x172c   : > { %v8423_v8 = vpop.xlane.xlu0 %8422 }
0x172e   : > { %v8926_v50 = vpop.xlane.xlu1 %8925 }
0x172f   : > { %19310 = vrcp.f32 %v8926_v50 }
0x1730   : > { %v8929_v60 = vpop.xlane.xlu0 %8928 }
0x1731   : > { %19312 = vrcp.f32 %v8929_v60 }
0x1732   : > { %v8941_v57 = vpop.xlane.xlu1 %8940  ;;  %19314 = vrcp.f32 %v8423_v8 }
0x1733   : > { %19316 = vrcp.f32 %v8941_v57 }
0x1734   : > { %v8935_v2 = vpop.xlane.xlu0 %8934 }
0x1736   : > { %v8938_v47 = vpop.xlane.xlu1 %8937 }
0x1737   : > { %19318 = vrcp.f32 %v8938_v47 }
0x1738   : > { %19320 = vrcp.f32 %v8935_v2  ;;  %v8932_v45 = vpop.xlane.xlu0 %8931 }
0x1739   : > { %v19311_v14 = vpop.eup %19310  ;;  %19322 = vrcp.f32 %v8932_v45 }
0x173a   : > { %v8429_v62 = vpop.xlane.xlu1 %8428  ;;  %v8949_v55 = vmul.f32 %v19311_v14, %v21997_v32  ;;  %19324 = vrcp.f32 %v8411_v5 }
0x173b   : > { %v19313_v48 = vpop.eup %19312  ;;  %19326 = vrcp.f32 %v8426_v16 }
0x173c   : > { %17220 = vmatprep.mubr.msk.f32.mxu1 %vm1263_vm6, %v8949_v55  ;;  %v8947_v54 = vpop.xlane.xlu0 %8946  ;;  %v8951_v28 = vmul.f32 %v19313_v48, %v22006_v29  ;;  %v19315_v43 = vpop.eup %19314 }
0x173d   : > { %19328 = vrcp.f32 %v8947_v54  ;;  %v19317_v12 = vpop.eup %19316  ;;  %v8442_v60 = vmul.f32 %v19315_v43, %v21993_v35 }
0x173e   : > { %v8944_v26 = vpop.xlane.xlu1 %8943  ;;  %17221 = vmatmul.mubr.msk.f32.vlgmr.msra.gmra.mrb[58].mxu1 %vm1263_vm6, %v8951_v28  ;;  %v8959_v8 = vmul.f32 %v19317_v12, %v22010_v21 }
0x173f   : > { %19330 = vrcp.f32 %v8944_v26  ;;  %18186 = vmatpush3.bf16.msra.mxu1 %v21624_v56  ;;  %v23557_v26 = vmov 1.0  }
0x1740   : > { %18192 = vmatprep.subr.bf16.mxu1 %v21668_v53  ;;  %v8420_v32 = vpop.xlane.xlu0 %8419  ;;  %19332 = vrcp.f32 %v8414_v63 }
0x1741   : > { %v19319_v0 = vpop.eup %19318  ;;  %19334 = vrcp.f32 %v8417_v38 }
0x1742   : > { %v18874_v7 = vpop.permute.xlu1 %18873  ;;  %v8957_v58 = vmul.f32 %v19319_v0, %v22022_v52  ;;  %v19321_v5 = vpop.eup %19320  ;;  %19336 = vrcp.f32 %v8420_v32 }
0x1743   : > { %v18876_v29 = vunpack.i.h.bf16 %v18874_v7  ;;  %v18875_v16 = vunpack.i.l.bf16 %v18874_v7  ;;  %v19323_v50 = vpop.eup %19322  ;;  %v8955_v52 = vmul.f32 %v19321_v5, %v22018_v22  ;;  %19338 = vrcp.f32 %v8429_v62 }
0x1744   : > { %17234 = vmatprep.mubr.msk.f32.mxu0 %vm1263_vm6, %v8957_v58  ;;  %v8432_v57 = vpop.xlane.xlu0 %8431  ;;  %v8953_v63 = vmul.f32 %v19323_v50, %v22030_v18  ;;  %v19325_v2 = vpop.eup %19324 }
0x1745   : > { %v18211_v56 = vpack.c.bf16 %v18876_v29, %v18875_v16  ;;  %17235 = vmatmul.mubr.msk.f32.vlgmr.msra.gmra.mrb[64].mxu0 %vm1263_vm6, %v8959_v8  ;;  %v19327_v21 = vpop.eup %19326  ;;  %19340 = vrcp.f32 %v8432_v57  ;;  %v8434_v54 = vmul.f32 %v19325_v2, %v21972_v42 }
0x1746   : > { %18206 = vmatpush3.bf16.msra.mxu0 %v21647_v23  ;;  %17262 = vmatprep.mubr.msk.f32.mxu0 %vm1263_vm6, %v8442_v60  ;;  %v18884_v18 = vpop.permute.xlu1 %18883  ;;  %v8444_v55 = vmul.f32 %v19327_v21, %v21984_v49 }
0x1747   : > { %17227 = vmatprep.mubr.msk.f32.mxu1 %vm1263_vm6, %v8953_v63  ;;  %18213 = vmatprep.subr.msk.bf16.mxu0 %vm20080_vm2, %v18211_v56  ;;  %v19329_v35 = vpop.eup %19328  ;;  %v18886_v43 = vunpack.i.h.bf16 %v18884_v18  ;;  %v18885_v12 = vunpack.i.l.bf16 %v18884_v18 }
0x1748   : > { %17228 = vmatmul.mubr.msk.f32.vlgmr.msra.gmra.mrb[60].mxu1 %vm1263_vm6, %v8955_v52  ;;  %v18879_v47 = vpop.permute.xlu0 %18878  ;;  %v8963_v45 = vmul.f32 %v19329_v35, %v22042_v33 }
0x1749   : > { %v19331_v38 = vpop.eup %19330  ;;  %18194 = vmatpush3.bf16.msra.mxu1 %v21668_v53  ;;  %v18881_v23 = vunpack.i.h.bf16 %v18879_v47  ;;  %v18880_v22 = vunpack.i.l.bf16 %v18879_v47  ;;  %v18223_v5 = vpack.c.bf16 %v18886_v43, %v18885_v12 }
0x174a   : > { %18196 = vmatprep.subr.bf16.mxu1 %v21576_v1  ;;  %v8961_v14 = vmul.f32 %v19331_v38, %v22046_v4  ;;  %v19333_v48 = vpop.eup %19332  ;;  %v18889_v53 = vpop.permute.xlu1 %18888  ;;  %v23556_v4 = vld [vmem:[#allocation18_spill] sm:$0xff] }
0x174b   : > { %v18217_v62 = vpack.c.bf16 %v18881_v23, %v18880_v22  ;;  %v19335_v28 = vpop.eup %19334  ;;  %v8436_v49 = vmul.f32 %v19333_v48, %v21965_v46  ;;  %v18891_v0 = vunpack.i.h.bf16 %v18889_v53  ;;  %v18890_v32 = vunpack.i.l.bf16 %v18889_v53  ;;  %v23558_v46 = vld [vmem:[#allocation23_spill] sm:$0xff] }
0x174c   : > { %17241 = vmatprep.mubr.msk.f32.mxu1 %vm1263_vm6, %v8961_v14  ;;  %v19337_v33 = vpop.eup %19336  ;;  %v8438_v42 = vmul.f32 %v19335_v28, %v21980_v51 }
0x174d   : > { %17242 = vmatmul.mubr.msk.f32.vlgmr.msra.gmra.mrb[62].mxu1 %vm1263_vm6, %v8963_v45  ;;  %17263 = vmatmul.mubr.msk.f32.vlgmr.msra.gmra.mrb[64].mxu0 %vm1263_vm6, %v8444_v55  ;;  %v8440_v7 = vmul.f32 %v19337_v33, %v22054_v27  ;;  %v18229_v29 = vpack.c.bf16 %v18891_v0, %v18890_v32  ;;  %v23560_v27 = vld [vmem:[#allocation19_spill] sm:$0xff] }
0x174e   : > { %18198 = vmatpush3.bf16.msra.mxu1 %v21576_v1  ;;  %17248 = vmatprep.mubr.msk.f32.mxu1 %vm1263_vm6, %v8434_v54  ;;  %v19339_v1 = vpop.eup %19338  ;;  %v9965_v8 = vpop.permute.xlu1 %9964 }
0x174f   : > { %18200 = vmatprep.subr.bf16.mxu1 %v23556_v4  ;;  %18216 = vmatpush3.bf16.xpose.msk.msra.mxu0 %vm20080_vm2, %v18211_v56  ;;  %v19341_v58 = vpop.eup %19340  ;;  %v8446_v51 = vmul.f32 %v19339_v1, %v22034_v15  ;;  %v23559_v15 = vld [vmem:[#allocation10_spill] sm:$0xff] }
0x1750   : > { %18219 = vmatprep.subr.msk.bf16.mxu0 %vm20080_vm2, %v18217_v62  ;;  %17276 = vmatprep.mubr.msk.f32.mxu0 %vm23460_vm1, %v23557_v26  ;;  %v8448_v16 = vmul.f32 %v19341_v58, %v22060_v3  ;;  %v23561_v3 = vld [vmem:[#allocation11_spill] sm:$0xff]  ;;  %v9961_v50 = vpop.permute.xlu0 %9960 }
0x1751   : > { %17249 = vmatmul.mubr.msk.f32.vlgmr.msra.gmra.mrb[58].mxu1 %vm1263_vm6, %v8436_v49 }
0x1752   : > { %18202 = vmatpush3.bf16.msra.mxu1 %v23556_v4  ;;  %17255 = vmatprep.mubr.msk.f32.mxu1 %vm1263_vm6, %v8438_v42  ;;  %v9969_v63 = vpop.permute.xlu1 %9968 }
0x1753   : > { %18208 = vmatprep.subr.bf16.mxu1 %v23558_v46 }
0x1754   : > { %v9973_v52 = vpop.permute.xlu0 %9972 }
0x1755   : > { %17256 = vmatmul.mubr.msk.f32.vlgmr.msra.gmra.mrb[60].mxu1 %vm1263_vm6, %v8440_v7 }
0x1756   : > { %18210 = vmatpush3.bf16.msra.mxu1 %v23558_v46  ;;  %17277 = vmatmul.mubr.msk.f32.vlgmr.msra.gmra.mrb[66].mxu0 %vm23460_vm1, %v23557_v26  ;;  %v9977_v14 = vpop.permute.xlu1 %9976 }
0x1757   : > { %17269 = vmatprep.mubr.msk.f32.mxu1 %vm1263_vm6, %v8446_v51  ;;  %18222 = vmatpush3.bf16.xpose.msk.msra.mxu0 %vm20080_vm2, %v18217_v62 }
0x1758   : > { %18225 = vmatprep.subr.msk.bf16.mxu1 %vm20080_vm2, %v18223_v5  ;;  %18231 = vmatprep.subr.msk.bf16.mxu0 %vm20080_vm2, %v18229_v29  ;;  %v9981_v48 = vpop.permute.xlu0 %9980 }
0x1759   : > { %17270 = vmatmul.mubr.msk.f32.vlgmr.msra.gmra.mrb[62].mxu1 %vm1263_vm6, %v8448_v16  ;;  %17283 = vmatprep.mubr.msk.f32.mxu0 %vm23460_vm1, %v23557_v26 }
0x175a   : > { %17290 = vmatprep.mubr.msk.f32.mxu1 %vm23460_vm1, %v23557_v26  ;;  %v9985_v1 = vpop.permute.xlu1 %9984 }
0x175c   : > { %v9989_v43 = vpop.permute.xlu0 %9988 }
0x175e   : > { %17284 = vmatmul.mubr.msk.f32.vlgmr.msra.gmra.mrb[68].mxu0 %vm23460_vm1, %v23557_v26 }
0x175f   : > { %18228 = vmatpush3.bf16.xpose.msk.msra.mxu1 %vm20080_vm2, %v18223_v5  ;;  %18234 = vmatpush3.bf16.xpose.msk.msra.mxu0 %vm20080_vm2, %v18229_v29 }
0x1760   : > { %18236 = vmatprep.subr.bf16.mxu1 %v23559_v15  ;;  %18244 = vmatprep.subr.bf16.mxu0 %v23560_v27 }
0x1761   : > { %17297 = vmatprep.mubr.msk.f32.mxu0 %vm23460_vm1, %v23557_v26 }
0x1766   : > { %17291 = vmatmul.mubr.msk.f32.vlgmr.msra.gmra.mrb[64].mxu1 %vm23460_vm1, %v23557_v26  ;;  %17298 = vmatmul.mubr.msk.f32.vlgmr.msra.gmra.mrb[70].mxu0 %vm23460_vm1, %v23557_v26 }
0x1767   : > { %18238 = vmatpush3.bf16.msra.mxu1 %v23559_v15  ;;  %18246 = vmatpush3.bf16.msra.mxu0 %v23560_v27 }
0x1768   : > { %18240 = vmatprep.subr.bf16.mxu1 %v23561_v3 }
0x1829   : > { %v17278_v60 = vpop.f32.mrb[66].mxu0 }
0x182a   : > { %v9992_v56 = vadd.f32 %v17278_v60, %v9965_v8  ;;  %v9701_v57 = vpop.f32.mrb[67].mxu0 }
0x182b   : > { %v9991_v2 = vadd.f32 %v9961_v50, %v9701_v57 }
0x182c   : > { %vm10000_vm9 = vcmp.gt.f32.partialorder %v9992_v56, 0.0  ;;  %v10008_v21 = vmul.f32 0.2, %v9992_v56 }
0x182d   : > { %vm9999_vm7 = vcmp.gt.f32.partialorder %v9991_v2, 0.0  ;;  %v10007_v35 = vmul.f32 0.2, %v9991_v2 }
0x182e   : > { %v10016_v38 = vsel %vm10000_vm9, %v9992_v56, %v10008_v21 }
0x182f   : > { %v22163_v18 = vsel %vm584_vm3, %v10016_v38, -1e+30  ;;  %v10015_v47 = vsel %vm9999_vm7, %v9991_v2, %v10007_v35 }
0x1830   : > { %v10034_v23 = vsel %vm1263_vm6, %v22163_v18, -inf  ;;  %v10023_v22 = vsel %vm583_vm5, %v10015_v47, -1e+30 }
0x1831   : > { %10035 = vmax.xlane.f32.xlu0 %v10034_v23  ;;  %v17285_v45 = vpop.f32.mrb[68].mxu0  ;;  %v10031_v55 = vsel %vm1263_vm6, %v10023_v22, -inf }
0x1832   : > { %v9994_v62 = vadd.f32 %v17285_v45, %v9973_v52  ;;  %10032 = vmax.xlane.f32.xlu1 %v10031_v55  ;;  %v9784_v54 = vpop.f32.mrb[69].mxu0 }
0x1833   : > { %v9993_v28 = vadd.f32 %v9969_v63, %v9784_v54 }
0x1834   : > { %vm10002_vm10 = vcmp.gt.f32.partialorder %v9994_v62, 0.0  ;;  %v10010_v53 = vmul.f32 0.2, %v9994_v62 }
0x1835   : > { %vm10001_vm11 = vcmp.gt.f32.partialorder %v9993_v28, 0.0  ;;  %v10009_v4 = vmul.f32 0.2, %v9993_v28 }
0x1836   : > { %v10018_v49 = vsel %vm10002_vm10, %v9994_v62, %v10010_v53 }
0x1837   : > { %v10026_v33 = vsel %vm586_vm12, %v10018_v49, -1e+30  ;;  %v10017_v42 = vsel %vm10001_vm11, %v9993_v28, %v10009_v4 }
0x1838   : > { %v10040_v12 = vsel %vm1263_vm6, %v10026_v33, -inf  ;;  %v10025_v0 = vsel %vm585_vm13, %v10017_v42, -1e+30 }
0x1839   : > { %v17292_v32 = vpop.f32.mrb[64].mxu1  ;;  %10041 = vmax.xlane.f32.xlu1 %v10040_v12  ;;  %v17299_v46 = vpop.f32.mrb[70].mxu0  ;;  %v10037_v7 = vsel %vm1263_vm6, %v10025_v0, -inf }
0x183a   : > { %v9996_v58 = vadd.f32 %v17292_v32, %v9981_v48  ;;  %v9998_v51 = vadd.f32 %v17299_v46, %v9989_v43  ;;  %v9867_v5 = vpop.f32.mrb[65].mxu1  ;;  %10038 = vmax.xlane.f32.xlu0 %v10037_v7  ;;  %v9950_v29 = vpop.f32.mrb[71].mxu0 }
0x183b   : > { %v9995_v16 = vadd.f32 %v9977_v14, %v9867_v5  ;;  %v9997_v15 = vadd.f32 %v9985_v1, %v9950_v29 }
0x183c   : > { %vm10004_vm8 = vcmp.gt.f32.partialorder %v9996_v58, 0.0  ;;  %v10012_v27 = vmul.f32 0.2, %v9996_v58  ;;  %vm10006_vm9 = vcmp.gt.f32.partialorder %v9998_v51, 0.0  ;;  %v10014_v8 = vmul.f32 0.2, %v9998_v51 }
0x183d   : > { %vm10003_vm7 = vcmp.gt.f32.partialorder %v9995_v16, 0.0  ;;  %v10011_v50 = vmul.f32 0.2, %v9995_v16  ;;  %vm10005_vm10 = vcmp.gt.f32.partialorder %v9997_v15, 0.0  ;;  %v10013_v60 = vmul.f32 0.2, %v9997_v15 }
0x183e   : > { %v10020_v56 = vsel %vm10004_vm8, %v9996_v58, %v10012_v27  ;;  %v10022_v57 = vsel %vm10006_vm9, %v9998_v51, %v10014_v8 }
0x183f   : > { %v10028_v63 = vsel %vm588_vm15, %v10020_v56, -1e+30  ;;  %v10019_v2 = vsel %vm10003_vm7, %v9995_v16, %v10011_v50  ;;  %v10021_v52 = vsel %vm10005_vm10, %v9997_v15, %v10013_v60  ;;  %v10030_v47 = vsel %vm590_vm4, %v10022_v57, -1e+30 }
0x1840   : > { %v10046_v21 = vsel %vm1263_vm6, %v10028_v63, -inf  ;;  %v10027_v35 = vsel %vm587_vm14, %v10019_v2, -1e+30  ;;  %v10029_v23 = vsel %vm589_vm0, %v10021_v52, -1e+30  ;;  %v10052_v14 = vsel %vm1263_vm6, %v10030_v47, -inf }
0x1841   : > { %10047 = vmax.xlane.f32.xlu1 %v10046_v21  ;;  %v10043_v38 = vsel %vm1263_vm6, %v10027_v35, -inf  ;;  %v10049_v45 = vsel %vm1263_vm6, %v10029_v23, -inf }
0x1842   : > { %10044 = vmax.xlane.f32.xlu0 %v10043_v38 }
0x1845   : > { %10053 = vmax.xlane.f32.xlu1 %v10052_v14 }
0x1846   : > { %10050 = vmax.xlane.f32.xlu0 %v10049_v45 }
0x18be   : > { %v10036_v55 = vpop.xlane.xlu0 %10035 }
0x18bf   : > { %v10056_v48 = vsub.f32 %v22163_v18, %v10036_v55  ;;  %v10033_v62 = vpop.xlane.xlu1 %10032 }
0x18c0   : > { %v10055_v54 = vsub.f32 %v10023_v22, %v10033_v62 }
0x18c1   : > { %v10065_v28 = vmul.f32 1.442695, %v10056_v48 }
0x18c2   : > { %v10063_v53 = vmul.f32 1.442695, %v10055_v54 }
0x18c3   : > { %19342 = vpow2.f32 %v10065_v28 }
0x18c4   : > { %19344 = vpow2.f32 %v10063_v53 }
0x18c6   : > { %v10042_v4 = vpop.xlane.xlu1 %10041 }
0x18c7   : > { %v10058_v49 = vsub.f32 %v10026_v33, %v10042_v4  ;;  %v10039_v42 = vpop.xlane.xlu0 %10038 }
0x18c8   : > { %v10057_v1 = vsub.f32 %v10025_v0, %v10039_v42 }
0x18c9   : > { %v10069_v43 = vmul.f32 1.442695, %v10058_v49  ;;  %v23563_v49 = vmov 12  }
0x18ca   : > { %v10067_v12 = vmul.f32 1.442695, %v10057_v1 }
0x18cb   : > { %19346 = vpow2.f32 %v10069_v43 }
0x18cc   : > { %19348 = vpow2.f32 %v10067_v12 }
0x18cd   : > { %v19343_v32 = vpop.eup %19342 }
0x18ce   : > { %v19345_v46 = vpop.eup %19344  ;;  %v10048_v7 = vpop.xlane.xlu1 %10047  ;;  %v22191_v18 = vsel %vm584_vm3, %v19343_v32, 0.0 }
0x18cf   : > { %v10060_v22 = vsub.f32 %v10028_v63, %v10048_v7  ;;  %v10045_v58 = vpop.xlane.xlu0 %10044  ;;  %v10090_v51 = vsel %vm1263_vm6, %v22191_v18, 0.0  ;;  %v22197_v33 = vsel %vm583_vm5, %v19345_v46, 0.0 }
0x18d0   : > { %v10059_v0 = vsub.f32 %v10027_v35, %v10045_v58  ;;  %10091 = vadd.xlane.f32.xlu1 %v10090_v51  ;;  %v10087_v5 = vsel %vm1263_vm6, %v22197_v33, 0.0 }
0x18d1   : > { %v10073_v29 = vmul.f32 1.442695, %v10060_v22  ;;  %10088 = vadd.xlane.f32.xlu0 %v10087_v5 }
0x18d2   : > { %v10071_v16 = vmul.f32 1.442695, %v10059_v0  ;;  %v10054_v15 = vpop.xlane.xlu1 %10053  ;;  %v23564_v0 = vld [vmem:[#allocation24_spill] sm:$0xff] }
0x18d3   : > { %19350 = vpow2.f32 %v10073_v29  ;;  %v10062_v27 = vsub.f32 %v10030_v47, %v10054_v15  ;;  %v10051_v8 = vpop.xlane.xlu0 %10050 }
0x18d4   : > { %19352 = vpow2.f32 %v10071_v16  ;;  %v10061_v50 = vsub.f32 %v10029_v23, %v10051_v8 }
0x18d5   : > { %v19347_v60 = vpop.eup %19346  ;;  %v10077_v56 = vmul.f32 1.442695, %v10062_v27 }
0x18d6   : > { %v19349_v57 = vpop.eup %19348  ;;  %v10075_v63 = vmul.f32 1.442695, %v10061_v50  ;;  %v22203_v2 = vsel %vm586_vm12, %v19347_v60, 0.0 }
0x18d7   : > { %19354 = vpow2.f32 %v10077_v56  ;;  %v10096_v52 = vsel %vm1263_vm6, %v22203_v2, 0.0  ;;  %v10081_v21 = vsel %vm585_vm13, %v19349_v57, 0.0 }
0x18d8   : > { %19356 = vpow2.f32 %v10075_v63  ;;  %10097 = vadd.xlane.f32.xlu1 %v10096_v52  ;;  %v10093_v35 = vsel %vm1263_vm6, %v10081_v21, 0.0 }
0x18d9   : > { %10094 = vadd.xlane.f32.xlu0 %v10093_v35 }
0x18dd   : > { %v19351_v38 = vpop.eup %19350 }
0x18de   : > { %v19353_v47 = vpop.eup %19352  ;;  %v22212_v23 = vsel %vm588_vm15, %v19351_v38, 0.0 }
0x18df   : > { %v10102_v14 = vsel %vm1263_vm6, %v22212_v23, 0.0  ;;  %v22218_v45 = vsel %vm587_vm14, %v19353_v47, 0.0 }
0x18e0   : > { %10103 = vadd.xlane.f32.xlu1 %v10102_v14  ;;  %v10099_v55 = vsel %vm1263_vm6, %v22218_v45, 0.0 }
0x18e1   : > { %v19355_v48 = vpop.eup %19354  ;;  %10100 = vadd.xlane.f32.xlu0 %v10099_v55 }
0x18e2   : > { %v19357_v62 = vpop.eup %19356  ;;  %v22224_v54 = vsel %vm590_vm4, %v19355_v48, 0.0 }
0x18e3   : > { %v10108_v28 = vsel %vm1263_vm6, %v22224_v54, 0.0  ;;  %v22230_v53 = vsel %vm589_vm0, %v19357_v62, 0.0 }
0x18e4   : > { %10109 = vadd.xlane.f32.xlu1 %v10108_v28  ;;  %v10105_v4 = vsel %vm1263_vm6, %v22230_v53, 0.0 }
0x18e5   : > { %10106 = vadd.xlane.f32.xlu0 %v10105_v4 }
0x18f5   : > { %18900 = vrot.lane.b32.xlu1 %v21741_v41, %s23562_s17 }
0x18f9   : > { %18905 = vrot.lane.b32.xlu1 %v21755_v34, %s23562_s17 }
0x18fb   : > { %18895 = vrot.lane.b32.xlu0 %v21725_v25, %s23562_s17 }
0x18fd   : > { %10807 = vperm.xlu1 %18914, %v21721_v39  }
0x18ff   : > { %18910 = vrot.lane.b32.xlu0 %v21776_v11, %s23562_s17 }
0x1901   : > { %10815 = vperm.xlu1 %18914, %v21737_v17  }
0x1903   : > { %10811 = vperm.xlu0 %18915, %v21719_v13  }
0x1905   : > { %10819 = vperm.xlu1 %18914, %v21733_v40  }
0x1907   : > { %10823 = vperm.xlu0 %18915, %v21751_v31  }
0x1909   : > { %10827 = vperm.xlu1 %18914, %v21747_v61  }
0x190b   : > { %10831 = vperm.xlu0 %18915, %v21770_v10  }
0x190d   : > { %10835 = vperm.xlu1 %18914, %v21764_v9  }
0x190f   : > { %18936 = vset.pattern.permute.xlu0 %v23563_v49 }
0x1911   : > { %18937 = vset.pattern.permute.xlu1 %v23563_v49 }
0x195d   : > { %v10092_v42 = vpop.xlane.xlu1 %10091 }
0x195e   : > { %19358 = vrcp.f32 %v10092_v42  ;;  %v10089_v1 = vpop.xlane.xlu0 %10088 }
0x195f   : > { %19360 = vrcp.f32 %v10089_v1  ;;  %v23567_v1 = vld [vmem:[#allocation15_spill] sm:$0xff] }
0x1965   : > { %v10098_v43 = vpop.xlane.xlu1 %10097 }
0x1966   : > { %19362 = vrcp.f32 %v10098_v43  ;;  %v10095_v12 = vpop.xlane.xlu0 %10094 }
0x1967   : > { %19364 = vrcp.f32 %v10095_v12 }
0x1968   : > { %v19359_v32 = vpop.eup %19358 }
0x1969   : > { %v19361_v46 = vpop.eup %19360  ;;  %v10114_v22 = vmul.f32 %v19359_v32, %v22191_v18 }
0x196a   : > { %v10112_v7 = vmul.f32 %v19361_v46, %v22197_v33 }
0x196c   : > { %17304 = vmatprep.mubr.msk.f32.mxu1 %vm1263_vm6, %v10112_v7 }
0x196d   : > { %v10104_v58 = vpop.xlane.xlu1 %10103  ;;  %17305 = vmatmul.mubr.msk.f32.vlgmr.msra.gmra.mrb[58].mxu1 %vm1263_vm6, %v10114_v22 }
0x196e   : > { %19366 = vrcp.f32 %v10104_v58  ;;  %18242 = vmatpush3.bf16.msra.mxu1 %v23561_v3  ;;  %v10101_v51 = vpop.xlane.xlu0 %10100 }
0x196f   : > { %18248 = vmatprep.subr.bf16.mxu1 %v23564_v0  ;;  %19368 = vrcp.f32 %v10101_v51 }
0x1970   : > { %v19363_v5 = vpop.eup %19362 }
0x1971   : > { %v19365_v29 = vpop.eup %19364  ;;  %v10110_v16 = vpop.xlane.xlu1 %10109  ;;  %v10118_v18 = vmul.f32 %v19363_v5, %v22203_v2 }
0x1972   : > { %19370 = vrcp.f32 %v10110_v16  ;;  %v10107_v15 = vpop.xlane.xlu0 %10106  ;;  %v10116_v33 = vmul.f32 %v19365_v29, %v10081_v21 }
0x1973   : > { %19372 = vrcp.f32 %v10107_v15 }
0x1974   : > { %17311 = vmatprep.mubr.msk.f32.mxu1 %vm1263_vm6, %v10116_v33 }
0x1975   : > { %v18901_v27 = vpop.permute.xlu1 %18900  ;;  %17312 = vmatmul.mubr.msk.f32.vlgmr.msra.gmra.mrb[60].mxu1 %vm1263_vm6, %v10118_v18 }
0x1976   : > { %v18903_v8 = vunpack.i.h.bf16 %v18901_v27  ;;  %v18902_v3 = vunpack.i.l.bf16 %v18901_v27  ;;  %18250 = vmatpush3.bf16.msra.mxu1 %v23564_v0  ;;  %v18896_v50 = vpop.permute.xlu0 %18895 }
0x1977   : > { %v18898_v60 = vunpack.i.h.bf16 %v18896_v50  ;;  %v18897_v56 = vunpack.i.l.bf16 %v18896_v50 }
0x1978   : > { %v19367_v57 = vpop.eup %19366  ;;  %v18257_v63 = vpack.c.bf16 %v18903_v8, %v18902_v3 }
0x1979   : > { %v19369_v52 = vpop.eup %19368  ;;  %v18251_v35 = vpack.c.bf16 %v18898_v60, %v18897_v56  ;;  %v18906_v21 = vpop.permute.xlu1 %18905  ;;  %v10122_v55 = vmul.f32 %v19367_v57, %v22212_v23 }
0x197a   : > { %v18908_v38 = vunpack.i.h.bf16 %v18906_v21  ;;  %v18907_v47 = vunpack.i.l.bf16 %v18906_v21  ;;  %18259 = vmatprep.subr.msk.bf16.mxu1 %vm20080_vm2, %v18257_v63  ;;  %v18911_v2 = vpop.permute.xlu0 %18910  ;;  %v10120_v14 = vmul.f32 %v19369_v52, %v22218_v45 }
0x197b   : > { %18253 = vmatprep.subr.msk.bf16.mxu0 %vm20080_vm2, %v18251_v35  ;;  %v18913_v4 = vunpack.i.h.bf16 %v18911_v2  ;;  %v18912_v49 = vunpack.i.l.bf16 %v18911_v2 }
0x197c   : > { %v19371_v48 = vpop.eup %19370  ;;  %v18263_v62 = vpack.c.bf16 %v18908_v38, %v18907_v47  ;;  %17318 = vmatprep.mubr.msk.f32.mxu0 %vm1263_vm6, %v10120_v14 }
0x197d   : > { %v19373_v28 = vpop.eup %19372  ;;  %17319 = vmatmul.mubr.msk.f32.vlgmr.msra.gmra.mrb[64].mxu0 %vm1263_vm6, %v10122_v55  ;;  %v10126_v23 = vmul.f32 %v19371_v48, %v22224_v54  ;;  %v18269_v45 = vpack.c.bf16 %v18913_v4, %v18912_v49  ;;  %v23565_v54 = vld [vmem:[#allocation12_spill] sm:$0xff]  ;;  %v10808_v43 = vpop.permute.xlu1 %10807 }
0x197e   : > { %18256 = vmatpush3.bf16.xpose.msk.msra.mxu0 %vm20080_vm2, %v18251_v35  ;;  %v10124_v42 = vmul.f32 %v19373_v28, %v22230_v53  ;;  %17332 = vmatprep.mubr.msk.f32.mxu0 %vm23460_vm1, %v23557_v26  ;;  %v23566_v53 = vld [vmem:[#allocation17_spill] sm:$0xff] }
0x197f   : > { %18265 = vmatprep.subr.msk.bf16.mxu0 %vm20080_vm2, %v18263_v62 }
0x1980   : > { %17325 = vmatprep.mubr.msk.f32.mxu1 %vm1263_vm6, %v10124_v42 }
0x1981   : > { %17326 = vmatmul.mubr.msk.f32.vlgmr.msra.gmra.mrb[62].mxu1 %vm1263_vm6, %v10126_v23  ;;  %v10816_v12 = vpop.permute.xlu1 %10815 }
0x1982   : > { %18262 = vmatpush3.bf16.xpose.msk.msra.mxu1 %vm20080_vm2, %v18257_v63  ;;  %17339 = vmatprep.mubr.msk.f32.mxu1 %vm23460_vm1, %v23557_v26  ;;  %v10812_v32 = vpop.permute.xlu0 %10811 }
0x1983   : > { %18271 = vmatprep.subr.msk.bf16.mxu1 %vm20080_vm2, %v18269_v45 }
0x1985   : > { %17333 = vmatmul.mubr.msk.f32.vlgmr.msra.gmra.mrb[72].mxu0 %vm23460_vm1, %v23557_v26  ;;  %v10820_v46 = vpop.permute.xlu1 %10819 }
0x1986   : > { %18268 = vmatpush3.bf16.xpose.msk.msra.mxu0 %vm20080_vm2, %v18263_v62  ;;  %17346 = vmatprep.mubr.msk.f32.mxu0 %vm23460_vm1, %v23557_v26  ;;  %v10824_v50 = vpop.permute.xlu0 %10823 }
0x1987   : > { %18284 = vmatprep.subr.bf16.mxu0 %v23565_v54 }
0x1989   : > { %17340 = vmatmul.mubr.msk.f32.vlgmr.msra.gmra.mrb[66].mxu1 %vm23460_vm1, %v23557_v26  ;;  %v10828_v18 = vpop.permute.xlu1 %10827 }
0x198a   : > { %18274 = vmatpush3.bf16.xpose.msk.msra.mxu1 %vm20080_vm2, %v18269_v45  ;;  %17353 = vmatprep.mubr.msk.f32.mxu1 %vm23460_vm1, %v23557_v26  ;;  %v10832_v42 = vpop.permute.xlu0 %10831 }
0x198b   : > { %18276 = vmatprep.subr.bf16.mxu1 %v23566_v53 }
0x198d   : > { %17347 = vmatmul.mubr.msk.f32.vlgmr.msra.gmra.mrb[74].mxu0 %vm23460_vm1, %v23557_v26  ;;  %v10836_v62 = vpop.permute.xlu1 %10835 }
0x198e   : > { %18286 = vmatpush3.bf16.msra.mxu0 %v23565_v54 }
0x1991   : > { %17354 = vmatmul.mubr.msk.f32.vlgmr.msra.gmra.mrb[68].mxu1 %vm23460_vm1, %v23557_v26 }
0x1992   : > { %18278 = vmatpush3.bf16.msra.mxu1 %v23566_v53 }
0x1993   : > { %18280 = vmatprep.subr.bf16.mxu1 %v23567_v1 }
0x1a58   : > { %v17334_v7 = vpop.f32.mrb[72].mxu0 }
0x1a59   : > { %v10839_v22 = vadd.f32 %v17334_v7, %v10812_v32  ;;  %v10548_v58 = vpop.f32.mrb[73].mxu0 }
0x1a5a   : > { %v10838_v51 = vadd.f32 %v10808_v43, %v10548_v58 }
0x1a5b   : > { %vm10847_vm11 = vcmp.gt.f32.partialorder %v10839_v22, 0.0  ;;  %v10855_v0 = vmul.f32 0.2, %v10839_v22 }
0x1a5c   : > { %vm10846_vm8 = vcmp.gt.f32.partialorder %v10838_v51, 0.0  ;;  %v10854_v5 = vmul.f32 0.2, %v10838_v51  ;;  %v17341_v29 = vpop.f32.mrb[66].mxu1 }
0x1a5d   : > { %v10841_v16 = vadd.f32 %v17341_v29, %v10820_v46  ;;  %v10631_v15 = vpop.f32.mrb[67].mxu1  ;;  %v10863_v33 = vsel %vm10847_vm11, %v10839_v22, %v10855_v0 }
0x1a5e   : > { %v10840_v27 = vadd.f32 %v10816_v12, %v10631_v15  ;;  %v10871_v8 = vsel %vm584_vm3, %v10863_v33, -1e+30  ;;  %v10862_v3 = vsel %vm10846_vm8, %v10838_v51, %v10854_v5 }
0x1a5f   : > { %vm10849_vm9 = vcmp.gt.f32.partialorder %v10841_v16, 0.0  ;;  %v10857_v60 = vmul.f32 0.2, %v10841_v16  ;;  %v10881_v56 = vsel %vm1263_vm6, %v10871_v8, -inf  ;;  %v10870_v57 = vsel %vm583_vm5, %v10862_v3, -1e+30 }
0x1a60   : > { %vm10848_vm7 = vcmp.gt.f32.partialorder %v10840_v27, 0.0  ;;  %v10856_v63 = vmul.f32 0.2, %v10840_v27  ;;  %10882 = vmax.xlane.f32.xlu1 %v10881_v56  ;;  %v17348_v52 = vpop.f32.mrb[74].mxu0  ;;  %v10878_v35 = vsel %vm1263_vm6, %v10870_v57, -inf }
0x1a61   : > { %v10843_v21 = vadd.f32 %v17348_v52, %v10828_v18  ;;  %10879 = vmax.xlane.f32.xlu0 %v10878_v35  ;;  %v10714_v38 = vpop.f32.mrb[75].mxu0  ;;  %v10865_v14 = vsel %vm10849_vm9, %v10841_v16, %v10857_v60 }
0x1a62   : > { %v10842_v47 = vadd.f32 %v10824_v50, %v10714_v38  ;;  %v10864_v2 = vsel %vm10848_vm7, %v10840_v27, %v10856_v63  ;;  %v10873_v54 = vsel %vm586_vm12, %v10865_v14, -1e+30 }
0x1a63   : > { %vm10851_vm10 = vcmp.gt.f32.partialorder %v10843_v21, 0.0  ;;  %v10859_v55 = vmul.f32 0.2, %v10843_v21  ;;  %v10872_v48 = vsel %vm585_vm13, %v10864_v2, -1e+30  ;;  %v10887_v22 = vsel %vm1263_vm6, %v10873_v54, -inf }
0x1a64   : > { %vm10850_vm11 = vcmp.gt.f32.partialorder %v10842_v47, 0.0  ;;  %v10858_v28 = vmul.f32 0.2, %v10842_v47  ;;  %v17355_v4 = vpop.f32.mrb[68].mxu1  ;;  %v10884_v49 = vsel %vm1263_vm6, %v10872_v48, -inf }
0x1a65   : > { %v10845_v23 = vadd.f32 %v17355_v4, %v10836_v62  ;;  %v10797_v45 = vpop.f32.mrb[69].mxu1  ;;  %10885 = vmax.xlane.f32.xlu0 %v10884_v49  ;;  %v10867_v12 = vsel %vm10851_vm10, %v10843_v21, %v10859_v55 }
0x1a66   : > { %v10844_v53 = vadd.f32 %v10832_v42, %v10797_v45  ;;  %v10866_v43 = vsel %vm10850_vm11, %v10842_v47, %v10858_v28  ;;  %v10875_v51 = vsel %vm588_vm15, %v10867_v12, -1e+30 }
0x1a67   : > { %vm10853_vm8 = vcmp.gt.f32.partialorder %v10845_v23, 0.0  ;;  %v10861_v32 = vmul.f32 0.2, %v10845_v23  ;;  %v10874_v46 = vsel %vm587_vm14, %v10866_v43, -1e+30  ;;  %v10893_v16 = vsel %vm1263_vm6, %v10875_v51, -inf }
0x1a68   : > { %vm10852_vm9 = vcmp.gt.f32.partialorder %v10844_v53, 0.0  ;;  %v10860_v7 = vmul.f32 0.2, %v10844_v53  ;;  %v10890_v58 = vsel %vm1263_vm6, %v10874_v46, -inf }
0x1a69   : > { %10888 = vmax.xlane.f32.xlu0 %v10887_v22  ;;  %10891 = vmax.xlane.f32.xlu1 %v10890_v58  ;;  %v10869_v5 = vsel %vm10853_vm8, %v10845_v23, %v10861_v32 }
0x1a6a   : > { %v10868_v0 = vsel %vm10852_vm9, %v10844_v53, %v10860_v7  ;;  %v10877_v33 = vsel %vm590_vm4, %v10869_v5, -1e+30 }
0x1a6b   : > { %v10876_v29 = vsel %vm589_vm0, %v10868_v0, -1e+30  ;;  %v10899_v18 = vsel %vm1263_vm6, %v10877_v33, -inf }
0x1a6c   : > { %v10896_v15 = vsel %vm1263_vm6, %v10876_v29, -inf }
0x1a6d   : > { %10894 = vmax.xlane.f32.xlu0 %v10893_v16  ;;  %10897 = vmax.xlane.f32.xlu1 %v10896_v15 }
0x1a71   : > { %10900 = vmax.xlane.f32.xlu0 %v10899_v18 }
0x1a7e   : > { %18917 = vrot.lane.b32.xlu1 %v21725_v25, %s23568_s21 }
0x1aed   : > { %v10883_v27 = vpop.xlane.xlu1 %10882 }
0x1aee   : > { %v10903_v3 = vsub.f32 %v10871_v8, %v10883_v27  ;;  %v10880_v50 = vpop.xlane.xlu0 %10879 }
0x1aef   : > { %v10902_v60 = vsub.f32 %v10870_v57, %v10880_v50 }
0x1af0   : > { %v10912_v56 = vmul.f32 1.442695, %v10903_v3 }
0x1af1   : > { %v10910_v63 = vmul.f32 1.442695, %v10902_v60 }
0x1af2   : > { %19374 = vpow2.f32 %v10912_v56  ;;  %v10886_v52 = vpop.xlane.xlu0 %10885 }
0x1af3   : > { %19376 = vpow2.f32 %v10910_v63  ;;  %v10904_v35 = vsub.f32 %v10872_v48, %v10886_v52 }
0x1af5   : > { %v10914_v21 = vmul.f32 1.442695, %v10904_v35 }
0x1af6   : > { %v10889_v38 = vpop.xlane.xlu0 %10888  ;;  %v10892_v47 = vpop.xlane.xlu1 %10891 }
0x1af7   : > { %19378 = vpow2.f32 %v10914_v21  ;;  %v10905_v2 = vsub.f32 %v10873_v54, %v10889_v38  ;;  %v10906_v14 = vsub.f32 %v10874_v46, %v10892_v47 }
0x1af9   : > { %v10916_v55 = vmul.f32 1.442695, %v10905_v2  ;;  %v10918_v62 = vmul.f32 1.442695, %v10906_v14  ;;  %v23569_v2 = vmov 13  }
0x1afa   : > { %v10895_v28 = vpop.xlane.xlu0 %10894  ;;  %v10898_v4 = vpop.xlane.xlu1 %10897 }
0x1afb   : > { %19380 = vpow2.f32 %v10916_v55  ;;  %v10907_v8 = vsub.f32 %v10875_v51, %v10895_v28  ;;  %v10908_v49 = vsub.f32 %v10876_v29, %v10898_v4 }
0x1afc   : > { %v19375_v57 = vpop.eup %19374  ;;  %19382 = vpow2.f32 %v10918_v62 }
0x1afd   : > { %v19377_v42 = vpop.eup %19376  ;;  %v10920_v23 = vmul.f32 1.442695, %v10907_v8  ;;  %v10922_v45 = vmul.f32 1.442695, %v10908_v49  ;;  %v22335_v48 = vsel %vm584_vm3, %v19375_v57, 0.0 }
0x1afe   : > { %v10901_v53 = vpop.xlane.xlu0 %10900  ;;  %v18918_v43 = vpop.permute.xlu1 %18917  ;;  %v10937_v54 = vsel %vm1263_vm6, %v22335_v48, 0.0  ;;  %v22341_v12 = vsel %vm583_vm5, %v19377_v42, 0.0 }
0x1aff   : > { %19384 = vpow2.f32 %v10920_v23  ;;  %v10909_v32 = vsub.f32 %v10877_v33, %v10901_v53  ;;  %v18920_v46 = vunpack.i.h.bf16 %v18918_v43  ;;  %v18919_v7 = vunpack.i.l.bf16 %v18918_v43  ;;  %10938 = vadd.xlane.f32.xlu0 %v10937_v54 }
0x1b00   : > { %19386 = vpow2.f32 %v10922_v45  ;;  %v10934_v22 = vsel %vm1263_vm6, %v22341_v12, 0.0 }
0x1b01   : > { %v19379_v58 = vpop.eup %19378  ;;  %v10924_v51 = vmul.f32 1.442695, %v10909_v32  ;;  %v22345_v0 = vpack.c.bf16 %v18920_v46, %v18919_v7  ;;  %10935 = vadd.xlane.f32.xlu1 %v10934_v22  ;;  %v23570_v32 = vld [vmem:[#allocation13_spill] sm:$0xff] }
0x1b02   : > { %v10928_v5 = vsel %vm585_vm13, %v19379_v58, 0.0 }
0x1b03   : > { %19388 = vpow2.f32 %v10924_v51  ;;  %18293 = vmatprep.subr.msk.bf16.mxu0 %vm20080_vm2, %v22345_v0  ;;  %v10940_v29 = vsel %vm1263_vm6, %v10928_v5, 0.0 }
0x1b05   : > { %v19381_v16 = vpop.eup %19380  ;;  %10941 = vadd.xlane.f32.xlu1 %v10940_v29 }
0x1b06   : > { %v19383_v15 = vpop.eup %19382  ;;  %v10929_v33 = vsel %vm586_vm12, %v19381_v16, 0.0 }
0x1b07   : > { %v10943_v18 = vsel %vm1263_vm6, %v10929_v33, 0.0  ;;  %v22358_v27 = vsel %vm587_vm14, %v19383_v15, 0.0 }
0x1b08   : > { %10944 = vadd.xlane.f32.xlu0 %v10943_v18  ;;  %v10946_v3 = vsel %vm1263_vm6, %v22358_v27, 0.0 }
0x1b09   : > { %v19385_v50 = vpop.eup %19384  ;;  %10947 = vadd.xlane.f32.xlu1 %v10946_v3 }
0x1b0a   : > { %v19387_v60 = vpop.eup %19386  ;;  %v22364_v56 = vsel %vm588_vm15, %v19385_v50, 0.0 }
0x1b0b   : > { %v10949_v63 = vsel %vm1263_vm6, %v22364_v56, 0.0  ;;  %v22370_v52 = vsel %vm589_vm0, %v19387_v60, 0.0 }
0x1b0c   : > { %10950 = vadd.xlane.f32.xlu0 %v10949_v63  ;;  %v10952_v35 = vsel %vm1263_vm6, %v22370_v52, 0.0 }
0x1b0d   : > { %v19389_v21 = vpop.eup %19388  ;;  %10953 = vadd.xlane.f32.xlu1 %v10952_v35  ;;  %v23571_v35 = vld [vmem:[#allocation14_spill] sm:$0xff] }
0x1b0e   : > { %v22376_v38 = vsel %vm590_vm4, %v19389_v21, 0.0  ;;  %v23572_v21 = vld [vmem:[#allocation22_spill] sm:$0xff] }
0x1b0f   : > { %v10955_v47 = vsel %vm1263_vm6, %v22376_v38, 0.0 }
0x1b10   : > { %10956 = vadd.xlane.f32.xlu0 %v10955_v47 }
0x1b1e   : > { %18927 = vrot.lane.b32.xlu1 %v21741_v41, %s23568_s21 }
0x1b22   : > { %18932 = vrot.lane.b32.xlu1 %v21776_v11, %s23568_s21 }
0x1b26   : > { %11674 = vperm.xlu1 %18937, %v21747_v61   ;;  %18922 = vrot.lane.b32.xlu0 %v21755_v34, %s23568_s21 }
0x1b2a   : > { %11654 = vperm.xlu1 %18937, %v21721_v39   ;;  %11670 = vperm.xlu0 %18936, %v21751_v31  }
0x1b2e   : > { %11662 = vperm.xlu1 %18937, %v21737_v17   ;;  %11658 = vperm.xlu0 %18936, %v21719_v13  }
0x1b32   : > { %11678 = vperm.xlu1 %18937, %v21770_v10   ;;  %11666 = vperm.xlu0 %18936, %v21733_v40  }
0x1b36   : > { %11682 = vperm.xlu0 %18936, %v21764_v9   ;;  %18958 = vset.pattern.permute.xlu1 %v23569_v2 }
0x1b3a   : > { %18959 = vset.pattern.permute.xlu0 %v23569_v2 }
0x1b8c   : > { %v10939_v14 = vpop.xlane.xlu0 %10938 }
0x1b8d   : > { %19390 = vrcp.f32 %v10939_v14 }
0x1b8e   : > { %v10936_v55 = vpop.xlane.xlu1 %10935 }
0x1b8f   : > { %19392 = vrcp.f32 %v10936_v55 }
0x1b92   : > { %v10942_v62 = vpop.xlane.xlu1 %10941 }
0x1b93   : > { %19394 = vrcp.f32 %v10942_v62 }
0x1b95   : > { %v10945_v28 = vpop.xlane.xlu0 %10944 }
0x1b96   : > { %19396 = vrcp.f32 %v10945_v28  ;;  %v10948_v4 = vpop.xlane.xlu1 %10947 }
0x1b97   : > { %19398 = vrcp.f32 %v10948_v4  ;;  %v19391_v8 = vpop.eup %19390 }
0x1b98   : > { %v10961_v45 = vmul.f32 %v19391_v8, %v22335_v48 }
0x1b99   : > { %v19393_v49 = vpop.eup %19392  ;;  %v10951_v57 = vpop.xlane.xlu0 %10950 }
0x1b9a   : > { %19400 = vrcp.f32 %v10951_v57  ;;  %v10954_v42 = vpop.xlane.xlu1 %10953  ;;  %v10959_v23 = vmul.f32 %v19393_v49, %v22341_v12 }
0x1b9b   : > { %19402 = vrcp.f32 %v10954_v42 }
0x1b9c   : > { %17360 = vmatprep.mubr.msk.f32.mxu1 %vm1263_vm6, %v10959_v23 }
0x1b9d   : > { %v19395_v53 = vpop.eup %19394  ;;  %17361 = vmatmul.mubr.msk.f32.vlgmr.msra.gmra.mrb[58].mxu1 %vm1263_vm6, %v10961_v45  ;;  %v10957_v43 = vpop.xlane.xlu0 %10956 }
0x1b9e   : > { %18282 = vmatpush3.bf16.msra.mxu1 %v23567_v1  ;;  %19404 = vrcp.f32 %v10957_v43  ;;  %v10963_v54 = vmul.f32 %v19395_v53, %v10928_v5  ;;  %v18928_v7 = vpop.permute.xlu1 %18927 }
0x1b9f   : > { %18288 = vmatprep.subr.bf16.mxu1 %v23570_v32  ;;  %v18930_v16 = vunpack.i.h.bf16 %v18928_v7  ;;  %v18929_v15 = vunpack.i.l.bf16 %v18928_v7 }
0x1ba0   : > { %v19397_v46 = vpop.eup %19396  ;;  %17367 = vmatprep.mubr.msk.f32.mxu1 %vm1263_vm6, %v10963_v54 }
0x1ba1   : > { %v19399_v12 = vpop.eup %19398  ;;  %v18923_v22 = vpop.permute.xlu0 %18922  ;;  %v10965_v58 = vmul.f32 %v19397_v46, %v10929_v33  ;;  %v18297_v50 = vpack.c.bf16 %v18930_v16, %v18929_v15 }
0x1ba2   : > { %v18925_v48 = vunpack.i.h.bf16 %v18923_v22  ;;  %v18924_v51 = vunpack.i.l.bf16 %v18923_v22  ;;  %v10967_v29 = vmul.f32 %v19399_v12, %v22358_v27  ;;  %v18933_v60 = vpop.permute.xlu1 %18932 }
0x1ba3   : > { %17368 = vmatmul.mubr.msk.f32.vlgmr.msra.gmra.mrb[60].mxu1 %vm1263_vm6, %v10965_v58  ;;  %v18935_v63 = vunpack.i.h.bf16 %v18933_v60 }
0x1ba4   : > { %v19401_v1 = vpop.eup %19400  ;;  %v18303_v18 = vpack.c.bf16 %v18925_v48, %v18924_v51  ;;  %17374 = vmatprep.mubr.msk.f32.mxu0 %vm1263_vm6, %v10967_v29  ;;  %18290 = vmatpush3.bf16.msra.mxu1 %v23570_v32 }
0x1ba5   : > { %v19403_v5 = vpop.eup %19402  ;;  %v10969_v3 = vmul.f32 %v19401_v1, %v22364_v56 }
0x1ba6   : > { %18305 = vmatprep.subr.msk.bf16.mxu1 %vm20080_vm2, %v18303_v18  ;;  %v10971_v33 = vmul.f32 %v19403_v5, %v22370_v52  ;;  %v18934_v52 = vunpack.i.l.bf16 %v18933_v60  ;;  %v11675_v47 = vpop.permute.xlu1 %11674 }
0x1ba7   : > { %17375 = vmatmul.mubr.msk.f32.vlgmr.msra.gmra.mrb[64].mxu0 %vm1263_vm6, %v10969_v3 }
0x1ba8   : > { %v19405_v27 = vpop.eup %19404  ;;  %17381 = vmatprep.mubr.msk.f32.mxu1 %vm1263_vm6, %v10971_v33  ;;  %18296 = vmatpush3.bf16.xpose.msk.msra.mxu0 %vm20080_vm2, %v22345_v0  ;;  %v18309_v0 = vpack.c.bf16 %v18935_v63, %v18934_v52 }
0x1ba9   : > { %18299 = vmatprep.subr.msk.bf16.mxu0 %vm20080_vm2, %v18297_v50  ;;  %v10973_v56 = vmul.f32 %v19405_v27, %v22376_v38  ;;  %17388 = vmatprep.mubr.msk.f32.mxu0 %vm23460_vm1, %v23557_v26  ;;  %v23573_v38 = vld [vmem:[#allocation16_spill] sm:$0xff]  ;;  %v11671_v2 = vpop.permute.xlu0 %11670 }
0x1baa   : > { %v11655_v14 = vpop.permute.xlu1 %11654 }
0x1bab   : > { %17382 = vmatmul.mubr.msk.f32.vlgmr.msra.gmra.mrb[62].mxu1 %vm1263_vm6, %v10973_v56 }
0x1bac   : > { %17402 = vmatprep.mubr.msk.f32.mxu1 %vm23460_vm1, %v23557_v26 }
0x1bad   : > { %18308 = vmatpush3.bf16.xpose.msk.msra.mxu1 %vm20080_vm2, %v18303_v18  ;;  %v11659_v62 = vpop.permute.xlu0 %11658 }
0x1bae   : > { %18316 = vmatprep.subr.bf16.mxu1 %v23571_v35  ;;  %v11663_v46 = vpop.permute.xlu1 %11662 }
0x1baf   : > { %17389 = vmatmul.mubr.msk.f32.vlgmr.msra.gmra.mrb[76].mxu0 %vm23460_vm1, %v23557_v26 }
0x1bb0   : > { %18302 = vmatpush3.bf16.xpose.msk.msra.mxu0 %vm20080_vm2, %v18297_v50  ;;  %17395 = vmatprep.mubr.msk.f32.mxu0 %vm23460_vm1, %v23557_v26 }
0x1bb1   : > { %18311 = vmatprep.subr.msk.bf16.mxu0 %vm20080_vm2, %v18309_v0  ;;  %v11667_v43 = vpop.permute.xlu0 %11666 }
0x1bb4   : > { %17403 = vmatmul.mubr.msk.f32.vlgmr.msra.gmra.mrb[70].mxu1 %vm23460_vm1, %v23557_v26 }
0x1bb5   : > { %18318 = vmatpush3.bf16.msra.mxu1 %v23571_v35  ;;  %v11683_v63 = vpop.permute.xlu0 %11682 }
0x1bb6   : > { %18320 = vmatprep.subr.bf16.mxu1 %v23572_v21 }
0x1bb7   : > { %17396 = vmatmul.mubr.msk.f32.vlgmr.msra.gmra.mrb[78].mxu0 %vm23460_vm1, %v23557_v26 }
0x1bb8   : > { %18314 = vmatpush3.bf16.xpose.msk.msra.mxu0 %vm20080_vm2, %v18309_v0  ;;  %17409 = vmatprep.mubr.msk.f32.mxu0 %vm23460_vm1, %v23557_v26  ;;  %v11679_v0 = vpop.permute.xlu1 %11678 }
0x1bb9   : > { %18324 = vmatprep.subr.bf16.mxu0 %v23573_v38 }
0x1bbf   : > { %17410 = vmatmul.mubr.msk.f32.vlgmr.msra.gmra.mrb[80].mxu0 %vm23460_vm1, %v23557_v26 }
0x1bc0   : > { %18326 = vmatpush3.bf16.msra.mxu0 %v23573_v38 }
0x1c82   : > { %v17390_v55 = vpop.f32.mrb[76].mxu0 }
0x1c83   : > { %v11395_v28 = vpop.f32.mrb[77].mxu0  ;;  %v11686_v4 = vadd.f32 %v17390_v55, %v11659_v62 }
0x1c84   : > { %v11685_v8 = vadd.f32 %v11655_v14, %v11395_v28 }
0x1c85   : > { %v11702_v57 = vmul.f32 0.2, %v11686_v4  ;;  %vm11694_vm7 = vcmp.gt.f32.partialorder %v11686_v4, 0.0 }
0x1c86   : > { %v11701_v42 = vmul.f32 0.2, %v11685_v8  ;;  %vm11693_vm10 = vcmp.gt.f32.partialorder %v11685_v8, 0.0 }
0x1c87   : > { %v17404_v49 = vpop.f32.mrb[70].mxu1  ;;  %v11710_v29 = vsel %vm11694_vm7, %v11686_v4, %v11702_v57 }
0x1c88   : > { %v11690_v23 = vadd.f32 %v17404_v49, %v11675_v47  ;;  %v11561_v45 = vpop.f32.mrb[71].mxu1  ;;  %v11709_v51 = vsel %vm11693_vm10, %v11685_v8, %v11701_v42  ;;  %v11718_v27 = vsel %vm584_vm3, %v11710_v29, -1e+30  ;;  %vm23577_vm10 = vcmask 7168  }
0x1c89   : > { %v11689_v53 = vadd.f32 %v11671_v2, %v11561_v45  ;;  %v11717_v50 = vsel %vm583_vm5, %v11709_v51, -1e+30  ;;  %v11728_v2 = vsel %vm1263_vm6, %v11718_v27, -inf }
0x1c8a   : > { %vm11698_vm11 = vcmp.gt.f32.partialorder %v11690_v23, 0.0  ;;  %v11706_v54 = vmul.f32 0.2, %v11690_v23  ;;  %v17397_v32 = vpop.f32.mrb[78].mxu0  ;;  %v11725_v35 = vsel %vm1263_vm6, %v11717_v50, -inf }
0x1c8b   : > { %vm11697_vm8 = vcmp.gt.f32.partialorder %v11689_v53, 0.0  ;;  %v11705_v7 = vmul.f32 0.2, %v11689_v53  ;;  %v11688_v12 = vadd.f32 %v17397_v32, %v11667_v43  ;;  %v11478_v22 = vpop.f32.mrb[79].mxu0 }
0x1c8c   : > { %v11687_v58 = vadd.f32 %v11663_v46, %v11478_v22  ;;  %v11714_v48 = vsel %vm11698_vm11, %v11690_v23, %v11706_v54  ;;  %vm23578_vm11 = vmmov %vm23577_vm10 }
0x1c8d   : > { %vm11696_vm9 = vcmp.gt.f32.partialorder %v11688_v12, 0.0  ;;  %v11704_v16 = vmul.f32 0.2, %v11688_v12  ;;  %v11722_v15 = vsel %vm588_vm15, %v11714_v48, -1e+30  ;;  %v11713_v1 = vsel %vm11697_vm8, %v11689_v53, %v11705_v7  ;;  %vm23579_vm8 = vmmov %vm23577_vm10 }
0x1c8e   : > { %vm11695_vm1 = vcmp.gt.f32.partialorder %v11687_v58, 0.0  ;;  %v11703_v18 = vmul.f32 0.2, %v11687_v58  ;;  %v11740_v5 = vsel %vm1263_vm6, %v11722_v15, -inf  ;;  %v11721_v3 = vsel %vm587_vm14, %v11713_v1, -1e+30 }
0x1c8f   : > { %11741 = vmax.xlane.f32.xlu0 %v11740_v5  ;;  %v11737_v33 = vsel %vm1263_vm6, %v11721_v3, -inf  ;;  %v11712_v56 = vsel %vm11696_vm9, %v11688_v12, %v11704_v16  ;;  %vm23580_vm9 = vmmov %vm23579_vm8 }
0x1c90   : > { %11738 = vmax.xlane.f32.xlu1 %v11737_v33  ;;  %v11711_v60 = vsel %vm11695_vm1, %v11687_v58, %v11703_v18  ;;  %v11720_v62 = vsel %vm586_vm12, %v11712_v56, -1e+30 }
0x1c91   : > { %v11719_v14 = vsel %vm585_vm13, %v11711_v60, -1e+30  ;;  %v11734_v49 = vsel %vm1263_vm6, %v11720_v62, -inf }
0x1c92   : > { %v17411_v52 = vpop.f32.mrb[80].mxu0  ;;  %v11731_v8 = vsel %vm1263_vm6, %v11719_v14, -inf }
0x1c93   : > { %v11692_v38 = vadd.f32 %v17411_v52, %v11683_v63  ;;  %11726 = vmax.xlane.f32.xlu0 %v11725_v35  ;;  %v11644_v47 = vpop.f32.mrb[81].mxu0 }
0x1c94   : > { %v11691_v55 = vadd.f32 %v11679_v0, %v11644_v47  ;;  %11729 = vmax.xlane.f32.xlu1 %v11728_v2 }
0x1c95   : > { %vm11700_vm1 = vcmp.gt.f32.partialorder %v11692_v38, 0.0  ;;  %v11708_v28 = vmul.f32 0.2, %v11692_v38 }
0x1c96   : > { %vm11699_vm7 = vcmp.gt.f32.partialorder %v11691_v55, 0.0  ;;  %v11707_v4 = vmul.f32 0.2, %v11691_v55 }
0x1c97   : > { %11732 = vmax.xlane.f32.xlu0 %v11731_v8  ;;  %v11716_v57 = vsel %vm11700_vm1, %v11692_v38, %v11708_v28  ;;  %vm23582_vm1 = vmmov %vm23579_vm8 }
0x1c98   : > { %11735 = vmax.xlane.f32.xlu1 %v11734_v49  ;;  %v11715_v42 = vsel %vm11699_vm7, %v11691_v55, %v11707_v4  ;;  %v11724_v23 = vsel %vm590_vm4, %v11716_v57, -1e+30  ;;  %vm23583_vm7 = vmmov %vm23582_vm1 }
0x1c99   : > { %v11723_v45 = vsel %vm589_vm0, %v11715_v42, -1e+30  ;;  %v11746_v43 = vsel %vm1263_vm6, %v11724_v23, -inf }
0x1c9a   : > { %v11743_v53 = vsel %vm1263_vm6, %v11723_v45, -inf }
0x1c9b   : > { %11744 = vmax.xlane.f32.xlu0 %v11743_v53 }
0x1c9c   : > { %11747 = vmax.xlane.f32.xlu1 %v11746_v43 }
0x1d1c   : > { %v11742_v54 = vpop.xlane.xlu0 %11741 }
0x1d1d   : > { %v11754_v32 = vsub.f32 %v11722_v15, %v11742_v54  ;;  %v11739_v46 = vpop.xlane.xlu1 %11738 }
0x1d1e   : > { %v11753_v7 = vsub.f32 %v11721_v3, %v11739_v46 }
0x1d1f   : > { %v11767_v12 = vmul.f32 1.442695, %v11754_v32 }
0x1d20   : > { %v11765_v22 = vmul.f32 1.442695, %v11753_v7  ;;  %v11727_v58 = vpop.xlane.xlu0 %11726 }
0x1d21   : > { %v11749_v48 = vsub.f32 %v11717_v50, %v11727_v58  ;;  %v11730_v51 = vpop.xlane.xlu1 %11729  ;;  %19406 = vpow2.f32 %v11767_v12 }
0x1d22   : > { %v11750_v29 = vsub.f32 %v11718_v27, %v11730_v51  ;;  %19408 = vpow2.f32 %v11765_v22 }
0x1d23   : > { %v11757_v16 = vmul.f32 1.442695, %v11749_v48  ;;  %v23575_v48 = vmov 14  }
0x1d24   : > { %v11759_v1 = vmul.f32 1.442695, %v11750_v29  ;;  %v11733_v18 = vpop.xlane.xlu0 %11732 }
0x1d25   : > { %19410 = vpow2.f32 %v11757_v16  ;;  %v11751_v5 = vsub.f32 %v11719_v14, %v11733_v18  ;;  %v11736_v33 = vpop.xlane.xlu1 %11735 }
0x1d26   : > { %19412 = vpow2.f32 %v11759_v1  ;;  %v11752_v60 = vsub.f32 %v11720_v62, %v11736_v33 }
0x1d27   : > { %v11761_v56 = vmul.f32 1.442695, %v11751_v5 }
0x1d28   : > { %v11763_v15 = vmul.f32 1.442695, %v11752_v60  ;;  %v11745_v63 = vpop.xlane.xlu0 %11744 }
0x1d29   : > { %19414 = vpow2.f32 %v11761_v56  ;;  %v11755_v3 = vsub.f32 %v11723_v45, %v11745_v63  ;;  %v11748_v52 = vpop.xlane.xlu1 %11747 }
0x1d2a   : > { %19416 = vpow2.f32 %v11763_v15  ;;  %v11756_v50 = vsub.f32 %v11724_v23, %v11748_v52 }
0x1d2b   : > { %v11769_v35 = vmul.f32 1.442695, %v11755_v3  ;;  %v19407_v0 = vpop.eup %19406 }
0x1d2c   : > { %v11771_v27 = vmul.f32 1.442695, %v11756_v50  ;;  %v19409_v38 = vpop.eup %19408  ;;  %v22485_v49 = vsel %vm588_vm15, %v19407_v0, 0.0  ;;  %v23576_v0 = vld [vmem:[#allocation25_spill] sm:$0xff] }
0x1d2d   : > { %19418 = vpow2.f32 %v11769_v35  ;;  %v22481_v4 = vsel %vm587_vm14, %v19409_v38, 0.0  ;;  %v11796_v23 = vsel %vm1263_vm6, %v22485_v49, 0.0 }
0x1d2e   : > { %19420 = vpow2.f32 %v11771_v27  ;;  %v11793_v42 = vsel %vm1263_vm6, %v22481_v4, 0.0 }
0x1d2f   : > { %v19411_v47 = vpop.eup %19410 }
0x1d30   : > { %v19413_v2 = vpop.eup %19412  ;;  %v11773_v14 = vsel %vm583_vm5, %v19411_v47, 0.0 }
0x1d31   : > { %v11781_v55 = vsel %vm1263_vm6, %v11773_v14, 0.0  ;;  %v11774_v62 = vsel %vm584_vm3, %v19413_v2, 0.0 }
0x1d32   : > { %11782 = vadd.xlane.f32.xlu0 %v11781_v55  ;;  %v11784_v28 = vsel %vm1263_vm6, %v11774_v62, 0.0 }
0x1d33   : > { %v19415_v8 = vpop.eup %19414  ;;  %11785 = vadd.xlane.f32.xlu1 %v11784_v28 }
0x1d34   : > { %v19417_v57 = vpop.eup %19416  ;;  %v22493_v45 = vsel %vm585_vm13, %v19415_v8, 0.0 }
0x1d35   : > { %v22497_v43 = vsel %vm586_vm12, %v19417_v57, 0.0  ;;  %v11787_v32 = vsel %vm1263_vm6, %v22493_v45, 0.0 }
0x1d36   : > { %11794 = vadd.xlane.f32.xlu0 %v11793_v42  ;;  %v11790_v46 = vsel %vm1263_vm6, %v22497_v43, 0.0 }
0x1d37   : > { %v19419_v53 = vpop.eup %19418  ;;  %11797 = vadd.xlane.f32.xlu1 %v11796_v23 }
0x1d38   : > { %v19421_v54 = vpop.eup %19420  ;;  %v22505_v7 = vsel %vm589_vm0, %v19419_v53, 0.0 }
0x1d39   : > { %v22509_v12 = vsel %vm590_vm4, %v19421_v54, 0.0  ;;  %v11799_v22 = vsel %vm1263_vm6, %v22505_v7, 0.0 }
0x1d3a   : > { %11788 = vadd.xlane.f32.xlu0 %v11787_v32  ;;  %v11802_v58 = vsel %vm1263_vm6, %v22509_v12, 0.0 }
0x1d3b   : > { %11791 = vadd.xlane.f32.xlu1 %v11790_v46 }
0x1d3e   : > { %11800 = vadd.xlane.f32.xlu0 %v11799_v22 }
0x1d3f   : > { %11803 = vadd.xlane.f32.xlu1 %v11802_v58 }
0x1d50   : > { %18944 = vrot.lane.b32.xlu1 %v21755_v34, %s23574_s30 }
0x1d54   : > { %18949 = vrot.lane.b32.xlu1 %v21741_v41, %s23574_s30  ;;  %18939 = vrot.lane.b32.xlu0 %v21725_v25, %s23574_s30 }
0x1d58   : > { %12517 = vperm.xlu1 %18958, %v21751_v31   ;;  %18954 = vrot.lane.b32.xlu0 %v21776_v11, %s23574_s30 }
0x1d5c   : > { %12501 = vperm.xlu1 %18958, %v21721_v39   ;;  %12521 = vperm.xlu0 %18959, %v21747_v61  }
0x1d60   : > { %12505 = vperm.xlu1 %18958, %v21719_v13   ;;  %12509 = vperm.xlu0 %18959, %v21737_v17  }
0x1d64   : > { %12513 = vperm.xlu1 %18958, %v21733_v40   ;;  %12525 = vperm.xlu0 %18959, %v21770_v10  }
0x1d68   : > { %12529 = vperm.xlu1 %18958, %v21764_v9   ;;  %18980 = vset.pattern.permute.xlu0 %v23575_v48 }
0x1d6c   : > { %18981 = vset.pattern.permute.xlu1 %v23575_v48 }
0x1dbf   : > { %v11783_v51 = vpop.xlane.xlu0 %11782 }
0x1dc0   : > { %19422 = vrcp.f32 %v11783_v51  ;;  %v11786_v29 = vpop.xlane.xlu1 %11785  ;;  %v23585_v51 = vld [vmem:[#allocation21_spill] sm:$0xff] }
0x1dc1   : > { %19424 = vrcp.f32 %v11786_v29  ;;  %v23587_v29 = vld [vmem:[#allocation27_spill] sm:$0xff] }
0x1dc3   : > { %v11795_v16 = vpop.xlane.xlu0 %11794 }
0x1dc4   : > { %19426 = vrcp.f32 %v11795_v16  ;;  %v11798_v1 = vpop.xlane.xlu1 %11797 }
0x1dc5   : > { %19428 = vrcp.f32 %v11798_v1 }
0x1dc7   : > { %v11789_v18 = vpop.xlane.xlu0 %11788 }
0x1dc8   : > { %19430 = vrcp.f32 %v11789_v18  ;;  %v11792_v5 = vpop.xlane.xlu1 %11791 }
0x1dc9   : > { %19432 = vrcp.f32 %v11792_v5 }
0x1dca   : > { %v19423_v33 = vpop.eup %19422 }
0x1dcb   : > { %v19425_v60 = vpop.eup %19424  ;;  %v11801_v56 = vpop.xlane.xlu0 %11800  ;;  %v11806_v15 = vmul.f32 %v19423_v33, %v11773_v14 }
0x1dcc   : > { %19434 = vrcp.f32 %v11801_v56  ;;  %v11804_v63 = vpop.xlane.xlu1 %11803  ;;  %v11808_v3 = vmul.f32 %v19425_v60, %v11774_v62 }
0x1dcd   : > { %19436 = vrcp.f32 %v11804_v63  ;;  %17416 = vmatprep.mubr.msk.f32.mxu1 %vm1263_vm6, %v11806_v15 }
0x1dce   : > { %v19427_v52 = vpop.eup %19426  ;;  %17417 = vmatmul.mubr.msk.f32.vlgmr.msra.gmra.mrb[58].mxu1 %vm1263_vm6, %v11808_v3 }
0x1dcf   : > { %v19429_v50 = vpop.eup %19428  ;;  %18322 = vmatpush3.bf16.msra.mxu1 %v23572_v21  ;;  %v18940_v35 = vpop.permute.xlu0 %18939  ;;  %v11814_v27 = vmul.f32 %v19427_v52, %v22481_v4 }
0x1dd0   : > { %18328 = vmatprep.subr.bf16.mxu1 %v23576_v0  ;;  %v18942_v38 = vunpack.i.h.bf16 %v18940_v35  ;;  %v18941_v47 = vunpack.i.l.bf16 %v18940_v35  ;;  %v18945_v2 = vpop.permute.xlu1 %18944  ;;  %v11816_v14 = vmul.f32 %v19429_v50, %v22485_v49 }
0x1dd1   : > { %v18947_v55 = vunpack.i.h.bf16 %v18945_v2  ;;  %v18946_v62 = vunpack.i.l.bf16 %v18945_v2  ;;  %17430 = vmatprep.mubr.msk.f32.mxu0 %vm1263_vm6, %v11814_v27 }
0x1dd2   : > { %v19431_v28 = vpop.eup %19430  ;;  %v18331_v8 = vpack.c.bf16 %v18942_v38, %v18941_v47  ;;  %17431 = vmatmul.mubr.msk.f32.vlgmr.msra.gmra.mrb[64].mxu0 %vm1263_vm6, %v11816_v14 }
0x1dd3   : > { %v19433_v57 = vpop.eup %19432  ;;  %v18343_v21 = vpack.c.bf16 %v18947_v55, %v18946_v62  ;;  %v11810_v42 = vmul.f32 %v19431_v28, %v22493_v45  ;;  %17444 = vmatprep.mubr.msk.f32.mxu0 %vm23577_vm10, %v23557_v26  ;;  %vm23584_vm10 = vmmov %vm23582_vm1 }
0x1dd4   : > { %v18950_v4 = vpop.permute.xlu1 %18949  ;;  %18333 = vmatprep.subr.msk.bf16.mxu0 %vm20080_vm2, %v18331_v8  ;;  %v11812_v49 = vmul.f32 %v19433_v57, %v22497_v43  ;;  %v18955_v43 = vpop.permute.xlu0 %18954 }
0x1dd5   : > { %v18952_v23 = vunpack.i.h.bf16 %v18950_v4  ;;  %v18951_v53 = vunpack.i.l.bf16 %v18950_v4  ;;  %17423 = vmatprep.mubr.msk.f32.mxu1 %vm1263_vm6, %v11810_v42  ;;  %18336 = vmatpush3.bf16.xpose.msk.msra.mxu0 %vm20080_vm2, %v18331_v8  ;;  %v18957_v58 = vunpack.i.h.bf16 %v18955_v43  ;;  %v18956_v48 = vunpack.i.l.bf16 %v18955_v43 }
0x1dd6   : > { %v19435_v54 = vpop.eup %19434  ;;  %17424 = vmatmul.mubr.msk.f32.vlgmr.msra.gmra.mrb[60].mxu1 %vm1263_vm6, %v11812_v49  ;;  %18345 = vmatprep.subr.msk.bf16.mxu0 %vm20080_vm2, %v18343_v21 }
0x1dd7   : > { %v19437_v45 = vpop.eup %19436  ;;  %v18337_v32 = vpack.c.bf16 %v18952_v23, %v18951_v53  ;;  %18330 = vmatpush3.bf16.msra.mxu1 %v23576_v0  ;;  %v11818_v46 = vmul.f32 %v19435_v54, %v22505_v7  ;;  %v23581_v7 = vld [vmem:[#allocation26_spill] sm:$0xff] }
0x1dd8   : > { %v11820_v22 = vmul.f32 %v19437_v45, %v22509_v12  ;;  %v18349_v12 = vpack.c.bf16 %v18957_v58, %v18956_v48  ;;  %v12518_v16 = vpop.permute.xlu1 %12517 }
0x1dd9   : > { %17437 = vmatprep.mubr.msk.f32.mxu1 %vm1263_vm6, %v11818_v46  ;;  %18339 = vmatprep.subr.msk.bf16.mxu1 %vm20080_vm2, %v18337_v32 }
0x1dda   : > { %17438 = vmatmul.mubr.msk.f32.vlgmr.msra.gmra.mrb[62].mxu1 %vm1263_vm6, %v11820_v22 }
0x1ddb   : > { %17451 = vmatprep.mubr.msk.f32.mxu1 %vm23578_vm11, %v23557_v26  ;;  %vm23586_vm11 = vmmov %vm23582_vm1  ;;  %v12522_v63 = vpop.permute.xlu0 %12521 }
0x1ddc   : > { %17445 = vmatmul.mubr.msk.f32.vlgmr.msra.gmra.mrb[82].mxu0 %vm23579_vm8, %v23557_v26  ;;  %v12502_v1 = vpop.permute.xlu1 %12501 }
0x1ddd   : > { %18348 = vmatpush3.bf16.xpose.msk.msra.mxu0 %vm20080_vm2, %v18343_v21  ;;  %17458 = vmatprep.mubr.msk.f32.mxu0 %vm23580_vm9, %v23557_v26 }
0x1dde   : > { %18364 = vmatprep.subr.bf16.mxu0 %v23581_v7 }
0x1ddf   : > { %v12510_v62 = vpop.permute.xlu0 %12509 }
0x1de0   : > { %18342 = vmatpush3.bf16.xpose.msk.msra.mxu1 %vm20080_vm2, %v18337_v32  ;;  %v12506_v60 = vpop.permute.xlu1 %12505 }
0x1de1   : > { %18351 = vmatprep.subr.msk.bf16.mxu1 %vm20080_vm2, %v18349_v12 }
0x1de4   : > { %17459 = vmatmul.mubr.msk.f32.vlgmr.msra.gmra.mrb[84].mxu0 %vm23582_vm1, %v23557_v26  ;;  %v12514_v2 = vpop.permute.xlu1 %12513 }
0x1de5   : > { %18366 = vmatpush3.bf16.msra.mxu0 %v23581_v7 }
0x1de7   : > { %17452 = vmatmul.mubr.msk.f32.vlgmr.msra.gmra.mrb[72].mxu1 %vm23583_vm7, %v23557_v26 }
0x1de8   : > { %18354 = vmatpush3.bf16.xpose.msk.msra.mxu1 %vm20080_vm2, %v18349_v12  ;;  %17465 = vmatprep.mubr.msk.f32.mxu1 %vm23584_vm10, %v23557_v26  ;;  %v12530_v7 = vpop.permute.xlu1 %12529 }
0x1de9   : > { %18356 = vmatprep.subr.bf16.mxu1 %v23585_v51 }
0x1def   : > { %17466 = vmatmul.mubr.msk.f32.vlgmr.msra.gmra.mrb[74].mxu1 %vm23586_vm11, %v23557_v26 }
0x1df0   : > { %18358 = vmatpush3.bf16.msra.mxu1 %v23585_v51 }
0x1df1   : > { %18360 = vmatprep.subr.bf16.mxu1 %v23587_v29 }
0x1eaf   : > { %v17446_v18 = vpop.f32.mrb[82].mxu0 }
0x1eb0   : > { %v12242_v5 = vpop.f32.mrb[83].mxu0  ;;  %v12533_v15 = vadd.f32 %v17446_v18, %v12506_v60 }
0x1eb1   : > { %v12532_v33 = vadd.f32 %v12502_v1, %v12242_v5 }
0x1eb2   : > { %v12549_v27 = vmul.f32 0.2, %v12533_v15  ;;  %vm12541_vm9 = vcmp.gt.f32.partialorder %v12533_v15, 0.0 }
0x1eb3   : > { %vm12540_vm8 = vcmp.gt.f32.partialorder %v12532_v33, 0.0  ;;  %v12548_v56 = vmul.f32 0.2, %v12532_v33 }
0x1eb4   : > { %v12557_v4 = vsel %vm12541_vm9, %v12533_v15, %v12549_v27 }
0x1eb5   : > { %v12556_v3 = vsel %vm12540_vm8, %v12532_v33, %v12548_v56  ;;  %v12565_v22 = vsel %vm584_vm3, %v12557_v4, -1e+30 }
0x1eb6   : > { %v22589_v52 = vsel %vm583_vm5, %v12556_v3, -1e+30  ;;  %v12575_v5 = vsel %vm1263_vm6, %v12565_v22, -inf }
0x1eb7   : > { %v17460_v50 = vpop.f32.mrb[84].mxu0  ;;  %v12572_v35 = vsel %vm1263_vm6, %v22589_v52, -inf }
0x1eb8   : > { %v12537_v0 = vadd.f32 %v17460_v50, %v12522_v63  ;;  %12573 = vmax.xlane.f32.xlu0 %v12572_v35  ;;  %v12408_v38 = vpop.f32.mrb[85].mxu0 }
0x1eb9   : > { %v12536_v47 = vadd.f32 %v12518_v16, %v12408_v38  ;;  %v12526_v16 = vpop.permute.xlu0 %12525 }
0x1eba   : > { %vm12545_vm1 = vcmp.gt.f32.partialorder %v12537_v0, 0.0  ;;  %v12553_v14 = vmul.f32 0.2, %v12537_v0  ;;  %v17453_v55 = vpop.f32.mrb[72].mxu1 }
0x1ebb   : > { %vm12544_vm7 = vcmp.gt.f32.partialorder %v12536_v47, 0.0  ;;  %v12552_v28 = vmul.f32 0.2, %v12536_v47  ;;  %v12535_v8 = vadd.f32 %v17453_v55, %v12514_v2  ;;  %v12325_v57 = vpop.f32.mrb[73].mxu1 }
0x1ebc   : > { %v12534_v21 = vadd.f32 %v12510_v62, %v12325_v57  ;;  %v12561_v42 = vsel %vm12545_vm1, %v12537_v0, %v12553_v14  ;;  %vm23591_vm1 = vcmask 7168  }
0x1ebd   : > { %vm12543_vm10 = vcmp.gt.f32.partialorder %v12535_v8, 0.0  ;;  %v12551_v49 = vmul.f32 0.2, %v12535_v8  ;;  %v12569_v23 = vsel %vm588_vm15, %v12561_v42, -1e+30  ;;  %v12560_v53 = vsel %vm12544_vm7, %v12536_v47, %v12552_v28  ;;  %vm23592_vm7 = vmmov %vm23591_vm1 }
0x1ebe   : > { %vm12542_vm11 = vcmp.gt.f32.partialorder %v12534_v21, 0.0  ;;  %v12550_v54 = vmul.f32 0.2, %v12534_v21  ;;  %v12587_v45 = vsel %vm1263_vm6, %v12569_v23, -inf  ;;  %v12568_v32 = vsel %vm587_vm14, %v12560_v53, -1e+30 }
0x1ebf   : > { %12588 = vmax.xlane.f32.xlu1 %v12587_v45  ;;  %v12584_v46 = vsel %vm1263_vm6, %v12568_v32, -inf  ;;  %v12559_v48 = vsel %vm12543_vm10, %v12535_v8, %v12551_v49  ;;  %vm23593_vm10 = vmmov %vm23591_vm1 }
0x1ec0   : > { %12585 = vmax.xlane.f32.xlu0 %v12584_v46  ;;  %v12558_v43 = vsel %vm12542_vm11, %v12534_v21, %v12550_v54  ;;  %v12567_v60 = vsel %vm586_vm12, %v12559_v48, -1e+30  ;;  %vm23594_vm11 = vmmov %vm23591_vm1 }
0x1ec1   : > { %v12566_v58 = vsel %vm585_vm13, %v12558_v43, -1e+30  ;;  %v12581_v63 = vsel %vm1263_vm6, %v12567_v60, -inf }
0x1ec2   : > { %v17467_v12 = vpop.f32.mrb[74].mxu1  ;;  %v12578_v51 = vsel %vm1263_vm6, %v12566_v58, -inf }
0x1ec3   : > { %v12539_v1 = vadd.f32 %v17467_v12, %v12530_v7  ;;  %v12491_v18 = vpop.f32.mrb[75].mxu1  ;;  %12579 = vmax.xlane.f32.xlu1 %v12578_v51 }
0x1ec4   : > { %v12538_v33 = vadd.f32 %v12526_v16, %v12491_v18  ;;  %12576 = vmax.xlane.f32.xlu0 %v12575_v5 }
0x1ec5   : > { %vm12547_vm8 = vcmp.gt.f32.partialorder %v12539_v1, 0.0  ;;  %v12555_v56 = vmul.f32 0.2, %v12539_v1 }
0x1ec6   : > { %vm12546_vm9 = vcmp.gt.f32.partialorder %v12538_v33, 0.0  ;;  %v12554_v15 = vmul.f32 0.2, %v12538_v33 }
0x1ec7   : > { %v12563_v3 = vsel %vm12547_vm8, %v12539_v1, %v12555_v56  ;;  %vm23595_vm8 = vmmov %vm23591_vm1 }
0x1ec8   : > { %12582 = vmax.xlane.f32.xlu0 %v12581_v63  ;;  %v12562_v50 = vsel %vm12546_vm9, %v12538_v33, %v12554_v15  ;;  %v12571_v35 = vsel %vm590_vm4, %v12563_v3, -1e+30  ;;  %vm23597_vm9 = vmmov %vm23591_vm1 }
0x1ec9   : > { %v22612_v27 = vsel %vm589_vm0, %v12562_v50, -1e+30  ;;  %v12593_v38 = vsel %vm1263_vm6, %v12571_v35, -inf }
0x1eca   : > { %v12590_v0 = vsel %vm1263_vm6, %v22612_v27, -inf }
0x1ecb   : > { %12591 = vmax.xlane.f32.xlu1 %v12590_v0 }
0x1ecc   : > { %12594 = vmax.xlane.f32.xlu0 %v12593_v38 }
0x1edc   : > { %18961 = vrot.lane.b32.xlu1 %v21725_v25, %s23588_s23 }
0x1f45   : > { %v12574_v47 = vpop.xlane.xlu0 %12573 }
0x1f46   : > { %v12596_v2 = vsub.f32 %v22589_v52, %v12574_v47 }
0x1f48   : > { %v12604_v14 = vmul.f32 1.442695, %v12596_v2 }
0x1f4a   : > { %19438 = vpow2.f32 %v12604_v14 }
0x1f4c   : > { %v12589_v55 = vpop.xlane.xlu1 %12588 }
0x1f4d   : > { %v12601_v62 = vsub.f32 %v12569_v23, %v12589_v55  ;;  %v12586_v28 = vpop.xlane.xlu0 %12585 }
0x1f4e   : > { %v12600_v8 = vsub.f32 %v12568_v32, %v12586_v28 }
0x1f4f   : > { %v12614_v57 = vmul.f32 1.442695, %v12601_v62 }
0x1f50   : > { %v12612_v21 = vmul.f32 1.442695, %v12600_v8  ;;  %v12580_v42 = vpop.xlane.xlu1 %12579 }
0x1f51   : > { %v12598_v4 = vsub.f32 %v12566_v58, %v12580_v42  ;;  %v12577_v49 = vpop.xlane.xlu0 %12576 }
0x1f52   : > { %19440 = vpow2.f32 %v12612_v21  ;;  %v12597_v53 = vsub.f32 %v12565_v22, %v12577_v49  ;;  %v23589_v49 = vmov 15  }
0x1f53   : > { %v12608_v54 = vmul.f32 1.442695, %v12598_v4  ;;  %19442 = vpow2.f32 %v12614_v57 }
0x1f54   : > { %v19439_v45 = vpop.eup %19438  ;;  %v12606_v46 = vmul.f32 1.442695, %v12597_v53 }
0x1f55   : > { %19444 = vpow2.f32 %v12608_v54  ;;  %v12583_v43 = vpop.xlane.xlu0 %12582  ;;  %v22622_v52 = vsel %vm583_vm5, %v19439_v45, 0.0 }
0x1f56   : > { %19446 = vpow2.f32 %v12606_v46  ;;  %v12599_v23 = vsub.f32 %v12567_v60, %v12583_v43  ;;  %v12628_v32 = vsel %vm1263_vm6, %v22622_v52, 0.0 }
0x1f57   : > { %12629 = vadd.xlane.f32.xlu1 %v12628_v32 }
0x1f58   : > { %v12610_v58 = vmul.f32 1.442695, %v12599_v23  ;;  %v12592_v48 = vpop.xlane.xlu1 %12591 }
0x1f59   : > { %v12595_v7 = vpop.xlane.xlu0 %12594  ;;  %v12602_v57 = vsub.f32 %v22612_v27, %v12592_v48 }
0x1f5a   : > { %19448 = vpow2.f32 %v12610_v58  ;;  %v12603_v22 = vsub.f32 %v12571_v35, %v12595_v7 }
0x1f5b   : > { %v12616_v21 = vmul.f32 1.442695, %v12602_v57  ;;  %v23596_v57 = vld [vmem:[#allocation30_spill] sm:$0xff] }
0x1f5c   : > { %v19441_v12 = vpop.eup %19440  ;;  %v12618_v51 = vmul.f32 1.442695, %v12603_v22  ;;  %v18962_v16 = vpop.permute.xlu1 %18961 }
0x1f5d   : > { %v18964_v1 = vunpack.i.h.bf16 %v18962_v16  ;;  %v18963_v18 = vunpack.i.l.bf16 %v18962_v16  ;;  %v12624_v5 = vsel %vm587_vm14, %v19441_v12, 0.0  ;;  %v19443_v33 = vpop.eup %19442 }
0x1f5e   : > { %19450 = vpow2.f32 %v12618_v51  ;;  %v12640_v60 = vsel %vm1263_vm6, %v12624_v5, 0.0  ;;  %v12625_v38 = vsel %vm588_vm15, %v19443_v33, 0.0 }
0x1f5f   : > { %v19445_v56 = vpop.eup %19444  ;;  %v22629_v15 = vpack.c.bf16 %v18964_v1, %v18963_v18  ;;  %12641 = vadd.xlane.f32.xlu1 %v12640_v60  ;;  %v12643_v2 = vsel %vm1263_vm6, %v12625_v38, 0.0  ;;  %19452 = vpow2.f32 %v12616_v21 }
0x1f60   : > { %v19447_v63 = vpop.eup %19446  ;;  %v12622_v3 = vsel %vm585_vm13, %v19445_v56, 0.0  ;;  %v23590_v56 = vld [vmem:[#allocation29_spill] sm:$0xff] }
0x1f61   : > { %18373 = vmatprep.subr.msk.bf16.mxu0 %vm20080_vm2, %v22629_v15  ;;  %v12634_v50 = vsel %vm1263_vm6, %v12622_v3, 0.0  ;;  %v12621_v35 = vsel %vm584_vm3, %v19447_v63, 0.0 }
0x1f62   : > { %v12631_v0 = vsel %vm1263_vm6, %v12621_v35, 0.0 }
0x1f63   : > { %12635 = vadd.xlane.f32.xlu1 %v12634_v50  ;;  %12632 = vadd.xlane.f32.xlu0 %v12631_v0 }
0x1f64   : > { %v19449_v47 = vpop.eup %19448 }
0x1f65   : > { %v22645_v14 = vsel %vm586_vm12, %v19449_v47, 0.0 }
0x1f66   : > { %v12637_v62 = vsel %vm1263_vm6, %v22645_v14, 0.0 }
0x1f67   : > { %12644 = vadd.xlane.f32.xlu0 %v12643_v2 }
0x1f68   : > { %v19451_v55 = vpop.eup %19450 }
0x1f69   : > { %v22651_v28 = vsel %vm590_vm4, %v19451_v55, 0.0  ;;  %v19453_v42 = vpop.eup %19452 }
0x1f6a   : > { %v12649_v8 = vsel %vm1263_vm6, %v22651_v28, 0.0  ;;  %v22665_v4 = vsel %vm589_vm0, %v19453_v42, 0.0 }
0x1f6b   : > { %12638 = vadd.xlane.f32.xlu0 %v12637_v62  ;;  %v12646_v27 = vsel %vm1263_vm6, %v22665_v4, 0.0 }
0x1f6f   : > { %12650 = vadd.xlane.f32.xlu0 %v12649_v8 }
0x1f74   : > { %18971 = vrot.lane.b32.xlu1 %v21755_v34, %s23588_s23 }
0x1f85   : > { %18966 = vrot.lane.b32.xlu0 %v21741_v41, %s23588_s23 }
0x1f89   : > { %13348 = vperm.xlu0 %18980, %v21721_v39  }
0x1f8d   : > { %13360 = vperm.xlu0 %18980, %v21733_v40  }
0x1f91   : > { %13368 = vperm.xlu0 %18980, %v21747_v61  }
0x1f95   : > { %13376 = vperm.xlu0 %18980, %v21764_v9  }
0x1f98   : > { %12647 = vadd.xlane.f32.xlu1 %v12646_v27  ;;  %v23598_v27 = vld [vmem:[#allocation28_spill] sm:$0xff] }
0x1f99   : > { %19003 = vset.pattern.permute.xlu0 %v23589_v49 }
0x1fa9   : > { %18976 = vrot.lane.b32.xlu1 %v21776_v11, %s23588_s23  ;;  %s23307_s23 = scalar_lea.hbm %s23366_s16, %s15910_s19 }
0x1fad   : > { %13352 = vperm.xlu1 %18981, %v21719_v13  }
0x1fb1   : > { %13356 = vperm.xlu1 %18981, %v21737_v17  }
0x1fb5   : > { %13364 = vperm.xlu1 %18981, %v21751_v31  }
0x1fb9   : > { %13372 = vperm.xlu1 %18981, %v21770_v10  }
0x1fbd   : > { %19002 = vset.pattern.permute.xlu1 %v23589_v49 }
0x1fe4   : > { %v12630_v53 = vpop.xlane.xlu1 %12629 }
0x1fe5   : > { %19454 = vrcp.f32 %v12630_v53 }
0x1fec   : > { %v12642_v54 = vpop.xlane.xlu1 %12641 }
0x1fed   : > { %19456 = vrcp.f32 %v12642_v54 }
0x1fef   : > { %v19455_v45 = vpop.eup %19454 }
0x1ff0   : > { %v12636_v46 = vpop.xlane.xlu1 %12635  ;;  %v12633_v43 = vpop.xlane.xlu0 %12632  ;;  %v12653_v23 = vmul.f32 %v19455_v45, %v22622_v52 }
0x1ff1   : > { %19458 = vrcp.f32 %v12636_v46 }
0x1ff2   : > { %19460 = vrcp.f32 %v12633_v43  ;;  %17472 = vmatprep.mubr.msk.f32.mxu1 %vm1263_vm6, %v12653_v23 }
0x1ff4   : > { %v12645_v32 = vpop.xlane.xlu0 %12644  ;;  %v18972_v33 = vpop.permute.xlu1 %18971 }
0x1ff5   : > { %19462 = vrcp.f32 %v12645_v32  ;;  %v18974_v50 = vunpack.i.h.bf16 %v18972_v33  ;;  %v18973_v0 = vunpack.i.l.bf16 %v18972_v33 }
0x1ff7   : > { %v19457_v58 = vpop.eup %19456 }
0x1ff8   : > { %v12639_v48 = vpop.xlane.xlu0 %12638  ;;  %v12661_v7 = vmul.f32 %v19457_v58, %v12624_v5 }
0x1ff9   : > { %19464 = vrcp.f32 %v12639_v48 }
0x1ffa   : > { %17486 = vmatprep.mubr.msk.f32.mxu0 %vm1263_vm6, %v12661_v7 }
0x1ffb   : > { %v19459_v22 = vpop.eup %19458 }
0x1ffc   : > { %v19461_v12 = vpop.eup %19460  ;;  %v12651_v51 = vpop.xlane.xlu0 %12650  ;;  %v12657_v16 = vmul.f32 %v19459_v22, %v12622_v3 }
0x1ffd   : > { %v12655_v1 = vmul.f32 %v19461_v12, %v12621_v35  ;;  %19466 = vrcp.f32 %v12651_v51 }
0x1fff   : > { %v19463_v18 = vpop.eup %19462  ;;  %17473 = vmatmul.mubr.msk.f32.vlgmr.msra.gmra.mrb[58].mxu1 %vm1263_vm6, %v12655_v1 }
0x2000   : > { %v12663_v52 = vmul.f32 %v19463_v18, %v12625_v38  ;;  %18362 = vmatpush3.bf16.msra.mxu1 %v23587_v29  ;;  %17479 = vmatprep.mubr.msk.f32.mxu1 %vm1263_vm6, %v12657_v16  ;;  %v18967_v60 = vpop.permute.xlu0 %18966  ;;  %v18383_v38 = vpack.c.bf16 %v18974_v50, %v18973_v0 }
0x2001   : > { %18368 = vmatprep.subr.bf16.mxu1 %v23590_v56  ;;  %v18969_v5 = vunpack.i.h.bf16 %v18967_v60  ;;  %v18968_v63 = vunpack.i.l.bf16 %v18967_v60 }
0x2002   : > { %17487 = vmatmul.mubr.msk.f32.vlgmr.msra.gmra.mrb[64].mxu0 %vm1263_vm6, %v12663_v52 }
0x2003   : > { %v19465_v3 = vpop.eup %19464  ;;  %v18377_v35 = vpack.c.bf16 %v18969_v5, %v18968_v63  ;;  %18376 = vmatpush3.bf16.xpose.msk.msra.mxu0 %vm20080_vm2, %v22629_v15  ;;  %17500 = vmatprep.mubr.msk.f32.mxu0 %vm23591_vm1, %v23557_v26 }
0x2004   : > { %v12659_v29 = vmul.f32 %v19465_v3, %v22645_v14 }
0x2005   : > { %18379 = vmatprep.subr.msk.bf16.mxu0 %vm20080_vm2, %v18377_v35 }
0x2006   : > { %17480 = vmatmul.mubr.msk.f32.vlgmr.msra.gmra.mrb[60].mxu1 %vm1263_vm6, %v12659_v29 }
0x2007   : > { %18370 = vmatpush3.bf16.msra.mxu1 %v23590_v56  ;;  %v19467_v62 = vpop.eup %19466 }
0x2008   : > { %18385 = vmatprep.subr.msk.bf16.mxu1 %vm20080_vm2, %v18383_v38  ;;  %v12667_v42 = vmul.f32 %v19467_v62, %v22651_v28  ;;  %v23600_v28 = vld [vmem:[#allocation31_spill] sm:$0xff]  ;;  %v13349_v53 = vpop.permute.xlu0 %13348 }
0x200a   : > { %17501 = vmatmul.mubr.msk.f32.vlgmr.msra.gmra.mrb[86].mxu0 %vm23592_vm7, %v23557_v26  ;;  %vm23599_vm7 = vmmov %vm23591_vm1 }
0x200b   : > { %18382 = vmatpush3.bf16.xpose.msk.msra.mxu0 %vm20080_vm2, %v18377_v35  ;;  %17507 = vmatprep.mubr.msk.f32.mxu0 %vm23593_vm10, %v23557_v26 }
0x200c   : > { %v13361_v12 = vpop.permute.xlu0 %13360 }
0x2010   : > { %v13369_v29 = vpop.permute.xlu0 %13368 }
0x2012   : > { %17508 = vmatmul.mubr.msk.f32.vlgmr.msra.gmra.mrb[88].mxu0 %vm23594_vm11, %v23557_v26 }
0x2013   : > { %17521 = vmatprep.mubr.msk.f32.mxu0 %vm23595_vm8, %v23557_v26 }
0x2025   : > { %v12648_v15 = vpop.xlane.xlu1 %12647 }
0x2026   : > { %19468 = vrcp.f32 %v12648_v15 }
0x2029   : > { %v18977_v47 = vpop.permute.xlu1 %18976 }
0x202a   : > { %v18979_v2 = vunpack.i.h.bf16 %v18977_v47  ;;  %v18978_v14 = vunpack.i.l.bf16 %v18977_v47 }
0x202c   : > { %v18389_v55 = vpack.c.bf16 %v18979_v2, %v18978_v14  ;;  %v13377_v2 = vpop.permute.xlu0 %13376 }
0x202e   : > { %18391 = vmatprep.subr.msk.bf16.mxu0 %vm20080_vm2, %v18389_v55 }
0x202f   : > { %18394 = vmatpush3.bf16.xpose.msk.msra.mxu0 %vm20080_vm2, %v18389_v55 }
0x2030   : > { %v19469_v8 = vpop.eup %19468  ;;  %18404 = vmatprep.subr.bf16.mxu0 %v23596_v57 }
0x2031   : > { %v12665_v21 = vmul.f32 %v19469_v8, %v22665_v4  ;;  %v13353_v4 = vpop.permute.xlu1 %13352 }
0x2033   : > { %17493 = vmatprep.mubr.msk.f32.mxu1 %vm1263_vm6, %v12665_v21 }
0x2034   : > { %17494 = vmatmul.mubr.msk.f32.vlgmr.msra.gmra.mrb[62].mxu1 %vm1263_vm6, %v12667_v42 }
0x2035   : > { %18388 = vmatpush3.bf16.xpose.msk.msra.mxu1 %vm20080_vm2, %v18383_v38  ;;  %17514 = vmatprep.mubr.msk.f32.mxu1 %vm23597_vm9, %v23557_v26  ;;  %v13357_v1 = vpop.permute.xlu1 %13356 }
0x2036   : > { %18396 = vmatprep.subr.bf16.mxu1 %v23598_v27  ;;  %17522 = vmatmul.mubr.msk.f32.vlgmr.msra.gmra.mrb[90].mxu0 %vm23591_vm1, %v23557_v26 }
0x2037   : > { %18406 = vmatpush3.bf16.msra.mxu0 %v23596_v57 }
0x2039   : > { %v13365_v38 = vpop.permute.xlu1 %13364 }
0x203c   : > { %17515 = vmatmul.mubr.msk.f32.vlgmr.msra.gmra.mrb[76].mxu1 %vm23599_vm7, %v23557_v26 }
0x203d   : > { %18398 = vmatpush3.bf16.msra.mxu1 %v23598_v27  ;;  %v13373_v14 = vpop.permute.xlu1 %13372 }
0x203e   : > { %18400 = vmatprep.subr.bf16.mxu1 %v23600_v28 }
0x20dd   : > { %v17502_v49 = vpop.f32.mrb[86].mxu0 }
0x20de   : > { %v13380_v54 = vadd.f32 %v17502_v49, %v13353_v4  ;;  %v13089_v45 = vpop.f32.mrb[87].mxu0 }
0x20df   : > { %v13379_v46 = vadd.f32 %v13349_v53, %v13089_v45 }
0x20e0   : > { %vm13388_vm10 = vcmp.gt.f32.partialorder %v13380_v54, 0.0  ;;  %v13396_v43 = vmul.f32 0.2, %v13380_v54 }
0x20e1   : > { %vm13387_vm11 = vcmp.gt.f32.partialorder %v13379_v46, 0.0  ;;  %v13395_v23 = vmul.f32 0.2, %v13379_v46 }
0x20e2   : > { %v13404_v32 = vsel %vm13388_vm10, %v13380_v54, %v13396_v43 }
0x20e3   : > { %v22731_v58 = vsel %vm584_vm3, %v13404_v32, -1e+30  ;;  %v13403_v48 = vsel %vm13387_vm11, %v13379_v46, %v13395_v23 }
0x20e4   : > { %v13422_v7 = vsel %vm1263_vm6, %v22731_v58, -inf  ;;  %v22737_v22 = vsel %vm583_vm5, %v13403_v48, -1e+30 }
0x20e5   : > { %13423 = vmax.xlane.f32.xlu0 %v13422_v7  ;;  %v17509_v51 = vpop.f32.mrb[88].mxu0  ;;  %v13419_v16 = vsel %vm1263_vm6, %v22737_v22, -inf }
0x20e6   : > { %v13382_v18 = vadd.f32 %v17509_v51, %v13361_v12  ;;  %13420 = vmax.xlane.f32.xlu1 %v13419_v16  ;;  %v13172_v33 = vpop.f32.mrb[89].mxu0 }
0x20e7   : > { %v13381_v52 = vadd.f32 %v13357_v1, %v13172_v33 }
0x20e8   : > { %vm13390_vm8 = vcmp.gt.f32.partialorder %v13382_v18, 0.0  ;;  %v13398_v60 = vmul.f32 0.2, %v13382_v18 }
0x20e9   : > { %vm13389_vm9 = vcmp.gt.f32.partialorder %v13381_v52, 0.0  ;;  %v13397_v56 = vmul.f32 0.2, %v13381_v52 }
0x20ea   : > { %v13406_v5 = vsel %vm13390_vm8, %v13382_v18, %v13398_v60  ;;  %vm23603_vm8 = vcmask 7168  }
0x20eb   : > { %v13414_v63 = vsel %vm586_vm12, %v13406_v5, -1e+30  ;;  %v13405_v50 = vsel %vm13389_vm9, %v13381_v52, %v13397_v56  ;;  %vm23604_vm9 = vmmov %vm23603_vm8 }
0x20ec   : > { %v13428_v0 = vsel %vm1263_vm6, %v13414_v63, -inf  ;;  %v13413_v3 = vsel %vm585_vm13, %v13405_v50, -1e+30 }
0x20ed   : > { %13429 = vmax.xlane.f32.xlu1 %v13428_v0  ;;  %v13425_v35 = vsel %vm1263_vm6, %v13413_v3, -inf }
0x20ee   : > { %13426 = vmax.xlane.f32.xlu0 %v13425_v35 }
0x2109   : > { %v17523_v15 = vpop.f32.mrb[90].mxu0 }
0x210a   : > { %v13338_v47 = vpop.f32.mrb[91].mxu0  ;;  %v13386_v55 = vadd.f32 %v17523_v15, %v13377_v2 }
0x210b   : > { %v13385_v62 = vadd.f32 %v13373_v14, %v13338_v47 }
0x210c   : > { %v13402_v57 = vmul.f32 0.2, %v13386_v55  ;;  %vm13394_vm1 = vcmp.gt.f32.partialorder %v13386_v55, 0.0 }
0x210d   : > { %v13401_v27 = vmul.f32 0.2, %v13385_v62  ;;  %vm13393_vm7 = vcmp.gt.f32.partialorder %v13385_v62, 0.0 }
0x210e   : > { %v13410_v45 = vsel %vm13394_vm1, %v13386_v55, %v13402_v57  ;;  %vm23605_vm1 = vmmov %vm23603_vm8 }
0x210f   : > { %v17516_v8 = vpop.f32.mrb[76].mxu1  ;;  %v13409_v23 = vsel %vm13393_vm7, %v13385_v62, %v13401_v27  ;;  %v13418_v12 = vsel %vm590_vm4, %v13410_v45, -1e+30  ;;  %vm23606_vm7 = vmmov %vm23605_vm1 }
0x2110   : > { %v13384_v21 = vadd.f32 %v17516_v8, %v13369_v29  ;;  %v13255_v42 = vpop.f32.mrb[77].mxu1  ;;  %v13417_v51 = vsel %vm589_vm0, %v13409_v23, -1e+30  ;;  %v13440_v16 = vsel %vm1263_vm6, %v13418_v12, -inf }
0x2111   : > { %v13383_v4 = vadd.f32 %v13365_v38, %v13255_v42  ;;  %v13437_v1 = vsel %vm1263_vm6, %v13417_v51, -inf }
0x2112   : > { %vm13392_vm10 = vcmp.gt.f32.partialorder %v13384_v21, 0.0  ;;  %v13400_v49 = vmul.f32 0.2, %v13384_v21 }
0x2113   : > { %vm13391_vm11 = vcmp.gt.f32.partialorder %v13383_v4, 0.0  ;;  %v13399_v53 = vmul.f32 0.2, %v13383_v4 }
0x2114   : > { %v13408_v54 = vsel %vm13392_vm10, %v13384_v21, %v13400_v49  ;;  %vm23608_vm10 = vmmov %vm23605_vm1 }
0x2115   : > { %v13416_v46 = vsel %vm588_vm15, %v13408_v54, -1e+30  ;;  %v13407_v43 = vsel %vm13391_vm11, %v13383_v4, %v13399_v53  ;;  %vm23609_vm11 = vmmov %vm23605_vm1 }
0x2116   : > { %v13434_v32 = vsel %vm1263_vm6, %v13416_v46, -inf  ;;  %v13415_v48 = vsel %vm587_vm14, %v13407_v43, -1e+30 }
0x2117   : > { %13435 = vmax.xlane.f32.xlu1 %v13434_v32  ;;  %v13431_v7 = vsel %vm1263_vm6, %v13415_v48, -inf }
0x2118   : > { %13432 = vmax.xlane.f32.xlu0 %v13431_v7 }
0x211b   : > { %13441 = vmax.xlane.f32.xlu1 %v13440_v16 }
0x211c   : > { %13438 = vmax.xlane.f32.xlu0 %v13437_v1 }
0x2172   : > { %v13424_v18 = vpop.xlane.xlu0 %13423 }
0x2173   : > { %v13444_v33 = vsub.f32 %v22731_v58, %v13424_v18  ;;  %v13421_v52 = vpop.xlane.xlu1 %13420 }
0x2174   : > { %v13443_v60 = vsub.f32 %v22737_v22, %v13421_v52 }
0x2175   : > { %v13453_v56 = vmul.f32 1.442695, %v13444_v33 }
0x2176   : > { %v13451_v5 = vmul.f32 1.442695, %v13443_v60 }
0x2177   : > { %19470 = vpow2.f32 %v13453_v56 }
0x2178   : > { %19472 = vpow2.f32 %v13451_v5 }
0x217a   : > { %v13430_v50 = vpop.xlane.xlu1 %13429 }
0x217b   : > { %v13446_v0 = vsub.f32 %v13414_v63, %v13430_v50  ;;  %v13427_v35 = vpop.xlane.xlu0 %13426 }
0x217c   : > { %v13445_v29 = vsub.f32 %v13413_v3, %v13427_v35 }
0x217d   : > { %v13457_v38 = vmul.f32 1.442695, %v13446_v0 }
0x217e   : > { %v13455_v15 = vmul.f32 1.442695, %v13445_v29 }
0x217f   : > { %19474 = vpow2.f32 %v13457_v38 }
0x2180   : > { %19476 = vpow2.f32 %v13455_v15 }
0x2181   : > { %v19471_v47 = vpop.eup %19470 }
0x2182   : > { %v19473_v2 = vpop.eup %19472  ;;  %v22763_v58 = vsel %vm584_vm3, %v19471_v47, 0.0 }
0x2183   : > { %v13478_v22 = vsel %vm1263_vm6, %v22763_v58, 0.0  ;;  %v22769_v14 = vsel %vm583_vm5, %v19473_v2, 0.0 }
0x2184   : > { %13479 = vadd.xlane.f32.xlu1 %v13478_v22  ;;  %v13475_v63 = vsel %vm1263_vm6, %v22769_v14, 0.0 }
0x2185   : > { %13476 = vadd.xlane.f32.xlu0 %v13475_v63 }
0x2189   : > { %v19475_v3 = vpop.eup %19474 }
0x218a   : > { %v19477_v55 = vpop.eup %19476  ;;  %v22775_v62 = vsel %vm586_vm12, %v19475_v3, 0.0 }
0x218b   : > { %v13484_v8 = vsel %vm1263_vm6, %v22775_v62, 0.0  ;;  %v22781_v57 = vsel %vm585_vm13, %v19477_v55, 0.0 }
0x218c   : > { %13485 = vadd.xlane.f32.xlu1 %v13484_v8  ;;  %v13481_v21 = vsel %vm1263_vm6, %v22781_v57, 0.0 }
0x218d   : > { %13482 = vadd.xlane.f32.xlu0 %v13481_v21 }
0x21a4   : > { %v13436_v42 = vpop.xlane.xlu1 %13435 }
0x21a5   : > { %v13448_v27 = vsub.f32 %v13416_v46, %v13436_v42  ;;  %v13433_v4 = vpop.xlane.xlu0 %13432 }
0x21a6   : > { %v13447_v49 = vsub.f32 %v13415_v48, %v13433_v4 }
0x21a7   : > { %v13461_v53 = vmul.f32 1.442695, %v13448_v27 }
0x21a8   : > { %v13459_v54 = vmul.f32 1.442695, %v13447_v49  ;;  %v13442_v45 = vpop.xlane.xlu1 %13441 }
0x21a9   : > { %19478 = vpow2.f32 %v13461_v53  ;;  %v13450_v43 = vsub.f32 %v13418_v12, %v13442_v45  ;;  %v13439_v23 = vpop.xlane.xlu0 %13438 }
0x21aa   : > { %19480 = vpow2.f32 %v13459_v54  ;;  %v13449_v32 = vsub.f32 %v13417_v51, %v13439_v23 }
0x21ab   : > { %v13465_v7 = vmul.f32 1.442695, %v13450_v43 }
0x21ac   : > { %v13463_v16 = vmul.f32 1.442695, %v13449_v32 }
0x21ad   : > { %19482 = vpow2.f32 %v13465_v7 }
0x21ae   : > { %19484 = vpow2.f32 %v13463_v16  ;;  %v23607_v16 = vld [vmem:[#allocation33_spill] sm:$0xff] }
0x21b3   : > { %v19479_v1 = vpop.eup %19478 }
0x21b4   : > { %v19481_v18 = vpop.eup %19480  ;;  %v22787_v33 = vsel %vm588_vm15, %v19479_v1, 0.0  ;;  %v23610_v1 = vld [vmem:[#allocation34_spill] sm:$0xff] }
0x21b5   : > { %v13490_v46 = vsel %vm1263_vm6, %v22787_v33, 0.0  ;;  %v22793_v48 = vsel %vm587_vm14, %v19481_v18, 0.0  ;;  %v23613_v18 = vld [vmem:[#allocation35_spill] sm:$0xff] }
0x21b6   : > { %13491 = vadd.xlane.f32.xlu1 %v13490_v46  ;;  %v13487_v12 = vsel %vm1263_vm6, %v22793_v48, 0.0 }
0x21b7   : > { %v19483_v51 = vpop.eup %19482  ;;  %13488 = vadd.xlane.f32.xlu0 %v13487_v12 }
0x21b8   : > { %v19485_v52 = vpop.eup %19484  ;;  %v22799_v60 = vsel %vm590_vm4, %v19483_v51, 0.0 }
0x21b9   : > { %v13496_v56 = vsel %vm1263_vm6, %v22799_v60, 0.0  ;;  %v22805_v5 = vsel %vm589_vm0, %v19485_v52, 0.0 }
0x21ba   : > { %13497 = vadd.xlane.f32.xlu1 %v13496_v56  ;;  %v13493_v50 = vsel %vm1263_vm6, %v22805_v5, 0.0 }
0x21bb   : > { %13494 = vadd.xlane.f32.xlu0 %v13493_v50 }
0x21cb   : > { %18988 = vrot.lane.b32.xlu1 %v21741_v41, %s23601_s27 }
0x21cf   : > { %18993 = vrot.lane.b32.xlu1 %v21755_v34, %s23601_s27 }
0x21d1   : > { %18983 = vrot.lane.b32.xlu0 %v21725_v25, %s23601_s27 }
0x21d3   : > { %14195 = vperm.xlu1 %19002, %v21721_v39  }
0x21d5   : > { %18998 = vrot.lane.b32.xlu0 %v21776_v11, %s23601_s27 }
0x21d7   : > { %14203 = vperm.xlu1 %19002, %v21737_v17  }
0x21d9   : > { %14199 = vperm.xlu0 %19003, %v21719_v13  }
0x21db   : > { %14207 = vperm.xlu1 %19002, %v21733_v40  }
0x21dd   : > { %14211 = vperm.xlu0 %19003, %v21751_v31  }
0x21df   : > { %14215 = vperm.xlu1 %19002, %v21747_v61   ;;  %v23602_v61 = vld [vmem:[#allocation32_spill] sm:$0xff] }
0x21e1   : > { %14219 = vperm.xlu0 %19003, %v21770_v10  }
0x21e3   : > { %14223 = vperm.xlu1 %19002, %v21764_v9  }
0x21e5   : > { %19005 = vset.pattern.permute.xlu0 %v19642_v37 }
0x21e7   : > { %19004 = vset.pattern.permute.xlu1 %v19642_v37 }
0x2211   : > { %v13480_v25 = vpop.xlane.xlu1 %13479 }
0x2212   : > { %19486 = vrcp.f32 %v13480_v25  ;;  %v13477_v39 = vpop.xlane.xlu0 %13476 }
0x2213   : > { %19488 = vrcp.f32 %v13477_v39 }
0x2219   : > { %v13486_v41 = vpop.xlane.xlu1 %13485 }
0x221a   : > { %19490 = vrcp.f32 %v13486_v41  ;;  %v13483_v34 = vpop.xlane.xlu0 %13482 }
0x221b   : > { %19492 = vrcp.f32 %v13483_v34 }
0x221c   : > { %v19487_v17 = vpop.eup %19486 }
0x221d   : > { %v19489_v13 = vpop.eup %19488  ;;  %v13502_v31 = vmul.f32 %v19487_v17, %v22763_v58 }
0x221e   : > { %v13500_v40 = vmul.f32 %v19489_v13, %v22769_v14 }
0x2220   : > { %17528 = vmatprep.mubr.msk.f32.mxu1 %vm1263_vm6, %v13500_v40 }
0x2221   : > { %17529 = vmatmul.mubr.msk.f32.vlgmr.msra.gmra.mrb[58].mxu1 %vm1263_vm6, %v13502_v31 }
0x2222   : > { %18402 = vmatpush3.bf16.msra.mxu1 %v23600_v28 }
0x2223   : > { %18408 = vmatprep.subr.bf16.mxu1 %v23602_v61 }
0x2224   : > { %v19491_v9 = vpop.eup %19490 }
0x2225   : > { %v19493_v10 = vpop.eup %19492  ;;  %v13506_v0 = vmul.f32 %v19491_v9, %v22775_v62 }
0x2226   : > { %v13504_v11 = vmul.f32 %v19493_v10, %v22781_v57 }
0x2228   : > { %17535 = vmatprep.mubr.msk.f32.mxu1 %vm1263_vm6, %v13504_v11 }
0x2229   : > { %17536 = vmatmul.mubr.msk.f32.vlgmr.msra.gmra.mrb[60].mxu1 %vm1263_vm6, %v13506_v0 }
0x222a   : > { %18410 = vmatpush3.bf16.msra.mxu1 %v23602_v61 }
0x2243   : > { %v13492_v35 = vpop.xlane.xlu1 %13491 }
0x2244   : > { %19494 = vrcp.f32 %v13492_v35  ;;  %v13489_v29 = vpop.xlane.xlu0 %13488 }
0x2245   : > { %19496 = vrcp.f32 %v13489_v29 }
0x2247   : > { %v13498_v38 = vpop.xlane.xlu1 %13497 }
0x2248   : > { %19498 = vrcp.f32 %v13498_v38  ;;  %v13495_v28 = vpop.xlane.xlu0 %13494 }
0x2249   : > { %19500 = vrcp.f32 %v13495_v28 }
0x224b   : > { %v18989_v15 = vpop.permute.xlu1 %18988 }
0x224c   : > { %v18991_v47 = vunpack.i.h.bf16 %v18989_v15  ;;  %v18990_v2 = vunpack.i.l.bf16 %v18989_v15  ;;  %v18984_v58 = vpop.permute.xlu0 %18983 }
0x224d   : > { %v18986_v22 = vunpack.i.h.bf16 %v18984_v58  ;;  %v18985_v14 = vunpack.i.l.bf16 %v18984_v58 }
0x224e   : > { %v19495_v63 = vpop.eup %19494  ;;  %v18417_v3 = vpack.c.bf16 %v18991_v47, %v18990_v2 }
0x224f   : > { %v19497_v55 = vpop.eup %19496  ;;  %v18411_v62 = vpack.c.bf16 %v18986_v22, %v18985_v14  ;;  %v18994_v8 = vpop.permute.xlu1 %18993  ;;  %v13510_v4 = vmul.f32 %v19495_v63, %v22787_v33 }
0x2250   : > { %v18996_v57 = vunpack.i.h.bf16 %v18994_v8  ;;  %v18995_v21 = vunpack.i.l.bf16 %v18994_v8  ;;  %18419 = vmatprep.subr.msk.bf16.mxu1 %vm20080_vm2, %v18417_v3  ;;  %v18999_v42 = vpop.permute.xlu0 %18998  ;;  %v13508_v27 = vmul.f32 %v19497_v55, %v22793_v48 }
0x2251   : > { %18413 = vmatprep.subr.msk.bf16.mxu0 %vm20080_vm2, %v18411_v62  ;;  %v19001_v45 = vunpack.i.h.bf16 %v18999_v42  ;;  %v19000_v43 = vunpack.i.l.bf16 %v18999_v42 }
0x2252   : > { %v19499_v49 = vpop.eup %19498  ;;  %v18423_v53 = vpack.c.bf16 %v18996_v57, %v18995_v21  ;;  %17542 = vmatprep.mubr.msk.f32.mxu0 %vm1263_vm6, %v13508_v27 }
0x2253   : > { %v19501_v54 = vpop.eup %19500  ;;  %17543 = vmatmul.mubr.msk.f32.vlgmr.msra.gmra.mrb[64].mxu0 %vm1263_vm6, %v13510_v4  ;;  %v13514_v32 = vmul.f32 %v19499_v49, %v22799_v60  ;;  %v18429_v7 = vpack.c.bf16 %v19001_v45, %v19000_v43  ;;  %v14196_v33 = vpop.permute.xlu1 %14195 }
0x2254   : > { %18416 = vmatpush3.bf16.xpose.msk.msra.mxu0 %vm20080_vm2, %v18411_v62  ;;  %v13512_v23 = vmul.f32 %v19501_v54, %v22805_v5  ;;  %17556 = vmatprep.mubr.msk.f32.mxu0 %vm23603_vm8, %v23557_v26  ;;  %vm23611_vm8 = vmmov %vm23605_vm1 }
0x2255   : > { %18425 = vmatprep.subr.msk.bf16.mxu0 %vm20080_vm2, %v18423_v53 }
0x2256   : > { %17549 = vmatprep.mubr.msk.f32.mxu1 %vm1263_vm6, %v13512_v23 }
0x2257   : > { %17550 = vmatmul.mubr.msk.f32.vlgmr.msra.gmra.mrb[62].mxu1 %vm1263_vm6, %v13514_v32  ;;  %v14204_v30 = vpop.permute.xlu1 %14203 }
0x2258   : > { %18422 = vmatpush3.bf16.xpose.msk.msra.mxu1 %vm20080_vm2, %v18417_v3  ;;  %17563 = vmatprep.mubr.msk.f32.mxu1 %vm23604_vm9, %v23557_v26  ;;  %vm23612_vm9 = vmmov %vm23605_vm1  ;;  %v14200_v46 = vpop.permute.xlu0 %14199 }
0x2259   : > { %18431 = vmatprep.subr.msk.bf16.mxu1 %vm20080_vm2, %v18429_v7 }
0x225b   : > { %17557 = vmatmul.mubr.msk.f32.vlgmr.msra.gmra.mrb[92].mxu0 %vm23605_vm1, %v23557_v26  ;;  %v14208_v48 = vpop.permute.xlu1 %14207 }
0x225c   : > { %18428 = vmatpush3.bf16.xpose.msk.msra.mxu0 %vm20080_vm2, %v18423_v53  ;;  %17570 = vmatprep.mubr.msk.f32.mxu0 %vm23606_vm7, %v23557_v26  ;;  %v14212_v40 = vpop.permute.xlu0 %14211 }
0x225d   : > { %18444 = vmatprep.subr.bf16.mxu0 %v23607_v16 }
0x225f   : > { %17564 = vmatmul.mubr.msk.f32.vlgmr.msra.gmra.mrb[78].mxu1 %vm23608_vm10, %v23557_v26  ;;  %v14216_v41 = vpop.permute.xlu1 %14215 }
0x2260   : > { %18434 = vmatpush3.bf16.xpose.msk.msra.mxu1 %vm20080_vm2, %v18429_v7  ;;  %17577 = vmatprep.mubr.msk.f32.mxu1 %vm23609_vm11, %v23557_v26  ;;  %v14220_v3 = vpop.permute.xlu0 %14219 }
0x2261   : > { %18436 = vmatprep.subr.bf16.mxu1 %v23610_v1 }
0x2263   : > { %17571 = vmatmul.mubr.msk.f32.vlgmr.msra.gmra.mrb[94].mxu0 %vm23611_vm8, %v23557_v26  ;;  %v14224_v22 = vpop.permute.xlu1 %14223 }
0x2264   : > { %18446 = vmatpush3.bf16.msra.mxu0 %v23607_v16 }
0x2267   : > { %17578 = vmatmul.mubr.msk.f32.vlgmr.msra.gmra.mrb[80].mxu1 %vm23612_vm9, %v23557_v26 }
0x2268   : > { %18438 = vmatpush3.bf16.msra.mxu1 %v23610_v1 }
0x2269   : > { %18440 = vmatprep.subr.bf16.mxu1 %v23613_v18 }
0x232e   : > { %v17558_v12 = vpop.f32.mrb[92].mxu0 }
0x232f   : > { %v14227_v51 = vadd.f32 %v17558_v12, %v14200_v46  ;;  %v13936_v52 = vpop.f32.mrb[93].mxu0 }
0x2330   : > { %v14226_v60 = vadd.f32 %v14196_v33, %v13936_v52 }
0x2331   : > { %vm14235_vm2 = vcmp.gt.f32.partialorder %v14227_v51, 0.0  ;;  %v14243_v56 = vmul.f32 0.2, %v14227_v51 }
0x2332   : > { %vm14234_vm1 = vcmp.gt.f32.partialorder %v14226_v60, 0.0  ;;  %v14242_v5 = vmul.f32 0.2, %v14226_v60  ;;  %v17565_v50 = vpop.f32.mrb[78].mxu1 }
0x2333   : > { %v14229_v25 = vadd.f32 %v17565_v50, %v14208_v48  ;;  %v14019_v39 = vpop.f32.mrb[79].mxu1  ;;  %v14251_v26 = vsel %vm14235_vm2, %v14227_v51, %v14243_v56 }
0x2334   : > { %v14228_v34 = vadd.f32 %v14204_v30, %v14019_v39  ;;  %v14259_v17 = vsel %vm584_vm3, %v14251_v26, -1e+30  ;;  %v14250_v13 = vsel %vm14234_vm1, %v14226_v60, %v14242_v5 }
0x2335   : > { %vm14237_vm7 = vcmp.gt.f32.partialorder %v14229_v25, 0.0  ;;  %v14245_v31 = vmul.f32 0.2, %v14229_v25  ;;  %v14269_v61 = vsel %vm1263_vm6, %v14259_v17, -inf  ;;  %v14258_v9 = vsel %vm583_vm5, %v14250_v13, -1e+30 }
0x2336   : > { %vm14236_vm10 = vcmp.gt.f32.partialorder %v14228_v34, 0.0  ;;  %v14244_v10 = vmul.f32 0.2, %v14228_v34  ;;  %14270 = vmax.xlane.f32.xlu1 %v14269_v61  ;;  %v17572_v11 = vpop.f32.mrb[94].mxu0  ;;  %v14266_v0 = vsel %vm1263_vm6, %v14258_v9, -inf }
0x2337   : > { %v14231_v35 = vadd.f32 %v17572_v11, %v14216_v41  ;;  %14267 = vmax.xlane.f32.xlu0 %v14266_v0  ;;  %v14102_v29 = vpop.f32.mrb[95].mxu0  ;;  %v14253_v38 = vsel %vm14237_vm7, %v14229_v25, %v14245_v31 }
0x2338   : > { %v14230_v28 = vadd.f32 %v14212_v40, %v14102_v29  ;;  %v14261_v15 = vsel %vm586_vm12, %v14253_v38, -1e+30  ;;  %v14252_v47 = vsel %vm14236_vm10, %v14228_v34, %v14244_v10 }
0x2339   : > { %vm14239_vm11 = vcmp.gt.f32.partialorder %v14231_v35, 0.0  ;;  %v14247_v2 = vmul.f32 0.2, %v14231_v35  ;;  %v14275_v58 = vsel %vm1263_vm6, %v14261_v15, -inf  ;;  %v14260_v8 = vsel %vm585_vm13, %v14252_v47, -1e+30 }
0x233a   : > { %vm14238_vm8 = vcmp.gt.f32.partialorder %v14230_v28, 0.0  ;;  %v14246_v14 = vmul.f32 0.2, %v14230_v28  ;;  %v17579_v63 = vpop.f32.mrb[80].mxu1  ;;  %v14272_v53 = vsel %vm1263_vm6, %v14260_v8, -inf }
0x233b   : > { %v14233_v55 = vadd.f32 %v17579_v63, %v14224_v22  ;;  %v14185_v62 = vpop.f32.mrb[81].mxu1  ;;  %14276 = vmax.xlane.f32.xlu0 %v14275_v58  ;;  %v14255_v42 = vsel %vm14239_vm11, %v14231_v35, %v14247_v2  ;;  %vm14940_vm11 = vcmp.gt.f32.partialorder %v591_v24, 0.0 }
0x233c   : > { %v14232_v57 = vadd.f32 %v14220_v3, %v14185_v62  ;;  %v14254_v21 = vsel %vm14238_vm8, %v14230_v28, %v14246_v14  ;;  %v14263_v45 = vsel %vm588_vm15, %v14255_v42, -1e+30 }
0x233d   : > { %vm14241_vm9 = vcmp.gt.f32.partialorder %v14233_v55, 0.0  ;;  %v14249_v27 = vmul.f32 0.2, %v14233_v55  ;;  %v14262_v4 = vsel %vm587_vm14, %v14254_v21, -1e+30  ;;  %v14281_v7 = vsel %vm1263_vm6, %v14263_v45, -inf }
0x233e   : > { %vm14240_vm2 = vcmp.gt.f32.partialorder %v14232_v57, 0.0  ;;  %v14248_v49 = vmul.f32 0.2, %v14232_v57  ;;  %v14278_v54 = vsel %vm1263_vm6, %v14262_v4, -inf }
0x233f   : > { %14273 = vmax.xlane.f32.xlu0 %v14272_v53  ;;  %14279 = vmax.xlane.f32.xlu1 %v14278_v54  ;;  %v14257_v23 = vsel %vm14241_vm9, %v14233_v55, %v14249_v27  ;;  %v22962_v27 = vld [vmem:[%s22957_s28 + $0x8] sm:$0xff]  ;;  %v595_v53 = vld [vmem:[%s22957_s28 + $0x20] sm:$0xff] }
0x2340   : > { %v14256_v43 = vsel %vm14240_vm2, %v14232_v57, %v14248_v49  ;;  %v14265_v1 = vsel %vm590_vm4, %v14257_v23, -1e+30  ;;  %v22970_v54 = vld [vmem:[%s22957_s28 + $0x28] sm:$0xff]  ;;  %vm14941_vm8 = vcmp.gt.f32.partialorder %v22962_v27, 0.0 }
0x2341   : > { %v14264_v32 = vsel %vm589_vm0, %v14256_v43, -1e+30  ;;  %v14287_v33 = vsel %vm1263_vm6, %v14265_v1, -inf  ;;  %v593_v43 = vld [vmem:[%s22957_s28 + $0x10] sm:$0xff]  ;;  %vm14945_vm2 = vcmp.gt.f32.partialorder %v22970_v54, 0.0 }
0x2342   : > { %v14284_v16 = vsel %vm1263_vm6, %v14264_v32, -inf }
0x2343   : > { %14282 = vmax.xlane.f32.xlu0 %v14281_v7  ;;  %14285 = vmax.xlane.f32.xlu1 %v14284_v16 }
0x2347   : > { %14288 = vmax.xlane.f32.xlu0 %v14287_v33 }
0x23c3   : > { %v14271_v30 = vpop.xlane.xlu1 %14270 }
0x23c4   : > { %v14291_v46 = vsub.f32 %v14259_v17, %v14271_v30  ;;  %v14268_v48 = vpop.xlane.xlu0 %14267  ;;  %v594_v30 = vld [vmem:[%s22957_s28 + $0x18] sm:$0xff] }
0x23c5   : > { %v14290_v12 = vsub.f32 %v14258_v9, %v14268_v48  ;;  %vm14943_vm9 = vcmp.gt.f32.partialorder %v594_v30, 0.0 }
0x23c6   : > { %v14300_v51 = vmul.f32 1.442695, %v14291_v46 }
0x23c7   : > { %v14298_v52 = vmul.f32 1.442695, %v14290_v12 }
0x23c8   : > { %19502 = vpow2.f32 %v14300_v51  ;;  %v14277_v60 = vpop.xlane.xlu0 %14276 }
0x23c9   : > { %19504 = vpow2.f32 %v14298_v52  ;;  %v14293_v56 = vsub.f32 %v14261_v15, %v14277_v60  ;;  %v597_v60 = vld [vmem:[%s22957_s28 + $0x30] sm:$0xff] }
0x23cb   : > { %v14304_v5 = vmul.f32 1.442695, %v14293_v56 }
0x23cc   : > { %v14274_v50 = vpop.xlane.xlu0 %14273  ;;  %v14280_v25 = vpop.xlane.xlu1 %14279 }
0x23cd   : > { %19506 = vpow2.f32 %v14304_v5  ;;  %v14292_v39 = vsub.f32 %v14260_v8, %v14274_v50  ;;  %v14294_v26 = vsub.f32 %v14262_v4, %v14280_v25 }
0x23cf   : > { %v14302_v41 = vmul.f32 1.442695, %v14292_v39  ;;  %v14306_v34 = vmul.f32 1.442695, %v14294_v26 }
0x23d0   : > { %v14283_v13 = vpop.xlane.xlu0 %14282  ;;  %v14286_v40 = vpop.xlane.xlu1 %14285 }
0x23d1   : > { %19508 = vpow2.f32 %v14302_v41  ;;  %v14295_v17 = vsub.f32 %v14263_v45, %v14283_v13  ;;  %v14296_v31 = vsub.f32 %v14264_v32, %v14286_v40  ;;  %v598_v40 = vld [vmem:[%s22957_s28 + $0x38] sm:$0xff]  ;;  %s551_s28 = sand.u32 1, %s19616_s22  }
0x23d2   : > { %v19503_v61 = vpop.eup %19502  ;;  %19510 = vpow2.f32 %v14306_v34  ;;  %s15439_s20 = sshll.u32 %s551_s28, 2  ;;  %s15339_s27 = scalar_lea.sflag [#allocation3], %s551_s28 }
0x23d3   : > { %v19505_v9 = vpop.eup %19504  ;;  %v14308_v10 = vmul.f32 1.442695, %v14295_v17  ;;  %v14310_v11 = vmul.f32 1.442695, %v14296_v31  ;;  %v22907_v0 = vsel %vm584_vm3, %v19503_v61, 0.0  ;;  %vm23614_vm3 = vcmask 7168  }
0x23d4   : > { %v14289_v35 = vpop.xlane.xlu0 %14288  ;;  %v14325_v29 = vsel %vm1263_vm6, %v22907_v0, 0.0  ;;  %v22913_v38 = vsel %vm583_vm5, %v19505_v9, 0.0  ;;  %v14796_v4 = vsel %vm23614_vm3, %v591_v24, 0.0  ;;  %vm23615_vm5 = vmmov %vm23614_vm3  ;;  %s553_s29 = scalar_lea.vmem [#allocation2], %s15439_s20  ;;  %s19568_s20 = scalar_lea.vmem %s19567_s18, 128 }
0x23d5   : > { %19512 = vpow2.f32 %v14308_v10  ;;  %v14297_v28 = vsub.f32 %v14265_v1, %v14289_v35  ;;  %14326 = vadd.xlane.f32.xlu0 %v14325_v29  ;;  %v14322_v15 = vsel %vm1263_vm6, %v22913_v38, 0.0  ;;  %v14797_v49 = vsel %vm23615_vm5, %v22962_v27, 0.0  ;;  %vm23619_vm1 = vmmov %vm23614_vm3  ;;  %s15352_s17 = sshll.u32 %s553_s29, 4  ;;  %s23309_s17 = int_to_ptr.vmem [resolvable:$true] %s15352_s17 }
0x23d6   : > { %19514 = vpow2.f32 %v14310_v11  ;;  %14323 = vadd.xlane.f32.xlu1 %v14322_v15  ;;  %v14798_v45 = vadd.f32 %v14797_v49, %v14796_v4  ;;  %v14806_v39 = vsel %vm23619_vm1, %v594_v30, 0.0  ;;  %vm23620_vm7 = vmmov %vm23619_vm1  ;;  %v14948_v15 = vsel %vm14940_vm11, 1, %v19642_v37  ;;  %s19562_s26 = scalar_lea.vmem %s23309_s17, 64  ;;  %p19569_p0 = scmp.lt.s32.totalorder %s23309_s17, %s19567_s18 }
0x23d7   : > { %v19507_v47 = vpop.eup %19506  ;;  %v14312_v59 = vmul.f32 1.442695, %v14297_v28  ;;  %v14823_v17 = vsel %vm23620_vm7, %v597_v60, 0.0  ;;  %vm23621_vm10 = vmmov %vm23619_vm1  ;;  %p19563_p11 = scmp.ne.s32.totalorder %s23309_s17, %s19562_s26  ;;  %p19570_p1 = scmp.lt.s32.totalorder %s19568_s20, %s19562_s26 }
0x23d8   : > { %v22919_v2 = vsel %vm586_vm12, %v19507_v47, 0.0  ;;  %vm23616_vm12 = vmmov %vm23614_vm3  ;;  %v14799_v16 = vrot.slane %v14798_v45, 4  ;;  %v14824_v31 = vsel %vm23621_vm10, %v598_v40, 0.0 }
0x23d9   : > { %19516 = vpow2.f32 %v14312_v59  ;;  %v14331_v36 = vsel %vm1263_vm6, %v22919_v2, 0.0  ;;  %v14814_v23 = vsel %vm23616_vm12, %v595_v53, 0.0  ;;  %v14825_v11 = vadd.f32 %v14824_v31, %v14823_v17  ;;  %v15894_v17 = vld [vmem:[%s23361_s11 + $0xa8] sm:$0xff]  ;;  %p19564_p12 = pnand %p19563_p11, %p19770_p5  ;;  %p19571_p2 = por %p19570_p1, %p19569_p0 }
0x23da   : > { %14332 = vadd.xlane.f32.xlu0 %v14331_v36  ;;  %v14800_v33 = vadd.f32 %v14799_v16, %v14798_v45  ;;  %v14949_v36 = vsel %vm14941_vm8, 1, %v19642_v37 }
0x23db   : > { %v19509_v58 = vpop.eup %19508  ;;  %v14826_v28 = vrot.slane %v14825_v11, 4  ;;  %p19565_p13 = pneg %p19564_p12 }
0x23dc   : > { %v19511_v22 = vpop.eup %19510  ;;  %v22925_v14 = vsel %vm585_vm13, %v19509_v58, 0.0  ;;  %vm23617_vm13 = vmmov %vm23614_vm3  ;;  %v14801_v48 = vrot.slane %v14800_v33, 2 }
0x23dd   : > { %v14328_v63 = vsel %vm1263_vm6, %v22925_v14, 0.0  ;;  %v22931_v6 = vsel %vm587_vm14, %v19511_v22, 0.0  ;;  %v14815_v32 = vsel %vm23617_vm13, %v22970_v54, 0.0  ;;  %vm14942_vm14 = vcmp.gt.f32.partialorder %v593_v43, 0.0  ;;  %p19572_p3 = pnand %p19571_p2, %p19565_p13 }
0x23de   : > { %14329 = vadd.xlane.f32.xlu1 %v14328_v63  ;;  %v14334_v8 = vsel %vm1263_vm6, %v22931_v6, 0.0  ;;  %v14816_v7 = vadd.f32 %v14815_v32, %v14814_v23  ;;  %v14950_v51 = vsel %vm14942_vm14, 1, %v19642_v37  ;;  %v14802_v52 = vadd.f32 %v14801_v48, %v14800_v33  ;;  %v23622_v33 = vld [vmem:[#allocation36_spill] sm:$0xff] }
0x23df   : > { %v19513_v3 = vpop.eup %19512  ;;  %v14827_v59 = vadd.f32 %v14826_v28, %v14825_v11  ;;  %v14951_v63 = vsel %vm14943_vm9, 1, %v19642_v37  ;;  %v15895_v11 = vld [vmem:[%s23361_s11 + $0xb0] sm:$0xff] }
0x23e0   : > { %v19515_v55 = vpop.eup %19514  ;;  %v22935_v62 = vsel %vm588_vm15, %v19513_v3, 0.0  ;;  %v14817_v1 = vrot.slane %v14816_v7, 4  ;;  %vm14944_vm15 = vcmp.gt.f32.partialorder %v595_v53, 0.0  ;;  %v14803_v50 = vrot.slane %v14802_v52, 1  ;;  %v15030_v28 = vld [vmem:[%s23361_s11 + $0x30] sm:$0xff] }
0x23e1   : > { %v14337_v19 = vsel %vm1263_vm6, %v22935_v62, 0.0  ;;  %v22943_v44 = vsel %vm589_vm0, %v19515_v55, 0.0  ;;  %v14952_v56 = vsel %vm14944_vm15, 1, %v19642_v37  ;;  %vm14946_vm0 = vcmp.gt.f32.partialorder %v597_v60, 0.0 }
0x23e2   : > { %14338 = vadd.xlane.f32.xlu0 %v14337_v19  ;;  %14335 = vadd.xlane.f32.xlu1 %v14334_v8  ;;  %v14340_v42 = vsel %vm1263_vm6, %v22943_v44, 0.0  ;;  %v14818_v46 = vadd.f32 %v14817_v1, %v14816_v7  ;;  %v14804_v26 = vadd.f32 %v14803_v50, %v14802_v52  ;;  %v14954_v34 = vsel %vm14946_vm0, 1, %v19642_v37 }
0x23e3   : > { %v19517_v57 = vpop.eup %19516  ;;  %v14828_v58 = vrot.slane %v14827_v59, 2  ;;  %v14953_v19 = vsel %vm14945_vm2, 1, %v19642_v37 }
0x23e4   : > { %v22947_v21 = vsel %vm590_vm4, %v19517_v57, 0.0  ;;  %v14819_v12 = vrot.slane %v14818_v46, 2  ;;  %vm23618_vm4 = vmmov %vm23614_vm3  ;;  %v14832_v61 = vmax.f32 %v14804_v26, 1.0  ;;  %vm14947_vm3 = vcmp.gt.f32.partialorder %v598_v40, 0.0 }
0x23e5   : > { %v14343_v20 = vsel %vm1263_vm6, %v22947_v21, 0.0  ;;  %v14805_v25 = vsel %vm23618_vm4, %v593_v43, 0.0  ;;  %v14829_v55 = vadd.f32 %v14828_v58, %v14827_v59  ;;  %v15897_v59 = vld [vmem:[%s23361_s11 + $0xc0] sm:$0xff] }
0x23e6   : > { %14344 = vadd.xlane.f32.xlu0 %v14343_v20  ;;  %14341 = vadd.xlane.f32.xlu1 %v14340_v42  ;;  %v14820_v5 = vadd.f32 %v14819_v12, %v14818_v46  ;;  %v14807_v13 = vadd.f32 %v14806_v39, %v14805_v25  ;;  %v14955_v20 = vsel %vm14947_vm3, 1, %v19642_v37  ;;  %v15891_v25 = vld [vmem:[%s23361_s11 + $0x90] sm:$0xff]  ;;  %v15892_v39 = vld [vmem:[%s23361_s11 + $0x98] sm:$0xff]  ;;  %v15032_v58 = vld [vmem:[%s23361_s11 + $0x40] sm:$0xff] }
0x23e7   : > { %v14830_v57 = vrot.slane %v14829_v55, 1  ;;  %v18455_v26 = vpack.c.bf16 %v15892_v39, %v15891_v25 }
0x23e8   : > { %v14821_v41 = vrot.slane %v14820_v5, 1  ;;  %v14808_v10 = vrot.slane %v14807_v13, 4 }
0x23ea   : > { %v14822_v9 = vadd.f32 %v14821_v41, %v14820_v5  ;;  %v14809_v29 = vadd.f32 %v14808_v10, %v14807_v13  ;;  %v19643_v5 = vmov 0.0|0.0   ;;  %v15026_v41 = vld [vmem:[%s23361_s11 + $0x10] sm:$0xff] }
0x23eb   : > { %18451 = vmatprep.subr.bf16.mxu0 %v19643_v5 }
0x23ec   : > { %v14834_v35 = vmax.f32 %v14822_v9, 1.0  ;;  %v14810_v47 = vrot.slane %v14809_v29, 2  ;;  %v15029_v9 = vld [vmem:[%s23361_s11 + $0x28] sm:$0xff] }
0x23ee   : > { %v14811_v22 = vadd.f32 %v14810_v47, %v14809_v29 }
0x23f0   : > { %v14812_v3 = vrot.slane %v14811_v22, 1 }
0x23f2   : > { %v14813_v8 = vadd.f32 %v14812_v3, %v14811_v22  ;;  %v15899_v3 = vld [vmem:[%s23361_s11 + $0xd0] sm:$0xff] }
0x23f4   : > { %v14833_v42 = vmax.f32 %v14813_v8, 1.0 }
0x23f7   : > { %14838 = vperm.xlu1 %19004, %v591_v24   ;;  %v14831_v24 = vadd.f32 %v14830_v57, %v14829_v55  ;;  %v15900_v55 = vld [vmem:[%s23361_s11 + $0xd8] sm:$0xff] }
0x23f8   : > { %v18467_v57 = vpack.c.bf16 %v15900_v55, %v15899_v3 }
0x23fb   : > { %14848 = vperm.xlu1 %19004, %v593_v43  }
0x23fc   : > { %14843 = vperm.xlu0 %19005, %v22962_v27   ;;  %v14835_v27 = vmax.f32 %v14831_v24, 1.0  ;;  %v15901_v24 = vld [vmem:[%s23361_s11 + $0xe0] sm:$0xff] }
0x23ff   : > { %14853 = vperm.xlu1 %19004, %v594_v30  }
0x2400   : > { %14963 = vperm.xlu0 %19005, %v14950_v51  }
0x2403   : > { %14858 = vperm.xlu1 %19004, %v595_v53  }
0x2404   : > { %14969 = vperm.xlu0 %19005, %v14952_v56  }
0x2407   : > { %14863 = vperm.xlu1 %19004, %v22970_v54  }
0x2408   : > { %14975 = vperm.xlu0 %19005, %v14954_v34   ;;  %v15027_v34 = vld [vmem:[%s23361_s11 + $0x18] sm:$0xff] }
0x2409   : > { %v18479_v13 = vpack.c.bf16 %v15027_v34, %v15026_v41 }
0x240b   : > { %14868 = vperm.xlu1 %19004, %v597_v60  }
0x240c   : > { %14914 = vperm.xlu0 %19005, %v14832_v61   ;;  %v15028_v61 = vld [vmem:[%s23361_s11 + $0x20] sm:$0xff] }
0x240d   : > { %v18482_v10 = vpack.c.bf16 %v15029_v9, %v15028_v61  ;;  %v7714_v61 = vld [vmem:[%s23360_s10] sm:$0x3] }
0x240f   : > { %14873 = vperm.xlu1 %19004, %v598_v40   ;;  %v15893_v40 = vld [vmem:[%s23361_s11 + $0xa0] sm:$0xff] }
0x2410   : > { %14924 = vperm.xlu0 %19005, %v14834_v35   ;;  %v18458_v31 = vpack.c.bf16 %v15894_v17, %v15893_v40  ;;  %v15896_v35 = vld [vmem:[%s23361_s11 + $0xb8] sm:$0xff] }
0x2411   : > { %v18461_v29 = vpack.c.bf16 %v15896_v35, %v15895_v11 }
0x2413   : > { %14957 = vperm.xlu1 %19004, %v14948_v15   ;;  %v15031_v15 = vld [vmem:[%s23361_s11 + $0x38] sm:$0xff] }
0x2414   : > { %v18485_v47 = vpack.c.bf16 %v15031_v15, %v15030_v28 }
0x2417   : > { %14960 = vperm.xlu1 %19004, %v14949_v36   ;;  %v15898_v36 = vld [vmem:[%s23361_s11 + $0xc8] sm:$0xff] }
0x2418   : > { %v18464_v22 = vpack.c.bf16 %v15898_v36, %v15897_v59 }
0x241b   : > { %14966 = vperm.xlu1 %19004, %v14951_v63   ;;  %v15033_v63 = vld [vmem:[%s23361_s11 + $0x48] sm:$0xff] }
0x241c   : > { %v18488_v8 = vpack.c.bf16 %v15033_v63, %v15032_v58 }
0x241f   : > { %14972 = vperm.xlu1 %19004, %v14953_v19   ;;  %v19645_v19 = vmov 0.0  }
0x2423   : > { %14978 = vperm.xlu1 %19004, %v14955_v20   ;;  %v15034_v20 = vld [vmem:[%s23361_s11 + $0x50] sm:$0xff] }
0x2427   : > { %14919 = vperm.xlu1 %19004, %v14833_v42   ;;  %v15035_v42 = vld [vmem:[%s23361_s11 + $0x58] sm:$0xff] }
0x242b   : > { %14929 = vperm.xlu1 %19004, %v14835_v27   ;;  %v15902_v27 = vld [vmem:[%s23361_s11 + $0xe8] sm:$0xff] }
0x2462   : > { %v14327_v4 = vpop.xlane.xlu0 %14326 }
0x2463   : > { %19518 = vrcp.f32 %v14327_v4  ;;  %v14324_v49 = vpop.xlane.xlu1 %14323  ;;  %v18491_v4 = vpack.c.bf16 %v15035_v42, %v15034_v20 }
0x2464   : > { %19520 = vrcp.f32 %v14324_v49  ;;  %v18470_v49 = vpack.c.bf16 %v15902_v27, %v15901_v24 }
0x2467   : > { %v14333_v53 = vpop.xlane.xlu0 %14332 }
0x2468   : > { %19522 = vrcp.f32 %v14333_v53  ;;  %v15036_v53 = vld [vmem:[%s23361_s11 + $0x60] sm:$0xff] }
0x246b   : > { %v14330_v54 = vpop.xlane.xlu1 %14329 }
0x246c   : > { %19524 = vrcp.f32 %v14330_v54  ;;  %v15037_v54 = vld [vmem:[%s23361_s11 + $0x68] sm:$0xff] }
0x246d   : > { %v19519_v45 = vpop.eup %19518 }
0x246e   : > { %v19521_v43 = vpop.eup %19520  ;;  %v14349_v7 = vmul.f32 %v19519_v45, %v22907_v0  ;;  %v15903_v45 = vld [vmem:[%s23361_s11 + $0xf0] sm:$0xff] }
0x246f   : > { %v14339_v23 = vpop.xlane.xlu0 %14338  ;;  %v14336_v32 = vpop.xlane.xlu1 %14335  ;;  %v14347_v37 = vmul.f32 %v19521_v43, %v22913_v38  ;;  %v15904_v43 = vld [vmem:[%s23361_s11 + $0xf8] sm:$0xff] }
0x2470   : > { %19526 = vrcp.f32 %v14339_v23  ;;  %v18494_v23 = vpack.c.bf16 %v15037_v54, %v15036_v53 }
0x2471   : > { %19528 = vrcp.f32 %v14336_v32  ;;  %17584 = vmatprep.mubr.msk.f32.mxu1 %vm1263_vm6, %v14347_v37  ;;  %v18473_v32 = vpack.c.bf16 %v15904_v43, %v15903_v45  ;;  %v15038_v37 = vld [vmem:[%s23361_s11 + $0x70] sm:$0xff] }
0x2472   : > { %17585 = vmatmul.mubr.msk.f32.vlgmr.msra.gmra.mrb[58].mxu1 %vm1263_vm6, %v14349_v7  ;;  %v19523_v30 = vpop.eup %19522  ;;  %v15039_v7 = vld [vmem:[%s23361_s11 + $0x78] sm:$0xff] }
0x2473   : > { %18442 = vmatpush3.bf16.msra.mxu1 %v23613_v18  ;;  %v14345_v16 = vpop.xlane.xlu0 %14344  ;;  %v14342_v1 = vpop.xlane.xlu1 %14341  ;;  %v14353_v0 = vmul.f32 %v19523_v30, %v22919_v2 }
0x2474   : > { %19530 = vrcp.f32 %v14345_v16  ;;  %18448 = vmatprep.subr.bf16.mxu1 %v23622_v33  ;;  %v18497_v16 = vpack.c.bf16 %v15039_v7, %v15038_v37 }
0x2475   : > { %19532 = vrcp.f32 %v14342_v1 }
0x2476   : > { %v19525_v46 = vpop.eup %19524 }
0x2477   : > { %v14351_v38 = vmul.f32 %v19525_v46, %v22925_v14  ;;  %v23131_v1 = vpop.permute.xlu1 %14838 }
0x2479   : > { %17591 = vmatprep.mubr.msk.f32.mxu1 %vm1263_vm6, %v14351_v38 }
0x247a   : > { %v19527_v48 = vpop.eup %19526  ;;  %17592 = vmatmul.mubr.msk.f32.vlgmr.msra.gmra.mrb[60].mxu1 %vm1263_vm6, %v14353_v0 }
0x247b   : > { %v19529_v12 = vpop.eup %19528  ;;  %v14357_v18 = vmul.f32 %v19527_v48, %v22935_v62  ;;  %18450 = vmatpush3.bf16.msra.mxu1 %v23622_v33  ;;  %v15889_v62 = vld [vmem:[%s23361_s11 + $0x80] sm:$0xff]  ;;  %v23133_v33 = vpop.permute.xlu1 %14848 }
0x247c   : > { %v14355_v51 = vmul.f32 %v19529_v12, %v22931_v6  ;;  %v15890_v6 = vld [vmem:[%s23361_s11 + $0x88] sm:$0xff]  ;;  %18475 = vmatprep.subr.bf16.mxu1 %v19643_v5 }
0x247d   : > { %v18452_v56 = vpack.c.bf16 %v15890_v6, %v15889_v62 }
0x247e   : > { %v19531_v52 = vpop.eup %19530  ;;  %17598 = vmatprep.mubr.msk.f32.mxu0 %vm1263_vm6, %v14355_v51 }
0x247f   : > { %v19533_v60 = vpop.eup %19532  ;;  %v14361_v14 = vmul.f32 %v19531_v52, %v22947_v21  ;;  %17599 = vmatmul.mubr.msk.f32.vlgmr.msra.gmra.mrb[64].mxu0 %vm1263_vm6, %v14357_v18  ;;  %v15025_v21 = vld [vmem:[%s23361_s11 + $0x8] sm:$0xff]  ;;  %v23135_v30 = vpop.permute.xlu1 %14853  ;;  %v15880_v18 = vld [vmem:[%s23358_s8] ss:$0 sm:$0xff] }
0x2480   : > { %v14359_v2 = vmul.f32 %v19533_v60, %v22943_v44  ;;  %18453 = vmatpush3.bf16.msra.mxu0 %v18452_v56  ;;  %v15024_v44 = vld [vmem:[%s23361_s11] sm:$0xff] }
0x2481   : > { %18454 = vmatprep.subr.bf16.mxu0 %v19643_v5  ;;  %v18476_v50 = vpack.c.bf16 %v15025_v21, %v15024_v44  ;;  %v14844_v44 = vpop.permute.xlu0 %14843 }
0x2482   : > { %17605 = vmatprep.mubr.msk.f32.mxu1 %vm1263_vm6, %v14359_v2 }
0x2483   : > { %17606 = vmatmul.mubr.msk.f32.vlgmr.msra.gmra.mrb[62].mxu1 %vm1263_vm6, %v14361_v14  ;;  %vm19644_vm6 = vmmov 0   ;;  %v23137_v46 = vpop.permute.xlu1 %14858 }
0x2484   : > { %18477 = vmatpush3.bf16.msra.mxu1 %v18476_v50  ;;  %18456 = vmatpush3.bf16.msra.mxu0 %v18455_v26 }
0x2485   : > { %18478 = vmatprep.subr.bf16.mxu1 %v19643_v5  ;;  %18457 = vmatprep.subr.bf16.mxu0 %v19643_v5 }
0x2486   : > { %17640 = vmatprep.mubr.msk.f32.mxu0 %vm19644_vm6, %v19645_v19  ;;  %17675 = vmatprep.mubr.msk.f32.mxu1 %vm19644_vm6, %v19645_v19 }
0x2487   : > { %v23139_v38 = vpop.permute.xlu1 %14863 }
0x2488   : > { %18480 = vmatpush3.bf16.msra.mxu1 %v18479_v13  ;;  %18459 = vmatpush3.bf16.msra.mxu0 %v18458_v31  ;;  %v23157_v13 = vpop.permute.xlu0 %14963 }
0x2489   : > { %18481 = vmatprep.subr.bf16.mxu1 %v19643_v5  ;;  %18460 = vmatprep.subr.bf16.mxu0 %v19643_v5  ;;  %vm14982_vm1 = vcmp.eq.s32.totalorder %v23157_v13, 1 }
0x248b   : > { %v23141_v0 = vpop.permute.xlu1 %14868 }
0x248c   : > { %18483 = vmatpush3.bf16.msra.mxu1 %v18482_v10  ;;  %18462 = vmatpush3.bf16.msra.mxu0 %v18461_v29  ;;  %v23175_v63 = vpop.permute.xlu0 %14969 }
0x248d   : > { %18484 = vmatprep.subr.bf16.mxu1 %v19643_v5  ;;  %18463 = vmatprep.subr.bf16.mxu0 %v19643_v5  ;;  %vm14984_vm10 = vcmp.eq.s32.totalorder %v23175_v63, 1 }
0x248f   : > { %v23143_v48 = vpop.permute.xlu1 %14873 }
0x2490   : > { %18486 = vmatpush3.bf16.msra.mxu1 %v18485_v47  ;;  %18465 = vmatpush3.bf16.msra.mxu0 %v18464_v22  ;;  %v23623_v47 = vld [vmem:[#allocation20_spill] sm:$0xff] }
0x2491   : > { %18487 = vmatprep.subr.bf16.mxu1 %v19643_v5  ;;  %18466 = vmatprep.subr.bf16.mxu0 %v19643_v5  ;;  %v23624_v59 = vsub.s32 0, %v23623_v47 }
0x2493   : > { %v23145_v12 = vpop.permute.xlu1 %14957  ;;  %v23172_v36 = vrot.slane %v7714_v61, %v23624_v59 }
0x2494   : > { %18489 = vmatpush3.bf16.msra.mxu1 %v18488_v8  ;;  %18468 = vmatpush3.bf16.msra.mxu0 %v18467_v57  ;;  %v23625_v57 = vsub.s32 1, %v23623_v47  ;;  %vm14980_vm14 = vcmp.eq.s32.totalorder %v23145_v12, 1 }
0x2495   : > { %18490 = vmatprep.subr.bf16.mxu1 %v19643_v5  ;;  %18469 = vmatprep.subr.bf16.mxu0 %v19643_v5 }
0x2496   : > { %v23179_v20 = vrot.slane %v7714_v61, %v23625_v57 }
0x2497   : > { %v14961_v62 = vpop.permute.xlu1 %14960 }
0x2498   : > { %18492 = vmatpush3.bf16.msra.mxu1 %v18491_v4  ;;  %18471 = vmatpush3.bf16.msra.mxu0 %v18470_v49  ;;  %vm14981_vm13 = vcmp.eq.s32.totalorder %v14961_v62, 1 }
0x2499   : > { %18493 = vmatprep.subr.bf16.mxu1 %v19643_v5  ;;  %18472 = vmatprep.subr.bf16.mxu0 %v19643_v5 }
0x249b   : > { %v23152_v26 = vpop.permute.xlu1 %14966 }
0x249c   : > { %18495 = vmatpush3.bf16.msra.mxu1 %v18494_v23  ;;  %18474 = vmatpush3.bf16.msra.mxu0 %v18473_v32  ;;  %vm14983_vm0 = vcmp.eq.s32.totalorder %v23152_v26, 1 }
0x249d   : > { %18496 = vmatprep.subr.bf16.mxu1 %v19643_v5  ;;  %18499 = vmatprep.subr.bf16.mxu0 %v19643_v5 }
0x249f   : > { %v23167_v29 = vpop.permute.xlu1 %14972 }
0x24a0   : > { %18498 = vmatpush3.bf16.msra.mxu1 %v18497_v16  ;;  %vm14985_vm11 = vcmp.eq.s32.totalorder %v23167_v29, 1 }
0x24a3   : > { %v23187_v23 = vpop.permute.xlu1 %14978 }
0x24a4   : > { %vm14987_vm9 = vcmp.eq.s32.totalorder %v23187_v23, 1 }
0x24a7   : > { %v14920_v62 = vpop.permute.xlu1 %14919 }
0x2545   : > { %v17586_v51 = vpop.f32.mrb[58].mxu1 }
0x2546   : > { %v14717_v52 = vadd.f32 %v17586_v51, %v15880_v18  ;;  %v14449_v60 = vpop.f32.mrb[59].mxu1 }
0x2547   : > { %v14716_v14 = vadd.f32 %v15880_v18, %v14449_v60 }
0x2548   : > { %v14733_v2 = vmin.f32 %v14717_v52, 0.0  ;;  %vm14725_vm5 = vcmp.gt.f32.partialorder %v14717_v52, 0.0 }
0x2549   : > { %v14732_v6 = vmin.f32 %v14716_v14, 0.0  ;;  %vm14724_vm12 = vcmp.gt.f32.partialorder %v14716_v14, 0.0 }
0x254a   : > { %v14742_v56 = vmul.f32 1.442695, %v14733_v2 }
0x254b   : > { %v14740_v21 = vmul.f32 1.442695, %v14732_v6 }
0x254c   : > { %19534 = vpow2.f32 %v14742_v56 }
0x254d   : > { %19536 = vpow2.f32 %v14740_v21  ;;  %v17593_v50 = vpop.f32.mrb[60].mxu1 }
0x254e   : > { %v23150_v25 = vadd.f32 %v17593_v50, %v15880_v18  ;;  %v14530_v39 = vpop.f32.mrb[61].mxu1 }
0x254f   : > { %v23154_v41 = vadd.f32 %v15880_v18, %v14530_v39 }
0x2550   : > { %v14735_v34 = vmin.f32 %v23150_v25, 0.0  ;;  %vm14727_vm15 = vcmp.gt.f32.partialorder %v23150_v25, 0.0 }
0x2551   : > { %v14734_v40 = vmin.f32 %v23154_v41, 0.0  ;;  %vm14726_vm4 = vcmp.gt.f32.partialorder %v23154_v41, 0.0 }
0x2552   : > { %v14746_v17 = vmul.f32 1.442695, %v14735_v34  ;;  %v17600_v31 = vpop.f32.mrb[64].mxu0 }
0x2553   : > { %v14744_v9 = vmul.f32 1.442695, %v14734_v40  ;;  %v23163_v10 = vadd.f32 %v17600_v31, %v15880_v18  ;;  %v14611_v11 = vpop.f32.mrb[65].mxu0 }
0x2554   : > { %19538 = vpow2.f32 %v14746_v17  ;;  %v23165_v35 = vadd.f32 %v15880_v18, %v14611_v11 }
0x2555   : > { %19540 = vpow2.f32 %v14744_v9  ;;  %v14737_v28 = vmin.f32 %v23163_v10, 0.0  ;;  %vm14729_vm7 = vcmp.gt.f32.partialorder %v23163_v10, 0.0 }
0x2556   : > { %v19535_v15 = vpop.eup %19534  ;;  %v14736_v58 = vmin.f32 %v23165_v35, 0.0  ;;  %v17607_v22 = vpop.f32.mrb[62].mxu1  ;;  %vm14728_vm8 = vcmp.gt.f32.partialorder %v23165_v35, 0.0 }
0x2557   : > { %v19537_v3 = vpop.eup %19536  ;;  %v15882_v55 = vadd.f32 -1.0, %v19535_v15  ;;  %v14750_v8 = vmul.f32 1.442695, %v14737_v28  ;;  %v23181_v42 = vadd.f32 %v17607_v22, %v15880_v18  ;;  %v14692_v24 = vpop.f32.mrb[63].mxu1 }
0x2558   : > { %v15881_v27 = vadd.f32 -1.0, %v19537_v3  ;;  %v14748_v4 = vmul.f32 1.442695, %v14736_v58  ;;  %v23183_v49 = vadd.f32 %v15880_v18, %v14692_v24  ;;  %v23192_v18 = vpop.permute.xlu0 %14975 }
0x2559   : > { %v14765_v53 = vsel %vm14725_vm5, %v14717_v52, %v15882_v55  ;;  %19542 = vpow2.f32 %v14750_v8  ;;  %v14739_v54 = vmin.f32 %v23181_v42, 0.0  ;;  %vm14731_vm2 = vcmp.gt.f32.partialorder %v23181_v42, 0.0 }
0x255a   : > { %v14764_v45 = vsel %vm14724_vm12, %v14716_v14, %v15881_v27  ;;  %v14777_v43 = vmul.f32 %v23172_v36, %v14765_v53  ;;  %19544 = vpow2.f32 %v14748_v4  ;;  %v14738_v7 = vmin.f32 %v23183_v49, 0.0 }
0x255b   : > { %v14776_v32 = vmul.f32 %v23172_v36, %v14764_v45  ;;  %v14754_v37 = vmul.f32 1.442695, %v14739_v54  ;;  %vm14730_vm3 = vcmp.gt.f32.partialorder %v23183_v49, 0.0  ;;  %vm14986_vm5 = vcmp.eq.s32.totalorder %v23192_v18, 1 }
0x255c   : > { %v14789_v16 = vadd.f32 %v23179_v20, %v14777_v43  ;;  %v14752_v52 = vmul.f32 1.442695, %v14738_v7  ;;  %v14915_v31 = vpop.permute.xlu0 %14914  ;;  %vm15061_vm12 = vcmask 1041409  }
0x255d   : > { %v14788_v51 = vadd.f32 %v23179_v20, %v14776_v32  ;;  %19546 = vpow2.f32 %v14754_v37 }
0x255e   : > { %v19539_v60 = vpop.eup %19538  ;;  %v14877_v14 = vmul.f32 %v14844_v44, %v14789_v16  ;;  %v14989_v2 = vsel %vm14981_vm13, %v14789_v16, -1e+30  ;;  %19548 = vpow2.f32 %v14752_v52  ;;  %vm15063_vm13 = vcmask 1042434  }
0x255f   : > { %v19541_v6 = vpop.eup %19540  ;;  %v15884_v56 = vadd.f32 -1.0, %v19539_v60  ;;  %v14876_v21 = vmul.f32 %v23131_v1, %v14788_v51  ;;  %v14988_v50 = vsel %vm14980_vm14, %v14788_v51, -1e+30  ;;  %19550 = vrcp.f32 %v14920_v62 }
0x2560   : > { %v15883_v39 = vadd.f32 -1.0, %v19541_v6  ;;  %v14996_v34 = vmax.f32 %v14988_v50, %v14989_v2  ;;  %19552 = vrcp.f32 %v14915_v31  ;;  %vm15065_vm14 = vcmask 1043459  }
0x2561   : > { %v14767_v40 = vsel %vm14727_vm15, %v23150_v25, %v15884_v56  ;;  %v14884_v12 = vadd.f32 %v14877_v14, %v14876_v21  ;;  %vm15245_vm15 = vcmask 818176  }
0x2562   : > { %v14779_v44 = vmul.f32 %v23172_v36, %v14767_v40  ;;  %v14766_v17 = vsel %vm14726_vm4, %v23154_v41, %v15883_v39  ;;  %v14997_v1 = vrot.slane %v14996_v34, 4 }
0x2563   : > { %v19543_v61 = vpop.eup %19542  ;;  %v14885_v9 = vrot.slane %v14884_v12, 4  ;;  %v14778_v11 = vmul.f32 %v23172_v36, %v14766_v17 }
0x2564   : > { %v19545_v28 = vpop.eup %19544  ;;  %v15886_v25 = vadd.f32 -1.0, %v19543_v61  ;;  %v14998_v15 = vmax.f32 %v14996_v34, %v14997_v1  ;;  %v14791_v47 = vadd.f32 %v23179_v20, %v14779_v44 }
0x2565   : > { %v14886_v41 = vadd.f32 %v14885_v9, %v14884_v12  ;;  %v15885_v59 = vadd.f32 -1.0, %v19545_v28  ;;  %v14790_v58 = vadd.f32 %v23179_v20, %v14778_v11 }
0x2566   : > { %v14769_v22 = vsel %vm14729_vm7, %v23163_v10, %v15886_v25  ;;  %v14999_v3 = vrot.slane %v14998_v15, 2  ;;  %v14879_v55 = vmul.f32 %v23135_v30, %v14791_v47  ;;  %v14991_v8 = vsel %vm14983_vm0, %v14791_v47, -1e+30  ;;  %v14930_v47 = vpop.permute.xlu1 %14929 }
0x2567   : > { %v19547_v57 = vpop.eup %19546  ;;  %v14781_v24 = vmul.f32 %v23172_v36, %v14769_v22  ;;  %v14887_v27 = vrot.slane %v14886_v41, 2  ;;  %v14768_v4 = vsel %vm14728_vm8, %v23165_v35, %v15885_v59  ;;  %v14878_v53 = vmul.f32 %v23133_v33, %v14790_v58 }
0x2568   : > { %v15888_v54 = vadd.f32 -1.0, %v19547_v57  ;;  %v14990_v10 = vsel %vm14982_vm1, %v14790_v58, -1e+30  ;;  %v14780_v30 = vmul.f32 %v23172_v36, %v14768_v4  ;;  %v19549_v26 = vpop.eup %19548  ;;  %v15000_v16 = vmax.f32 %v14998_v15, %v14999_v3 }
0x2569   : > { %v14888_v45 = vadd.f32 %v14887_v27, %v14886_v41  ;;  %v14891_v43 = vadd.f32 %v14879_v55, %v14878_v53  ;;  %v15003_v32 = vmax.f32 %v14990_v10, %v14991_v8  ;;  %v14793_v37 = vadd.f32 %v23179_v20, %v14781_v24  ;;  %v19551_v60 = vpop.eup %19550 }
0x256a   : > { %v14771_v7 = vsel %vm14731_vm2, %v23181_v42, %v15888_v54  ;;  %v15887_v35 = vadd.f32 -1.0, %v19549_v26  ;;  %v14792_v33 = vadd.f32 %v23179_v20, %v14780_v30  ;;  %v19553_v42 = vpop.eup %19552  ;;  %v15001_v12 = vrot.slane %v15000_v16, 1 }
0x256b   : > { %v14783_v51 = vmul.f32 %v23172_v36, %v14771_v7  ;;  %v14892_v13 = vrot.slane %v14891_v43, 4  ;;  %v15004_v52 = vrot.slane %v15003_v32, 4  ;;  %v14881_v6 = vmul.f32 %v23139_v38, %v14793_v37 }
0x256c   : > { %v14770_v14 = vsel %vm14730_vm3, %v23183_v49, %v15887_v35  ;;  %v14880_v2 = vmul.f32 %v23137_v46, %v14792_v33  ;;  %v14889_v56 = vrot.slane %v14888_v45, 1  ;;  %v14992_v39 = vsel %vm14984_vm10, %v14792_v33, -1e+30  ;;  %v14925_v46 = vpop.permute.xlu0 %14924 }
0x256d   : > { %v14893_v21 = vadd.f32 %v14892_v13, %v14891_v43  ;;  %v15005_v50 = vmax.f32 %v15003_v32, %v15004_v52  ;;  %v14993_v62 = vsel %vm14985_vm11, %v14793_v37, -1e+30  ;;  %v14782_v40 = vmul.f32 %v23172_v36, %v14770_v14  ;;  %v15225_v13 = vld [vmem:[%s23363_s13] sm:$0xff]  ;;  %v15226_v52 = vld [vmem:[%s23363_s13 + $0x8] sm:$0xff] }
0x256e   : > { %v14898_v34 = vadd.f32 %v14881_v6, %v14880_v2  ;;  %v14795_v49 = vadd.f32 %v23179_v20, %v14783_v51  ;;  %v15010_v17 = vmax.f32 %v14992_v39, %v14993_v62  ;;  %19554 = vrcp.f32 %v14925_v46  ;;  %v15227_v39 = vld [vmem:[%s23363_s13 + $0x10] sm:$0xff] }
0x256f   : > { %v14894_v38 = vrot.slane %v14893_v21, 2  ;;  %v15006_v44 = vrot.slane %v15005_v50, 2  ;;  %v14794_v31 = vadd.f32 %v23179_v20, %v14782_v40  ;;  %v14890_v36 = vadd.f32 %v14889_v56, %v14888_v45 }
0x2570   : > { %v14899_v1 = vrot.slane %v14898_v34, 4  ;;  %v14883_v61 = vmul.f32 %v23143_v48, %v14795_v49  ;;  %v14995_v63 = vsel %vm14987_vm9, %v14795_v49, -1e+30  ;;  %v15011_v11 = vrot.slane %v15010_v17, 4 }
0x2571   : > { %v14895_v9 = vadd.f32 %v14894_v38, %v14893_v21  ;;  %v15007_v29 = vmax.f32 %v15005_v50, %v15006_v44  ;;  %v14882_v25 = vmul.f32 %v23141_v0, %v14794_v31  ;;  %v14994_v15 = vsel %vm14986_vm5, %v14794_v31, -1e+30  ;;  %v15230_v38 = vld [vmem:[%s23363_s13 + $0x28] sm:$0xff] }
0x2572   : > { %v14900_v28 = vadd.f32 %v14899_v1, %v14898_v34  ;;  %v15012_v20 = vmax.f32 %v15010_v17, %v15011_v11  ;;  %v15017_v58 = vmax.f32 %v14994_v15, %v14995_v63  ;;  %v15002_v48 = vmax.f32 %v15000_v16, %v15001_v12  ;;  %v15228_v34 = vld [vmem:[%s23363_s13 + $0x18] sm:$0xff]  ;;  %v15229_v12 = vld [vmem:[%s23363_s13 + $0x20] sm:$0xff]  ;;  %v15231_v17 = vld [vmem:[%s23363_s13 + $0x30] sm:$0xff] }
0x2573   : > { %v14896_v41 = vrot.slane %v14895_v9, 1  ;;  %v15008_v59 = vrot.slane %v15007_v29, 1  ;;  %v14905_v23 = vadd.f32 %v14883_v61, %v14882_v25  ;;  %19556 = vrcp.f32 %v14930_v47  ;;  %v15232_v1 = vld [vmem:[%s23363_s13 + $0x38] sm:$0xff]  ;;  %v15233_v61 = vld [vmem:[%s23363_s13 + $0x40] sm:$0xff]  ;;  %v15234_v63 = vld [vmem:[%s23363_s13 + $0x48] sm:$0xff] }
0x2574   : > { %v14901_v22 = vrot.slane %v14900_v28, 2  ;;  %v15013_v8 = vrot.slane %v15012_v20, 2  ;;  %v15018_v57 = vrot.slane %v15017_v58, 4  ;;  %v14933_v0 = vmul.f32 %v19553_v42, %v14890_v36  ;;  %v15236_v11 = vld [vmem:[%s23363_s13 + $0x58] sm:$0xff]  ;;  %v15905_v47 = vld [vmem:[%s23362_s12] ss:$0 sm:$0xff] }
0x2575   : > { %v14897_v3 = vadd.f32 %v14896_v41, %v14895_v9  ;;  %v15009_v55 = vmax.f32 %v15007_v29, %v15008_v59  ;;  %v14906_v27 = vrot.slane %v14905_v23, 4  ;;  %v18500_v56 = vpack.c.bf16 %v15226_v52, %v15225_v13  ;;  %v15235_v29 = vld [vmem:[%s23363_s13 + $0x50] sm:$0xff] }
0x2576   : > { %v14902_v24 = vadd.f32 %v14901_v22, %v14900_v28  ;;  %v15014_v4 = vmax.f32 %v15012_v20, %v15013_v8  ;;  %v15019_v18 = vmax.f32 %v15017_v58, %v15018_v57  ;;  %v18503_v49 = vpack.c.bf16 %v15228_v34, %v15227_v39  ;;  %v15237_v28 = vld [vmem:[%s23363_s13 + $0x60] sm:$0xf] }
0x2577   : > { %v15062_v53 = vsel %vm15061_vm12, %v15009_v55, %v15002_v48  ;;  %v14935_v54 = vmul.f32 %v19551_v60, %v14897_v3  ;;  %v14907_v30 = vadd.f32 %v14906_v27, %v14905_v23  ;;  %v18506_v44 = vpack.c.bf16 %v15230_v38, %v15229_v12 }
0x2578   : > { %v14903_v10 = vrot.slane %v14902_v24, 1  ;;  %v15015_v26 = vrot.slane %v15014_v4, 1  ;;  %v15020_v45 = vrot.slane %v15019_v18, 2  ;;  %v19555_v7 = vpop.eup %19554  ;;  %v18509_v31 = vpack.c.bf16 %v15232_v1, %v15231_v17 }
0x2579   : > { %v15142_v43 = vsel %vm15061_vm12, %v14935_v54, %v14933_v0  ;;  %v14908_v32 = vrot.slane %v14907_v30, 2  ;;  %v18512_v9 = vpack.c.bf16 %v15234_v63, %v15233_v61  ;;  %v18515_v36 = vpack.c.bf16 %v15236_v11, %v15235_v29 }
0x257a   : > { %v14904_v37 = vadd.f32 %v14903_v10, %v14902_v24  ;;  %v15016_v35 = vmax.f32 %v15014_v4, %v15015_v26  ;;  %v15021_v33 = vmax.f32 %v15019_v18, %v15020_v45  ;;  %vm15323_vm0 = vcmask 44032  }
0x257b   : > { %v14909_v16 = vadd.f32 %v14908_v32, %v14907_v30 }
0x257c   : > { %v14937_v51 = vmul.f32 %v19555_v7, %v14904_v37  ;;  %v15022_v60 = vrot.slane %v15021_v33, 1  ;;  %v15064_v14 = vsel %vm15063_vm13, %v15016_v35, %v15062_v53 }
0x257d   : > { %v14910_v2 = vrot.slane %v14909_v16, 1  ;;  %v19557_v21 = vpop.eup %19556 }
0x257e   : > { %v15143_v6 = vsel %vm15063_vm13, %v14937_v51, %v15142_v43  ;;  %v15023_v42 = vmax.f32 %v15021_v33, %v15022_v60 }
0x257f   : > { %v14911_v50 = vadd.f32 %v14910_v2, %v14909_v16 }
0x2580   : > { %v15066_v62 = vsel %vm15065_vm14, %v15023_v42, %v15064_v14 }
0x2581   : > { %17641 = vmatmul.mubr.f32.vlgmr.msra.gmra.mrb[96].mxu0 %v15066_v62  ;;  %v14939_v40 = vmul.f32 %v19557_v21, %v14911_v50 }
0x2582   : > { %18501 = vmatpush3.bf16.msra.mxu0 %v18500_v56  ;;  %17704 = vmatprep.mubr.msk.f32.mxu0 %vm19644_vm6, %v19645_v19  ;;  %vm15249_vm6 = vcmask 1043456  }
0x2583   : > { %v15144_v46 = vsel %vm15065_vm14, %v14939_v40, %v15143_v6  ;;  %18502 = vmatprep.subr.bf16.mxu0 %v19643_v5 }
0x2584   : > { %17676 = vmatmul.mubr.f32.vlgmr.msra.gmra.mrb[82].mxu1 %v15144_v46 }
0x2586   : > { %18504 = vmatpush3.bf16.msra.mxu0 %v18503_v49 }
0x2587   : > { %18505 = vmatprep.subr.bf16.mxu0 %v19643_v5 }
0x258a   : > { %18507 = vmatpush3.bf16.msra.mxu0 %v18506_v44 }
0x258b   : > { %18508 = vmatprep.subr.bf16.mxu0 %v19643_v5 }
0x258e   : > { %18510 = vmatpush3.bf16.msra.mxu0 %v18509_v31 }
0x258f   : > { %18511 = vmatprep.subr.bf16.mxu0 %v19643_v5 }
0x2592   : > { %18513 = vmatpush3.bf16.msra.mxu0 %v18512_v9 }
0x2593   : > { %18514 = vmatprep.subr.bf16.mxu0 %v19643_v5 }
0x2596   : > { %18516 = vmatpush3.bf16.msra.mxu0 %v18515_v36 }
0x2597   : > { %17702 = vmatprep.subr.mxu0 %v19645_v19  ;;  %v15906_v19 = vld [vmem:[%s23364_s14] ss:$0 sm:$0xff] }
0x259a   : > { %17703 = vmatpush3.msk.msra.mxu0 %vm15249_vm6, %v15237_v28 }
0x2654   : > { %v15134_v25 = vpop.f32.mrb[96].mxu0 }
0x2655   : > { %v17642_v5 = vpop.f32.mrb[97].mxu0 }
0x2657   : > { %v15212_v15 = vpop.f32.mrb[82].mxu1 }
0x2658   : > { %v15213_v41 = vadd.f32 %v15212_v15, %v15134_v25  ;;  %v17677_v59 = vpop.f32.mrb[83].mxu1 }
0x265a   : > { %v15223_v20 = vadd.f32 %v15905_v47, %v15213_v41 }
0x265c   : > { %v15224_v58 = vmax.f32 %v15223_v20, 0.0 }
0x265e   : > { %17705 = vmatmul.mubr.msk.f32.vlgmr.msra.gmra.mrb[98].mxu0 %vm15245_vm15, %v15224_v58 }
0x2731   : > { %v15319_v48 = vpop.f32.mrb[98].mxu0 }
0x2732   : > { %v15320_v22 = vadd.f32 %v15906_v19, %v15319_v48  ;;  %v17706_v23 = vpop.f32.mrb[99].mxu0 }
0x2734   : > { %v15324_v3 = vsel %vm15323_vm0, %v15320_v22, -inf }
0x2735   : > { %15325 = vmax.xlane.f32.xlu0 %v15324_v3 }
0x27c2   : > { %v15326_v55 = vpop.xlane.xlu0 %15325 }
0x27c3   : > { %v15327_v8 = vsub.f32 %v15320_v22, %v15326_v55 }
0x27c5   : > { %v15328_v57 = vmul.f32 1.442695, %v15327_v8 }
0x27c7   : > { %19558 = vpow2.f32 %v15328_v57 }
0x27d1   : > { %v19559_v24 = vpop.eup %19558 }
0x27d2   : > { %v15330_v27 = vsel %vm15323_vm0, %v19559_v24, 0.0 }
0x27d3   : > { %15331 = vadd.xlane.f32.xlu1 %v15330_v27 }
0x2860   : > { %v15332_v0 = vpop.xlane.xlu1 %15331 }
0x2861   : > { %19560 = vlog2.f32 %v15332_v0 }
0x286b   : > { %v19561_v4 = vpop.eup %19560 }
0x286c   : > { %v15334_v18 = vmul.f32 0.6931472, %v19561_v4 }
0x286e   : > { %v15335_v53 = vadd.f32 %v15334_v18, %v15326_v55 }
0x2870   : > { %v15336_v54 = vsub.f32 %v15320_v22, %v15335_v53 }
0x2872   : > { %15337 = vst.msk [vmem:[%s553_s29] sm:$0xf] %vm15323_vm0, %v15336_v54 }
0x2873   : > { %19575 = shalt.err (!%p19572_p3)
}
0x2874   : > { %s19576_s28 = scalar_lea.hbm %s23307_s23, 64  ;;  %s19580_s21 = scalar_lea.hbm %s23366_s16, 128 }
0x2875   : > { %p19577_p4 = scmp.ne.s32.totalorder %s23307_s23, %s19576_s28  ;;  %p19581_p9 = scmp.lt.u32.totalorder %s23307_s23, %s23366_s16 }
0x2876   : > { %p19582_p10 = scmp.lt.u32.totalorder %s19580_s21, %s19576_s28  ;;  %p19584_p12 = scmp.lt.u32.totalorder %s19576_s28, %s23307_s23 }
0x2877   : > { %p19578_p7 = pnand %p19577_p4, %p19770_p5 }
0x2878   : > { %p19583_p11 = por %p19582_p10, %p19581_p9 }
0x2879   : > { %p19579_p8 = pneg %p19578_p7 }
0x287a   : > { %p19585_p13 = por %p19584_p12, %p19583_p11 }
0x287c   : > { %p19586_p0 = pnand %p19585_p13, %p19579_p8 }
0x287e   : > { %19589 = shalt.err (!%p19586_p0)
}
0x287f   : > { %18629 = dma.vmem_to_hbm [thread:$0]  (%p19770_p5), %s23309_s17, 64, %s23307_s23, %s15339_s27  }
0x2880 PF: > { %s23626_s26 = sld [smem:[#allocation5_spill]]  ;;  %p18635_p1 = scmp.ge.s32.totalorder %s19624_s24, 2 }
0x2882   : > { %p18632_p2 = pnand %p18635_p1, %p19774_p6 }
0x2886   : > { %s15364_s20 = sand.u32 1, %s23626_s26  }
0x2887   : > { %s15365_s19 = scalar_lea.sflag [#allocation3], %s15364_s20 }
0x2888   : > { %19607 = dma.done.wait (!%p18632_p2), %s15365_s19, 64  }
0x2889   : > { %19609 = vsyncadd (!%p18632_p2), %s15365_s19, 4294967232  ;;  %s23628_s24 = sld [smem:[#allocation7_spill]]  ;;  %s23629_s28 = sld [smem:[#allocation6_spill]] }
0x288a   : > { %s23630_s23 = sld [smem:[#allocation8_spill]]  ;;  %s23631_s21 = smov %s19616_s22 }
0x288f   : > { %p26_p3 = scmp.ge.s32.totalorder %s23628_s24, 4   ;;  %s23632_s22 = smov %s23629_s28 }
0x2891   :  { %28 = sbr.rel (!%p26_p3) target bundleno = 5 (0x5), region = 133 }
0x2898   :  { %15370 = vsyncpa [#allocation3], 1 }
0x2899   :  { %15372 = vsyncpa [#allocation3 + $0x1], 1 }

</bundles_post_ra>
